<compile_context>
chip_gen: v7x
topology: tpu7x:2x2x1
jax: 0.10.0
libtpu: 0.0.40
codegen_flags: <defaults>
</compile_context>

<pallas_src>
import functools

import jax
import jax.numpy as jnp
from jax.experimental import pallas as pl
from jax.experimental.pallas import tpu as pltpu

F32 = jnp.float32
BF16 = jnp.bfloat16


def _round_up(x, m):
    return ((x + m - 1) // m) * m


def _pick_row_tile(M):
    """Largest row tile (<=1024) dividing M, preferring >=2 tiles so megacore has work on both cores."""
    cands = (1024, 512, 256, 128, 64, 32, 16, 8)
    for t in cands:
        if M % t == 0 and M // t >= 2:
            return t
    for t in cands:
        if M % t == 0:
            return t
    return None


# ----------------------------- Pallas kernels -----------------------------

def _offset_conv_stats_kernel(xpad_ref, w_ref, off_ref, stats_ref):
    """3x3 conv (pad=1, no bias) as ONE MXU matmul over an in-VMEM lane-concatenated patch,
    with the SpatialAttention channel mean/max fused in.

    xpad_ref: (1, H+2, W+2, Cin) bf16      w_ref: (Cin*9, N) bf16  (row = tap*Cin + c)
    off_ref:  (1, H, W, N) f32             stats_ref: (1, H, W, 2) f32
    """
    _, H, W, N = off_ref.shape
    C = xpad_ref.shape[3]
    taps = []
    for t in range(9):                                     # unrolled: shifted views, no HBM im2col
        dy, dx = t // 3, t % 3
        # concat in f32 (32-bit minor-dim concat), cast back to bf16 for the MXU
        taps.append(xpad_ref[0, dy:dy + H, dx:dx + W, :].reshape(H * W, C).astype(jnp.float32))
    patch = jnp.concatenate(taps, axis=-1).astype(BF16)    # (H*W, Cin*9) in VMEM
    acc = jnp.dot(patch, w_ref[...], preferred_element_type=jnp.float32)   # single K=Cin*9 matmul
    off_ref[0] = acc.reshape(H, W, N)
    stats_ref[0] = jnp.concatenate(
        [jnp.mean(acc, axis=-1, keepdims=True),
         jnp.max(acc, axis=-1, keepdims=True)], axis=-1).reshape(H, W, 2)


def _sa_conv_kernel(w_sa_ref, sp_ref, gate_ref):
    """SpatialAttention 7x7 conv(2->1) + sigmoid on the VPU, W on the lane dim (lane-dense taps).

    w_sa_ref: (98,) f32 in SMEM (tap-major, channel-minor)
    sp_ref:   (1, 2, H+6, W+6) f32 (zero-padded channel-plane stats: plane 0 = mean, plane 1 = max)
    gate_ref: (1, H, W) f32
    """
    _, H, W = gate_ref.shape
    att = jnp.zeros((H, W), jnp.float32)
    for t in range(49):                                    # N=1 conv -> VPU multiply-add, never the MXU
        dy, dx = t // 7, t % 7
        att = (att
               + sp_ref[0, 0, dy:dy + H, dx:dx + W] * w_sa_ref[2 * t]
               + sp_ref[0, 1, dy:dy + H, dx:dx + W] * w_sa_ref[2 * t + 1])
    gate_ref[0] = jax.nn.sigmoid(att)


def _gate_chunk_kernel(off_ref, gate_ref, offset_ref, mask_ref):
    """Apply the spatial-attention gate, chunk(3) -> offset = cat(o1,o2), mask = sigmoid(o3).

    off_ref: (1, H, W, 216) f32   gate_ref: (1, H, W, 1) f32
    offset_ref: (1, H, W, 144) f32   mask_ref: (1, H, W, 72) f32
    """
    n_off = offset_ref.shape[3]
    gate = gate_ref[0]                                     # (H, W, 1), lane-broadcast across channels
    off = off_ref[0]
    offset_ref[0] = off[:, :, :n_off] * gate
    mask_ref[0] = jax.nn.sigmoid(off[:, :, n_off:] * gate)


def _deform_pointwise_kernel(val_ref, wbd_ref, bd_ref, wp_ref, bp_ref, o_ref):
    """Grouped deform contraction (block-diagonal weight) + bias + fused ReLU + pointwise 1x1 (+bias).

    val_ref: (tm, Cin*9) bf16 (already modulated)   wbd_ref: (Cin*9, Cout) bf16 block-diagonal
    bd_ref: (1, Cout) f32   wp_ref: (Cout, Cp) bf16   bp_ref: (1, Cp) f32   o_ref: (tm, Cp) f32
    """
    feat = jnp.dot(val_ref[...], wbd_ref[...], preferred_element_type=jnp.float32) + bd_ref[...]
    h = jnp.maximum(feat, 0.0).astype(wp_ref.dtype)        # act_layer = ReLU, fused
    o_ref[...] = jnp.dot(h, wp_ref[...], preferred_element_type=jnp.float32) + bp_ref[...]


# ----------------------------- JAX glue -----------------------------

def _deform_gather(x_nhwc, offset_map, mask_map, n_groups, kh=3, kw=3, pad=1):
    """Bilinear sampling + modulation of the deformable conv (torchvision DCNv2 semantics).

    Returns (M, Cin*kh*kw) with column layout (channel-major, tap-minor): col = c*K + k, ready for the
    block-diagonal Pallas matmul (no post-gather transpose of the big tensor).
    # TODO(synk): the data-dependent bilinear gather has no clean Pallas equivalent; kept in JAX/XLA.
    """
    B, H, W, C = x_nhwc.shape
    G = n_groups
    cg = C // G
    K = kh * kw
    off = offset_map.reshape(B, H, W, G, K, 2)
    dy, dx = off[..., 0], off[..., 1]
    msk = mask_map.reshape(B, H, W, G, K)

    def to_chan(a):  # (B,H,W,G,K) -> (B,H,W,C,K), channels of a group are contiguous
        return jnp.broadcast_to(a[:, :, :, :, None, :], (B, H, W, G, cg, K)).reshape(B, H, W, C, K)

    dy_c, dx_c, m_c = to_chan(dy), to_chan(dx), to_chan(msk)

    ys = jnp.arange(H, dtype=F32).reshape(1, H, 1, 1, 1)
    xs = jnp.arange(W, dtype=F32).reshape(1, 1, W, 1, 1)
    ki = (jnp.arange(K) // kw).astype(F32).reshape(1, 1, 1, 1, K)
    kj = (jnp.arange(K) % kw).astype(F32).reshape(1, 1, 1, 1, K)
    py = ys - pad + ki + dy_c                              # (B,H,W,C,K)
    px = xs - pad + kj + dx_c

    valid = (py > -1.0) & (py < float(H)) & (px > -1.0) & (px < float(W))
    y0 = jnp.floor(py)
    x0 = jnp.floor(px)
    ly, lx = py - y0, px - x0
    hy, hx = 1.0 - ly, 1.0 - lx
    y0i = y0.astype(jnp.int32)
    x0i = x0.astype(jnp.int32)
    y1i, x1i = y0i + 1, x0i + 1

    xf = x_nhwc.reshape(B, H * W * C)
    cidx = jnp.arange(C, dtype=jnp.int32).reshape(1, 1, 1, C, 1)

    def corner(yi, xi, wgt):
        ok = valid & (yi >= 0) & (yi <= H - 1) & (xi >= 0) & (xi <= W - 1)
        flat = (jnp.clip(yi, 0, H - 1) * W + jnp.clip(xi, 0, W - 1)) * C + cidx
        v = jax.vmap(lambda f, i: f[i])(xf, flat)          # (B,H,W,C,K)
        return v * (wgt * ok.astype(F32))

    val = (corner(y0i, x0i, hy * hx) + corner(y0i, x1i, hy * lx)
           + corner(y1i, x0i, ly * hx) + corner(y1i, x1i, ly * lx))
    val = val * m_c                                        # modulation folded into the gather output
    return val.reshape(B * H * W, C * K)


# ----------------------------- SepConv2d forward -----------------------------

def sep_conv2d_forward(x_nchw, params):
    B, Cin, H, W = x_nchw.shape
    x_nhwc = jnp.transpose(x_nchw, (0, 2, 3, 1)).astype(F32)
    M = B * H * W

    # 1) offset_conv1 (3x3, pad=1, no bias) + fused channel mean/max — one MXU matmul per batch tile.
    w_off = params["w_offset_conv"]                                    # (216, Cin, 3, 3)
    N_off = w_off.shape[0]
    xpad = jnp.pad(x_nhwc, ((0, 0), (1, 1), (1, 1), (0, 0))).astype(BF16)
    w_off_k = jnp.transpose(w_off, (2, 3, 1, 0)).reshape(9 * Cin, N_off).astype(BF16)  # row = tap*Cin + c
    off, stats = pl.pallas_call(
        _offset_conv_stats_kernel,
        out_shape=(jax.ShapeDtypeStruct((B, H, W, N_off), F32),
                   jax.ShapeDtypeStruct((B, H, W, 2), F32)),
        grid=(B,),
        in_specs=[pl.BlockSpec((1, H + 2, W + 2, Cin), lambda b: (b, 0, 0, 0)),
                  pl.BlockSpec((9 * Cin, N_off), lambda b: (0, 0))],
        out_specs=(pl.BlockSpec((1, H, W, N_off), lambda b: (b, 0, 0, 0)),
                   pl.BlockSpec((1, H, W, 2), lambda b: (b, 0, 0, 0))),
        compiler_params=pltpu.CompilerParams(dimension_semantics=("parallel",)),
    )(xpad, w_off_k)

    # 2) SpatialAttention 7x7 conv + sigmoid — channel-plane layout (W on lanes) for lane-dense VPU taps.
    stats_planes = jnp.pad(jnp.transpose(stats, (0, 3, 1, 2)),          # tiny (B,2,H+6,W+6) transpose+pad
                           ((0, 0), (0, 0), (3, 3), (3, 3)))
    w_sa = jnp.transpose(params["w_sa_conv"][0], (1, 2, 0)).reshape(-1).astype(F32)   # (98,), tap-major
    gate = pl.pallas_call(
        _sa_conv_kernel,
        out_shape=jax.ShapeDtypeStruct((B, H, W), F32),
        grid=(B,),
        in_specs=[pl.BlockSpec(memory_space=pltpu.MemorySpace.SMEM),
                  pl.BlockSpec((1, 2, H + 6, W + 6), lambda b: (b, 0, 0, 0))],
        out_specs=pl.BlockSpec((1, H, W), lambda b: (b, 0, 0)),
        compiler_params=pltpu.CompilerParams(dimension_semantics=("parallel",)),
    )(w_sa, stats_planes)

    # 3) gate * conv output, chunk(3) -> (offset, sigmoid(mask)) — elementwise Pallas kernel.
    n_offc = 2 * (N_off // 3)                                           # 144
    n_maskc = N_off // 3                                                # 72
    gate4 = gate[:, :, :, None]                                         # (B, H, W, 1), free reshape
    offset_map, mask_map = pl.pallas_call(
        _gate_chunk_kernel,
        out_shape=(jax.ShapeDtypeStruct((B, H, W, n_offc), F32),
                   jax.ShapeDtypeStruct((B, H, W, n_maskc), F32)),
        grid=(B,),
        in_specs=[pl.BlockSpec((1, H, W, N_off), lambda b: (b, 0, 0, 0)),
                  pl.BlockSpec((1, H, W, 1), lambda b: (b, 0, 0, 0))],
        out_specs=(pl.BlockSpec((1, H, W, n_offc), lambda b: (b, 0, 0, 0)),
                   pl.BlockSpec((1, H, W, n_maskc), lambda b: (b, 0, 0, 0))),
        compiler_params=pltpu.CompilerParams(dimension_semantics=("parallel",)),
    )(off, gate4)

    # 4) deform1: bilinear gather (+modulation) in JAX, lane-stacked grouped contraction in Pallas.
    G, K = 8, 9
    val = _deform_gather(x_nhwc, offset_map, mask_map, G).astype(BF16)  # (M, Cin*9) bf16

    w_d = params["w_deform"]                                            # (Cout, Cin//G, 3, 3)
    Cout = w_d.shape[0]
    cin_g, cout_g = w_d.shape[1], Cout // G
    wg = jnp.transpose(w_d.reshape(G, cout_g, cin_g, K), (0, 2, 3, 1))  # (G, cin_g, K, cout_g)
    w_bd = jnp.einsum('gjkn,gh->gjkhn', wg, jnp.eye(G, dtype=F32)) \
              .reshape(G * cin_g * K, Cout).astype(BF16)                # block-diagonal (Cin*9, Cout)
    b_d = params["b_deform"].reshape(1, Cout).astype(F32)

    # 5) act_layer (ReLU) + pointwise Conv2d(Cin, Cout, 1) with bias — fused into the same kernel.
    Cp_out = params["w_pointwise"].shape[0]
    w_p = params["w_pointwise"].reshape(Cp_out, -1).T.astype(BF16)      # (Cout, Cp_out)
    b_p = params["b_pointwise"].reshape(1, Cp_out).astype(F32)

    tm = _pick_row_tile(M)
    if tm is None:                                                      # ragged M: pad rows (rare)
        tm = 256
        Mp = _round_up(M, tm)
        val = jnp.pad(val, ((0, Mp - M), (0, 0)))
    else:
        Mp = M

    out_flat = pl.pallas_call(
        _deform_pointwise_kernel,
        out_shape=jax.ShapeDtypeStruct((Mp, Cp_out), F32),
        grid=(Mp // tm,),
        in_specs=[pl.BlockSpec((tm, Cin * K), lambda m: (m, 0)),
                  pl.BlockSpec(w_bd.shape, lambda m: (0, 0)),
                  pl.BlockSpec(b_d.shape, lambda m: (0, 0)),
                  pl.BlockSpec(w_p.shape, lambda m: (0, 0)),
                  pl.BlockSpec(b_p.shape, lambda m: (0, 0))],
        out_specs=pl.BlockSpec((tm, Cp_out), lambda m: (m, 0)),
        compiler_params=pltpu.CompilerParams(dimension_semantics=("parallel",)),
    )(val, w_bd, b_d, w_p, b_p)

    return out_flat[:M].reshape(B, H, W, Cp_out).transpose(0, 3, 1, 2)  # NCHW


def init_params(key, in_channels, out_channels):
    assert in_channels == out_channels, "pointwise(Cin,Cout) consumes the deform output -> Cin must equal Cout"
    assert in_channels % 8 == 0 and out_channels % 8 == 0
    ks = jax.random.split(key, 6)
    return {
        "w_offset_conv": 0.05 * jax.random.normal(ks[0], (216, in_channels, 3, 3), F32),
        "w_sa_conv":     0.05 * jax.random.normal(ks[1], (1, 2, 7, 7), F32),
        "w_deform":      0.10 * jax.random.normal(ks[2], (out_channels, in_channels // 8, 3, 3), F32),
        "b_deform":      0.01 * jax.random.normal(ks[3], (out_channels,), F32),
        "w_pointwise":   0.10 * jax.random.normal(ks[4], (out_channels, in_channels, 1, 1), F32),
        "b_pointwise":   0.01 * jax.random.normal(ks[5], (out_channels,), F32),
    }


if __name__ == "__main__":
    B, C, H, W = 2, 8, 16, 16   # in_channels = out_channels = 8 (divisible by deform groups=8)
    key = jax.random.PRNGKey(0)
    kx, kp = jax.random.split(key)
    x = jax.random.normal(kx, (B, C, H, W), F32)
    params = init_params(kp, C, C)

    fwd = jax.jit(functools.partial(sep_conv2d_forward, params=params))
    y = fwd(x)
    jax.block_until_ready(y)
    assert y.shape == (B, C, H, W) and y.dtype == jnp.float32
    print("KERNEL_OK")
</pallas_src>

<mosaic_0001>
module attributes {stable_mosaic.version = 11 : i64} {
  func.func @_offset_conv_stats_kernel(%arg0: i32, %arg1: memref<1x18x18x8xbf16, #tpu.memory_space<vmem>>, %arg2: memref<72x216xbf16, #tpu.memory_space<vmem>>, %arg3: memref<1x16x16x216xf32, #tpu.memory_space<vmem>>, %arg4: memref<1x16x16x2xf32, #tpu.memory_space<vmem>>) attributes {dimension_semantics = [#tpu.dimension_semantics<parallel>], iteration_bounds = array<i64: 2>, scalar_prefetch = 0 : i64, scratch_operands = 0 : i64, tpu.core_type = #tpu.core_type<tc>, window_params = [{transform_indices = @transform_0, window_bounds = array<i64: 1, 18, 18, 8>}, {pipeline_mode = #tpu.pipeline_mode<synchronous>, transform_indices = @transform_1, window_bounds = array<i64: 72, 216>}, {transform_indices = @transform_2, window_bounds = array<i64: 1, 16, 16, 216>}, {transform_indices = @transform_3, window_bounds = array<i64: 1, 16, 16, 2>}]} {
    %c0 = arith.constant 0 : index
    %c0_0 = arith.constant 0 : index
    %c0_1 = arith.constant 0 : index
    %c0_2 = arith.constant 0 : index
    %0 = vector.load %arg1[%c0, %c0_0, %c0_1, %c0_2] : memref<1x18x18x8xbf16, #tpu.memory_space<vmem>>, vector<1x16x16x8xbf16>
    %1 = vector.shape_cast %0 : vector<1x16x16x8xbf16> to vector<16x16x8xbf16>
    %2 = vector.shape_cast %1 : vector<16x16x8xbf16> to vector<256x8xbf16>
    %3 = arith.extf %2 : vector<256x8xbf16> to vector<256x8xf32>
    %c0_3 = arith.constant 0 : index
    %c0_4 = arith.constant 0 : index
    %c1 = arith.constant 1 : index
    %c0_5 = arith.constant 0 : index
    %4 = vector.load %arg1[%c0_3, %c0_4, %c1, %c0_5] : memref<1x18x18x8xbf16, #tpu.memory_space<vmem>>, vector<1x16x16x8xbf16>
    %5 = vector.shape_cast %4 : vector<1x16x16x8xbf16> to vector<16x16x8xbf16>
    %6 = vector.shape_cast %5 : vector<16x16x8xbf16> to vector<256x8xbf16>
    %7 = arith.extf %6 : vector<256x8xbf16> to vector<256x8xf32>
    %c0_6 = arith.constant 0 : index
    %c0_7 = arith.constant 0 : index
    %c2 = arith.constant 2 : index
    %c0_8 = arith.constant 0 : index
    %8 = vector.load %arg1[%c0_6, %c0_7, %c2, %c0_8] : memref<1x18x18x8xbf16, #tpu.memory_space<vmem>>, vector<1x16x16x8xbf16>
    %9 = vector.shape_cast %8 : vector<1x16x16x8xbf16> to vector<16x16x8xbf16>
    %10 = vector.shape_cast %9 : vector<16x16x8xbf16> to vector<256x8xbf16>
    %11 = arith.extf %10 : vector<256x8xbf16> to vector<256x8xf32>
    %c0_9 = arith.constant 0 : index
    %c1_10 = arith.constant 1 : index
    %c0_11 = arith.constant 0 : index
    %c0_12 = arith.constant 0 : index
    %12 = vector.load %arg1[%c0_9, %c1_10, %c0_11, %c0_12] : memref<1x18x18x8xbf16, #tpu.memory_space<vmem>>, vector<1x16x16x8xbf16>
    %13 = vector.shape_cast %12 : vector<1x16x16x8xbf16> to vector<16x16x8xbf16>
    %14 = vector.shape_cast %13 : vector<16x16x8xbf16> to vector<256x8xbf16>
    %15 = arith.extf %14 : vector<256x8xbf16> to vector<256x8xf32>
    %c0_13 = arith.constant 0 : index
    %c1_14 = arith.constant 1 : index
    %c1_15 = arith.constant 1 : index
    %c0_16 = arith.constant 0 : index
    %16 = vector.load %arg1[%c0_13, %c1_14, %c1_15, %c0_16] : memref<1x18x18x8xbf16, #tpu.memory_space<vmem>>, vector<1x16x16x8xbf16>
    %17 = vector.shape_cast %16 : vector<1x16x16x8xbf16> to vector<16x16x8xbf16>
    %18 = vector.shape_cast %17 : vector<16x16x8xbf16> to vector<256x8xbf16>
    %19 = arith.extf %18 : vector<256x8xbf16> to vector<256x8xf32>
    %c0_17 = arith.constant 0 : index
    %c1_18 = arith.constant 1 : index
    %c2_19 = arith.constant 2 : index
    %c0_20 = arith.constant 0 : index
    %20 = vector.load %arg1[%c0_17, %c1_18, %c2_19, %c0_20] : memref<1x18x18x8xbf16, #tpu.memory_space<vmem>>, vector<1x16x16x8xbf16>
    %21 = vector.shape_cast %20 : vector<1x16x16x8xbf16> to vector<16x16x8xbf16>
    %22 = vector.shape_cast %21 : vector<16x16x8xbf16> to vector<256x8xbf16>
    %23 = arith.extf %22 : vector<256x8xbf16> to vector<256x8xf32>
    %c0_21 = arith.constant 0 : index
    %c2_22 = arith.constant 2 : index
    %c0_23 = arith.constant 0 : index
    %c0_24 = arith.constant 0 : index
    %24 = vector.load %arg1[%c0_21, %c2_22, %c0_23, %c0_24] : memref<1x18x18x8xbf16, #tpu.memory_space<vmem>>, vector<1x16x16x8xbf16>
    %25 = vector.shape_cast %24 : vector<1x16x16x8xbf16> to vector<16x16x8xbf16>
    %26 = vector.shape_cast %25 : vector<16x16x8xbf16> to vector<256x8xbf16>
    %27 = arith.extf %26 : vector<256x8xbf16> to vector<256x8xf32>
    %c0_25 = arith.constant 0 : index
    %c2_26 = arith.constant 2 : index
    %c1_27 = arith.constant 1 : index
    %c0_28 = arith.constant 0 : index
    %28 = vector.load %arg1[%c0_25, %c2_26, %c1_27, %c0_28] : memref<1x18x18x8xbf16, #tpu.memory_space<vmem>>, vector<1x16x16x8xbf16>
    %29 = vector.shape_cast %28 : vector<1x16x16x8xbf16> to vector<16x16x8xbf16>
    %30 = vector.shape_cast %29 : vector<16x16x8xbf16> to vector<256x8xbf16>
    %31 = arith.extf %30 : vector<256x8xbf16> to vector<256x8xf32>
    %c0_29 = arith.constant 0 : index
    %c2_30 = arith.constant 2 : index
    %c2_31 = arith.constant 2 : index
    %c0_32 = arith.constant 0 : index
    %32 = vector.load %arg1[%c0_29, %c2_30, %c2_31, %c0_32] : memref<1x18x18x8xbf16, #tpu.memory_space<vmem>>, vector<1x16x16x8xbf16>
    %33 = vector.shape_cast %32 : vector<1x16x16x8xbf16> to vector<16x16x8xbf16>
    %34 = vector.shape_cast %33 : vector<16x16x8xbf16> to vector<256x8xbf16>
    %35 = arith.extf %34 : vector<256x8xbf16> to vector<256x8xf32>
    %36 = tpu.concatenate %3, %7, %11, %15, %19, %23, %27, %31, %35 in 1 : vector<256x8xf32>, vector<256x8xf32>, vector<256x8xf32>, vector<256x8xf32>, vector<256x8xf32>, vector<256x8xf32>, vector<256x8xf32>, vector<256x8xf32>, vector<256x8xf32> -> vector<256x72xf32>
    %37 = arith.truncf %36 : vector<256x72xf32> to vector<256x72xbf16>
    %c0_33 = arith.constant 0 : index
    %c0_34 = arith.constant 0 : index
    %38 = vector.load %arg2[%c0_33, %c0_34] : memref<72x216xbf16, #tpu.memory_space<vmem>>, vector<72x216xbf16>
    %cst = arith.constant dense<0.000000e+00> : vector<256x216xf32>
    %39 = tpu.matmul %37, %38, %cst {dimension_numbers = #tpu.dot_dimension_numbers<[1], [0], [0], [1], [0, 0, 1, 1], [], []>} : vector<256x72xbf16>, vector<72x216xbf16>, vector<256x216xf32> -> vector<256x216xf32>
    %40 = vector.shape_cast %39 : vector<256x216xf32> to vector<16x16x216xf32>
    %c0_35 = arith.constant 0 : index
    %c0_36 = arith.constant 0 : index
    %c0_37 = arith.constant 0 : index
    %c0_38 = arith.constant 0 : index
    %41 = vector.load %arg3[%c0_35, %c0_36, %c0_37, %c0_38] : memref<1x16x16x216xf32, #tpu.memory_space<vmem>>, vector<1x16x16x216xf32>
    %42 = vector.shape_cast %41 : vector<1x16x16x216xf32> to vector<16x16x216xf32>
    %43 = vector.shape_cast %40 : vector<16x16x216xf32> to vector<1x16x16x216xf32>
    tpu.vector_store %arg3[%c0_35, %c0_36, %c0_37, %c0_38], %43 {strides = array<i32>} : memref<1x16x16x216xf32, #tpu.memory_space<vmem>>, vector<1x16x16x216xf32>,
    %cst_39 = arith.constant dense<0.000000e+00> : vector<256xf32>
    %44 = vector.multi_reduction <add>, %39, %cst_39 [1] : vector<256x216xf32> to vector<256xf32>
    %45 = vector.shape_cast %44 : vector<256xf32> to vector<256x1xf32>
    %cst_40 = arith.constant 2.160000e+02 : f32
    %46 = vector.broadcast %cst_40 : f32 to vector<256x1xf32>
    %47 = arith.divf %45, %46 : vector<256x1xf32>
    %cst_41 = arith.constant dense<0xFF800000> : vector<256xf32>
    %48 = vector.multi_reduction <maximumf>, %39, %cst_41 [1] : vector<256x216xf32> to vector<256xf32>
    %49 = vector.shape_cast %48 : vector<256xf32> to vector<256x1xf32>
    %50 = tpu.concatenate %47, %49 in 1 : vector<256x1xf32>, vector<256x1xf32> -> vector<256x2xf32>
    %51 = vector.shape_cast %50 : vector<256x2xf32> to vector<16x16x2xf32>
    %c0_42 = arith.constant 0 : index
    %c0_43 = arith.constant 0 : index
    %c0_44 = arith.constant 0 : index
    %c0_45 = arith.constant 0 : index
    %52 = vector.load %arg4[%c0_42, %c0_43, %c0_44, %c0_45] : memref<1x16x16x2xf32, #tpu.memory_space<vmem>>, vector<1x16x16x2xf32>
    %53 = vector.shape_cast %52 : vector<1x16x16x2xf32> to vector<16x16x2xf32>
    %54 = vector.shape_cast %51 : vector<16x16x2xf32> to vector<1x16x16x2xf32>
    tpu.vector_store %arg4[%c0_42, %c0_43, %c0_44, %c0_45], %54 {strides = array<i32>} : memref<1x16x16x2xf32, #tpu.memory_space<vmem>>, vector<1x16x16x2xf32>,
    return
  }
  func.func @transform_0(%arg0: i32) -> (i32, i32, i32, i32) {
    %c0_i32 = arith.constant 0 : i32
    %c0_i32_0 = arith.constant 0 : i32
    %c0_i32_1 = arith.constant 0 : i32
    %c0_i32_2 = arith.constant 0 : i32
    return %arg0, %c0_i32, %c0_i32_0, %c0_i32_1 : i32, i32, i32, i32
  }
  func.func @transform_1(%arg0: i32) -> (i32, i32) {
    %c0_i32 = arith.constant 0 : i32
    %c0_i32_0 = arith.constant 0 : i32
    %c0_i32_1 = arith.constant 0 : i32
    return %c0_i32, %c0_i32_0 : i32, i32
  }
  func.func @transform_2(%arg0: i32) -> (i32, i32, i32, i32) {
    %c0_i32 = arith.constant 0 : i32
    %c0_i32_0 = arith.constant 0 : i32
    %c0_i32_1 = arith.constant 0 : i32
    %c0_i32_2 = arith.constant 0 : i32
    return %arg0, %c0_i32, %c0_i32_0, %c0_i32_1 : i32, i32, i32, i32
  }
  func.func @transform_3(%arg0: i32) -> (i32, i32, i32, i32) {
    %c0_i32 = arith.constant 0 : i32
    %c0_i32_0 = arith.constant 0 : i32
    %c0_i32_1 = arith.constant 0 : i32
    %c0_i32_2 = arith.constant 0 : i32
    return %arg0, %c0_i32, %c0_i32_0, %c0_i32_1 : i32, i32, i32, i32
  }
}

module attributes {stable_mosaic.version = 11 : i64} {
  func.func @_gate_chunk_kernel(%arg0: i32, %arg1: memref<1x16x16x216xf32, #tpu.memory_space<vmem>>, %arg2: memref<1x16x16x1xf32, #tpu.memory_space<vmem>>, %arg3: memref<1x16x16x144xf32, #tpu.memory_space<vmem>>, %arg4: memref<1x16x16x72xf32, #tpu.memory_space<vmem>>) attributes {dimension_semantics = [#tpu.dimension_semantics<parallel>], iteration_bounds = array<i64: 2>, scalar_prefetch = 0 : i64, scratch_operands = 0 : i64, tpu.core_type = #tpu.core_type<tc>, window_params = [{transform_indices = @transform_0, window_bounds = array<i64: 1, 16, 16, 216>}, {transform_indices = @transform_1, window_bounds = array<i64: 1, 16, 16, 1>}, {transform_indices = @transform_2, window_bounds = array<i64: 1, 16, 16, 144>}, {transform_indices = @transform_3, window_bounds = array<i64: 1, 16, 16, 72>}]} {
    %c0 = arith.constant 0 : index
    %c0_0 = arith.constant 0 : index
    %c0_1 = arith.constant 0 : index
    %c0_2 = arith.constant 0 : index
    %0 = vector.load %arg2[%c0, %c0_0, %c0_1, %c0_2] : memref<1x16x16x1xf32, #tpu.memory_space<vmem>>, vector<1x16x16x1xf32>
    %1 = vector.shape_cast %0 : vector<1x16x16x1xf32> to vector<16x16x1xf32>
    %c0_3 = arith.constant 0 : index
    %c0_4 = arith.constant 0 : index
    %c0_5 = arith.constant 0 : index
    %c0_6 = arith.constant 0 : index
    %2 = vector.load %arg1[%c0_3, %c0_4, %c0_5, %c0_6] : memref<1x16x16x216xf32, #tpu.memory_space<vmem>>, vector<1x16x16x216xf32>
    %3 = vector.shape_cast %2 : vector<1x16x16x216xf32> to vector<16x16x216xf32>
    %4 = vector.extract_strided_slice %3 {offsets = [0, 0, 0], sizes = [16, 16, 144], strides = [1, 1, 1]} : vector<16x16x216xf32> to vector<16x16x144xf32>
    %5 = vector.broadcast %1 : vector<16x16x1xf32> to vector<16x16x144xf32>
    %6 = arith.mulf %4, %5 : vector<16x16x144xf32>
    %c0_7 = arith.constant 0 : index
    %c0_8 = arith.constant 0 : index
    %c0_9 = arith.constant 0 : index
    %c0_10 = arith.constant 0 : index
    %7 = vector.load %arg3[%c0_7, %c0_8, %c0_9, %c0_10] : memref<1x16x16x144xf32, #tpu.memory_space<vmem>>, vector<1x16x16x144xf32>
    %8 = vector.shape_cast %7 : vector<1x16x16x144xf32> to vector<16x16x144xf32>
    %9 = vector.shape_cast %6 : vector<16x16x144xf32> to vector<1x16x16x144xf32>
    tpu.vector_store %arg3[%c0_7, %c0_8, %c0_9, %c0_10], %9 {strides = array<i32>} : memref<1x16x16x144xf32, #tpu.memory_space<vmem>>, vector<1x16x16x144xf32>,
    %10 = vector.extract_strided_slice %3 {offsets = [0, 0, 144], sizes = [16, 16, 72], strides = [1, 1, 1]} : vector<16x16x216xf32> to vector<16x16x72xf32>
    %11 = vector.broadcast %1 : vector<16x16x1xf32> to vector<16x16x72xf32>
    %12 = arith.mulf %10, %11 : vector<16x16x72xf32>
    %13 = arith.negf %12 : vector<16x16x72xf32>
    %14 = math.exp %13 : vector<16x16x72xf32>
    %cst = arith.constant 1.000000e+00 : f32
    %15 = vector.broadcast %cst : f32 to vector<16x16x72xf32>
    %16 = arith.addf %15, %14 : vector<16x16x72xf32>
    %17 = arith.divf %15, %16 : vector<16x16x72xf32>
    %c0_11 = arith.constant 0 : index
    %c0_12 = arith.constant 0 : index
    %c0_13 = arith.constant 0 : index
    %c0_14 = arith.constant 0 : index
    %18 = vector.load %arg4[%c0_11, %c0_12, %c0_13, %c0_14] : memref<1x16x16x72xf32, #tpu.memory_space<vmem>>, vector<1x16x16x72xf32>
    %19 = vector.shape_cast %18 : vector<1x16x16x72xf32> to vector<16x16x72xf32>
    %20 = vector.shape_cast %17 : vector<16x16x72xf32> to vector<1x16x16x72xf32>
    tpu.vector_store %arg4[%c0_11, %c0_12, %c0_13, %c0_14], %20 {strides = array<i32>} : memref<1x16x16x72xf32, #tpu.memory_space<vmem>>, vector<1x16x16x72xf32>,
    return
  }
  func.func @transform_0(%arg0: i32) -> (i32, i32, i32, i32) {
    %c0_i32 = arith.constant 0 : i32
    %c0_i32_0 = arith.constant 0 : i32
    %c0_i32_1 = arith.constant 0 : i32
    %c0_i32_2 = arith.constant 0 : i32
    return %arg0, %c0_i32, %c0_i32_0, %c0_i32_1 : i32, i32, i32, i32
  }
  func.func @transform_1(%arg0: i32) -> (i32, i32, i32, i32) {
    %c0_i32 = arith.constant 0 : i32
    %c0_i32_0 = arith.constant 0 : i32
    %c0_i32_1 = arith.constant 0 : i32
    %c0_i32_2 = arith.constant 0 : i32
    return %arg0, %c0_i32, %c0_i32_0, %c0_i32_1 : i32, i32, i32, i32
  }
  func.func @transform_2(%arg0: i32) -> (i32, i32, i32, i32) {
    %c0_i32 = arith.constant 0 : i32
    %c0_i32_0 = arith.constant 0 : i32
    %c0_i32_1 = arith.constant 0 : i32
    %c0_i32_2 = arith.constant 0 : i32
    return %arg0, %c0_i32, %c0_i32_0, %c0_i32_1 : i32, i32, i32, i32
  }
  func.func @transform_3(%arg0: i32) -> (i32, i32, i32, i32) {
    %c0_i32 = arith.constant 0 : i32
    %c0_i32_0 = arith.constant 0 : i32
    %c0_i32_1 = arith.constant 0 : i32
    %c0_i32_2 = arith.constant 0 : i32
    return %arg0, %c0_i32, %c0_i32_0, %c0_i32_1 : i32, i32, i32, i32
  }
}

module attributes {stable_mosaic.version = 11 : i64} {
  func.func @_sa_conv_kernel(%arg0: i32, %arg1: memref<98xf32, #tpu.memory_space<smem>>, %arg2: memref<1x2x22x22xf32, #tpu.memory_space<vmem>>, %arg3: memref<1x16x16xf32, #tpu.memory_space<vmem>>) attributes {dimension_semantics = [#tpu.dimension_semantics<parallel>], iteration_bounds = array<i64: 2>, scalar_prefetch = 0 : i64, scratch_operands = 0 : i64, tpu.core_type = #tpu.core_type<tc>, window_params = [{transform_indices = @transform_0, window_bounds = array<i64: 98>}, {transform_indices = @transform_1, window_bounds = array<i64: 1, 2, 22, 22>}, {transform_indices = @transform_2, window_bounds = array<i64: 1, 16, 16>}]} {
    %cst = arith.constant 0.000000e+00 : f32
    %0 = vector.broadcast %cst : f32 to vector<16x16xf32>
    %c0 = arith.constant 0 : index
    %c0_0 = arith.constant 0 : index
    %c0_1 = arith.constant 0 : index
    %c0_2 = arith.constant 0 : index
    %1 = vector.load %arg2[%c0, %c0_0, %c0_1, %c0_2] : memref<1x2x22x22xf32, #tpu.memory_space<vmem>>, vector<1x1x16x16xf32>
    %2 = vector.shape_cast %1 : vector<1x1x16x16xf32> to vector<16x16xf32>
    %c0_3 = arith.constant 0 : index
    %3 = memref.load %arg1[%c0_3] : memref<98xf32, #tpu.memory_space<smem>>
    %4 = vector.broadcast %3 : f32 to vector<16x16xf32>
    %5 = arith.mulf %2, %4 : vector<16x16xf32>
    %6 = arith.addf %0, %5 : vector<16x16xf32>
    %c0_4 = arith.constant 0 : index
    %c1 = arith.constant 1 : index
    %c0_5 = arith.constant 0 : index
    %c0_6 = arith.constant 0 : index
    %7 = vector.load %arg2[%c0_4, %c1, %c0_5, %c0_6] : memref<1x2x22x22xf32, #tpu.memory_space<vmem>>, vector<1x1x16x16xf32>
    %8 = vector.shape_cast %7 : vector<1x1x16x16xf32> to vector<16x16xf32>
    %c1_7 = arith.constant 1 : index
    %9 = memref.load %arg1[%c1_7] : memref<98xf32, #tpu.memory_space<smem>>
    %10 = vector.broadcast %9 : f32 to vector<16x16xf32>
    %11 = arith.mulf %8, %10 : vector<16x16xf32>
    %12 = arith.addf %6, %11 : vector<16x16xf32>
    %c0_8 = arith.constant 0 : index
    %c0_9 = arith.constant 0 : index
    %c0_10 = arith.constant 0 : index
    %c1_11 = arith.constant 1 : index
    %13 = vector.load %arg2[%c0_8, %c0_9, %c0_10, %c1_11] : memref<1x2x22x22xf32, #tpu.memory_space<vmem>>, vector<1x1x16x16xf32>
    %14 = vector.shape_cast %13 : vector<1x1x16x16xf32> to vector<16x16xf32>
    %c2 = arith.constant 2 : index
    %15 = memref.load %arg1[%c2] : memref<98xf32, #tpu.memory_space<smem>>
    %16 = vector.broadcast %15 : f32 to vector<16x16xf32>
    %17 = arith.mulf %14, %16 : vector<16x16xf32>
    %18 = arith.addf %12, %17 : vector<16x16xf32>
    %c0_12 = arith.constant 0 : index
    %c1_13 = arith.constant 1 : index
    %c0_14 = arith.constant 0 : index
    %c1_15 = arith.constant 1 : index
    %19 = vector.load %arg2[%c0_12, %c1_13, %c0_14, %c1_15] : memref<1x2x22x22xf32, #tpu.memory_space<vmem>>, vector<1x1x16x16xf32>
    %20 = vector.shape_cast %19 : vector<1x1x16x16xf32> to vector<16x16xf32>
    %c3 = arith.constant 3 : index
    %21 = memref.load %arg1[%c3] : memref<98xf32, #tpu.memory_space<smem>>
    %22 = vector.broadcast %21 : f32 to vector<16x16xf32>
    %23 = arith.mulf %20, %22 : vector<16x16xf32>
    %24 = arith.addf %18, %23 : vector<16x16xf32>
    %c0_16 = arith.constant 0 : index
    %c0_17 = arith.constant 0 : index
    %c0_18 = arith.constant 0 : index
    %c2_19 = arith.constant 2 : index
    %25 = vector.load %arg2[%c0_16, %c0_17, %c0_18, %c2_19] : memref<1x2x22x22xf32, #tpu.memory_space<vmem>>, vector<1x1x16x16xf32>
    %26 = vector.shape_cast %25 : vector<1x1x16x16xf32> to vector<16x16xf32>
    %c4 = arith.constant 4 : index
    %27 = memref.load %arg1[%c4] : memref<98xf32, #tpu.memory_space<smem>>
    %28 = vector.broadcast %27 : f32 to vector<16x16xf32>
    %29 = arith.mulf %26, %28 : vector<16x16xf32>
    %30 = arith.addf %24, %29 : vector<16x16xf32>
    %c0_20 = arith.constant 0 : index
    %c1_21 = arith.constant 1 : index
    %c0_22 = arith.constant 0 : index
    %c2_23 = arith.constant 2 : index
    %31 = vector.load %arg2[%c0_20, %c1_21, %c0_22, %c2_23] : memref<1x2x22x22xf32, #tpu.memory_space<vmem>>, vector<1x1x16x16xf32>
    %32 = vector.shape_cast %31 : vector<1x1x16x16xf32> to vector<16x16xf32>
    %c5 = arith.constant 5 : index
    %33 = memref.load %arg1[%c5] : memref<98xf32, #tpu.memory_space<smem>>
    %34 = vector.broadcast %33 : f32 to vector<16x16xf32>
    %35 = arith.mulf %32, %34 : vector<16x16xf32>
    %36 = arith.addf %30, %35 : vector<16x16xf32>
    %c0_24 = arith.constant 0 : index
    %c0_25 = arith.constant 0 : index
    %c0_26 = arith.constant 0 : index
    %c3_27 = arith.constant 3 : index
    %37 = vector.load %arg2[%c0_24, %c0_25, %c0_26, %c3_27] : memref<1x2x22x22xf32, #tpu.memory_space<vmem>>, vector<1x1x16x16xf32>
    %38 = vector.shape_cast %37 : vector<1x1x16x16xf32> to vector<16x16xf32>
    %c6 = arith.constant 6 : index
    %39 = memref.load %arg1[%c6] : memref<98xf32, #tpu.memory_space<smem>>
    %40 = vector.broadcast %39 : f32 to vector<16x16xf32>
    %41 = arith.mulf %38, %40 : vector<16x16xf32>
    %42 = arith.addf %36, %41 : vector<16x16xf32>
    %c0_28 = arith.constant 0 : index
    %c1_29 = arith.constant 1 : index
    %c0_30 = arith.constant 0 : index
    %c3_31 = arith.constant 3 : index
    %43 = vector.load %arg2[%c0_28, %c1_29, %c0_30, %c3_31] : memref<1x2x22x22xf32, #tpu.memory_space<vmem>>, vector<1x1x16x16xf32>
    %44 = vector.shape_cast %43 : vector<1x1x16x16xf32> to vector<16x16xf32>
    %c7 = arith.constant 7 : index
    %45 = memref.load %arg1[%c7] : memref<98xf32, #tpu.memory_space<smem>>
    %46 = vector.broadcast %45 : f32 to vector<16x16xf32>
    %47 = arith.mulf %44, %46 : vector<16x16xf32>
    %48 = arith.addf %42, %47 : vector<16x16xf32>
    %c0_32 = arith.constant 0 : index
    %c0_33 = arith.constant 0 : index
    %c0_34 = arith.constant 0 : index
    %c4_35 = arith.constant 4 : index
    %49 = vector.load %arg2[%c0_32, %c0_33, %c0_34, %c4_35] : memref<1x2x22x22xf32, #tpu.memory_space<vmem>>, vector<1x1x16x16xf32>
    %50 = vector.shape_cast %49 : vector<1x1x16x16xf32> to vector<16x16xf32>
    %c8 = arith.constant 8 : index
    %51 = memref.load %arg1[%c8] : memref<98xf32, #tpu.memory_space<smem>>
    %52 = vector.broadcast %51 : f32 to vector<16x16xf32>
    %53 = arith.mulf %50, %52 : vector<16x16xf32>
    %54 = arith.addf %48, %53 : vector<16x16xf32>
    %c0_36 = arith.constant 0 : index
    %c1_37 = arith.constant 1 : index
    %c0_38 = arith.constant 0 : index
    %c4_39 = arith.constant 4 : index
    %55 = vector.load %arg2[%c0_36, %c1_37, %c0_38, %c4_39] : memref<1x2x22x22xf32, #tpu.memory_space<vmem>>, vector<1x1x16x16xf32>
    %56 = vector.shape_cast %55 : vector<1x1x16x16xf32> to vector<16x16xf32>
    %c9 = arith.constant 9 : index
    %57 = memref.load %arg1[%c9] : memref<98xf32, #tpu.memory_space<smem>>
    %58 = vector.broadcast %57 : f32 to vector<16x16xf32>
    %59 = arith.mulf %56, %58 : vector<16x16xf32>
    %60 = arith.addf %54, %59 : vector<16x16xf32>
    %c0_40 = arith.constant 0 : index
    %c0_41 = arith.constant 0 : index
    %c0_42 = arith.constant 0 : index
    %c5_43 = arith.constant 5 : index
    %61 = vector.load %arg2[%c0_40, %c0_41, %c0_42, %c5_43] : memref<1x2x22x22xf32, #tpu.memory_space<vmem>>, vector<1x1x16x16xf32>
    %62 = vector.shape_cast %61 : vector<1x1x16x16xf32> to vector<16x16xf32>
    %c10 = arith.constant 10 : index
    %63 = memref.load %arg1[%c10] : memref<98xf32, #tpu.memory_space<smem>>
    %64 = vector.broadcast %63 : f32 to vector<16x16xf32>
    %65 = arith.mulf %62, %64 : vector<16x16xf32>
    %66 = arith.addf %60, %65 : vector<16x16xf32>
    %c0_44 = arith.constant 0 : index
    %c1_45 = arith.constant 1 : index
    %c0_46 = arith.constant 0 : index
    %c5_47 = arith.constant 5 : index
    %67 = vector.load %arg2[%c0_44, %c1_45, %c0_46, %c5_47] : memref<1x2x22x22xf32, #tpu.memory_space<vmem>>, vector<1x1x16x16xf32>
    %68 = vector.shape_cast %67 : vector<1x1x16x16xf32> to vector<16x16xf32>
    %c11 = arith.constant 11 : index
    %69 = memref.load %arg1[%c11] : memref<98xf32, #tpu.memory_space<smem>>
    %70 = vector.broadcast %69 : f32 to vector<16x16xf32>
    %71 = arith.mulf %68, %70 : vector<16x16xf32>
    %72 = arith.addf %66, %71 : vector<16x16xf32>
    %c0_48 = arith.constant 0 : index
    %c0_49 = arith.constant 0 : index
    %c0_50 = arith.constant 0 : index
    %c6_51 = arith.constant 6 : index
    %73 = vector.load %arg2[%c0_48, %c0_49, %c0_50, %c6_51] : memref<1x2x22x22xf32, #tpu.memory_space<vmem>>, vector<1x1x16x16xf32>
    %74 = vector.shape_cast %73 : vector<1x1x16x16xf32> to vector<16x16xf32>
    %c12 = arith.constant 12 : index
    %75 = memref.load %arg1[%c12] : memref<98xf32, #tpu.memory_space<smem>>
    %76 = vector.broadcast %75 : f32 to vector<16x16xf32>
    %77 = arith.mulf %74, %76 : vector<16x16xf32>
    %78 = arith.addf %72, %77 : vector<16x16xf32>
    %c0_52 = arith.constant 0 : index
    %c1_53 = arith.constant 1 : index
    %c0_54 = arith.constant 0 : index
    %c6_55 = arith.constant 6 : index
    %79 = vector.load %arg2[%c0_52, %c1_53, %c0_54, %c6_55] : memref<1x2x22x22xf32, #tpu.memory_space<vmem>>, vector<1x1x16x16xf32>
    %80 = vector.shape_cast %79 : vector<1x1x16x16xf32> to vector<16x16xf32>
    %c13 = arith.constant 13 : index
    %81 = memref.load %arg1[%c13] : memref<98xf32, #tpu.memory_space<smem>>
    %82 = vector.broadcast %81 : f32 to vector<16x16xf32>
    %83 = arith.mulf %80, %82 : vector<16x16xf32>
    %84 = arith.addf %78, %83 : vector<16x16xf32>
    %c0_56 = arith.constant 0 : index
    %c0_57 = arith.constant 0 : index
    %c1_58 = arith.constant 1 : index
    %c0_59 = arith.constant 0 : index
    %85 = vector.load %arg2[%c0_56, %c0_57, %c1_58, %c0_59] : memref<1x2x22x22xf32, #tpu.memory_space<vmem>>, vector<1x1x16x16xf32>
    %86 = vector.shape_cast %85 : vector<1x1x16x16xf32> to vector<16x16xf32>
    %c14 = arith.constant 14 : index
    %87 = memref.load %arg1[%c14] : memref<98xf32, #tpu.memory_space<smem>>
    %88 = vector.broadcast %87 : f32 to vector<16x16xf32>
    %89 = arith.mulf %86, %88 : vector<16x16xf32>
    %90 = arith.addf %84, %89 : vector<16x16xf32>
    %c0_60 = arith.constant 0 : index
    %c1_61 = arith.constant 1 : index
    %c1_62 = arith.constant 1 : index
    %c0_63 = arith.constant 0 : index
    %91 = vector.load %arg2[%c0_60, %c1_61, %c1_62, %c0_63] : memref<1x2x22x22xf32, #tpu.memory_space<vmem>>, vector<1x1x16x16xf32>
    %92 = vector.shape_cast %91 : vector<1x1x16x16xf32> to vector<16x16xf32>
    %c15 = arith.constant 15 : index
    %93 = memref.load %arg1[%c15] : memref<98xf32, #tpu.memory_space<smem>>
    %94 = vector.broadcast %93 : f32 to vector<16x16xf32>
    %95 = arith.mulf %92, %94 : vector<16x16xf32>
    %96 = arith.addf %90, %95 : vector<16x16xf32>
    %c0_64 = arith.constant 0 : index
    %c0_65 = arith.constant 0 : index
    %c1_66 = arith.constant 1 : index
    %c1_67 = arith.constant 1 : index
    %97 = vector.load %arg2[%c0_64, %c0_65, %c1_66, %c1_67] : memref<1x2x22x22xf32, #tpu.memory_space<vmem>>, vector<1x1x16x16xf32>
    %98 = vector.shape_cast %97 : vector<1x1x16x16xf32> to vector<16x16xf32>
    %c16 = arith.constant 16 : index
    %99 = memref.load %arg1[%c16] : memref<98xf32, #tpu.memory_space<smem>>
    %100 = vector.broadcast %99 : f32 to vector<16x16xf32>
    %101 = arith.mulf %98, %100 : vector<16x16xf32>
    %102 = arith.addf %96, %101 : vector<16x16xf32>
    %c0_68 = arith.constant 0 : index
    %c1_69 = arith.constant 1 : index
    %c1_70 = arith.constant 1 : index
    %c1_71 = arith.constant 1 : index
    %103 = vector.load %arg2[%c0_68, %c1_69, %c1_70, %c1_71] : memref<1x2x22x22xf32, #tpu.memory_space<vmem>>, vector<1x1x16x16xf32>
    %104 = vector.shape_cast %103 : vector<1x1x16x16xf32> to vector<16x16xf32>
    %c17 = arith.constant 17 : index
    %105 = memref.load %arg1[%c17] : memref<98xf32, #tpu.memory_space<smem>>
    %106 = vector.broadcast %105 : f32 to vector<16x16xf32>
    %107 = arith.mulf %104, %106 : vector<16x16xf32>
    %108 = arith.addf %102, %107 : vector<16x16xf32>
    %c0_72 = arith.constant 0 : index
    %c0_73 = arith.constant 0 : index
    %c1_74 = arith.constant 1 : index
    %c2_75 = arith.constant 2 : index
    %109 = vector.load %arg2[%c0_72, %c0_73, %c1_74, %c2_75] : memref<1x2x22x22xf32, #tpu.memory_space<vmem>>, vector<1x1x16x16xf32>
    %110 = vector.shape_cast %109 : vector<1x1x16x16xf32> to vector<16x16xf32>
    %c18 = arith.constant 18 : index
    %111 = memref.load %arg1[%c18] : memref<98xf32, #tpu.memory_space<smem>>
    %112 = vector.broadcast %111 : f32 to vector<16x16xf32>
    %113 = arith.mulf %110, %112 : vector<16x16xf32>
    %114 = arith.addf %108, %113 : vector<16x16xf32>
    %c0_76 = arith.constant 0 : index
    %c1_77 = arith.constant 1 : index
    %c1_78 = arith.constant 1 : index
    %c2_79 = arith.constant 2 : index
    %115 = vector.load %arg2[%c0_76, %c1_77, %c1_78, %c2_79] : memref<1x2x22x22xf32, #tpu.memory_space<vmem>>, vector<1x1x16x16xf32>
    %116 = vector.shape_cast %115 : vector<1x1x16x16xf32> to vector<16x16xf32>
    %c19 = arith.constant 19 : index
    %117 = memref.load %arg1[%c19] : memref<98xf32, #tpu.memory_space<smem>>
    %118 = vector.broadcast %117 : f32 to vector<16x16xf32>
    %119 = arith.mulf %116, %118 : vector<16x16xf32>
    %120 = arith.addf %114, %119 : vector<16x16xf32>
    %c0_80 = arith.constant 0 : index
    %c0_81 = arith.constant 0 : index
    %c1_82 = arith.constant 1 : index
    %c3_83 = arith.constant 3 : index
    %121 = vector.load %arg2[%c0_80, %c0_81, %c1_82, %c3_83] : memref<1x2x22x22xf32, #tpu.memory_space<vmem>>, vector<1x1x16x16xf32>
    %122 = vector.shape_cast %121 : vector<1x1x16x16xf32> to vector<16x16xf32>
    %c20 = arith.constant 20 : index
    %123 = memref.load %arg1[%c20] : memref<98xf32, #tpu.memory_space<smem>>
    %124 = vector.broadcast %123 : f32 to vector<16x16xf32>
    %125 = arith.mulf %122, %124 : vector<16x16xf32>
    %126 = arith.addf %120, %125 : vector<16x16xf32>
    %c0_84 = arith.constant 0 : index
    %c1_85 = arith.constant 1 : index
    %c1_86 = arith.constant 1 : index
    %c3_87 = arith.constant 3 : index
    %127 = vector.load %arg2[%c0_84, %c1_85, %c1_86, %c3_87] : memref<1x2x22x22xf32, #tpu.memory_space<vmem>>, vector<1x1x16x16xf32>
    %128 = vector.shape_cast %127 : vector<1x1x16x16xf32> to vector<16x16xf32>
    %c21 = arith.constant 21 : index
    %129 = memref.load %arg1[%c21] : memref<98xf32, #tpu.memory_space<smem>>
    %130 = vector.broadcast %129 : f32 to vector<16x16xf32>
    %131 = arith.mulf %128, %130 : vector<16x16xf32>
    %132 = arith.addf %126, %131 : vector<16x16xf32>
    %c0_88 = arith.constant 0 : index
    %c0_89 = arith.constant 0 : index
    %c1_90 = arith.constant 1 : index
    %c4_91 = arith.constant 4 : index
    %133 = vector.load %arg2[%c0_88, %c0_89, %c1_90, %c4_91] : memref<1x2x22x22xf32, #tpu.memory_space<vmem>>, vector<1x1x16x16xf32>
    %134 = vector.shape_cast %133 : vector<1x1x16x16xf32> to vector<16x16xf32>
    %c22 = arith.constant 22 : index
    %135 = memref.load %arg1[%c22] : memref<98xf32, #tpu.memory_space<smem>>
    %136 = vector.broadcast %135 : f32 to vector<16x16xf32>
    %137 = arith.mulf %134, %136 : vector<16x16xf32>
    %138 = arith.addf %132, %137 : vector<16x16xf32>
    %c0_92 = arith.constant 0 : index
    %c1_93 = arith.constant 1 : index
    %c1_94 = arith.constant 1 : index
    %c4_95 = arith.constant 4 : index
    %139 = vector.load %arg2[%c0_92, %c1_93, %c1_94, %c4_95] : memref<1x2x22x22xf32, #tpu.memory_space<vmem>>, vector<1x1x16x16xf32>
    %140 = vector.shape_cast %139 : vector<1x1x16x16xf32> to vector<16x16xf32>
    %c23 = arith.constant 23 : index
    %141 = memref.load %arg1[%c23] : memref<98xf32, #tpu.memory_space<smem>>
    %142 = vector.broadcast %141 : f32 to vector<16x16xf32>
    %143 = arith.mulf %140, %142 : vector<16x16xf32>
    %144 = arith.addf %138, %143 : vector<16x16xf32>
    %c0_96 = arith.constant 0 : index
    %c0_97 = arith.constant 0 : index
    %c1_98 = arith.constant 1 : index
    %c5_99 = arith.constant 5 : index
    %145 = vector.load %arg2[%c0_96, %c0_97, %c1_98, %c5_99] : memref<1x2x22x22xf32, #tpu.memory_space<vmem>>, vector<1x1x16x16xf32>
    %146 = vector.shape_cast %145 : vector<1x1x16x16xf32> to vector<16x16xf32>
    %c24 = arith.constant 24 : index
    %147 = memref.load %arg1[%c24] : memref<98xf32, #tpu.memory_space<smem>>
    %148 = vector.broadcast %147 : f32 to vector<16x16xf32>
    %149 = arith.mulf %146, %148 : vector<16x16xf32>
    %150 = arith.addf %144, %149 : vector<16x16xf32>
    %c0_100 = arith.constant 0 : index
    %c1_101 = arith.constant 1 : index
    %c1_102 = arith.constant 1 : index
    %c5_103 = arith.constant 5 : index
    %151 = vector.load %arg2[%c0_100, %c1_101, %c1_102, %c5_103] : memref<1x2x22x22xf32, #tpu.memory_space<vmem>>, vector<1x1x16x16xf32>
    %152 = vector.shape_cast %151 : vector<1x1x16x16xf32> to vector<16x16xf32>
    %c25 = arith.constant 25 : index
    %153 = memref.load %arg1[%c25] : memref<98xf32, #tpu.memory_space<smem>>
    %154 = vector.broadcast %153 : f32 to vector<16x16xf32>
    %155 = arith.mulf %152, %154 : vector<16x16xf32>
    %156 = arith.addf %150, %155 : vector<16x16xf32>
    %c0_104 = arith.constant 0 : index
    %c0_105 = arith.constant 0 : index
    %c1_106 = arith.constant 1 : index
    %c6_107 = arith.constant 6 : index
    %157 = vector.load %arg2[%c0_104, %c0_105, %c1_106, %c6_107] : memref<1x2x22x22xf32, #tpu.memory_space<vmem>>, vector<1x1x16x16xf32>
    %158 = vector.shape_cast %157 : vector<1x1x16x16xf32> to vector<16x16xf32>
    %c26 = arith.constant 26 : index
    %159 = memref.load %arg1[%c26] : memref<98xf32, #tpu.memory_space<smem>>
    %160 = vector.broadcast %159 : f32 to vector<16x16xf32>
    %161 = arith.mulf %158, %160 : vector<16x16xf32>
    %162 = arith.addf %156, %161 : vector<16x16xf32>
    %c0_108 = arith.constant 0 : index
    %c1_109 = arith.constant 1 : index
    %c1_110 = arith.constant 1 : index
    %c6_111 = arith.constant 6 : index
    %163 = vector.load %arg2[%c0_108, %c1_109, %c1_110, %c6_111] : memref<1x2x22x22xf32, #tpu.memory_space<vmem>>, vector<1x1x16x16xf32>
    %164 = vector.shape_cast %163 : vector<1x1x16x16xf32> to vector<16x16xf32>
    %c27 = arith.constant 27 : index
    %165 = memref.load %arg1[%c27] : memref<98xf32, #tpu.memory_space<smem>>
    %166 = vector.broadcast %165 : f32 to vector<16x16xf32>
    %167 = arith.mulf %164, %166 : vector<16x16xf32>
    %168 = arith.addf %162, %167 : vector<16x16xf32>
    %c0_112 = arith.constant 0 : index
    %c0_113 = arith.constant 0 : index
    %c2_114 = arith.constant 2 : index
    %c0_115 = arith.constant 0 : index
    %169 = vector.load %arg2[%c0_112, %c0_113, %c2_114, %c0_115] : memref<1x2x22x22xf32, #tpu.memory_space<vmem>>, vector<1x1x16x16xf32>
    %170 = vector.shape_cast %169 : vector<1x1x16x16xf32> to vector<16x16xf32>
    %c28 = arith.constant 28 : index
    %171 = memref.load %arg1[%c28] : memref<98xf32, #tpu.memory_space<smem>>
    %172 = vector.broadcast %171 : f32 to vector<16x16xf32>
    %173 = arith.mulf %170, %172 : vector<16x16xf32>
    %174 = arith.addf %168, %173 : vector<16x16xf32>
    %c0_116 = arith.constant 0 : index
    %c1_117 = arith.constant 1 : index
    %c2_118 = arith.constant 2 : index
    %c0_119 = arith.constant 0 : index
    %175 = vector.load %arg2[%c0_116, %c1_117, %c2_118, %c0_119] : memref<1x2x22x22xf32, #tpu.memory_space<vmem>>, vector<1x1x16x16xf32>
    %176 = vector.shape_cast %175 : vector<1x1x16x16xf32> to vector<16x16xf32>
    %c29 = arith.constant 29 : index
    %177 = memref.load %arg1[%c29] : memref<98xf32, #tpu.memory_space<smem>>
    %178 = vector.broadcast %177 : f32 to vector<16x16xf32>
    %179 = arith.mulf %176, %178 : vector<16x16xf32>
    %180 = arith.addf %174, %179 : vector<16x16xf32>
    %c0_120 = arith.constant 0 : index
    %c0_121 = arith.constant 0 : index
    %c2_122 = arith.constant 2 : index
    %c1_123 = arith.constant 1 : index
    %181 = vector.load %arg2[%c0_120, %c0_121, %c2_122, %c1_123] : memref<1x2x22x22xf32, #tpu.memory_space<vmem>>, vector<1x1x16x16xf32>
    %182 = vector.shape_cast %181 : vector<1x1x16x16xf32> to vector<16x16xf32>
    %c30 = arith.constant 30 : index
    %183 = memref.load %arg1[%c30] : memref<98xf32, #tpu.memory_space<smem>>
    %184 = vector.broadcast %183 : f32 to vector<16x16xf32>
    %185 = arith.mulf %182, %184 : vector<16x16xf32>
    %186 = arith.addf %180, %185 : vector<16x16xf32>
    %c0_124 = arith.constant 0 : index
    %c1_125 = arith.constant 1 : index
    %c2_126 = arith.constant 2 : index
    %c1_127 = arith.constant 1 : index
    %187 = vector.load %arg2[%c0_124, %c1_125, %c2_126, %c1_127] : memref<1x2x22x22xf32, #tpu.memory_space<vmem>>, vector<1x1x16x16xf32>
    %188 = vector.shape_cast %187 : vector<1x1x16x16xf32> to vector<16x16xf32>
    %c31 = arith.constant 31 : index
    %189 = memref.load %arg1[%c31] : memref<98xf32, #tpu.memory_space<smem>>
    %190 = vector.broadcast %189 : f32 to vector<16x16xf32>
    %191 = arith.mulf %188, %190 : vector<16x16xf32>
    %192 = arith.addf %186, %191 : vector<16x16xf32>
    %c0_128 = arith.constant 0 : index
    %c0_129 = arith.constant 0 : index
    %c2_130 = arith.constant 2 : index
    %c2_131 = arith.constant 2 : index
    %193 = vector.load %arg2[%c0_128, %c0_129, %c2_130, %c2_131] : memref<1x2x22x22xf32, #tpu.memory_space<vmem>>, vector<1x1x16x16xf32>
    %194 = vector.shape_cast %193 : vector<1x1x16x16xf32> to vector<16x16xf32>
    %c32 = arith.constant 32 : index
    %195 = memref.load %arg1[%c32] : memref<98xf32, #tpu.memory_space<smem>>
    %196 = vector.broadcast %195 : f32 to vector<16x16xf32>
    %197 = arith.mulf %194, %196 : vector<16x16xf32>
    %198 = arith.addf %192, %197 : vector<16x16xf32>
    %c0_132 = arith.constant 0 : index
    %c1_133 = arith.constant 1 : index
    %c2_134 = arith.constant 2 : index
    %c2_135 = arith.constant 2 : index
    %199 = vector.load %arg2[%c0_132, %c1_133, %c2_134, %c2_135] : memref<1x2x22x22xf32, #tpu.memory_space<vmem>>, vector<1x1x16x16xf32>
    %200 = vector.shape_cast %199 : vector<1x1x16x16xf32> to vector<16x16xf32>
    %c33 = arith.constant 33 : index
    %201 = memref.load %arg1[%c33] : memref<98xf32, #tpu.memory_space<smem>>
    %202 = vector.broadcast %201 : f32 to vector<16x16xf32>
    %203 = arith.mulf %200, %202 : vector<16x16xf32>
    %204 = arith.addf %198, %203 : vector<16x16xf32>
    %c0_136 = arith.constant 0 : index
    %c0_137 = arith.constant 0 : index
    %c2_138 = arith.constant 2 : index
    %c3_139 = arith.constant 3 : index
    %205 = vector.load %arg2[%c0_136, %c0_137, %c2_138, %c3_139] : memref<1x2x22x22xf32, #tpu.memory_space<vmem>>, vector<1x1x16x16xf32>
    %206 = vector.shape_cast %205 : vector<1x1x16x16xf32> to vector<16x16xf32>
    %c34 = arith.constant 34 : index
    %207 = memref.load %arg1[%c34] : memref<98xf32, #tpu.memory_space<smem>>
    %208 = vector.broadcast %207 : f32 to vector<16x16xf32>
    %209 = arith.mulf %206, %208 : vector<16x16xf32>
    %210 = arith.addf %204, %209 : vector<16x16xf32>
    %c0_140 = arith.constant 0 : index
    %c1_141 = arith.constant 1 : index
    %c2_142 = arith.constant 2 : index
    %c3_143 = arith.constant 3 : index
    %211 = vector.load %arg2[%c0_140, %c1_141, %c2_142, %c3_143] : memref<1x2x22x22xf32, #tpu.memory_space<vmem>>, vector<1x1x16x16xf32>
    %212 = vector.shape_cast %211 : vector<1x1x16x16xf32> to vector<16x16xf32>
    %c35 = arith.constant 35 : index
    %213 = memref.load %arg1[%c35] : memref<98xf32, #tpu.memory_space<smem>>
    %214 = vector.broadcast %213 : f32 to vector<16x16xf32>
    %215 = arith.mulf %212, %214 : vector<16x16xf32>
    %216 = arith.addf %210, %215 : vector<16x16xf32>
    %c0_144 = arith.constant 0 : index
    %c0_145 = arith.constant 0 : index
    %c2_146 = arith.constant 2 : index
    %c4_147 = arith.constant 4 : index
    %217 = vector.load %arg2[%c0_144, %c0_145, %c2_146, %c4_147] : memref<1x2x22x22xf32, #tpu.memory_space<vmem>>, vector<1x1x16x16xf32>
    %218 = vector.shape_cast %217 : vector<1x1x16x16xf32> to vector<16x16xf32>
    %c36 = arith.constant 36 : index
    %219 = memref.load %arg1[%c36] : memref<98xf32, #tpu.memory_space<smem>>
    %220 = vector.broadcast %219 : f32 to vector<16x16xf32>
    %221 = arith.mulf %218, %220 : vector<16x16xf32>
    %222 = arith.addf %216, %221 : vector<16x16xf32>
    %c0_148 = arith.constant 0 : index
    %c1_149 = arith.constant 1 : index
    %c2_150 = arith.constant 2 : index
    %c4_151 = arith.constant 4 : index
    %223 = vector.load %arg2[%c0_148, %c1_149, %c2_150, %c4_151] : memref<1x2x22x22xf32, #tpu.memory_space<vmem>>, vector<1x1x16x16xf32>
    %224 = vector.shape_cast %223 : vector<1x1x16x16xf32> to vector<16x16xf32>
    %c37 = arith.constant 37 : index
    %225 = memref.load %arg1[%c37] : memref<98xf32, #tpu.memory_space<smem>>
    %226 = vector.broadcast %225 : f32 to vector<16x16xf32>
    %227 = arith.mulf %224, %226 : vector<16x16xf32>
    %228 = arith.addf %222, %227 : vector<16x16xf32>
    %c0_152 = arith.constant 0 : index
    %c0_153 = arith.constant 0 : index
    %c2_154 = arith.constant 2 : index
    %c5_155 = arith.constant 5 : index
    %229 = vector.load %arg2[%c0_152, %c0_153, %c2_154, %c5_155] : memref<1x2x22x22xf32, #tpu.memory_space<vmem>>, vector<1x1x16x16xf32>
    %230 = vector.shape_cast %229 : vector<1x1x16x16xf32> to vector<16x16xf32>
    %c38 = arith.constant 38 : index
    %231 = memref.load %arg1[%c38] : memref<98xf32, #tpu.memory_space<smem>>
    %232 = vector.broadcast %231 : f32 to vector<16x16xf32>
    %233 = arith.mulf %230, %232 : vector<16x16xf32>
    %234 = arith.addf %228, %233 : vector<16x16xf32>
    %c0_156 = arith.constant 0 : index
    %c1_157 = arith.constant 1 : index
    %c2_158 = arith.constant 2 : index
    %c5_159 = arith.constant 5 : index
    %235 = vector.load %arg2[%c0_156, %c1_157, %c2_158, %c5_159] : memref<1x2x22x22xf32, #tpu.memory_space<vmem>>, vector<1x1x16x16xf32>
    %236 = vector.shape_cast %235 : vector<1x1x16x16xf32> to vector<16x16xf32>
    %c39 = arith.constant 39 : index
    %237 = memref.load %arg1[%c39] : memref<98xf32, #tpu.memory_space<smem>>
    %238 = vector.broadcast %237 : f32 to vector<16x16xf32>
    %239 = arith.mulf %236, %238 : vector<16x16xf32>
    %240 = arith.addf %234, %239 : vector<16x16xf32>
    %c0_160 = arith.constant 0 : index
    %c0_161 = arith.constant 0 : index
    %c2_162 = arith.constant 2 : index
    %c6_163 = arith.constant 6 : index
    %241 = vector.load %arg2[%c0_160, %c0_161, %c2_162, %c6_163] : memref<1x2x22x22xf32, #tpu.memory_space<vmem>>, vector<1x1x16x16xf32>
    %242 = vector.shape_cast %241 : vector<1x1x16x16xf32> to vector<16x16xf32>
    %c40 = arith.constant 40 : index
    %243 = memref.load %arg1[%c40] : memref<98xf32, #tpu.memory_space<smem>>
    %244 = vector.broadcast %243 : f32 to vector<16x16xf32>
    %245 = arith.mulf %242, %244 : vector<16x16xf32>
    %246 = arith.addf %240, %245 : vector<16x16xf32>
    %c0_164 = arith.constant 0 : index
    %c1_165 = arith.constant 1 : index
    %c2_166 = arith.constant 2 : index
    %c6_167 = arith.constant 6 : index
    %247 = vector.load %arg2[%c0_164, %c1_165, %c2_166, %c6_167] : memref<1x2x22x22xf32, #tpu.memory_space<vmem>>, vector<1x1x16x16xf32>
    %248 = vector.shape_cast %247 : vector<1x1x16x16xf32> to vector<16x16xf32>
    %c41 = arith.constant 41 : index
    %249 = memref.load %arg1[%c41] : memref<98xf32, #tpu.memory_space<smem>>
    %250 = vector.broadcast %249 : f32 to vector<16x16xf32>
    %251 = arith.mulf %248, %250 : vector<16x16xf32>
    %252 = arith.addf %246, %251 : vector<16x16xf32>
    %c0_168 = arith.constant 0 : index
    %c0_169 = arith.constant 0 : index
    %c3_170 = arith.constant 3 : index
    %c0_171 = arith.constant 0 : index
    %253 = vector.load %arg2[%c0_168, %c0_169, %c3_170, %c0_171] : memref<1x2x22x22xf32, #tpu.memory_space<vmem>>, vector<1x1x16x16xf32>
    %254 = vector.shape_cast %253 : vector<1x1x16x16xf32> to vector<16x16xf32>
    %c42 = arith.constant 42 : index
    %255 = memref.load %arg1[%c42] : memref<98xf32, #tpu.memory_space<smem>>
    %256 = vector.broadcast %255 : f32 to vector<16x16xf32>
    %257 = arith.mulf %254, %256 : vector<16x16xf32>
    %258 = arith.addf %252, %257 : vector<16x16xf32>
    %c0_172 = arith.constant 0 : index
    %c1_173 = arith.constant 1 : index
    %c3_174 = arith.constant 3 : index
    %c0_175 = arith.constant 0 : index
    %259 = vector.load %arg2[%c0_172, %c1_173, %c3_174, %c0_175] : memref<1x2x22x22xf32, #tpu.memory_space<vmem>>, vector<1x1x16x16xf32>
    %260 = vector.shape_cast %259 : vector<1x1x16x16xf32> to vector<16x16xf32>
    %c43 = arith.constant 43 : index
    %261 = memref.load %arg1[%c43] : memref<98xf32, #tpu.memory_space<smem>>
    %262 = vector.broadcast %261 : f32 to vector<16x16xf32>
    %263 = arith.mulf %260, %262 : vector<16x16xf32>
    %264 = arith.addf %258, %263 : vector<16x16xf32>
    %c0_176 = arith.constant 0 : index
    %c0_177 = arith.constant 0 : index
    %c3_178 = arith.constant 3 : index
    %c1_179 = arith.constant 1 : index
    %265 = vector.load %arg2[%c0_176, %c0_177, %c3_178, %c1_179] : memref<1x2x22x22xf32, #tpu.memory_space<vmem>>, vector<1x1x16x16xf32>
    %266 = vector.shape_cast %265 : vector<1x1x16x16xf32> to vector<16x16xf32>
    %c44 = arith.constant 44 : index
    %267 = memref.load %arg1[%c44] : memref<98xf32, #tpu.memory_space<smem>>
    %268 = vector.broadcast %267 : f32 to vector<16x16xf32>
    %269 = arith.mulf %266, %268 : vector<16x16xf32>
    %270 = arith.addf %264, %269 : vector<16x16xf32>
    %c0_180 = arith.constant 0 : index
    %c1_181 = arith.constant 1 : index
    %c3_182 = arith.constant 3 : index
    %c1_183 = arith.constant 1 : index
    %271 = vector.load %arg2[%c0_180, %c1_181, %c3_182, %c1_183] : memref<1x2x22x22xf32, #tpu.memory_space<vmem>>, vector<1x1x16x16xf32>
    %272 = vector.shape_cast %271 : vector<1x1x16x16xf32> to vector<16x16xf32>
    %c45 = arith.constant 45 : index
    %273 = memref.load %arg1[%c45] : memref<98xf32, #tpu.memory_space<smem>>
    %274 = vector.broadcast %273 : f32 to vector<16x16xf32>
    %275 = arith.mulf %272, %274 : vector<16x16xf32>
    %276 = arith.addf %270, %275 : vector<16x16xf32>
    %c0_184 = arith.constant 0 : index
    %c0_185 = arith.constant 0 : index
    %c3_186 = arith.constant 3 : index
    %c2_187 = arith.constant 2 : index
    %277 = vector.load %arg2[%c0_184, %c0_185, %c3_186, %c2_187] : memref<1x2x22x22xf32, #tpu.memory_space<vmem>>, vector<1x1x16x16xf32>
    %278 = vector.shape_cast %277 : vector<1x1x16x16xf32> to vector<16x16xf32>
    %c46 = arith.constant 46 : index
    %279 = memref.load %arg1[%c46] : memref<98xf32, #tpu.memory_space<smem>>
    %280 = vector.broadcast %279 : f32 to vector<16x16xf32>
    %281 = arith.mulf %278, %280 : vector<16x16xf32>
    %282 = arith.addf %276, %281 : vector<16x16xf32>
    %c0_188 = arith.constant 0 : index
    %c1_189 = arith.constant 1 : index
    %c3_190 = arith.constant 3 : index
    %c2_191 = arith.constant 2 : index
    %283 = vector.load %arg2[%c0_188, %c1_189, %c3_190, %c2_191] : memref<1x2x22x22xf32, #tpu.memory_space<vmem>>, vector<1x1x16x16xf32>
    %284 = vector.shape_cast %283 : vector<1x1x16x16xf32> to vector<16x16xf32>
    %c47 = arith.constant 47 : index
    %285 = memref.load %arg1[%c47] : memref<98xf32, #tpu.memory_space<smem>>
    %286 = vector.broadcast %285 : f32 to vector<16x16xf32>
    %287 = arith.mulf %284, %286 : vector<16x16xf32>
    %288 = arith.addf %282, %287 : vector<16x16xf32>
    %c0_192 = arith.constant 0 : index
    %c0_193 = arith.constant 0 : index
    %c3_194 = arith.constant 3 : index
    %c3_195 = arith.constant 3 : index
    %289 = vector.load %arg2[%c0_192, %c0_193, %c3_194, %c3_195] : memref<1x2x22x22xf32, #tpu.memory_space<vmem>>, vector<1x1x16x16xf32>
    %290 = vector.shape_cast %289 : vector<1x1x16x16xf32> to vector<16x16xf32>
    %c48 = arith.constant 48 : index
    %291 = memref.load %arg1[%c48] : memref<98xf32, #tpu.memory_space<smem>>
    %292 = vector.broadcast %291 : f32 to vector<16x16xf32>
    %293 = arith.mulf %290, %292 : vector<16x16xf32>
    %294 = arith.addf %288, %293 : vector<16x16xf32>
    %c0_196 = arith.constant 0 : index
    %c1_197 = arith.constant 1 : index
    %c3_198 = arith.constant 3 : index
    %c3_199 = arith.constant 3 : index
    %295 = vector.load %arg2[%c0_196, %c1_197, %c3_198, %c3_199] : memref<1x2x22x22xf32, #tpu.memory_space<vmem>>, vector<1x1x16x16xf32>
    %296 = vector.shape_cast %295 : vector<1x1x16x16xf32> to vector<16x16xf32>
    %c49 = arith.constant 49 : index
    %297 = memref.load %arg1[%c49] : memref<98xf32, #tpu.memory_space<smem>>
    %298 = vector.broadcast %297 : f32 to vector<16x16xf32>
    %299 = arith.mulf %296, %298 : vector<16x16xf32>
    %300 = arith.addf %294, %299 : vector<16x16xf32>
    %c0_200 = arith.constant 0 : index
    %c0_201 = arith.constant 0 : index
    %c3_202 = arith.constant 3 : index
    %c4_203 = arith.constant 4 : index
    %301 = vector.load %arg2[%c0_200, %c0_201, %c3_202, %c4_203] : memref<1x2x22x22xf32, #tpu.memory_space<vmem>>, vector<1x1x16x16xf32>
    %302 = vector.shape_cast %301 : vector<1x1x16x16xf32> to vector<16x16xf32>
    %c50 = arith.constant 50 : index
    %303 = memref.load %arg1[%c50] : memref<98xf32, #tpu.memory_space<smem>>
    %304 = vector.broadcast %303 : f32 to vector<16x16xf32>
    %305 = arith.mulf %302, %304 : vector<16x16xf32>
    %306 = arith.addf %300, %305 : vector<16x16xf32>
    %c0_204 = arith.constant 0 : index
    %c1_205 = arith.constant 1 : index
    %c3_206 = arith.constant 3 : index
    %c4_207 = arith.constant 4 : index
    %307 = vector.load %arg2[%c0_204, %c1_205, %c3_206, %c4_207] : memref<1x2x22x22xf32, #tpu.memory_space<vmem>>, vector<1x1x16x16xf32>
    %308 = vector.shape_cast %307 : vector<1x1x16x16xf32> to vector<16x16xf32>
    %c51 = arith.constant 51 : index
    %309 = memref.load %arg1[%c51] : memref<98xf32, #tpu.memory_space<smem>>
    %310 = vector.broadcast %309 : f32 to vector<16x16xf32>
    %311 = arith.mulf %308, %310 : vector<16x16xf32>
    %312 = arith.addf %306, %311 : vector<16x16xf32>
    %c0_208 = arith.constant 0 : index
    %c0_209 = arith.constant 0 : index
    %c3_210 = arith.constant 3 : index
    %c5_211 = arith.constant 5 : index
    %313 = vector.load %arg2[%c0_208, %c0_209, %c3_210, %c5_211] : memref<1x2x22x22xf32, #tpu.memory_space<vmem>>, vector<1x1x16x16xf32>
    %314 = vector.shape_cast %313 : vector<1x1x16x16xf32> to vector<16x16xf32>
    %c52 = arith.constant 52 : index
    %315 = memref.load %arg1[%c52] : memref<98xf32, #tpu.memory_space<smem>>
    %316 = vector.broadcast %315 : f32 to vector<16x16xf32>
    %317 = arith.mulf %314, %316 : vector<16x16xf32>
    %318 = arith.addf %312, %317 : vector<16x16xf32>
    %c0_212 = arith.constant 0 : index
    %c1_213 = arith.constant 1 : index
    %c3_214 = arith.constant 3 : index
    %c5_215 = arith.constant 5 : index
    %319 = vector.load %arg2[%c0_212, %c1_213, %c3_214, %c5_215] : memref<1x2x22x22xf32, #tpu.memory_space<vmem>>, vector<1x1x16x16xf32>
    %320 = vector.shape_cast %319 : vector<1x1x16x16xf32> to vector<16x16xf32>
    %c53 = arith.constant 53 : index
    %321 = memref.load %arg1[%c53] : memref<98xf32, #tpu.memory_space<smem>>
    %322 = vector.broadcast %321 : f32 to vector<16x16xf32>
    %323 = arith.mulf %320, %322 : vector<16x16xf32>
    %324 = arith.addf %318, %323 : vector<16x16xf32>
    %c0_216 = arith.constant 0 : index
    %c0_217 = arith.constant 0 : index
    %c3_218 = arith.constant 3 : index
    %c6_219 = arith.constant 6 : index
    %325 = vector.load %arg2[%c0_216, %c0_217, %c3_218, %c6_219] : memref<1x2x22x22xf32, #tpu.memory_space<vmem>>, vector<1x1x16x16xf32>
    %326 = vector.shape_cast %325 : vector<1x1x16x16xf32> to vector<16x16xf32>
    %c54 = arith.constant 54 : index
    %327 = memref.load %arg1[%c54] : memref<98xf32, #tpu.memory_space<smem>>
    %328 = vector.broadcast %327 : f32 to vector<16x16xf32>
    %329 = arith.mulf %326, %328 : vector<16x16xf32>
    %330 = arith.addf %324, %329 : vector<16x16xf32>
    %c0_220 = arith.constant 0 : index
    %c1_221 = arith.constant 1 : index
    %c3_222 = arith.constant 3 : index
    %c6_223 = arith.constant 6 : index
    %331 = vector.load %arg2[%c0_220, %c1_221, %c3_222, %c6_223] : memref<1x2x22x22xf32, #tpu.memory_space<vmem>>, vector<1x1x16x16xf32>
    %332 = vector.shape_cast %331 : vector<1x1x16x16xf32> to vector<16x16xf32>
    %c55 = arith.constant 55 : index
    %333 = memref.load %arg1[%c55] : memref<98xf32, #tpu.memory_space<smem>>
    %334 = vector.broadcast %333 : f32 to vector<16x16xf32>
    %335 = arith.mulf %332, %334 : vector<16x16xf32>
    %336 = arith.addf %330, %335 : vector<16x16xf32>
    %c0_224 = arith.constant 0 : index
    %c0_225 = arith.constant 0 : index
    %c4_226 = arith.constant 4 : index
    %c0_227 = arith.constant 0 : index
    %337 = vector.load %arg2[%c0_224, %c0_225, %c4_226, %c0_227] : memref<1x2x22x22xf32, #tpu.memory_space<vmem>>, vector<1x1x16x16xf32>
    %338 = vector.shape_cast %337 : vector<1x1x16x16xf32> to vector<16x16xf32>
    %c56 = arith.constant 56 : index
    %339 = memref.load %arg1[%c56] : memref<98xf32, #tpu.memory_space<smem>>
    %340 = vector.broadcast %339 : f32 to vector<16x16xf32>
    %341 = arith.mulf %338, %340 : vector<16x16xf32>
    %342 = arith.addf %336, %341 : vector<16x16xf32>
    %c0_228 = arith.constant 0 : index
    %c1_229 = arith.constant 1 : index
    %c4_230 = arith.constant 4 : index
    %c0_231 = arith.constant 0 : index
    %343 = vector.load %arg2[%c0_228, %c1_229, %c4_230, %c0_231] : memref<1x2x22x22xf32, #tpu.memory_space<vmem>>, vector<1x1x16x16xf32>
    %344 = vector.shape_cast %343 : vector<1x1x16x16xf32> to vector<16x16xf32>
    %c57 = arith.constant 57 : index
    %345 = memref.load %arg1[%c57] : memref<98xf32, #tpu.memory_space<smem>>
    %346 = vector.broadcast %345 : f32 to vector<16x16xf32>
    %347 = arith.mulf %344, %346 : vector<16x16xf32>
    %348 = arith.addf %342, %347 : vector<16x16xf32>
    %c0_232 = arith.constant 0 : index
    %c0_233 = arith.constant 0 : index
    %c4_234 = arith.constant 4 : index
    %c1_235 = arith.constant 1 : index
    %349 = vector.load %arg2[%c0_232, %c0_233, %c4_234, %c1_235] : memref<1x2x22x22xf32, #tpu.memory_space<vmem>>, vector<1x1x16x16xf32>
    %350 = vector.shape_cast %349 : vector<1x1x16x16xf32> to vector<16x16xf32>
    %c58 = arith.constant 58 : index
    %351 = memref.load %arg1[%c58] : memref<98xf32, #tpu.memory_space<smem>>
    %352 = vector.broadcast %351 : f32 to vector<16x16xf32>
    %353 = arith.mulf %350, %352 : vector<16x16xf32>
    %354 = arith.addf %348, %353 : vector<16x16xf32>
    %c0_236 = arith.constant 0 : index
    %c1_237 = arith.constant 1 : index
    %c4_238 = arith.constant 4 : index
    %c1_239 = arith.constant 1 : index
    %355 = vector.load %arg2[%c0_236, %c1_237, %c4_238, %c1_239] : memref<1x2x22x22xf32, #tpu.memory_space<vmem>>, vector<1x1x16x16xf32>
    %356 = vector.shape_cast %355 : vector<1x1x16x16xf32> to vector<16x16xf32>
    %c59 = arith.constant 59 : index
    %357 = memref.load %arg1[%c59] : memref<98xf32, #tpu.memory_space<smem>>
    %358 = vector.broadcast %357 : f32 to vector<16x16xf32>
    %359 = arith.mulf %356, %358 : vector<16x16xf32>
    %360 = arith.addf %354, %359 : vector<16x16xf32>
    %c0_240 = arith.constant 0 : index
    %c0_241 = arith.constant 0 : index
    %c4_242 = arith.constant 4 : index
    %c2_243 = arith.constant 2 : index
    %361 = vector.load %arg2[%c0_240, %c0_241, %c4_242, %c2_243] : memref<1x2x22x22xf32, #tpu.memory_space<vmem>>, vector<1x1x16x16xf32>
    %362 = vector.shape_cast %361 : vector<1x1x16x16xf32> to vector<16x16xf32>
    %c60 = arith.constant 60 : index
    %363 = memref.load %arg1[%c60] : memref<98xf32, #tpu.memory_space<smem>>
    %364 = vector.broadcast %363 : f32 to vector<16x16xf32>
    %365 = arith.mulf %362, %364 : vector<16x16xf32>
    %366 = arith.addf %360, %365 : vector<16x16xf32>
    %c0_244 = arith.constant 0 : index
    %c1_245 = arith.constant 1 : index
    %c4_246 = arith.constant 4 : index
    %c2_247 = arith.constant 2 : index
    %367 = vector.load %arg2[%c0_244, %c1_245, %c4_246, %c2_247] : memref<1x2x22x22xf32, #tpu.memory_space<vmem>>, vector<1x1x16x16xf32>
    %368 = vector.shape_cast %367 : vector<1x1x16x16xf32> to vector<16x16xf32>
    %c61 = arith.constant 61 : index
    %369 = memref.load %arg1[%c61] : memref<98xf32, #tpu.memory_space<smem>>
    %370 = vector.broadcast %369 : f32 to vector<16x16xf32>
    %371 = arith.mulf %368, %370 : vector<16x16xf32>
    %372 = arith.addf %366, %371 : vector<16x16xf32>
    %c0_248 = arith.constant 0 : index
    %c0_249 = arith.constant 0 : index
    %c4_250 = arith.constant 4 : index
    %c3_251 = arith.constant 3 : index
    %373 = vector.load %arg2[%c0_248, %c0_249, %c4_250, %c3_251] : memref<1x2x22x22xf32, #tpu.memory_space<vmem>>, vector<1x1x16x16xf32>
    %374 = vector.shape_cast %373 : vector<1x1x16x16xf32> to vector<16x16xf32>
    %c62 = arith.constant 62 : index
    %375 = memref.load %arg1[%c62] : memref<98xf32, #tpu.memory_space<smem>>
    %376 = vector.broadcast %375 : f32 to vector<16x16xf32>
    %377 = arith.mulf %374, %376 : vector<16x16xf32>
    %378 = arith.addf %372, %377 : vector<16x16xf32>
    %c0_252 = arith.constant 0 : index
    %c1_253 = arith.constant 1 : index
    %c4_254 = arith.constant 4 : index
    %c3_255 = arith.constant 3 : index
    %379 = vector.load %arg2[%c0_252, %c1_253, %c4_254, %c3_255] : memref<1x2x22x22xf32, #tpu.memory_space<vmem>>, vector<1x1x16x16xf32>
    %380 = vector.shape_cast %379 : vector<1x1x16x16xf32> to vector<16x16xf32>
    %c63 = arith.constant 63 : index
    %381 = memref.load %arg1[%c63] : memref<98xf32, #tpu.memory_space<smem>>
    %382 = vector.broadcast %381 : f32 to vector<16x16xf32>
    %383 = arith.mulf %380, %382 : vector<16x16xf32>
    %384 = arith.addf %378, %383 : vector<16x16xf32>
    %c0_256 = arith.constant 0 : index
    %c0_257 = arith.constant 0 : index
    %c4_258 = arith.constant 4 : index
    %c4_259 = arith.constant 4 : index
    %385 = vector.load %arg2[%c0_256, %c0_257, %c4_258, %c4_259] : memref<1x2x22x22xf32, #tpu.memory_space<vmem>>, vector<1x1x16x16xf32>
    %386 = vector.shape_cast %385 : vector<1x1x16x16xf32> to vector<16x16xf32>
    %c64 = arith.constant 64 : index
    %387 = memref.load %arg1[%c64] : memref<98xf32, #tpu.memory_space<smem>>
    %388 = vector.broadcast %387 : f32 to vector<16x16xf32>
    %389 = arith.mulf %386, %388 : vector<16x16xf32>
    %390 = arith.addf %384, %389 : vector<16x16xf32>
    %c0_260 = arith.constant 0 : index
    %c1_261 = arith.constant 1 : index
    %c4_262 = arith.constant 4 : index
    %c4_263 = arith.constant 4 : index
    %391 = vector.load %arg2[%c0_260, %c1_261, %c4_262, %c4_263] : memref<1x2x22x22xf32, #tpu.memory_space<vmem>>, vector<1x1x16x16xf32>
    %392 = vector.shape_cast %391 : vector<1x1x16x16xf32> to vector<16x16xf32>
    %c65 = arith.constant 65 : index
    %393 = memref.load %arg1[%c65] : memref<98xf32, #tpu.memory_space<smem>>
    %394 = vector.broadcast %393 : f32 to vector<16x16xf32>
    %395 = arith.mulf %392, %394 : vector<16x16xf32>
    %396 = arith.addf %390, %395 : vector<16x16xf32>
    %c0_264 = arith.constant 0 : index
    %c0_265 = arith.constant 0 : index
    %c4_266 = arith.constant 4 : index
    %c5_267 = arith.constant 5 : index
    %397 = vector.load %arg2[%c0_264, %c0_265, %c4_266, %c5_267] : memref<1x2x22x22xf32, #tpu.memory_space<vmem>>, vector<1x1x16x16xf32>
    %398 = vector.shape_cast %397 : vector<1x1x16x16xf32> to vector<16x16xf32>
    %c66 = arith.constant 66 : index
    %399 = memref.load %arg1[%c66] : memref<98xf32, #tpu.memory_space<smem>>
    %400 = vector.broadcast %399 : f32 to vector<16x16xf32>
    %401 = arith.mulf %398, %400 : vector<16x16xf32>
    %402 = arith.addf %396, %401 : vector<16x16xf32>
    %c0_268 = arith.constant 0 : index
    %c1_269 = arith.constant 1 : index
    %c4_270 = arith.constant 4 : index
    %c5_271 = arith.constant 5 : index
    %403 = vector.load %arg2[%c0_268, %c1_269, %c4_270, %c5_271] : memref<1x2x22x22xf32, #tpu.memory_space<vmem>>, vector<1x1x16x16xf32>
    %404 = vector.shape_cast %403 : vector<1x1x16x16xf32> to vector<16x16xf32>
    %c67 = arith.constant 67 : index
    %405 = memref.load %arg1[%c67] : memref<98xf32, #tpu.memory_space<smem>>
    %406 = vector.broadcast %405 : f32 to vector<16x16xf32>
    %407 = arith.mulf %404, %406 : vector<16x16xf32>
    %408 = arith.addf %402, %407 : vector<16x16xf32>
    %c0_272 = arith.constant 0 : index
    %c0_273 = arith.constant 0 : index
    %c4_274 = arith.constant 4 : index
    %c6_275 = arith.constant 6 : index
    %409 = vector.load %arg2[%c0_272, %c0_273, %c4_274, %c6_275] : memref<1x2x22x22xf32, #tpu.memory_space<vmem>>, vector<1x1x16x16xf32>
    %410 = vector.shape_cast %409 : vector<1x1x16x16xf32> to vector<16x16xf32>
    %c68 = arith.constant 68 : index
    %411 = memref.load %arg1[%c68] : memref<98xf32, #tpu.memory_space<smem>>
    %412 = vector.broadcast %411 : f32 to vector<16x16xf32>
    %413 = arith.mulf %410, %412 : vector<16x16xf32>
    %414 = arith.addf %408, %413 : vector<16x16xf32>
    %c0_276 = arith.constant 0 : index
    %c1_277 = arith.constant 1 : index
    %c4_278 = arith.constant 4 : index
    %c6_279 = arith.constant 6 : index
    %415 = vector.load %arg2[%c0_276, %c1_277, %c4_278, %c6_279] : memref<1x2x22x22xf32, #tpu.memory_space<vmem>>, vector<1x1x16x16xf32>
    %416 = vector.shape_cast %415 : vector<1x1x16x16xf32> to vector<16x16xf32>
    %c69 = arith.constant 69 : index
    %417 = memref.load %arg1[%c69] : memref<98xf32, #tpu.memory_space<smem>>
    %418 = vector.broadcast %417 : f32 to vector<16x16xf32>
    %419 = arith.mulf %416, %418 : vector<16x16xf32>
    %420 = arith.addf %414, %419 : vector<16x16xf32>
    %c0_280 = arith.constant 0 : index
    %c0_281 = arith.constant 0 : index
    %c5_282 = arith.constant 5 : index
    %c0_283 = arith.constant 0 : index
    %421 = vector.load %arg2[%c0_280, %c0_281, %c5_282, %c0_283] : memref<1x2x22x22xf32, #tpu.memory_space<vmem>>, vector<1x1x16x16xf32>
    %422 = vector.shape_cast %421 : vector<1x1x16x16xf32> to vector<16x16xf32>
    %c70 = arith.constant 70 : index
    %423 = memref.load %arg1[%c70] : memref<98xf32, #tpu.memory_space<smem>>
    %424 = vector.broadcast %423 : f32 to vector<16x16xf32>
    %425 = arith.mulf %422, %424 : vector<16x16xf32>
    %426 = arith.addf %420, %425 : vector<16x16xf32>
    %c0_284 = arith.constant 0 : index
    %c1_285 = arith.constant 1 : index
    %c5_286 = arith.constant 5 : index
    %c0_287 = arith.constant 0 : index
    %427 = vector.load %arg2[%c0_284, %c1_285, %c5_286, %c0_287] : memref<1x2x22x22xf32, #tpu.memory_space<vmem>>, vector<1x1x16x16xf32>
    %428 = vector.shape_cast %427 : vector<1x1x16x16xf32> to vector<16x16xf32>
    %c71 = arith.constant 71 : index
    %429 = memref.load %arg1[%c71] : memref<98xf32, #tpu.memory_space<smem>>
    %430 = vector.broadcast %429 : f32 to vector<16x16xf32>
    %431 = arith.mulf %428, %430 : vector<16x16xf32>
    %432 = arith.addf %426, %431 : vector<16x16xf32>
    %c0_288 = arith.constant 0 : index
    %c0_289 = arith.constant 0 : index
    %c5_290 = arith.constant 5 : index
    %c1_291 = arith.constant 1 : index
    %433 = vector.load %arg2[%c0_288, %c0_289, %c5_290, %c1_291] : memref<1x2x22x22xf32, #tpu.memory_space<vmem>>, vector<1x1x16x16xf32>
    %434 = vector.shape_cast %433 : vector<1x1x16x16xf32> to vector<16x16xf32>
    %c72 = arith.constant 72 : index
    %435 = memref.load %arg1[%c72] : memref<98xf32, #tpu.memory_space<smem>>
    %436 = vector.broadcast %435 : f32 to vector<16x16xf32>
    %437 = arith.mulf %434, %436 : vector<16x16xf32>
    %438 = arith.addf %432, %437 : vector<16x16xf32>
    %c0_292 = arith.constant 0 : index
    %c1_293 = arith.constant 1 : index
    %c5_294 = arith.constant 5 : index
    %c1_295 = arith.constant 1 : index
    %439 = vector.load %arg2[%c0_292, %c1_293, %c5_294, %c1_295] : memref<1x2x22x22xf32, #tpu.memory_space<vmem>>, vector<1x1x16x16xf32>
    %440 = vector.shape_cast %439 : vector<1x1x16x16xf32> to vector<16x16xf32>
    %c73 = arith.constant 73 : index
    %441 = memref.load %arg1[%c73] : memref<98xf32, #tpu.memory_space<smem>>
    %442 = vector.broadcast %441 : f32 to vector<16x16xf32>
    %443 = arith.mulf %440, %442 : vector<16x16xf32>
    %444 = arith.addf %438, %443 : vector<16x16xf32>
    %c0_296 = arith.constant 0 : index
    %c0_297 = arith.constant 0 : index
    %c5_298 = arith.constant 5 : index
    %c2_299 = arith.constant 2 : index
    %445 = vector.load %arg2[%c0_296, %c0_297, %c5_298, %c2_299] : memref<1x2x22x22xf32, #tpu.memory_space<vmem>>, vector<1x1x16x16xf32>
    %446 = vector.shape_cast %445 : vector<1x1x16x16xf32> to vector<16x16xf32>
    %c74 = arith.constant 74 : index
    %447 = memref.load %arg1[%c74] : memref<98xf32, #tpu.memory_space<smem>>
    %448 = vector.broadcast %447 : f32 to vector<16x16xf32>
    %449 = arith.mulf %446, %448 : vector<16x16xf32>
    %450 = arith.addf %444, %449 : vector<16x16xf32>
    %c0_300 = arith.constant 0 : index
    %c1_301 = arith.constant 1 : index
    %c5_302 = arith.constant 5 : index
    %c2_303 = arith.constant 2 : index
    %451 = vector.load %arg2[%c0_300, %c1_301, %c5_302, %c2_303] : memref<1x2x22x22xf32, #tpu.memory_space<vmem>>, vector<1x1x16x16xf32>
    %452 = vector.shape_cast %451 : vector<1x1x16x16xf32> to vector<16x16xf32>
    %c75 = arith.constant 75 : index
    %453 = memref.load %arg1[%c75] : memref<98xf32, #tpu.memory_space<smem>>
    %454 = vector.broadcast %453 : f32 to vector<16x16xf32>
    %455 = arith.mulf %452, %454 : vector<16x16xf32>
    %456 = arith.addf %450, %455 : vector<16x16xf32>
    %c0_304 = arith.constant 0 : index
    %c0_305 = arith.constant 0 : index
    %c5_306 = arith.constant 5 : index
    %c3_307 = arith.constant 3 : index
    %457 = vector.load %arg2[%c0_304, %c0_305, %c5_306, %c3_307] : memref<1x2x22x22xf32, #tpu.memory_space<vmem>>, vector<1x1x16x16xf32>
    %458 = vector.shape_cast %457 : vector<1x1x16x16xf32> to vector<16x16xf32>
    %c76 = arith.constant 76 : index
    %459 = memref.load %arg1[%c76] : memref<98xf32, #tpu.memory_space<smem>>
    %460 = vector.broadcast %459 : f32 to vector<16x16xf32>
    %461 = arith.mulf %458, %460 : vector<16x16xf32>
    %462 = arith.addf %456, %461 : vector<16x16xf32>
    %c0_308 = arith.constant 0 : index
    %c1_309 = arith.constant 1 : index
    %c5_310 = arith.constant 5 : index
    %c3_311 = arith.constant 3 : index
    %463 = vector.load %arg2[%c0_308, %c1_309, %c5_310, %c3_311] : memref<1x2x22x22xf32, #tpu.memory_space<vmem>>, vector<1x1x16x16xf32>
    %464 = vector.shape_cast %463 : vector<1x1x16x16xf32> to vector<16x16xf32>
    %c77 = arith.constant 77 : index
    %465 = memref.load %arg1[%c77] : memref<98xf32, #tpu.memory_space<smem>>
    %466 = vector.broadcast %465 : f32 to vector<16x16xf32>
    %467 = arith.mulf %464, %466 : vector<16x16xf32>
    %468 = arith.addf %462, %467 : vector<16x16xf32>
    %c0_312 = arith.constant 0 : index
    %c0_313 = arith.constant 0 : index
    %c5_314 = arith.constant 5 : index
    %c4_315 = arith.constant 4 : index
    %469 = vector.load %arg2[%c0_312, %c0_313, %c5_314, %c4_315] : memref<1x2x22x22xf32, #tpu.memory_space<vmem>>, vector<1x1x16x16xf32>
    %470 = vector.shape_cast %469 : vector<1x1x16x16xf32> to vector<16x16xf32>
    %c78 = arith.constant 78 : index
    %471 = memref.load %arg1[%c78] : memref<98xf32, #tpu.memory_space<smem>>
    %472 = vector.broadcast %471 : f32 to vector<16x16xf32>
    %473 = arith.mulf %470, %472 : vector<16x16xf32>
    %474 = arith.addf %468, %473 : vector<16x16xf32>
    %c0_316 = arith.constant 0 : index
    %c1_317 = arith.constant 1 : index
    %c5_318 = arith.constant 5 : index
    %c4_319 = arith.constant 4 : index
    %475 = vector.load %arg2[%c0_316, %c1_317, %c5_318, %c4_319] : memref<1x2x22x22xf32, #tpu.memory_space<vmem>>, vector<1x1x16x16xf32>
    %476 = vector.shape_cast %475 : vector<1x1x16x16xf32> to vector<16x16xf32>
    %c79 = arith.constant 79 : index
    %477 = memref.load %arg1[%c79] : memref<98xf32, #tpu.memory_space<smem>>
    %478 = vector.broadcast %477 : f32 to vector<16x16xf32>
    %479 = arith.mulf %476, %478 : vector<16x16xf32>
    %480 = arith.addf %474, %479 : vector<16x16xf32>
    %c0_320 = arith.constant 0 : index
    %c0_321 = arith.constant 0 : index
    %c5_322 = arith.constant 5 : index
    %c5_323 = arith.constant 5 : index
    %481 = vector.load %arg2[%c0_320, %c0_321, %c5_322, %c5_323] : memref<1x2x22x22xf32, #tpu.memory_space<vmem>>, vector<1x1x16x16xf32>
    %482 = vector.shape_cast %481 : vector<1x1x16x16xf32> to vector<16x16xf32>
    %c80 = arith.constant 80 : index
    %483 = memref.load %arg1[%c80] : memref<98xf32, #tpu.memory_space<smem>>
    %484 = vector.broadcast %483 : f32 to vector<16x16xf32>
    %485 = arith.mulf %482, %484 : vector<16x16xf32>
    %486 = arith.addf %480, %485 : vector<16x16xf32>
    %c0_324 = arith.constant 0 : index
    %c1_325 = arith.constant 1 : index
    %c5_326 = arith.constant 5 : index
    %c5_327 = arith.constant 5 : index
    %487 = vector.load %arg2[%c0_324, %c1_325, %c5_326, %c5_327] : memref<1x2x22x22xf32, #tpu.memory_space<vmem>>, vector<1x1x16x16xf32>
    %488 = vector.shape_cast %487 : vector<1x1x16x16xf32> to vector<16x16xf32>
    %c81 = arith.constant 81 : index
    %489 = memref.load %arg1[%c81] : memref<98xf32, #tpu.memory_space<smem>>
    %490 = vector.broadcast %489 : f32 to vector<16x16xf32>
    %491 = arith.mulf %488, %490 : vector<16x16xf32>
    %492 = arith.addf %486, %491 : vector<16x16xf32>
    %c0_328 = arith.constant 0 : index
    %c0_329 = arith.constant 0 : index
    %c5_330 = arith.constant 5 : index
    %c6_331 = arith.constant 6 : index
    %493 = vector.load %arg2[%c0_328, %c0_329, %c5_330, %c6_331] : memref<1x2x22x22xf32, #tpu.memory_space<vmem>>, vector<1x1x16x16xf32>
    %494 = vector.shape_cast %493 : vector<1x1x16x16xf32> to vector<16x16xf32>
    %c82 = arith.constant 82 : index
    %495 = memref.load %arg1[%c82] : memref<98xf32, #tpu.memory_space<smem>>
    %496 = vector.broadcast %495 : f32 to vector<16x16xf32>
    %497 = arith.mulf %494, %496 : vector<16x16xf32>
    %498 = arith.addf %492, %497 : vector<16x16xf32>
    %c0_332 = arith.constant 0 : index
    %c1_333 = arith.constant 1 : index
    %c5_334 = arith.constant 5 : index
    %c6_335 = arith.constant 6 : index
    %499 = vector.load %arg2[%c0_332, %c1_333, %c5_334, %c6_335] : memref<1x2x22x22xf32, #tpu.memory_space<vmem>>, vector<1x1x16x16xf32>
    %500 = vector.shape_cast %499 : vector<1x1x16x16xf32> to vector<16x16xf32>
    %c83 = arith.constant 83 : index
    %501 = memref.load %arg1[%c83] : memref<98xf32, #tpu.memory_space<smem>>
    %502 = vector.broadcast %501 : f32 to vector<16x16xf32>
    %503 = arith.mulf %500, %502 : vector<16x16xf32>
    %504 = arith.addf %498, %503 : vector<16x16xf32>
    %c0_336 = arith.constant 0 : index
    %c0_337 = arith.constant 0 : index
    %c6_338 = arith.constant 6 : index
    %c0_339 = arith.constant 0 : index
    %505 = vector.load %arg2[%c0_336, %c0_337, %c6_338, %c0_339] : memref<1x2x22x22xf32, #tpu.memory_space<vmem>>, vector<1x1x16x16xf32>
    %506 = vector.shape_cast %505 : vector<1x1x16x16xf32> to vector<16x16xf32>
    %c84 = arith.constant 84 : index
    %507 = memref.load %arg1[%c84] : memref<98xf32, #tpu.memory_space<smem>>
    %508 = vector.broadcast %507 : f32 to vector<16x16xf32>
    %509 = arith.mulf %506, %508 : vector<16x16xf32>
    %510 = arith.addf %504, %509 : vector<16x16xf32>
    %c0_340 = arith.constant 0 : index
    %c1_341 = arith.constant 1 : index
    %c6_342 = arith.constant 6 : index
    %c0_343 = arith.constant 0 : index
    %511 = vector.load %arg2[%c0_340, %c1_341, %c6_342, %c0_343] : memref<1x2x22x22xf32, #tpu.memory_space<vmem>>, vector<1x1x16x16xf32>
    %512 = vector.shape_cast %511 : vector<1x1x16x16xf32> to vector<16x16xf32>
    %c85 = arith.constant 85 : index
    %513 = memref.load %arg1[%c85] : memref<98xf32, #tpu.memory_space<smem>>
    %514 = vector.broadcast %513 : f32 to vector<16x16xf32>
    %515 = arith.mulf %512, %514 : vector<16x16xf32>
    %516 = arith.addf %510, %515 : vector<16x16xf32>
    %c0_344 = arith.constant 0 : index
    %c0_345 = arith.constant 0 : index
    %c6_346 = arith.constant 6 : index
    %c1_347 = arith.constant 1 : index
    %517 = vector.load %arg2[%c0_344, %c0_345, %c6_346, %c1_347] : memref<1x2x22x22xf32, #tpu.memory_space<vmem>>, vector<1x1x16x16xf32>
    %518 = vector.shape_cast %517 : vector<1x1x16x16xf32> to vector<16x16xf32>
    %c86 = arith.constant 86 : index
    %519 = memref.load %arg1[%c86] : memref<98xf32, #tpu.memory_space<smem>>
    %520 = vector.broadcast %519 : f32 to vector<16x16xf32>
    %521 = arith.mulf %518, %520 : vector<16x16xf32>
    %522 = arith.addf %516, %521 : vector<16x16xf32>
    %c0_348 = arith.constant 0 : index
    %c1_349 = arith.constant 1 : index
    %c6_350 = arith.constant 6 : index
    %c1_351 = arith.constant 1 : index
    %523 = vector.load %arg2[%c0_348, %c1_349, %c6_350, %c1_351] : memref<1x2x22x22xf32, #tpu.memory_space<vmem>>, vector<1x1x16x16xf32>
    %524 = vector.shape_cast %523 : vector<1x1x16x16xf32> to vector<16x16xf32>
    %c87 = arith.constant 87 : index
    %525 = memref.load %arg1[%c87] : memref<98xf32, #tpu.memory_space<smem>>
    %526 = vector.broadcast %525 : f32 to vector<16x16xf32>
    %527 = arith.mulf %524, %526 : vector<16x16xf32>
    %528 = arith.addf %522, %527 : vector<16x16xf32>
    %c0_352 = arith.constant 0 : index
    %c0_353 = arith.constant 0 : index
    %c6_354 = arith.constant 6 : index
    %c2_355 = arith.constant 2 : index
    %529 = vector.load %arg2[%c0_352, %c0_353, %c6_354, %c2_355] : memref<1x2x22x22xf32, #tpu.memory_space<vmem>>, vector<1x1x16x16xf32>
    %530 = vector.shape_cast %529 : vector<1x1x16x16xf32> to vector<16x16xf32>
    %c88 = arith.constant 88 : index
    %531 = memref.load %arg1[%c88] : memref<98xf32, #tpu.memory_space<smem>>
    %532 = vector.broadcast %531 : f32 to vector<16x16xf32>
    %533 = arith.mulf %530, %532 : vector<16x16xf32>
    %534 = arith.addf %528, %533 : vector<16x16xf32>
    %c0_356 = arith.constant 0 : index
    %c1_357 = arith.constant 1 : index
    %c6_358 = arith.constant 6 : index
    %c2_359 = arith.constant 2 : index
    %535 = vector.load %arg2[%c0_356, %c1_357, %c6_358, %c2_359] : memref<1x2x22x22xf32, #tpu.memory_space<vmem>>, vector<1x1x16x16xf32>
    %536 = vector.shape_cast %535 : vector<1x1x16x16xf32> to vector<16x16xf32>
    %c89 = arith.constant 89 : index
    %537 = memref.load %arg1[%c89] : memref<98xf32, #tpu.memory_space<smem>>
    %538 = vector.broadcast %537 : f32 to vector<16x16xf32>
    %539 = arith.mulf %536, %538 : vector<16x16xf32>
    %540 = arith.addf %534, %539 : vector<16x16xf32>
    %c0_360 = arith.constant 0 : index
    %c0_361 = arith.constant 0 : index
    %c6_362 = arith.constant 6 : index
    %c3_363 = arith.constant 3 : index
    %541 = vector.load %arg2[%c0_360, %c0_361, %c6_362, %c3_363] : memref<1x2x22x22xf32, #tpu.memory_space<vmem>>, vector<1x1x16x16xf32>
    %542 = vector.shape_cast %541 : vector<1x1x16x16xf32> to vector<16x16xf32>
    %c90 = arith.constant 90 : index
    %543 = memref.load %arg1[%c90] : memref<98xf32, #tpu.memory_space<smem>>
    %544 = vector.broadcast %543 : f32 to vector<16x16xf32>
    %545 = arith.mulf %542, %544 : vector<16x16xf32>
    %546 = arith.addf %540, %545 : vector<16x16xf32>
    %c0_364 = arith.constant 0 : index
    %c1_365 = arith.constant 1 : index
    %c6_366 = arith.constant 6 : index
    %c3_367 = arith.constant 3 : index
    %547 = vector.load %arg2[%c0_364, %c1_365, %c6_366, %c3_367] : memref<1x2x22x22xf32, #tpu.memory_space<vmem>>, vector<1x1x16x16xf32>
    %548 = vector.shape_cast %547 : vector<1x1x16x16xf32> to vector<16x16xf32>
    %c91 = arith.constant 91 : index
    %549 = memref.load %arg1[%c91] : memref<98xf32, #tpu.memory_space<smem>>
    %550 = vector.broadcast %549 : f32 to vector<16x16xf32>
    %551 = arith.mulf %548, %550 : vector<16x16xf32>
    %552 = arith.addf %546, %551 : vector<16x16xf32>
    %c0_368 = arith.constant 0 : index
    %c0_369 = arith.constant 0 : index
    %c6_370 = arith.constant 6 : index
    %c4_371 = arith.constant 4 : index
    %553 = vector.load %arg2[%c0_368, %c0_369, %c6_370, %c4_371] : memref<1x2x22x22xf32, #tpu.memory_space<vmem>>, vector<1x1x16x16xf32>
    %554 = vector.shape_cast %553 : vector<1x1x16x16xf32> to vector<16x16xf32>
    %c92 = arith.constant 92 : index
    %555 = memref.load %arg1[%c92] : memref<98xf32, #tpu.memory_space<smem>>
    %556 = vector.broadcast %555 : f32 to vector<16x16xf32>
    %557 = arith.mulf %554, %556 : vector<16x16xf32>
    %558 = arith.addf %552, %557 : vector<16x16xf32>
    %c0_372 = arith.constant 0 : index
    %c1_373 = arith.constant 1 : index
    %c6_374 = arith.constant 6 : index
    %c4_375 = arith.constant 4 : index
    %559 = vector.load %arg2[%c0_372, %c1_373, %c6_374, %c4_375] : memref<1x2x22x22xf32, #tpu.memory_space<vmem>>, vector<1x1x16x16xf32>
    %560 = vector.shape_cast %559 : vector<1x1x16x16xf32> to vector<16x16xf32>
    %c93 = arith.constant 93 : index
    %561 = memref.load %arg1[%c93] : memref<98xf32, #tpu.memory_space<smem>>
    %562 = vector.broadcast %561 : f32 to vector<16x16xf32>
    %563 = arith.mulf %560, %562 : vector<16x16xf32>
    %564 = arith.addf %558, %563 : vector<16x16xf32>
    %c0_376 = arith.constant 0 : index
    %c0_377 = arith.constant 0 : index
    %c6_378 = arith.constant 6 : index
    %c5_379 = arith.constant 5 : index
    %565 = vector.load %arg2[%c0_376, %c0_377, %c6_378, %c5_379] : memref<1x2x22x22xf32, #tpu.memory_space<vmem>>, vector<1x1x16x16xf32>
    %566 = vector.shape_cast %565 : vector<1x1x16x16xf32> to vector<16x16xf32>
    %c94 = arith.constant 94 : index
    %567 = memref.load %arg1[%c94] : memref<98xf32, #tpu.memory_space<smem>>
    %568 = vector.broadcast %567 : f32 to vector<16x16xf32>
    %569 = arith.mulf %566, %568 : vector<16x16xf32>
    %570 = arith.addf %564, %569 : vector<16x16xf32>
    %c0_380 = arith.constant 0 : index
    %c1_381 = arith.constant 1 : index
    %c6_382 = arith.constant 6 : index
    %c5_383 = arith.constant 5 : index
    %571 = vector.load %arg2[%c0_380, %c1_381, %c6_382, %c5_383] : memref<1x2x22x22xf32, #tpu.memory_space<vmem>>, vector<1x1x16x16xf32>
    %572 = vector.shape_cast %571 : vector<1x1x16x16xf32> to vector<16x16xf32>
    %c95 = arith.constant 95 : index
    %573 = memref.load %arg1[%c95] : memref<98xf32, #tpu.memory_space<smem>>
    %574 = vector.broadcast %573 : f32 to vector<16x16xf32>
    %575 = arith.mulf %572, %574 : vector<16x16xf32>
    %576 = arith.addf %570, %575 : vector<16x16xf32>
    %c0_384 = arith.constant 0 : index
    %c0_385 = arith.constant 0 : index
    %c6_386 = arith.constant 6 : index
    %c6_387 = arith.constant 6 : index
    %577 = vector.load %arg2[%c0_384, %c0_385, %c6_386, %c6_387] : memref<1x2x22x22xf32, #tpu.memory_space<vmem>>, vector<1x1x16x16xf32>
    %578 = vector.shape_cast %577 : vector<1x1x16x16xf32> to vector<16x16xf32>
    %c96 = arith.constant 96 : index
    %579 = memref.load %arg1[%c96] : memref<98xf32, #tpu.memory_space<smem>>
    %580 = vector.broadcast %579 : f32 to vector<16x16xf32>
    %581 = arith.mulf %578, %580 : vector<16x16xf32>
    %582 = arith.addf %576, %581 : vector<16x16xf32>
    %c0_388 = arith.constant 0 : index
    %c1_389 = arith.constant 1 : index
    %c6_390 = arith.constant 6 : index
    %c6_391 = arith.constant 6 : index
    %583 = vector.load %arg2[%c0_388, %c1_389, %c6_390, %c6_391] : memref<1x2x22x22xf32, #tpu.memory_space<vmem>>, vector<1x1x16x16xf32>
    %584 = vector.shape_cast %583 : vector<1x1x16x16xf32> to vector<16x16xf32>
    %c97 = arith.constant 97 : index
    %585 = memref.load %arg1[%c97] : memref<98xf32, #tpu.memory_space<smem>>
    %586 = vector.broadcast %585 : f32 to vector<16x16xf32>
    %587 = arith.mulf %584, %586 : vector<16x16xf32>
    %588 = arith.addf %582, %587 : vector<16x16xf32>
    %589 = arith.negf %588 : vector<16x16xf32>
    %590 = math.exp %589 : vector<16x16xf32>
    %cst_392 = arith.constant 1.000000e+00 : f32
    %591 = vector.broadcast %cst_392 : f32 to vector<16x16xf32>
    %592 = arith.addf %591, %590 : vector<16x16xf32>
    %593 = arith.divf %591, %592 : vector<16x16xf32>
    %c0_393 = arith.constant 0 : index
    %c0_394 = arith.constant 0 : index
    %c0_395 = arith.constant 0 : index
    %594 = vector.load %arg3[%c0_393, %c0_394, %c0_395] : memref<1x16x16xf32, #tpu.memory_space<vmem>>, vector<1x16x16xf32>
    %595 = vector.shape_cast %594 : vector<1x16x16xf32> to vector<16x16xf32>
    %596 = vector.shape_cast %593 : vector<16x16xf32> to vector<1x16x16xf32>
    tpu.vector_store %arg3[%c0_393, %c0_394, %c0_395], %596 {strides = array<i32>} : memref<1x16x16xf32, #tpu.memory_space<vmem>>, vector<1x16x16xf32>,
    return
  }
  func.func @transform_0(%arg0: i32) -> i32 {
    %c0_i32 = arith.constant 0 : i32
    %c0_i32_0 = arith.constant 0 : i32
    return %c0_i32 : i32
  }
  func.func @transform_1(%arg0: i32) -> (i32, i32, i32, i32) {
    %c0_i32 = arith.constant 0 : i32
    %c0_i32_0 = arith.constant 0 : i32
    %c0_i32_1 = arith.constant 0 : i32
    %c0_i32_2 = arith.constant 0 : i32
    return %arg0, %c0_i32, %c0_i32_0, %c0_i32_1 : i32, i32, i32, i32
  }
  func.func @transform_2(%arg0: i32) -> (i32, i32, i32) {
    %c0_i32 = arith.constant 0 : i32
    %c0_i32_0 = arith.constant 0 : i32
    %c0_i32_1 = arith.constant 0 : i32
    return %arg0, %c0_i32, %c0_i32_0 : i32, i32, i32
  }
}

module attributes {stable_mosaic.version = 11 : i64} {
  func.func @_deform_pointwise_kernel(%arg0: i32, %arg1: memref<256x72xbf16, #tpu.memory_space<vmem>>, %arg2: memref<72x8xbf16, #tpu.memory_space<vmem>>, %arg3: memref<1x8xf32, #tpu.memory_space<vmem>>, %arg4: memref<8x8xbf16, #tpu.memory_space<vmem>>, %arg5: memref<1x8xf32, #tpu.memory_space<vmem>>, %arg6: memref<256x8xf32, #tpu.memory_space<vmem>>) attributes {dimension_semantics = [#tpu.dimension_semantics<parallel>], iteration_bounds = array<i64: 2>, scalar_prefetch = 0 : i64, scratch_operands = 0 : i64, tpu.core_type = #tpu.core_type<tc>, window_params = [{transform_indices = @transform_0, window_bounds = array<i64: 256, 72>}, {pipeline_mode = #tpu.pipeline_mode<synchronous>, transform_indices = @transform_1, window_bounds = array<i64: 72, 8>}, {pipeline_mode = #tpu.pipeline_mode<synchronous>, transform_indices = @transform_2, window_bounds = array<i64: 1, 8>}, {pipeline_mode = #tpu.pipeline_mode<synchronous>, transform_indices = @transform_3, window_bounds = array<i64: 8, 8>}, {pipeline_mode = #tpu.pipeline_mode<synchronous>, transform_indices = @transform_4, window_bounds = array<i64: 1, 8>}, {transform_indices = @transform_5, window_bounds = array<i64: 256, 8>}]} {
    %c0 = arith.constant 0 : index
    %c0_0 = arith.constant 0 : index
    %0 = vector.load %arg1[%c0, %c0_0] : memref<256x72xbf16, #tpu.memory_space<vmem>>, vector<256x72xbf16>
    %c0_1 = arith.constant 0 : index
    %c0_2 = arith.constant 0 : index
    %1 = vector.load %arg2[%c0_1, %c0_2] : memref<72x8xbf16, #tpu.memory_space<vmem>>, vector<72x8xbf16>
    %cst = arith.constant dense<0.000000e+00> : vector<256x8xf32>
    %2 = tpu.matmul %0, %1, %cst {dimension_numbers = #tpu.dot_dimension_numbers<[1], [0], [0], [1], [0, 0, 1, 1], [], []>} : vector<256x72xbf16>, vector<72x8xbf16>, vector<256x8xf32> -> vector<256x8xf32>
    %c0_3 = arith.constant 0 : index
    %c0_4 = arith.constant 0 : index
    %3 = vector.load %arg3[%c0_3, %c0_4] : memref<1x8xf32, #tpu.memory_space<vmem>>, vector<1x8xf32>
    %4 = vector.broadcast %3 : vector<1x8xf32> to vector<256x8xf32>
    %5 = arith.addf %2, %4 : vector<256x8xf32>
    %cst_5 = arith.constant 0.000000e+00 : f32
    %6 = vector.broadcast %cst_5 : f32 to vector<256x8xf32>
    %7 = arith.maximumf %5, %6 : vector<256x8xf32>
    %8 = arith.truncf %7 : vector<256x8xf32> to vector<256x8xbf16>
    %c0_6 = arith.constant 0 : index
    %c0_7 = arith.constant 0 : index
    %9 = vector.load %arg4[%c0_6, %c0_7] : memref<8x8xbf16, #tpu.memory_space<vmem>>, vector<8x8xbf16>
    %cst_8 = arith.constant dense<0.000000e+00> : vector<256x8xf32>
    %10 = tpu.matmul %8, %9, %cst_8 {dimension_numbers = #tpu.dot_dimension_numbers<[1], [0], [0], [1], [0, 0, 1, 1], [], []>} : vector<256x8xbf16>, vector<8x8xbf16>, vector<256x8xf32> -> vector<256x8xf32>
    %c0_9 = arith.constant 0 : index
    %c0_10 = arith.constant 0 : index
    %11 = vector.load %arg5[%c0_9, %c0_10] : memref<1x8xf32, #tpu.memory_space<vmem>>, vector<1x8xf32>
    %12 = vector.broadcast %11 : vector<1x8xf32> to vector<256x8xf32>
    %13 = arith.addf %10, %12 : vector<256x8xf32>
    %c0_11 = arith.constant 0 : index
    %c0_12 = arith.constant 0 : index
    %14 = vector.load %arg6[%c0_11, %c0_12] : memref<256x8xf32, #tpu.memory_space<vmem>>, vector<256x8xf32>
    tpu.vector_store %arg6[%c0_11, %c0_12], %13 {strides = array<i32>} : memref<256x8xf32, #tpu.memory_space<vmem>>, vector<256x8xf32>,
    return
  }
  func.func @transform_0(%arg0: i32) -> (i32, i32) {
    %c0_i32 = arith.constant 0 : i32
    %c0_i32_0 = arith.constant 0 : i32
    return %arg0, %c0_i32 : i32, i32
  }
  func.func @transform_1(%arg0: i32) -> (i32, i32) {
    %c0_i32 = arith.constant 0 : i32
    %c0_i32_0 = arith.constant 0 : i32
    %c0_i32_1 = arith.constant 0 : i32
    return %c0_i32, %c0_i32_0 : i32, i32
  }
  func.func @transform_2(%arg0: i32) -> (i32, i32) {
    %c0_i32 = arith.constant 0 : i32
    %c0_i32_0 = arith.constant 0 : i32
    %c0_i32_1 = arith.constant 0 : i32
    return %c0_i32, %c0_i32_0 : i32, i32
  }
  func.func @transform_3(%arg0: i32) -> (i32, i32) {
    %c0_i32 = arith.constant 0 : i32
    %c0_i32_0 = arith.constant 0 : i32
    %c0_i32_1 = arith.constant 0 : i32
    return %c0_i32, %c0_i32_0 : i32, i32
  }
  func.func @transform_4(%arg0: i32) -> (i32, i32) {
    %c0_i32 = arith.constant 0 : i32
    %c0_i32_0 = arith.constant 0 : i32
    %c0_i32_1 = arith.constant 0 : i32
    return %c0_i32, %c0_i32_0 : i32, i32
  }
  func.func @transform_5(%arg0: i32) -> (i32, i32) {
    %c0_i32 = arith.constant 0 : i32
    %c0_i32_0 = arith.constant 0 : i32
    return %arg0, %c0_i32 : i32, i32
  }
}

</mosaic_0001>

<bundles_post_ra>
// kernel: sep_conv2d_forward.6
= control target key start
LH: loop header
LB: loop body
LE: loop exit
PB: predicated region body
PF: predicated region fallthrough
CT: control target
= control target key end

     0   :  { %9 = vsyncpa [#allocation3], 0  ;;  %s1789_s0 = inlined_call_operand.vmem [shape: f32[2,16,16,216], index: 0, kind: input, shape index: {}]   ;;  %s1790_s1 = inlined_call_operand.vmem [shape: f32[2,16,16,1], index: 1, kind: input, shape index: {}]   ;;  %s1791_s2 = inlined_call_operand.vmem [shape: f32[2,16,16,144], index: 2, kind: output, shape index: {0}]   ;;  %s1792_s3 = inlined_call_operand.hbm [shape: f32[2,16,16,72], index: 3, kind: output, shape index: {1}]  }
   0x1   :  { %11 = vsyncpa [#allocation3 + $0x1], 0  ;;  %s1375_s12 = smov 0   ;;  %s1377_s13 = smov 0  }
   0x2   :  { %s1379_s14 = smov 0   ;;  %s1381_s15 = smov 0  }
   0x3 LB: > { %s1396_s16 = sadd.s32 4294967295, %s1348_s15   ;;  %s1061_s17 = sadd.s32 4294967294, %s1348_s15   ;;  %s1348_s15 = sphi %s1381_s15, %s1798_s15   ;;  %s1344_s14 = sphi %s1379_s14, %s1797_s14   ;;  %s1340_s13 = sphi %s1377_s13, %s1796_s13   ;;  %s1336_s12 = sphi %s1375_s12, %s1795_s12  }
   0x4   : > { %s1400_s18 = sadd.s32 1, %s1348_s15   ;;  %s102_s19 = sadd.s32 1, %s1344_s14 }
   0x5   : > { %s99_s20 = ssub.s32 %s1348_s15, %s1400_s18  ;;  %p112_p0 = scmp.ne.s32.totalorder %s1344_s14, %s1340_s13 }
   0x6   : > { %p100_p1 = scmp.eq.s32.totalorder %s99_s20, 0  ;;  %p113_p2 = scmp.eq.s32.totalorder %s1396_s16, 1 }
   0x7   : > { %p118_p3 = scmp.ne.s32.totalorder %s1340_s13, %s1336_s12  ;;  %p119_p4 = scmp.eq.s32.totalorder %s1061_s17, 1 }
   0x8   : > { %s1411_s21 = scalar_select %p100_p1, %s1344_s14, %s102_s19  }
   0x9   : > { %p1413_p5 = por %p113_p2, %p112_p0  ;;  %p1417_p6 = por %p119_p4, %p118_p3 }
   0xa   : > { %p1064_p7 = scmp.ge.s32.totalorder %s1348_s15, 1  ;;  %p153_p8 = scmp.lt.s32.totalorder %s1348_s15, 3 }
   0xc   : > { %p154_p9 = pnand %p1064_p7, %p153_p8 }
   0xd   : > { %p187_p10 = scmp.lt.s32.totalorder (!%p154_p9), %s1396_s16, 1  ;;  %v1350_v0 = vmov (!%p154_p9), 0   ;;  %vm523_vm0 = vcmask (!%p154_p9), 130048   ;;  %s1351_s9 = smov (!%p154_p9), 112   ;;  %vm907_vm1 = vcmask (!%p154_p9), 588800  }
   0xe   : > { %157 = sbr.rel (%p154_p9) target bundleno = 377 (0x179), region = 28  ;;  %1157 = vset.pattern.permute.xlu1 (!%p154_p9), %v1350_v0  ;;  %1156 = vset.pattern.permute.xlu0 (!%p154_p9), %v1350_v0  ;;  %s184_s10 = sand.u32 (!%p154_p9), 1, %s1340_s13  }
   0xf   : > { %s1065_s11 = sshll.u32 (!%p154_p9), %s184_s10, 8  ;;  %s1112_s19 = sshll.u32 (!%p154_p9), %s1396_s16, 12 }
  0x10   : > { %s1671_s17 = scalar_lea.vmem (!%p154_p9), [#allocation2], %s1065_s11  ;;  %s1738_s26 = scalar_lea.hbm (!%p154_p9), %s1792_s3, %s1112_s19 }
  0x11   : > { %s962_s20 = sshll.u32 (!%p154_p9), %s1671_s17, 4  ;;  %s1740_s20 = int_to_ptr.vmem [resolvable:$true] %s962_s20 }
  0x12   : > { %s1286_s27 = scalar_lea.vmem (!%p154_p9), %s1740_s20, 4096 }
  0x13   : > { %p1287_p11 = scmp.ne.s32.totalorder (!%p154_p9), %s1740_s20, %s1286_s27 }
  0x15   : > { %s1425_s24 = scalar_select %p187_p10, %s1396_s16, 1 }
  0x16   : > { %s1748_s16 = scalar_lea.sflag [#allocation3], %s184_s10  ;;  %p1288_p12 = pnand %p1287_p11, %p1413_p5 }
  0x17   : > { %s1110_s25 = sshll.u32 %s1425_s24, 8  ;;  %s1109_s29 = sshll.u32 %s1425_s24, 9 }
  0x18   : > { %s1431_s28 = scalar_lea.vmem %s1790_s1, %s1110_s25  ;;  %s1469_s5 = scalar_lea.vmem %s1789_s0, %s1109_s29 }
  0x19   : > { %v204_v1 = vld [vmem:[%s1431_s28 + $0x10] sm:$0xff]  ;;  %v202_v2 = vld [vmem:[%s1431_s28] sm:$0xff]  ;;  %v205_v3 = vld [vmem:[%s1431_s28 + $0x18] sm:$0xff]  ;;  %s1478_s8 = scalar_lea.vmem %s1791_s2, %s1109_s29  ;;  %p1289_p13 = pneg %p1288_p12 }
  0x1a   : > { %310 = vperm.xlu1 %1157, %v204_v1   ;;  %300 = vperm.xlu0 %1156, %v202_v2   ;;  %v203_v4 = vld [vmem:[%s1431_s28 + $0x8] sm:$0xff]  ;;  %v206_v6 = vld [vmem:[%s1431_s28 + $0x20] sm:$0xff]  ;;  %v209_v7 = vld [vmem:[%s1431_s28 + $0x38] sm:$0xff] }
  0x1b   : > { %v207_v5 = vld [vmem:[%s1431_s28 + $0x28] sm:$0xff]  ;;  %v208_v8 = vld [vmem:[%s1431_s28 + $0x30] sm:$0xff]  ;;  %v210_v10 = vld [vmem:[%s1431_s28 + $0x40] sm:$0xff] }
  0x1c   : > { %v211_v9 = vld [vmem:[%s1431_s28 + $0x48] sm:$0xff]  ;;  %v213_v11 = vld [vmem:[%s1431_s28 + $0x58] sm:$0xff]  ;;  %v212_v12 = vld [vmem:[%s1431_s28 + $0x50] sm:$0xff] }
  0x1d   : > { %v215_v13 = vld [vmem:[%s1431_s28 + $0x68] sm:$0xff]  ;;  %v214_v14 = vld [vmem:[%s1431_s28 + $0x60] sm:$0xff]  ;;  %v217_v15 = vld [vmem:[%s1431_s28 + $0x78] sm:$0xff] }
  0x1e   : > { %315 = vperm.xlu1 %1157, %v205_v3   ;;  %305 = vperm.xlu0 %1156, %v203_v4   ;;  %v216_v16 = vld [vmem:[%s1431_s28 + $0x70] sm:$0xff]  ;;  %v219_v17 = vld [vmem:[%s1431_s28 + $0x88] sm:$0xff]  ;;  %v218_v18 = vld [vmem:[%s1431_s28 + $0x80] sm:$0xff] }
  0x1f   : > { %v221_v19 = vld [vmem:[%s1431_s28 + $0x98] sm:$0xff]  ;;  %v220_v20 = vld [vmem:[%s1431_s28 + $0x90] sm:$0xff]  ;;  %v223_v21 = vld [vmem:[%s1431_s28 + $0xa8] sm:$0xff] }
  0x20   : > { %v222_v22 = vld [vmem:[%s1431_s28 + $0xa0] sm:$0xff]  ;;  %v225_v23 = vld [vmem:[%s1431_s28 + $0xb8] sm:$0xff]  ;;  %v224_v24 = vld [vmem:[%s1431_s28 + $0xb0] sm:$0xff] }
  0x21   : > { %v227_v25 = vld [vmem:[%s1431_s28 + $0xc8] sm:$0xff]  ;;  %v226_v26 = vld [vmem:[%s1431_s28 + $0xc0] sm:$0xff]  ;;  %v229_v27 = vld [vmem:[%s1431_s28 + $0xd8] sm:$0xff] }
  0x22   : > { %325 = vperm.xlu1 %1157, %v207_v5   ;;  %320 = vperm.xlu0 %1156, %v206_v6   ;;  %v228_v28 = vld [vmem:[%s1431_s28 + $0xd0] sm:$0xff]  ;;  %v231_v29 = vld [vmem:[%s1431_s28 + $0xe8] sm:$0xff]  ;;  %v230_v30 = vld [vmem:[%s1431_s28 + $0xe0] sm:$0xff] }
  0x23   : > { %v233_v31 = vld [vmem:[%s1431_s28 + $0xf8] sm:$0xff]  ;;  %v232_v32 = vld [vmem:[%s1431_s28 + $0xf0] sm:$0xff]  ;;  %v238_v33 = vld [vmem:[%s1469_s5 + $0x20] sm:$0xff]  ;;  %s1352_s28 = smov [#allocation2]  }
  0x24   : > { %v239_v34 = vld [vmem:[%s1469_s5 + $0x28] sm:$0xff]  ;;  %v234_v35 = vld [vmem:[%s1469_s5] sm:$0xff]  ;;  %v240_v43 = vld [vmem:[%s1469_s5 + $0x30] sm:$0xff]  ;;  %s1290_s29 = sshll.u32 %s1352_s28, 4  ;;  %s1291_s29 = int_to_ptr.vmem [resolvable:$false] %s1290_s29 }
  0x25   : > { %v235_v36 = vld [vmem:[%s1469_s5 + $0x8] sm:$0xff]  ;;  %v241_v44 = vld [vmem:[%s1469_s5 + $0x38] sm:$0xff]  ;;  %v236_v45 = vld [vmem:[%s1469_s5 + $0x10] sm:$0xff]  ;;  %s1292_s30 = scalar_lea.vmem %s1291_s29, 8192  ;;  %p1293_p0 = scmp.lt.s32.totalorder %s1740_s20, %s1291_s29 }
  0x26   : > { %335 = vperm.xlu1 %1157, %v209_v7   ;;  %330 = vperm.xlu0 %1156, %v208_v8   ;;  %v237_v48 = vld [vmem:[%s1469_s5 + $0x18] sm:$0xff]  ;;  %v244_v55 = vld [vmem:[%s1469_s5 + $0x50] sm:$0xff]  ;;  %v242_v57 = vld [vmem:[%s1469_s5 + $0x40] sm:$0xff]  ;;  %p1294_p1 = scmp.lt.s32.totalorder %s1292_s30, %s1286_s27 }
  0x27   : > { %v245_v56 = vld [vmem:[%s1469_s5 + $0x58] sm:$0xff]  ;;  %v243_v59 = vld [vmem:[%s1469_s5 + $0x48] sm:$0xff]  ;;  %v248_v3 = vld [vmem:[%s1469_s5 + $0x70] sm:$0xff] }
  0x28   : > { %v249_v4 = vld [vmem:[%s1469_s5 + $0x78] sm:$0xff]  ;;  %v246_v5 = vld [vmem:[%s1469_s5 + $0x60] sm:$0xff]  ;;  %v247_v7 = vld [vmem:[%s1469_s5 + $0x68] sm:$0xff]  ;;  %p1295_p2 = por %p1294_p1, %p1293_p0 }
  0x2a   : > { %345 = vperm.xlu1 %1157, %v211_v9   ;;  %340 = vperm.xlu0 %1156, %v210_v10   ;;  %p1296_p3 = pnand %p1295_p2, %p1289_p13 }
  0x2e   : > { %355 = vperm.xlu1 %1157, %v213_v11   ;;  %350 = vperm.xlu0 %1156, %v212_v12  }
  0x32   : > { %365 = vperm.xlu1 %1157, %v215_v13   ;;  %360 = vperm.xlu0 %1156, %v214_v14  }
  0x36   : > { %375 = vperm.xlu1 %1157, %v217_v15   ;;  %370 = vperm.xlu0 %1156, %v216_v16   ;;  %v252_v15 = vld [vmem:[%s1469_s5 + $0x90] sm:$0xff]  ;;  %v253_v16 = vld [vmem:[%s1469_s5 + $0x98] sm:$0xff] }
  0x3a   : > { %385 = vperm.xlu1 %1157, %v219_v17   ;;  %380 = vperm.xlu0 %1156, %v218_v18  }
  0x3e   : > { %395 = vperm.xlu1 %1157, %v221_v19   ;;  %390 = vperm.xlu0 %1156, %v220_v20   ;;  %v250_v19 = vld [vmem:[%s1469_s5 + $0x80] sm:$0xff]  ;;  %v251_v20 = vld [vmem:[%s1469_s5 + $0x88] sm:$0xff] }
  0x42   : > { %405 = vperm.xlu1 %1157, %v223_v21   ;;  %400 = vperm.xlu0 %1156, %v222_v22  }
  0x46   : > { %415 = vperm.xlu1 %1157, %v225_v23   ;;  %410 = vperm.xlu0 %1156, %v224_v24  }
  0x4a   : > { %425 = vperm.xlu1 %1157, %v227_v25   ;;  %420 = vperm.xlu0 %1156, %v226_v26  }
  0x4e   : > { %435 = vperm.xlu1 %1157, %v229_v27   ;;  %430 = vperm.xlu0 %1156, %v228_v28  }
  0x52   : > { %445 = vperm.xlu1 %1157, %v231_v29   ;;  %440 = vperm.xlu0 %1156, %v230_v30  }
  0x56   : > { %455 = vperm.xlu1 %1157, %v233_v31   ;;  %450 = vperm.xlu0 %1156, %v232_v32   ;;  %v256_v31 = vld [vmem:[%s1469_s5 + $0xb0] sm:$0xff]  ;;  %v257_v32 = vld [vmem:[%s1469_s5 + $0xb8] sm:$0xff] }
  0x99   : > { %v311_v37 = vpop.permute.xlu1 %310  ;;  %v301_v38 = vpop.permute.xlu0 %300 }
  0x9a   : > { %v462_v39 = vmul.f32 %v311_v37, %v238_v33  ;;  %v463_v40 = vmul.f32 %v311_v37, %v239_v34  ;;  %v458_v41 = vmul.f32 %v301_v38, %v234_v35  ;;  %v459_v42 = vmul.f32 %v301_v38, %v235_v36  ;;  %v254_v35 = vld [vmem:[%s1469_s5 + $0xa0] sm:$0xff]  ;;  %v255_v36 = vld [vmem:[%s1469_s5 + $0xa8] sm:$0xff] }
  0x9c   : > { %527 = vst [vmem:[%s1478_s8 + $0x20] sm:$0xff] %v462_v39  ;;  %528 = vst.msk [vmem:[%s1478_s8 + $0x28] sm:$0xff] %vm523_vm0, %v463_v40  ;;  %v1074_v46 = vmul.f32 -1.442695, %v463_v40  ;;  %v1072_v47 = vmul.f32 -1.442695, %v459_v42 }
  0x9d   : > { %522 = vst [vmem:[%s1478_s8] sm:$0xff] %v458_v41  ;;  %524 = vst.msk [vmem:[%s1478_s8 + $0x8] sm:$0xff] %vm523_vm0, %v459_v42  ;;  %v316_v49 = vpop.permute.xlu1 %315  ;;  %v306_v50 = vpop.permute.xlu0 %305 }
  0x9e   : > { %1158 = vpow2.f32 %v1074_v46  ;;  %v464_v51 = vmul.f32 %v316_v49, %v240_v43  ;;  %v465_v52 = vmul.f32 %v316_v49, %v241_v44  ;;  %v460_v53 = vmul.f32 %v306_v50, %v236_v45 }
  0x9f   : > { %1160 = vpow2.f32 %v1072_v47  ;;  %v461_v54 = vmul.f32 %v306_v50, %v237_v48  ;;  %v260_v47 = vld [vmem:[%s1469_s5 + $0xd0] sm:$0xff]  ;;  %v261_v48 = vld [vmem:[%s1469_s5 + $0xd8] sm:$0xff] }
  0xa0   : > { %529 = vst [vmem:[%s1478_s8 + $0x30] sm:$0xff] %v464_v51  ;;  %530 = vst.msk [vmem:[%s1478_s8 + $0x38] sm:$0xff] %vm523_vm0, %v465_v52  ;;  %v1075_v58 = vmul.f32 -1.442695, %v465_v52  ;;  %v258_v51 = vld [vmem:[%s1469_s5 + $0xc0] sm:$0xff]  ;;  %v259_v52 = vld [vmem:[%s1469_s5 + $0xc8] sm:$0xff] }
  0xa1   : > { %525 = vst [vmem:[%s1478_s8 + $0x10] sm:$0xff] %v460_v53  ;;  %526 = vst.msk [vmem:[%s1478_s8 + $0x18] sm:$0xff] %vm523_vm0, %v461_v54  ;;  %v1073_v60 = vmul.f32 -1.442695, %v461_v54  ;;  %v326_v61 = vpop.permute.xlu1 %325  ;;  %v321_v62 = vpop.permute.xlu0 %320 }
  0xa2   : > { %1162 = vpow2.f32 %v1075_v58  ;;  %v468_v63 = vmul.f32 %v326_v61, %v244_v55  ;;  %v469_v0 = vmul.f32 %v326_v61, %v245_v56  ;;  %v466_v1 = vmul.f32 %v321_v62, %v242_v57 }
  0xa3   : > { %1164 = vpow2.f32 %v1073_v60  ;;  %v467_v2 = vmul.f32 %v321_v62, %v243_v59 }
  0xa4   : > { %533 = vst [vmem:[%s1478_s8 + $0x50] sm:$0xff] %v468_v63  ;;  %534 = vst.msk [vmem:[%s1478_s8 + $0x58] sm:$0xff] %vm523_vm0, %v469_v0  ;;  %v1077_v6 = vmul.f32 -1.442695, %v469_v0  ;;  %v264_v63 = vld [vmem:[%s1469_s5 + $0xf0] sm:$0xff]  ;;  %v265_v0 = vld [vmem:[%s1469_s5 + $0xf8] sm:$0xff] }
  0xa5   : > { %531 = vst [vmem:[%s1478_s8 + $0x40] sm:$0xff] %v466_v1  ;;  %532 = vst.msk [vmem:[%s1478_s8 + $0x48] sm:$0xff] %vm523_vm0, %v467_v2  ;;  %v1076_v8 = vmul.f32 -1.442695, %v467_v2  ;;  %v336_v9 = vpop.permute.xlu1 %335  ;;  %v331_v10 = vpop.permute.xlu0 %330  ;;  %v262_v1 = vld [vmem:[%s1469_s5 + $0xe0] sm:$0xff] }
  0xa6   : > { %1166 = vpow2.f32 %v1077_v6  ;;  %v472_v11 = vmul.f32 %v336_v9, %v248_v3  ;;  %v473_v12 = vmul.f32 %v336_v9, %v249_v4  ;;  %v470_v13 = vmul.f32 %v331_v10, %v246_v5  ;;  %v263_v4 = vld [vmem:[%s1469_s5 + $0xe8] sm:$0xff] }
  0xa7   : > { %1168 = vpow2.f32 %v1076_v8  ;;  %v471_v14 = vmul.f32 %v331_v10, %v247_v7 }
  0xa8   : > { %v1159_v17 = vpop.eup %1158  ;;  %537 = vst [vmem:[%s1478_s8 + $0x70] sm:$0xff] %v472_v11  ;;  %538 = vst.msk [vmem:[%s1478_s8 + $0x78] sm:$0xff] %vm523_vm0, %v473_v12  ;;  %v1079_v18 = vmul.f32 -1.442695, %v473_v12 }
  0xa9   : > { %535 = vst [vmem:[%s1478_s8 + $0x60] sm:$0xff] %v470_v13  ;;  %v1161_v21 = vpop.eup %1160  ;;  %v685_v22 = vadd.f32 1.0, %v1159_v17  ;;  %536 = vst.msk [vmem:[%s1478_s8 + $0x68] sm:$0xff] %vm523_vm0, %v471_v14  ;;  %v1078_v23 = vmul.f32 -1.442695, %v471_v14  ;;  %v346_v24 = vpop.permute.xlu1 %345  ;;  %v269_v17 = vld [vmem:[%s1469_s5 + $0x118] sm:$0xff] }
  0xaa   : > { %v341_v25 = vpop.permute.xlu0 %340  ;;  %v683_v26 = vadd.f32 1.0, %v1161_v21  ;;  %1170 = vpow2.f32 %v1079_v18  ;;  %v476_v27 = vmul.f32 %v346_v24, %v252_v15  ;;  %v477_v28 = vmul.f32 %v346_v24, %v253_v16  ;;  %v268_v16 = vld [vmem:[%s1469_s5 + $0x110] sm:$0xff]  ;;  %v266_v18 = vld [vmem:[%s1469_s5 + $0x100] sm:$0xff] }
  0xab   : > { %1172 = vrcp.f32 %v685_v22  ;;  %v474_v29 = vmul.f32 %v341_v25, %v250_v19  ;;  %v475_v30 = vmul.f32 %v341_v25, %v251_v20  ;;  %v267_v22 = vld [vmem:[%s1469_s5 + $0x108] sm:$0xff] }
  0xac   : > { %v1163_v33 = vpop.eup %1162  ;;  %1174 = vrcp.f32 %v683_v26  ;;  %541 = vst [vmem:[%s1478_s8 + $0x90] sm:$0xff] %v476_v27  ;;  %542 = vst.msk [vmem:[%s1478_s8 + $0x98] sm:$0xff] %vm523_vm0, %v477_v28  ;;  %v1081_v34 = vmul.f32 -1.442695, %v477_v28 }
  0xad   : > { %v1165_v37 = vpop.eup %1164  ;;  %1176 = vpow2.f32 %v1078_v23  ;;  %539 = vst [vmem:[%s1478_s8 + $0x80] sm:$0xff] %v474_v29  ;;  %540 = vst.msk [vmem:[%s1478_s8 + $0x88] sm:$0xff] %vm523_vm0, %v475_v30  ;;  %v1080_v38 = vmul.f32 -1.442695, %v475_v30  ;;  %v356_v39 = vpop.permute.xlu1 %355  ;;  %v686_v44 = vadd.f32 1.0, %v1163_v33 }
  0xae   : > { %v351_v40 = vpop.permute.xlu0 %350  ;;  %v684_v41 = vadd.f32 1.0, %v1165_v37  ;;  %1178 = vpow2.f32 %v1081_v34  ;;  %v480_v42 = vmul.f32 %v356_v39, %v256_v31  ;;  %v481_v43 = vmul.f32 %v356_v39, %v257_v32  ;;  %v272_v31 = vld [vmem:[%s1469_s5 + $0x130] sm:$0xff]  ;;  %v273_v34 = vld [vmem:[%s1469_s5 + $0x138] sm:$0xff]  ;;  %v271_v39 = vld [vmem:[%s1469_s5 + $0x128] sm:$0xff] }
  0xaf   : > { %v478_v45 = vmul.f32 %v351_v40, %v254_v35  ;;  %v479_v46 = vmul.f32 %v351_v40, %v255_v36  ;;  %v270_v35 = vld [vmem:[%s1469_s5 + $0x120] sm:$0xff] }
  0xb0   : > { %v1167_v49 = vpop.eup %1166  ;;  %1180 = vrcp.f32 %v684_v41  ;;  %545 = vst [vmem:[%s1478_s8 + $0xb0] sm:$0xff] %v480_v42  ;;  %546 = vst.msk [vmem:[%s1478_s8 + $0xb8] sm:$0xff] %vm523_vm0, %v481_v43  ;;  %v1083_v50 = vmul.f32 -1.442695, %v481_v43 }
  0xb1   : > { %v1169_v53 = vpop.eup %1168  ;;  %1182 = vpow2.f32 %v1080_v38  ;;  %543 = vst [vmem:[%s1478_s8 + $0xa0] sm:$0xff] %v478_v45  ;;  %544 = vst.msk [vmem:[%s1478_s8 + $0xa8] sm:$0xff] %vm523_vm0, %v479_v46  ;;  %v1082_v54 = vmul.f32 -1.442695, %v479_v46  ;;  %v366_v55 = vpop.permute.xlu1 %365  ;;  %v688_v60 = vadd.f32 1.0, %v1167_v49  ;;  %v276_v49 = vld [vmem:[%s1469_s5 + $0x150] sm:$0xff] }
  0xb2   : > { %v361_v56 = vpop.permute.xlu0 %360  ;;  %v687_v57 = vadd.f32 1.0, %v1169_v53  ;;  %1184 = vpow2.f32 %v1083_v50  ;;  %v484_v58 = vmul.f32 %v366_v55, %v260_v47  ;;  %v485_v59 = vmul.f32 %v366_v55, %v261_v48  ;;  %v274_v53 = vld [vmem:[%s1469_s5 + $0x140] sm:$0xff] }
  0xb3   : > { %1186 = vrcp.f32 %v686_v44  ;;  %v482_v61 = vmul.f32 %v361_v56, %v258_v51  ;;  %v483_v62 = vmul.f32 %v361_v56, %v259_v52  ;;  %v277_v52 = vld [vmem:[%s1469_s5 + $0x158] sm:$0xff] }
  0xb4   : > { %v1171_v2 = vpop.eup %1170  ;;  %1188 = vrcp.f32 %v687_v57  ;;  %549 = vst [vmem:[%s1478_s8 + $0xd0] sm:$0xff] %v484_v58  ;;  %550 = vst.msk [vmem:[%s1478_s8 + $0xd8] sm:$0xff] %vm523_vm0, %v485_v59  ;;  %v1085_v3 = vmul.f32 -1.442695, %v485_v59  ;;  %v275_v57 = vld [vmem:[%s1469_s5 + $0x148] sm:$0xff] }
  0xb5   : > { %v1173_v5 = vpop.eup %1172  ;;  %v690_v6 = vadd.f32 1.0, %v1171_v2  ;;  %1190 = vpow2.f32 %v1082_v54  ;;  %547 = vst [vmem:[%s1478_s8 + $0xc0] sm:$0xff] %v482_v61  ;;  %548 = vst.msk [vmem:[%s1478_s8 + $0xc8] sm:$0xff] %vm523_vm0, %v483_v62  ;;  %v1084_v7 = vmul.f32 -1.442695, %v483_v62  ;;  %v376_v8 = vpop.permute.xlu1 %375 }
  0xb6   : > { %v371_v9 = vpop.permute.xlu0 %370  ;;  %v1175_v10 = vpop.eup %1174  ;;  %1192 = vpow2.f32 %v1085_v3  ;;  %v488_v11 = vmul.f32 %v376_v8, %v264_v63  ;;  %v489_v12 = vmul.f32 %v376_v8, %v265_v0  ;;  %v278_v8 = vld [vmem:[%s1469_s5 + $0x160] sm:$0xff] }
  0xb7   : > { %v486_v13 = vmul.f32 %v371_v9, %v262_v1  ;;  %v1177_v14 = vpop.eup %1176  ;;  %1194 = vrcp.f32 %v688_v60  ;;  %v487_v15 = vmul.f32 %v371_v9, %v263_v4  ;;  %811 = vrot.lane.b32.xlu0 %v1175_v10, %s1351_s9 }
  0xb8   : > { %v1179_v19 = vpop.eup %1178  ;;  %v689_v20 = vadd.f32 1.0, %v1177_v14  ;;  %1196 = vpow2.f32 %v1084_v7  ;;  %553 = vst [vmem:[%s1478_s8 + $0xf0] sm:$0xff] %v488_v11  ;;  %554 = vst.msk [vmem:[%s1478_s8 + $0xf8] sm:$0xff] %vm523_vm0, %v489_v12  ;;  %v1087_v21 = vmul.f32 -1.442695, %v489_v12  ;;  %v281_v7 = vld [vmem:[%s1469_s5 + $0x178] sm:$0xff] }
  0xb9   : > { %551 = vst [vmem:[%s1478_s8 + $0xe0] sm:$0xff] %v486_v13  ;;  %1198 = vrcp.f32 %v690_v6  ;;  %v692_v23 = vadd.f32 1.0, %v1179_v19  ;;  %552 = vst.msk [vmem:[%s1478_s8 + $0xe8] sm:$0xff] %vm523_vm0, %v487_v15  ;;  %v1086_v24 = vmul.f32 -1.442695, %v487_v15  ;;  %v386_v25 = vpop.permute.xlu1 %385  ;;  %v280_v6 = vld [vmem:[%s1469_s5 + $0x170] sm:$0xff] }
  0xba   : > { %v381_v26 = vpop.permute.xlu0 %380  ;;  %v1181_v27 = vpop.eup %1180  ;;  %1200 = vrcp.f32 %v689_v20  ;;  %v492_v28 = vmul.f32 %v386_v25, %v268_v16  ;;  %v493_v29 = vmul.f32 %v386_v25, %v269_v17  ;;  %v279_v11 = vld [vmem:[%s1469_s5 + $0x168] sm:$0xff]  ;;  %v282_v25 = vld [vmem:[%s1469_s5 + $0x180] sm:$0xff] }
  0xbb   : > { %v490_v30 = vmul.f32 %v381_v26, %v266_v18  ;;  %v1183_v32 = vpop.eup %1182  ;;  %1202 = vrcp.f32 %v692_v23  ;;  %v491_v33 = vmul.f32 %v381_v26, %v267_v22  ;;  %813 = vrot.lane.b32.xlu1 %v1181_v27, %s1351_s9  ;;  %815 = vrot.lane.b32.xlu0 %v1173_v5, %s1351_s9  ;;  %v284_v23 = vld [vmem:[%s1469_s5 + $0x190] sm:$0xff] }
  0xbc   : > { %v1185_v36 = vpop.eup %1184  ;;  %v691_v37 = vadd.f32 1.0, %v1183_v32  ;;  %1204 = vpow2.f32 %v1087_v21  ;;  %557 = vst [vmem:[%s1478_s8 + $0x110] sm:$0xff] %v492_v28  ;;  %558 = vst.msk [vmem:[%s1478_s8 + $0x118] sm:$0xff] %vm523_vm0, %v493_v29  ;;  %v1089_v38 = vmul.f32 -1.442695, %v493_v29  ;;  %v283_v29 = vld [vmem:[%s1469_s5 + $0x188] sm:$0xff] }
  0xbd   : > { %555 = vst [vmem:[%s1478_s8 + $0x100] sm:$0xff] %v490_v30  ;;  %v1187_v40 = vpop.eup %1186  ;;  %v694_v41 = vadd.f32 1.0, %v1185_v36  ;;  %1206 = vpow2.f32 %v1086_v24  ;;  %556 = vst.msk [vmem:[%s1478_s8 + $0x108] sm:$0xff] %vm523_vm0, %v491_v33  ;;  %v1088_v42 = vmul.f32 -1.442695, %v491_v33  ;;  %v396_v43 = vpop.permute.xlu1 %395  ;;  %v285_v24 = vld [vmem:[%s1469_s5 + $0x198] sm:$0xff] }
  0xbe   : > { %v391_v44 = vpop.permute.xlu0 %390  ;;  %v1189_v45 = vpop.eup %1188  ;;  %1208 = vrcp.f32 %v691_v37  ;;  %v496_v46 = vmul.f32 %v396_v43, %v272_v31  ;;  %v497_v47 = vmul.f32 %v396_v43, %v273_v34  ;;  %v286_v43 = vld [vmem:[%s1469_s5 + $0x1a0] sm:$0xff] }
  0xbf   : > { %v494_v48 = vmul.f32 %v391_v44, %v270_v35  ;;  %v1191_v50 = vpop.eup %1190  ;;  %1210 = vrcp.f32 %v694_v41  ;;  %v495_v51 = vmul.f32 %v391_v44, %v271_v39  ;;  %817 = vrot.lane.b32.xlu1 %v1187_v40, %s1351_s9  ;;  %819 = vrot.lane.b32.xlu0 %v1189_v45, %s1351_s9  ;;  %v288_v41 = vld [vmem:[%s1469_s5 + $0x1b0] sm:$0xff] }
  0xc0   : > { %v1193_v54 = vpop.eup %1192  ;;  %v693_v55 = vadd.f32 1.0, %v1191_v50  ;;  %1212 = vpow2.f32 %v1089_v38  ;;  %561 = vst [vmem:[%s1478_s8 + $0x130] sm:$0xff] %v496_v46  ;;  %562 = vst.msk [vmem:[%s1478_s8 + $0x138] sm:$0xff] %vm523_vm0, %v497_v47  ;;  %v1091_v56 = vmul.f32 -1.442695, %v497_v47  ;;  %v287_v47 = vld [vmem:[%s1469_s5 + $0x1a8] sm:$0xff] }
  0xc1   : > { %559 = vst [vmem:[%s1478_s8 + $0x120] sm:$0xff] %v494_v48  ;;  %v1195_v58 = vpop.eup %1194  ;;  %v696_v59 = vadd.f32 1.0, %v1193_v54  ;;  %1214 = vpow2.f32 %v1088_v42  ;;  %560 = vst.msk [vmem:[%s1478_s8 + $0x128] sm:$0xff] %vm523_vm0, %v495_v51  ;;  %v1090_v60 = vmul.f32 -1.442695, %v495_v51  ;;  %v406_v61 = vpop.permute.xlu1 %405  ;;  %v289_v42 = vld [vmem:[%s1469_s5 + $0x1b8] sm:$0xff] }
  0xc2   : > { %v401_v62 = vpop.permute.xlu0 %400  ;;  %v1197_v63 = vpop.eup %1196  ;;  %1216 = vrcp.f32 %v693_v55  ;;  %v500_v0 = vmul.f32 %v406_v61, %v276_v49  ;;  %v501_v1 = vmul.f32 %v406_v61, %v277_v52 }
  0xc3   : > { %v498_v2 = vmul.f32 %v401_v62, %v274_v53  ;;  %v1199_v3 = vpop.eup %1198  ;;  %1218 = vrcp.f32 %v696_v59  ;;  %v695_v4 = vadd.f32 1.0, %v1197_v63  ;;  %v499_v5 = vmul.f32 %v401_v62, %v275_v57  ;;  %821 = vrot.lane.b32.xlu1 %v1195_v58, %s1351_s9  ;;  %v292_v58 = vld [vmem:[%s1469_s5 + $0x1d0] sm:$0xff]  ;;  %v293_v59 = vld [vmem:[%s1469_s5 + $0x1d8] sm:$0xff]  ;;  %v290_v63 = vld [vmem:[%s1469_s5 + $0x1c0] sm:$0xff] }
  0xc4   : > { %v1201_v9 = vpop.eup %1200  ;;  %1220 = vpow2.f32 %v1091_v56  ;;  %565 = vst [vmem:[%s1478_s8 + $0x150] sm:$0xff] %v500_v0  ;;  %566 = vst.msk [vmem:[%s1478_s8 + $0x158] sm:$0xff] %vm523_vm0, %v501_v1  ;;  %v1093_v10 = vmul.f32 -1.442695, %v501_v1  ;;  %v291_v0 = vld [vmem:[%s1469_s5 + $0x1c8] sm:$0xff] }
  0xc5   : > { %563 = vst [vmem:[%s1478_s8 + $0x140] sm:$0xff] %v498_v2  ;;  %v1203_v12 = vpop.eup %1202  ;;  %1222 = vrcp.f32 %v695_v4  ;;  %564 = vst.msk [vmem:[%s1478_s8 + $0x148] sm:$0xff] %vm523_vm0, %v499_v5  ;;  %v1092_v13 = vmul.f32 -1.442695, %v499_v5  ;;  %823 = vrot.lane.b32.xlu0 %v1201_v9, %s1351_s9  ;;  %v416_v14 = vpop.permute.xlu1 %415 }
  0xc6   : > { %v411_v15 = vpop.permute.xlu0 %410  ;;  %v1205_v16 = vpop.eup %1204  ;;  %1224 = vpow2.f32 %v1090_v60  ;;  %v504_v17 = vmul.f32 %v416_v14, %v280_v6  ;;  %v505_v18 = vmul.f32 %v416_v14, %v281_v7  ;;  %v297_v14 = vld [vmem:[%s1469_s5 + $0x1f8] sm:$0xff] }
  0xc7   : > { %v502_v19 = vmul.f32 %v411_v15, %v278_v8  ;;  %v1207_v20 = vpop.eup %1206  ;;  %v698_v21 = vadd.f32 1.0, %v1205_v16  ;;  %1226 = vpow2.f32 %v1093_v10  ;;  %v503_v22 = vmul.f32 %v411_v15, %v279_v11  ;;  %825 = vrot.lane.b32.xlu1 %v1199_v3, %s1351_s9 }
  0xc8   : > { %v1209_v26 = vpop.eup %1208  ;;  %v697_v27 = vadd.f32 1.0, %v1207_v20  ;;  %1228 = vpow2.f32 %v1092_v13  ;;  %569 = vst [vmem:[%s1478_s8 + $0x170] sm:$0xff] %v504_v17  ;;  %570 = vst.msk [vmem:[%s1478_s8 + $0x178] sm:$0xff] %vm523_vm0, %v505_v18  ;;  %v1095_v28 = vmul.f32 -1.442695, %v505_v18  ;;  %v296_v13 = vld [vmem:[%s1469_s5 + $0x1f0] sm:$0xff] }
  0xc9   : > { %567 = vst [vmem:[%s1478_s8 + $0x160] sm:$0xff] %v502_v19  ;;  %v1211_v30 = vpop.eup %1210  ;;  %1230 = vrcp.f32 %v698_v21  ;;  %568 = vst.msk [vmem:[%s1478_s8 + $0x168] sm:$0xff] %vm523_vm0, %v503_v22  ;;  %v1094_v31 = vmul.f32 -1.442695, %v503_v22  ;;  %827 = vrot.lane.b32.xlu0 %v1209_v26, %s1351_s9  ;;  %v426_v32 = vpop.permute.xlu1 %425  ;;  %v294_v18 = vld [vmem:[%s1469_s5 + $0x1e0] sm:$0xff] }
  0xca   : > { %v421_v33 = vpop.permute.xlu0 %420  ;;  %v1213_v34 = vpop.eup %1212  ;;  %1232 = vrcp.f32 %v697_v27  ;;  %v508_v35 = vmul.f32 %v426_v32, %v284_v23  ;;  %v509_v36 = vmul.f32 %v426_v32, %v285_v24  ;;  %v295_v19 = vld [vmem:[%s1469_s5 + $0x1e8] sm:$0xff] }
  0xcb   : > { %v506_v37 = vmul.f32 %v421_v33, %v282_v25  ;;  %v1215_v38 = vpop.eup %1214  ;;  %v700_v39 = vadd.f32 1.0, %v1213_v34  ;;  %1234 = vpow2.f32 %v1095_v28  ;;  %v507_v40 = vmul.f32 %v421_v33, %v283_v29  ;;  %829 = vrot.lane.b32.xlu1 %v1203_v12, %s1351_s9 }
  0xcc   : > { %v1217_v44 = vpop.eup %1216  ;;  %v699_v45 = vadd.f32 1.0, %v1215_v38  ;;  %1236 = vpow2.f32 %v1094_v31  ;;  %573 = vst [vmem:[%s1478_s8 + $0x190] sm:$0xff] %v508_v35  ;;  %574 = vst.msk [vmem:[%s1478_s8 + $0x198] sm:$0xff] %vm523_vm0, %v509_v36  ;;  %v1097_v46 = vmul.f32 -1.442695, %v509_v36 }
  0xcd   : > { %571 = vst [vmem:[%s1478_s8 + $0x180] sm:$0xff] %v506_v37  ;;  %v1219_v48 = vpop.eup %1218  ;;  %1238 = vrcp.f32 %v700_v39  ;;  %572 = vst.msk [vmem:[%s1478_s8 + $0x188] sm:$0xff] %vm523_vm0, %v507_v40  ;;  %v1096_v49 = vmul.f32 -1.442695, %v507_v40  ;;  %831 = vrot.lane.b32.xlu0 %v1217_v44, %s1351_s9  ;;  %v436_v50 = vpop.permute.xlu1 %435 }
  0xce   : > { %v431_v51 = vpop.permute.xlu0 %430  ;;  %v1221_v52 = vpop.eup %1220  ;;  %1240 = vrcp.f32 %v699_v45  ;;  %v512_v53 = vmul.f32 %v436_v50, %v288_v41  ;;  %v513_v54 = vmul.f32 %v436_v50, %v289_v42 }
  0xcf   : > { %v510_v55 = vmul.f32 %v431_v51, %v286_v43  ;;  %v1223_v56 = vpop.eup %1222  ;;  %1242 = vpow2.f32 %v1097_v46  ;;  %v511_v57 = vmul.f32 %v431_v51, %v287_v47  ;;  %833 = vrot.lane.b32.xlu1 %v1211_v30, %s1351_s9  ;;  %v702_v61 = vadd.f32 1.0, %v1221_v52 }
  0xd0   : > { %v1225_v60 = vpop.eup %1224  ;;  %1244 = vpow2.f32 %v1096_v49  ;;  %577 = vst [vmem:[%s1478_s8 + $0x1b0] sm:$0xff] %v512_v53  ;;  %578 = vst.msk [vmem:[%s1478_s8 + $0x1b8] sm:$0xff] %vm523_vm0, %v513_v54  ;;  %v1099_v62 = vmul.f32 -1.442695, %v513_v54 }
  0xd1   : > { %575 = vst [vmem:[%s1478_s8 + $0x1a0] sm:$0xff] %v510_v55  ;;  %v1227_v1 = vpop.eup %1226  ;;  %v701_v2 = vadd.f32 1.0, %v1225_v60  ;;  %576 = vst.msk [vmem:[%s1478_s8 + $0x1a8] sm:$0xff] %vm523_vm0, %v511_v57  ;;  %835 = vrot.lane.b32.xlu0 %v1223_v56, %s1351_s9  ;;  %v446_v3 = vpop.permute.xlu1 %445  ;;  %v1098_v6 = vmul.f32 -1.442695, %v511_v57 }
  0xd2   : > { %v441_v4 = vpop.permute.xlu0 %440  ;;  %v1229_v5 = vpop.eup %1228  ;;  %1246 = vpow2.f32 %v1099_v62  ;;  %v516_v7 = vmul.f32 %v446_v3, %v292_v58  ;;  %v517_v8 = vmul.f32 %v446_v3, %v293_v59  ;;  %v704_v16 = vadd.f32 1.0, %v1227_v1 }
  0xd3   : > { %v1231_v9 = vpop.eup %1230  ;;  %1248 = vrcp.f32 %v701_v2  ;;  %v703_v10 = vadd.f32 1.0, %v1229_v5  ;;  %v514_v11 = vmul.f32 %v441_v4, %v290_v63  ;;  %v515_v12 = vmul.f32 %v441_v4, %v291_v0  ;;  %837 = vrot.lane.b32.xlu1 %v1219_v48, %s1351_s9 }
  0xd4   : > { %v1233_v15 = vpop.eup %1232  ;;  %1250 = vrcp.f32 %v702_v61  ;;  %581 = vst [vmem:[%s1478_s8 + $0x1d0] sm:$0xff] %v516_v7  ;;  %582 = vst.msk [vmem:[%s1478_s8 + $0x1d8] sm:$0xff] %vm523_vm0, %v517_v8  ;;  %v1101_v17 = vmul.f32 -1.442695, %v517_v8 }
  0xd5   : > { %v1235_v20 = vpop.eup %1234  ;;  %1252 = vrcp.f32 %v703_v10  ;;  %579 = vst [vmem:[%s1478_s8 + $0x1c0] sm:$0xff] %v514_v11  ;;  %580 = vst.msk [vmem:[%s1478_s8 + $0x1c8] sm:$0xff] %vm523_vm0, %v515_v12  ;;  %839 = vrot.lane.b32.xlu0 %v1233_v15, %s1351_s9  ;;  %v456_v21 = vpop.permute.xlu1 %455  ;;  %v1100_v24 = vmul.f32 -1.442695, %v515_v12 }
  0xd6   : > { %v451_v22 = vpop.permute.xlu0 %450  ;;  %v1237_v23 = vpop.eup %1236  ;;  %1254 = vpow2.f32 %v1098_v6  ;;  %v520_v25 = vmul.f32 %v456_v21, %v296_v13  ;;  %v521_v26 = vmul.f32 %v456_v21, %v297_v14  ;;  %v706_v32 = vadd.f32 1.0, %v1235_v20 }
  0xd7   : > { %v1239_v27 = vpop.eup %1238  ;;  %v705_v28 = vadd.f32 1.0, %v1237_v23  ;;  %1256 = vpow2.f32 %v1101_v17  ;;  %v518_v29 = vmul.f32 %v451_v22, %v294_v18  ;;  %v519_v30 = vmul.f32 %v451_v22, %v295_v19  ;;  %841 = vrot.lane.b32.xlu1 %v1231_v9, %s1351_s9 }
  0xd8   : > { %v1241_v31 = vpop.eup %1240  ;;  %1258 = vrcp.f32 %v704_v16  ;;  %585 = vst [vmem:[%s1478_s8 + $0x1f0] sm:$0xff] %v520_v25  ;;  %586 = vst.msk [vmem:[%s1478_s8 + $0x1f8] sm:$0xff] %vm523_vm0, %v521_v26  ;;  %v1103_v33 = vmul.f32 -1.442695, %v521_v26 }
  0xd9   : > { %v1243_v34 = vpop.eup %1242  ;;  %1260 = vrcp.f32 %v705_v28  ;;  %583 = vst [vmem:[%s1478_s8 + $0x1e0] sm:$0xff] %v518_v29  ;;  %584 = vst.msk [vmem:[%s1478_s8 + $0x1e8] sm:$0xff] %vm523_vm0, %v519_v30  ;;  %843 = vrot.lane.b32.xlu0 %v1241_v31, %s1351_s9  ;;  %v1102_v36 = vmul.f32 -1.442695, %v519_v30 }
  0xda   : > { %v1245_v35 = vpop.eup %1244  ;;  %1262 = vpow2.f32 %v1100_v24  ;;  %v708_v39 = vadd.f32 1.0, %v1243_v34 }
  0xdb   : > { %v707_v37 = vadd.f32 1.0, %v1245_v35  ;;  %1264 = vpow2.f32 %v1103_v33  ;;  %845 = vrot.lane.b32.xlu1 %v1239_v27, %s1351_s9 }
  0xdc   : > { %v1247_v38 = vpop.eup %1246  ;;  %1266 = vrcp.f32 %v706_v32 }
  0xdd   : > { %v1249_v40 = vpop.eup %1248  ;;  %1268 = vrcp.f32 %v707_v37  ;;  %v710_v44 = vadd.f32 1.0, %v1247_v38 }
  0xde   : > { %v1251_v41 = vpop.eup %1250  ;;  %1270 = vpow2.f32 %v1102_v36  ;;  %847 = vrot.lane.b32.xlu0 %v1249_v40, %s1351_s9 }
  0xdf   : > { %v1253_v42 = vpop.eup %1252  ;;  %849 = vrot.lane.b32.xlu1 %v1251_v41, %s1351_s9  ;;  %1272 = vrcp.f32 %v708_v39 }
  0xe0   : > { %v1255_v43 = vpop.eup %1254 }
  0xe1   : > { %v1257_v45 = vpop.eup %1256  ;;  %v709_v46 = vadd.f32 1.0, %v1255_v43 }
  0xe2   : > { %v1259_v47 = vpop.eup %1258  ;;  %851 = vrot.lane.b32.xlu0 %v1253_v42, %s1351_s9  ;;  %v712_v50 = vadd.f32 1.0, %v1257_v45 }
  0xe3   : > { %v1261_v48 = vpop.eup %1260  ;;  %1274 = vrcp.f32 %v709_v46  ;;  %853 = vrot.lane.b32.xlu1 %v1259_v47, %s1351_s9 }
  0xe4   : > { %v1263_v49 = vpop.eup %1262  ;;  %1276 = vrcp.f32 %v710_v44 }
  0xe5   : > { %v1265_v51 = vpop.eup %1264  ;;  %v711_v52 = vadd.f32 1.0, %v1263_v49 }
  0xe6   : > { %v1267_v53 = vpop.eup %1266  ;;  %855 = vrot.lane.b32.xlu0 %v1261_v48, %s1351_s9  ;;  %v714_v56 = vadd.f32 1.0, %v1265_v51 }
  0xe7   : > { %v1269_v54 = vpop.eup %1268  ;;  %1278 = vrcp.f32 %v711_v52  ;;  %857 = vrot.lane.b32.xlu1 %v1267_v53, %s1351_s9 }
  0xe8   : > { %v1271_v55 = vpop.eup %1270  ;;  %1280 = vrcp.f32 %v712_v50 }
  0xe9   : > { %v713_v57 = vadd.f32 1.0, %v1271_v55  ;;  %v1273_v58 = vpop.eup %1272 }
  0xea   : > { %859 = vrot.lane.b32.xlu0 %v1269_v54, %s1351_s9 }
  0xeb   : > { %1282 = vrcp.f32 %v713_v57  ;;  %861 = vrot.lane.b32.xlu1 %v1273_v58, %s1351_s9 }
  0xec   : > { %1284 = vrcp.f32 %v714_v56 }
  0xed   : > { %v1275_v59 = vpop.eup %1274 }
  0xee   : > { %v1277_v60 = vpop.eup %1276  ;;  %863 = vrot.lane.b32.xlu0 %v1275_v59, %s1351_s9 }
  0xef   : > { %865 = vrot.lane.b32.xlu1 %v1277_v60, %s1351_s9 }
  0xf1   : > { %v1279_v61 = vpop.eup %1278 }
  0xf2   : > { %v1281_v62 = vpop.eup %1280  ;;  %867 = vrot.lane.b32.xlu0 %v1279_v61, %s1351_s9 }
  0xf3   : > { %869 = vrot.lane.b32.xlu1 %v1281_v62, %s1351_s9 }
  0xf5   : > { %v1283_v63 = vpop.eup %1282 }
  0xf6   : > { %v1285_v0 = vpop.eup %1284  ;;  %871 = vrot.lane.b32.xlu0 %v1283_v63, %s1351_s9 }
  0xf7   : > { %873 = vrot.lane.b32.xlu1 %v1285_v0, %s1351_s9 }
 0x129   : > { %v812_v1 = vpop.permute.xlu0 %811 }
 0x12a   : > { %908 = vst.msk [vmem:[%s1671_s17] sm:$0xff] %vm907_vm1, %v812_v1 }
 0x12d   : > { %v814_v2 = vpop.permute.xlu1 %813  ;;  %v816_v3 = vpop.permute.xlu0 %815 }
 0x12e   : > { %909 = vst.msk [vmem:[%s1671_s17 + $0x8] sm:$0xff] %vm907_vm1, %v814_v2  ;;  %910 = vst.msk [vmem:[%s1671_s17 + $0x10] sm:$0xff] %vm907_vm1, %v816_v3 }
 0x131   : > { %v818_v4 = vpop.permute.xlu1 %817  ;;  %v820_v5 = vpop.permute.xlu0 %819 }
 0x132   : > { %911 = vst.msk [vmem:[%s1671_s17 + $0x18] sm:$0xff] %vm907_vm1, %v818_v4  ;;  %912 = vst.msk [vmem:[%s1671_s17 + $0x20] sm:$0xff] %vm907_vm1, %v820_v5 }
 0x135   : > { %v822_v6 = vpop.permute.xlu1 %821 }
 0x136   : > { %913 = vst.msk [vmem:[%s1671_s17 + $0x28] sm:$0xff] %vm907_vm1, %v822_v6 }
 0x137   : > { %v824_v7 = vpop.permute.xlu0 %823 }
 0x138   : > { %914 = vst.msk [vmem:[%s1671_s17 + $0x30] sm:$0xff] %vm907_vm1, %v824_v7 }
 0x139   : > { %v826_v8 = vpop.permute.xlu1 %825 }
 0x13a   : > { %915 = vst.msk [vmem:[%s1671_s17 + $0x38] sm:$0xff] %vm907_vm1, %v826_v8 }
 0x13b   : > { %v828_v9 = vpop.permute.xlu0 %827 }
 0x13c   : > { %916 = vst.msk [vmem:[%s1671_s17 + $0x40] sm:$0xff] %vm907_vm1, %v828_v9 }
 0x13d   : > { %v830_v10 = vpop.permute.xlu1 %829 }
 0x13e   : > { %917 = vst.msk [vmem:[%s1671_s17 + $0x48] sm:$0xff] %vm907_vm1, %v830_v10 }
 0x13f   : > { %v832_v11 = vpop.permute.xlu0 %831 }
 0x140   : > { %918 = vst.msk [vmem:[%s1671_s17 + $0x50] sm:$0xff] %vm907_vm1, %v832_v11 }
 0x141   : > { %v834_v12 = vpop.permute.xlu1 %833 }
 0x142   : > { %919 = vst.msk [vmem:[%s1671_s17 + $0x58] sm:$0xff] %vm907_vm1, %v834_v12 }
 0x143   : > { %v836_v13 = vpop.permute.xlu0 %835 }
 0x144   : > { %920 = vst.msk [vmem:[%s1671_s17 + $0x60] sm:$0xff] %vm907_vm1, %v836_v13 }
 0x145   : > { %v838_v14 = vpop.permute.xlu1 %837 }
 0x146   : > { %921 = vst.msk [vmem:[%s1671_s17 + $0x68] sm:$0xff] %vm907_vm1, %v838_v14 }
 0x147   : > { %v840_v15 = vpop.permute.xlu0 %839 }
 0x148   : > { %922 = vst.msk [vmem:[%s1671_s17 + $0x70] sm:$0xff] %vm907_vm1, %v840_v15 }
 0x149   : > { %v842_v16 = vpop.permute.xlu1 %841 }
 0x14a   : > { %923 = vst.msk [vmem:[%s1671_s17 + $0x78] sm:$0xff] %vm907_vm1, %v842_v16 }
 0x14b   : > { %v844_v17 = vpop.permute.xlu0 %843 }
 0x14c   : > { %924 = vst.msk [vmem:[%s1671_s17 + $0x80] sm:$0xff] %vm907_vm1, %v844_v17 }
 0x14d   : > { %v846_v18 = vpop.permute.xlu1 %845 }
 0x14e   : > { %925 = vst.msk [vmem:[%s1671_s17 + $0x88] sm:$0xff] %vm907_vm1, %v846_v18 }
 0x150   : > { %v848_v19 = vpop.permute.xlu0 %847 }
 0x151   : > { %926 = vst.msk [vmem:[%s1671_s17 + $0x90] sm:$0xff] %vm907_vm1, %v848_v19  ;;  %v850_v20 = vpop.permute.xlu1 %849 }
 0x152   : > { %927 = vst.msk [vmem:[%s1671_s17 + $0x98] sm:$0xff] %vm907_vm1, %v850_v20 }
 0x154   : > { %v852_v21 = vpop.permute.xlu0 %851 }
 0x155   : > { %928 = vst.msk [vmem:[%s1671_s17 + $0xa0] sm:$0xff] %vm907_vm1, %v852_v21  ;;  %v854_v22 = vpop.permute.xlu1 %853 }
 0x156   : > { %929 = vst.msk [vmem:[%s1671_s17 + $0xa8] sm:$0xff] %vm907_vm1, %v854_v22 }
 0x158   : > { %v856_v23 = vpop.permute.xlu0 %855 }
 0x159   : > { %930 = vst.msk [vmem:[%s1671_s17 + $0xb0] sm:$0xff] %vm907_vm1, %v856_v23  ;;  %v858_v24 = vpop.permute.xlu1 %857 }
 0x15a   : > { %931 = vst.msk [vmem:[%s1671_s17 + $0xb8] sm:$0xff] %vm907_vm1, %v858_v24 }
 0x15c   : > { %v860_v25 = vpop.permute.xlu0 %859 }
 0x15d   : > { %932 = vst.msk [vmem:[%s1671_s17 + $0xc0] sm:$0xff] %vm907_vm1, %v860_v25  ;;  %v862_v26 = vpop.permute.xlu1 %861 }
 0x15e   : > { %933 = vst.msk [vmem:[%s1671_s17 + $0xc8] sm:$0xff] %vm907_vm1, %v862_v26 }
 0x160   : > { %v864_v27 = vpop.permute.xlu0 %863 }
 0x161   : > { %934 = vst.msk [vmem:[%s1671_s17 + $0xd0] sm:$0xff] %vm907_vm1, %v864_v27  ;;  %v866_v28 = vpop.permute.xlu1 %865 }
 0x162   : > { %935 = vst.msk [vmem:[%s1671_s17 + $0xd8] sm:$0xff] %vm907_vm1, %v866_v28 }
 0x164   : > { %v868_v29 = vpop.permute.xlu0 %867 }
 0x165   : > { %936 = vst.msk [vmem:[%s1671_s17 + $0xe0] sm:$0xff] %vm907_vm1, %v868_v29  ;;  %v870_v30 = vpop.permute.xlu1 %869 }
 0x166   : > { %937 = vst.msk [vmem:[%s1671_s17 + $0xe8] sm:$0xff] %vm907_vm1, %v870_v30 }
 0x168   : > { %v872_v31 = vpop.permute.xlu0 %871 }
 0x169   : > { %938 = vst.msk [vmem:[%s1671_s17 + $0xf0] sm:$0xff] %vm907_vm1, %v872_v31  ;;  %v874_v32 = vpop.permute.xlu1 %873 }
 0x16a   : > { %939 = vst.msk [vmem:[%s1671_s17 + $0xf8] sm:$0xff] %vm907_vm1, %v874_v32 }
 0x16b   : > { %1299 = shalt.err (!%p1296_p3)
}
 0x16c   : > { %s1300_s4 = scalar_lea.hbm %s1738_s26, 4096  ;;  %s1304_s7 = scalar_lea.hbm %s1792_s3, 8192 }
 0x16d   : > { %p1301_p4 = scmp.ne.s32.totalorder %s1738_s26, %s1300_s4  ;;  %p1305_p9 = scmp.lt.u32.totalorder %s1738_s26, %s1792_s3 }
 0x16e   : > { %p1306_p10 = scmp.lt.u32.totalorder %s1304_s7, %s1300_s4  ;;  %p1308_p12 = scmp.lt.u32.totalorder %s1300_s4, %s1738_s26 }
 0x16f   : > { %p1302_p7 = pnand %p1301_p4, %p1413_p5 }
 0x170   : > { %p1307_p11 = por %p1306_p10, %p1305_p9 }
 0x171   : > { %p1303_p8 = pneg %p1302_p7 }
 0x172   : > { %p1309_p13 = por %p1308_p12, %p1307_p11 }
 0x174   : > { %p1310_p0 = pnand %p1309_p13, %p1303_p8 }
 0x176   : > { %1313 = shalt.err (!%p1310_p0)
}
 0x177   : > { %s1353_s10 = smov 128   ;;  %s1354_s11 = smov 8  }
 0x178   : > { %1113 = dma.vmem_to_hbm [thread:$0]  (%p1413_p5), %s1740_s20, 4096, %s1738_s26, %s1748_s16, %s1353_s10, %s1353_s10, %s1354_s11  }
 0x179 PF: > { %p1119_p1 = scmp.ge.s32.totalorder %s1348_s15, 2  ;;  %s985_s17 = sand.u32 1, %s1336_s12  }
 0x17a   : > { %s986_s19 = scalar_lea.sflag [#allocation3], %s985_s17 }
 0x17b   : > { %p1116_p2 = pnand %p1119_p1, %p1417_p6 }
 0x17d   : > { %1331 = dma.done.wait (!%p1116_p2), %s986_s19, 4096  }
 0x17e   : > { %1333 = vsyncadd (!%p1116_p2), %s986_s19, 4294963200  ;;  %p14_p3 = scmp.ge.s32.totalorder %s1400_s18, 4   ;;  %s1795_s12 = smov %s1340_s13 }
 0x17f   : > { %s1796_s13 = smov %s1344_s14  ;;  %s1797_s14 = smov %s1411_s21 }
 0x180   : > { %s1798_s15 = smov %s1400_s18  ;;  %16 = sbr.rel (!%p14_p3) target bundleno = 3 (0x3), region = 78 }
 0x187   :  { %991 = vsyncpa [#allocation3], 1 }
 0x188   :  { %993 = vsyncpa [#allocation3 + $0x1], 1 }

// kernel: sep_conv2d_forward.5
= control target key start
LH: loop header
LB: loop body
LE: loop exit
PB: predicated region body
PF: predicated region fallthrough
CT: control target
= control target key end

     0   :  { %7 = vsyncpa [#allocation3], 0  ;;  %s1738_s9 = smov 0   ;;  %s2358_s0 = inlined_call_operand.vmem [shape: f32[98], index: 0, kind: input, shape index: {}]   ;;  %s2359_s1 = inlined_call_operand.vmem [shape: f32[2,2,22,22], index: 1, kind: input, shape index: {}]   ;;  %s2360_s2 = inlined_call_operand.vmem [shape: f32[2,16,16], index: 2, kind: output, shape index: {}]  }
   0x1 LB: > { %s1529_s10 = sadd.s32 4294967295, %s1714_s9   ;;  %p1531_p0 = scmp.ge.s32.totalorder %s1714_s9, 1  ;;  %s1714_s9 = sphi %s1738_s9, %s13_s9  }
   0x2   : > { %p91_p1 = scmp.lt.s32.totalorder %s1714_s9, 3  ;;  %s104_s13 = sshll.u32 %s2358_s0, 4  ;;  %s105_s13 = int_to_ptr.vmem [resolvable:$true] %s104_s13 }
   0x3   : > { %p1664_p3 = scmp.eq.s32.totalorder %s1529_s10, 0  ;;  %s1689_s15 = scalar_lea.vmem %s105_s13, 16 }
   0x4   : > { %p1749_p2 = pnand %p1531_p0, %p91_p1  ;;  %p1690_p6 = scmp.ne.s32.totalorder %s105_s13, %s1689_s15 }
   0x5   : > { %p1697_p10 = scmp.lt.s32.totalorder %s105_s13, %s105_s13  ;;  %p1698_p11 = scmp.lt.s32.totalorder %s1689_s15, %s1689_s15 }
   0x6   : > { %p1660_p4 = pneg %p1749_p2 }
   0x7   : > { %p1699_p12 = por %p1698_p11, %p1697_p10 }
   0x8   : > { %p1661_p5 = pnand %p1664_p3, %p1660_p4 }
   0xa   : > { %p1691_p7 = pneg %p1661_p5 }
   0xc   : > { %p1692_p8 = pnand %p1691_p7, %p1690_p6 }
   0xe   : > { %p1693_p9 = pneg %p1692_p8 }
  0x10   : > { %p1700_p13 = pnand %p1699_p12, %p1693_p9 }
  0x12   : > { %1703 = shalt.err (!%p1700_p13)
}
  0x13   : > { %s1716_s16 = smov [#allocation2]   ;;  %125 = sbr.rel (%p1749_p2) target bundleno = 515 (0x203), region = 28 }
  0x14   : > { %1663 = dma.vmem_to_smem (!%p1661_p5), %s105_s13, 16, %s1716_s16, [#allocation3]  }
  0x1a   : > { %1709 = dma.done.wait (%p1664_p3), [#allocation3], 16  }
  0x1b   : > { %1711 = vsyncadd (%p1664_p3), [#allocation3], 4294967280 }
  0x1c   : > { %131 = sfence }
  0x1d   : > { %p148_p0 = scmp.lt.s32.totalorder %s1529_s10, 1  ;;  %s1543_s17 = sld [smem:[#allocation2 + $0x3]]  ;;  %vm1459_vm0 = vcmask 130048  }
  0x1e   : > { %s1542_s18 = sld [smem:[#allocation2 + $0x2]]  ;;  %s1544_s19 = sld [smem:[#allocation2 + $0x4]] }
  0x1f   : > { %s2363_s10 = smov (!%p148_p0, %s1529_s10), 1  ;;  %s1545_s24 = sld [smem:[#allocation2 + $0x5]] }
  0x20   : > { %s1655_s20 = smul.u32 48, %s2363_s10  ;;  %s1717_s25 = smov 127  }
  0x21   : > { %s1546_s26 = sld [smem:[#allocation2 + $0x6]]  ;;  %s1547_s27 = sld [smem:[#allocation2 + $0x7]] }
  0x22   : > { %s1766_s23 = scalar_lea.vmem %s2359_s1, %s1655_s20  ;;  %s1718_s28 = smov 126  }
  0x23   : > { %v1769_v0 = vld [vmem:[%s1766_s23 + $0x18] sm:$0xff]  ;;  %v1772_v1 = vld [vmem:[%s1766_s23 + $0x20] sm:$0xff]  ;;  %v190_v2 = vstv %s1543_s17  ;;  %v1779_v5 = vld [vmem:[%s1766_s23 + $0x8] sm:$0xff]  ;;  %s1548_s29 = sld [smem:[#allocation2 + $0x8]]  ;;  %s1549_s30 = sld [smem:[#allocation2 + $0x9]] }
  0x24   : > { %v1775_v3 = vld [vmem:[%s1766_s23] sm:$0xff]  ;;  %v191_v4 = vmul.f32 %v1769_v0, %v190_v2  ;;  %v176_v6 = vstv %s1542_s18  ;;  %v192_v8 = vmul.f32 %v1772_v1, %v190_v2  ;;  %v204_v10 = vstv %s1544_s19  ;;  %s160_s3 = sld [smem:[#allocation2]]  ;;  %s1541_s4 = sld [smem:[#allocation2 + $0x1]]  ;;  %v1835_v48 = vld [vmem:[%s1766_s23 + $0x9] sm:$0xff] }
  0x25   : > { %v177_v7 = vmul.f32 %v176_v6, %v1775_v3  ;;  %v178_v9 = vmul.f32 %v176_v6, %v1779_v5  ;;  %v206_v11 = vmul.f32 %v204_v10, %v1779_v5  ;;  %v205_v12 = vmul.f32 %v204_v10, %v1775_v3  ;;  %s1719_s5 = smov 125   ;;  %s1550_s6 = sld [smem:[#allocation2 + $0xa]]  ;;  %v1838_v50 = vld [vmem:[%s1766_s23 + $0x1] sm:$0xff]  ;;  %v1848_v55 = vld [vmem:[%s1766_s23 + $0x19] sm:$0xff] }
  0x26   : > { %195 = vrot.lane.b32.xlu1 %v191_v4, %s1717_s25  ;;  %v218_v13 = vstv %s1545_s24  ;;  %s1551_s7 = sld [smem:[#allocation2 + $0xb]]  ;;  %s1720_s8 = smov 124   ;;  %v1845_v53 = vld [vmem:[%s1766_s23 + $0x21] sm:$0xff] }
  0x27   : > { %181 = vrot.lane.b32.xlu0 %v177_v7, %s1717_s25  ;;  %v220_v14 = vmul.f32 %v1772_v1, %v218_v13  ;;  %v219_v15 = vmul.f32 %v1769_v0, %v218_v13  ;;  %v232_v16 = vstv %s1546_s26  ;;  %v246_v19 = vstv %s1547_s27  ;;  %s1552_s11 = sld [smem:[#allocation2 + $0xc]]  ;;  %s1553_s12 = sld [smem:[#allocation2 + $0xd]] }
  0x28   : > { %v234_v17 = vmul.f32 %v232_v16, %v1779_v5  ;;  %v233_v18 = vmul.f32 %v232_v16, %v1775_v3  ;;  %v248_v20 = vmul.f32 %v1772_v1, %v246_v19  ;;  %v247_v21 = vmul.f32 %v1769_v0, %v246_v19  ;;  %s1721_s13 = smov 123   ;;  %s1558_s14 = sld [smem:[#allocation2 + $0x10]] }
  0x29   : > { %v260_v22 = vstv %s1548_s29  ;;  %v274_v25 = vstv %s1549_s30  ;;  %s1559_s15 = sld [smem:[#allocation2 + $0x11]]  ;;  %s1722_s16 = smov 122  }
  0x2a   : > { %197 = vrot.lane.b32.xlu1 %v192_v8, %s1717_s25  ;;  %v262_v23 = vmul.f32 %v260_v22, %v1779_v5  ;;  %v261_v24 = vmul.f32 %v260_v22, %v1775_v3  ;;  %v161_v26 = vstv %s160_s3  ;;  %v170_v27 = vstv %s1541_s4  ;;  %s1560_s17 = sld [smem:[#allocation2 + $0x12]]  ;;  %s1561_s18 = sld [smem:[#allocation2 + $0x13]] }
  0x2b   : > { %183 = vrot.lane.b32.xlu0 %v178_v9, %s1717_s25  ;;  %v171_v28 = vmul.f32 %v1769_v0, %v170_v27  ;;  %v162_v29 = vmul.f32 %v161_v26, %v1775_v3  ;;  %v163_v30 = vmul.f32 %v161_v26, %v1779_v5  ;;  %v276_v31 = vmul.f32 %v1772_v1, %v274_v25  ;;  %s1562_s19 = sld [smem:[#allocation2 + $0x14]]  ;;  %s1563_s20 = sld [smem:[#allocation2 + $0x15]]  ;;  %v1898_v26 = vld [vmem:[%s1766_s23 + $0x2] sm:$0xff] }
  0x2c   : > { %v172_v32 = vmul.f32 %v1772_v1, %v170_v27  ;;  %v275_v33 = vmul.f32 %v1769_v0, %v274_v25  ;;  %v288_v34 = vstv %s1550_s6  ;;  %v302_v39 = vstv %s1551_s7  ;;  %s1564_s21 = sld [smem:[#allocation2 + $0x16]]  ;;  %s1565_s22 = sld [smem:[#allocation2 + $0x17]] }
  0x2d   : > { %v1814_v35 = vadd.f32 %v171_v28, %v162_v29  ;;  %v290_v37 = vmul.f32 %v288_v34, %v1779_v5  ;;  %v289_v38 = vmul.f32 %v288_v34, %v1775_v3  ;;  %v304_v40 = vmul.f32 %v1772_v1, %v302_v39  ;;  %s1566_s24 = sld [smem:[#allocation2 + $0x18]]  ;;  %s1567_s26 = sld [smem:[#allocation2 + $0x19]]  ;;  %v1905_v29 = vld [vmem:[%s1766_s23 + $0x22] sm:$0xff] }
  0x2e   : > { %211 = vrot.lane.b32.xlu1 %v206_v11, %s1718_s28  ;;  %v1816_v36 = vadd.f32 %v172_v32, %v163_v30  ;;  %v303_v41 = vmul.f32 %v1769_v0, %v302_v39  ;;  %v316_v42 = vstv %s1552_s11  ;;  %v330_v45 = vstv %s1553_s12  ;;  %s1568_s27 = sld [smem:[#allocation2 + $0x1a]]  ;;  %s1569_s29 = sld [smem:[#allocation2 + $0x1b]] }
  0x2f   : > { %209 = vrot.lane.b32.xlu0 %v205_v12, %s1718_s28  ;;  %v318_v43 = vmul.f32 %v316_v42, %v1779_v5  ;;  %v317_v44 = vmul.f32 %v316_v42, %v1775_v3  ;;  %v332_v46 = vmul.f32 %v1772_v1, %v330_v45  ;;  %v331_v47 = vmul.f32 %v1769_v0, %v330_v45  ;;  %s1574_s30 = sld [smem:[#allocation2 + $0x1e]]  ;;  %s1575_s3 = sld [smem:[#allocation2 + $0x1f]] }
  0x30   : > { %v360_v49 = vstv %s1558_s14  ;;  %v374_v54 = vstv %s1559_s15  ;;  %v388_v58 = vstv %s1560_s17  ;;  %v402_v61 = vstv %s1561_s18  ;;  %s1576_s4 = sld [smem:[#allocation2 + $0x20]]  ;;  %s1577_s6 = sld [smem:[#allocation2 + $0x21]] }
  0x31   : > { %v362_v51 = vmul.f32 %v360_v49, %v1835_v48  ;;  %v361_v52 = vmul.f32 %v360_v49, %v1838_v50  ;;  %v376_v56 = vmul.f32 %v1845_v53, %v374_v54  ;;  %v375_v57 = vmul.f32 %v1848_v55, %v374_v54  ;;  %s1578_s7 = sld [smem:[#allocation2 + $0x22]]  ;;  %s1579_s11 = sld [smem:[#allocation2 + $0x23]] }
  0x32   : > { %225 = vrot.lane.b32.xlu1 %v220_v14, %s1718_s28  ;;  %v390_v59 = vmul.f32 %v388_v58, %v1835_v48  ;;  %v389_v60 = vmul.f32 %v388_v58, %v1838_v50  ;;  %v404_v62 = vmul.f32 %v1845_v53, %v402_v61  ;;  %v403_v63 = vmul.f32 %v1848_v55, %v402_v61  ;;  %s1580_s12 = sld [smem:[#allocation2 + $0x24]]  ;;  %s1581_s14 = sld [smem:[#allocation2 + $0x25]] }
  0x33   : > { %223 = vrot.lane.b32.xlu0 %v219_v15, %s1718_s28  ;;  %v416_v0 = vstv %s1562_s19  ;;  %v430_v3 = vstv %s1563_s20  ;;  %v444_v6 = vstv %s1564_s21  ;;  %s1582_s15 = sld [smem:[#allocation2 + $0x26]]  ;;  %s1583_s17 = sld [smem:[#allocation2 + $0x27]] }
  0x34   : > { %v418_v1 = vmul.f32 %v416_v0, %v1835_v48  ;;  %v417_v2 = vmul.f32 %v416_v0, %v1838_v50  ;;  %v432_v4 = vmul.f32 %v1845_v53, %v430_v3  ;;  %v431_v5 = vmul.f32 %v1848_v55, %v430_v3  ;;  %s1584_s18 = sld [smem:[#allocation2 + $0x28]]  ;;  %s1585_s19 = sld [smem:[#allocation2 + $0x29]] }
  0x35   : > { %v446_v7 = vmul.f32 %v444_v6, %v1835_v48  ;;  %v445_v8 = vmul.f32 %v444_v6, %v1838_v50  ;;  %v458_v9 = vstv %s1565_s22  ;;  %v472_v12 = vstv %s1566_s24  ;;  %s1590_s20 = sld [smem:[#allocation2 + $0x2c]]  ;;  %s1951_s21 = sld [smem:[#allocation2 + $0x2d]] }
  0x36   : > { %239 = vrot.lane.b32.xlu1 %v234_v17, %s1719_s5  ;;  %v460_v10 = vmul.f32 %v1845_v53, %v458_v9  ;;  %v459_v11 = vmul.f32 %v1848_v55, %v458_v9  ;;  %v474_v13 = vmul.f32 %v472_v12, %v1835_v48  ;;  %v473_v14 = vmul.f32 %v472_v12, %v1838_v50  ;;  %s1961_s22 = sld [smem:[#allocation2 + $0x2e]]  ;;  %s1974_s24 = sld [smem:[#allocation2 + $0x2f]] }
  0x37   : > { %237 = vrot.lane.b32.xlu0 %v233_v18, %s1719_s5  ;;  %v486_v15 = vstv %s1567_s26  ;;  %v500_v18 = vstv %s1568_s27  ;;  %v544_v25 = vstv %s1574_s30  ;;  %s1984_s26 = sld [smem:[#allocation2 + $0x30]]  ;;  %s1986_s27 = sld [smem:[#allocation2 + $0xe]] }
  0x38   : > { %v488_v16 = vmul.f32 %v1845_v53, %v486_v15  ;;  %v487_v17 = vmul.f32 %v1848_v55, %v486_v15  ;;  %v502_v19 = vmul.f32 %v500_v18, %v1835_v48  ;;  %v545_v28 = vmul.f32 %v544_v25, %v1898_v26  ;;  %s1995_s30 = sld [smem:[#allocation2 + $0x31]] }
  0x39   : > { %v558_v30 = vstv %s1575_s3  ;;  %v572_v34 = vstv %s1576_s4  ;;  %v586_v39 = vstv %s1577_s6  ;;  %v600_v42 = vstv %s1578_s7  ;;  %s2002_s3 = sld [smem:[#allocation2 + $0x32]]  ;;  %s2012_s4 = sld [smem:[#allocation2 + $0x33]] }
  0x3a   : > { %253 = vrot.lane.b32.xlu1 %v248_v20, %s1719_s5  ;;  %v501_v20 = vmul.f32 %v500_v18, %v1838_v50  ;;  %v560_v32 = vmul.f32 %v1905_v29, %v558_v30  ;;  %v614_v45 = vstv %s1579_s11  ;;  %v628_v49 = vstv %s1580_s12  ;;  %s1598_s6 = sld [smem:[#allocation2 + $0x34]]  ;;  %s1599_s7 = sld [smem:[#allocation2 + $0x35]] }
  0x3b   : > { %251 = vrot.lane.b32.xlu0 %v247_v21, %s1719_s5  ;;  %v514_v21 = vstv %s1569_s29  ;;  %v670_v3 = vstv %s1583_s17  ;;  %s1990_s29 = sld [smem:[#allocation2 + $0xf]]  ;;  %s1600_s11 = sld [smem:[#allocation2 + $0x36]] }
  0x3c   : > { %v516_v22 = vmul.f32 %v1845_v53, %v514_v21  ;;  %v672_v6 = vmul.f32 %v1905_v29, %v670_v3  ;;  %s1601_s12 = sld [smem:[#allocation2 + $0x37]]  ;;  %s2052_s17 = sld [smem:[#allocation2 + $0x3c]] }
  0x3e   : > { %267 = vrot.lane.b32.xlu1 %v262_v23, %s1720_s8  ;;  %v515_v23 = vmul.f32 %v1848_v55, %v514_v21  ;;  %v728_v21 = vstv %s1590_s20  ;;  %s2077_s20 = sld [smem:[#allocation2 + $0x1c]] }
  0x3f   : > { %265 = vrot.lane.b32.xlu0 %v261_v24, %s1720_s8  ;;  %v1895_v24 = vld [vmem:[%s1766_s23 + $0xa] sm:$0xff] }
  0x40   : > { %v546_v27 = vmul.f32 %v544_v25, %v1895_v24  ;;  %v630_v54 = vmul.f32 %v628_v49, %v1895_v24 }
  0x42   : > { %281 = vrot.lane.b32.xlu1 %v276_v31, %s1720_s8  ;;  %v1908_v31 = vld [vmem:[%s1766_s23 + $0x1a] sm:$0xff] }
  0x43   : > { %279 = vrot.lane.b32.xlu0 %v275_v33, %s1720_s8  ;;  %v559_v33 = vmul.f32 %v1908_v31, %v558_v30 }
  0x46   : > { %295 = vrot.lane.b32.xlu1 %v290_v37, %s1721_s13  ;;  %v574_v37 = vmul.f32 %v572_v34, %v1895_v24 }
  0x47   : > { %293 = vrot.lane.b32.xlu0 %v289_v38, %s1721_s13  ;;  %v573_v38 = vmul.f32 %v572_v34, %v1898_v26 }
  0x4a   : > { %309 = vrot.lane.b32.xlu1 %v304_v40, %s1721_s13  ;;  %v588_v40 = vmul.f32 %v1905_v29, %v586_v39 }
  0x4b   : > { %307 = vrot.lane.b32.xlu0 %v303_v41, %s1721_s13  ;;  %v587_v41 = vmul.f32 %v1908_v31, %v586_v39 }
  0x4e   : > { %323 = vrot.lane.b32.xlu1 %v318_v43, %s1722_s16  ;;  %v602_v43 = vmul.f32 %v600_v42, %v1895_v24 }
  0x4f   : > { %321 = vrot.lane.b32.xlu0 %v317_v44, %s1722_s16  ;;  %v601_v44 = vmul.f32 %v600_v42, %v1898_v26 }
  0x52   : > { %337 = vrot.lane.b32.xlu1 %v332_v46, %s1722_s16  ;;  %v616_v46 = vmul.f32 %v1905_v29, %v614_v45 }
  0x53   : > { %335 = vrot.lane.b32.xlu0 %v331_v47, %s1722_s16  ;;  %v615_v47 = vmul.f32 %v1908_v31, %v614_v45  ;;  %v756_v45 = vstv %s1961_s22  ;;  %s2086_s22 = sld [smem:[#allocation2 + $0x3f]] }
  0x56   : > { %367 = vrot.lane.b32.xlu1 %v362_v51, %s1717_s25 }
  0x57   : > { %365 = vrot.lane.b32.xlu0 %v361_v52, %s1717_s25 }
  0x5a   : > { %381 = vrot.lane.b32.xlu1 %v376_v56, %s1717_s25  ;;  %v629_v56 = vmul.f32 %v628_v49, %v1898_v26 }
  0x5b   : > { %379 = vrot.lane.b32.xlu0 %v375_v57, %s1717_s25  ;;  %v642_v57 = vstv %s1581_s14  ;;  %s1606_s14 = sld [smem:[#allocation2 + $0x3a]] }
  0x5c   : > { %v643_v61 = vmul.f32 %v1908_v31, %v642_v57 }
  0x5e   : > { %395 = vrot.lane.b32.xlu1 %v390_v59, %s1718_s28 }
  0x5f   : > { %393 = vrot.lane.b32.xlu0 %v389_v60, %s1718_s28  ;;  %v644_v60 = vmul.f32 %v1905_v29, %v642_v57 }
  0x62   : > { %409 = vrot.lane.b32.xlu1 %v404_v62, %s1718_s28  ;;  %v656_v62 = vstv %s1582_s15  ;;  %s2043_s15 = sld [smem:[#allocation2 + $0x3b]] }
  0x63   : > { %407 = vrot.lane.b32.xlu0 %v403_v63, %s1718_s28 }
  0x66   : > { %423 = vrot.lane.b32.xlu1 %v418_v1, %s1719_s5  ;;  %v658_v1 = vmul.f32 %v656_v62, %v1895_v24 }
  0x67   : > { %421 = vrot.lane.b32.xlu0 %v417_v2, %s1719_s5  ;;  %v657_v2 = vmul.f32 %v656_v62, %v1898_v26 }
  0x6a   : > { %437 = vrot.lane.b32.xlu1 %v432_v4, %s1719_s5 }
  0x6b   : > { %435 = vrot.lane.b32.xlu0 %v431_v5, %s1719_s5 }
  0x6e   : > { %451 = vrot.lane.b32.xlu1 %v446_v7, %s1720_s8  ;;  %v671_v7 = vmul.f32 %v1908_v31, %v670_v3  ;;  %v784_v3 = vstv %s1984_s26  ;;  %s2103_s26 = sld [smem:[#allocation2 + $0x41]] }
  0x6f   : > { %449 = vrot.lane.b32.xlu0 %v445_v8, %s1720_s8  ;;  %v684_v8 = vstv %s1584_s18  ;;  %s2065_s18 = sld [smem:[#allocation2 + $0x3d]] }
  0x72   : > { %465 = vrot.lane.b32.xlu1 %v460_v10, %s1720_s8 }
  0x73   : > { %463 = vrot.lane.b32.xlu0 %v459_v11, %s1720_s8  ;;  %v686_v11 = vmul.f32 %v684_v8, %v1895_v24 }
  0x76   : > { %479 = vrot.lane.b32.xlu1 %v474_v13, %s1721_s13  ;;  %v685_v13 = vmul.f32 %v684_v8, %v1898_v26 }
  0x77   : > { %477 = vrot.lane.b32.xlu0 %v473_v14, %s1721_s13  ;;  %v698_v14 = vstv %s1585_s19  ;;  %s2075_s19 = sld [smem:[#allocation2 + $0x3e]] }
  0x78   : > { %v700_v18 = vmul.f32 %v1905_v29, %v698_v14 }
  0x7a   : > { %493 = vrot.lane.b32.xlu1 %v488_v16, %s1721_s13 }
  0x7b   : > { %491 = vrot.lane.b32.xlu0 %v487_v17, %s1721_s13 }
  0x7e   : > { %507 = vrot.lane.b32.xlu1 %v502_v19, %s1722_s16 }
  0x7f   : > { %505 = vrot.lane.b32.xlu0 %v501_v20, %s1722_s16  ;;  %v1959_v20 = vld [vmem:[%s1766_s23 + $0xb] sm:$0xff] }
  0x82   : > { %521 = vrot.lane.b32.xlu1 %v516_v22, %s1722_s16 }
  0x83   : > { %519 = vrot.lane.b32.xlu0 %v515_v23, %s1722_s16  ;;  %v1964_v23 = vld [vmem:[%s1766_s23 + $0x3] sm:$0xff] }
  0x84   : > { %v729_v30 = vmul.f32 %v728_v21, %v1964_v23  ;;  %v757_v57 = vmul.f32 %v756_v45, %v1964_v23 }
  0x86   : > { %551 = vrot.lane.b32.xlu1 %v546_v27, %s1717_s25  ;;  %v730_v27 = vmul.f32 %v728_v21, %v1959_v20 }
  0x87   : > { %549 = vrot.lane.b32.xlu0 %v545_v28, %s1717_s25 }
  0x8a   : > { %565 = vrot.lane.b32.xlu1 %v560_v32, %s1717_s25  ;;  %v1971_v32 = vld [vmem:[%s1766_s23 + $0x23] sm:$0xff] }
  0x8b   : > { %563 = vrot.lane.b32.xlu0 %v559_v33, %s1717_s25  ;;  %v742_v33 = vstv %s1951_s21  ;;  %s2081_s21 = sld [smem:[#allocation2 + $0x1d]] }
  0x8c   : > { %v744_v42 = vmul.f32 %v1971_v32, %v742_v33 }
  0x8e   : > { %579 = vrot.lane.b32.xlu1 %v574_v37, %s1718_s28 }
  0x8f   : > { %577 = vrot.lane.b32.xlu0 %v573_v38, %s1718_s28  ;;  %v1977_v38 = vld [vmem:[%s1766_s23 + $0x1b] sm:$0xff] }
  0x92   : > { %593 = vrot.lane.b32.xlu1 %v588_v40, %s1718_s28 }
  0x93   : > { %591 = vrot.lane.b32.xlu0 %v587_v41, %s1718_s28 }
  0x96   : > { %607 = vrot.lane.b32.xlu1 %v602_v43, %s1719_s5 }
  0x97   : > { %605 = vrot.lane.b32.xlu0 %v601_v44, %s1719_s5  ;;  %v743_v44 = vmul.f32 %v1977_v38, %v742_v33 }
  0x98   : > { %v196_v51 = vpop.permute.xlu1 %195 }
  0x99   : > { %v182_v52 = vpop.permute.xlu0 %181 }
  0x9a   : > { %621 = vrot.lane.b32.xlu1 %v616_v46, %s1719_s5  ;;  %v187_v17 = vadd.f32 %v182_v52, %v1814_v35 }
  0x9b   : > { %619 = vrot.lane.b32.xlu0 %v615_v47, %s1719_s5 }
  0x9c   : > { %v198_v58 = vpop.permute.xlu1 %197  ;;  %v201_v25 = vadd.f32 %v196_v51, %v187_v17 }
  0x9d   : > { %v184_v59 = vpop.permute.xlu0 %183 }
  0x9e   : > { %635 = vrot.lane.b32.xlu1 %v630_v54, %s1720_s8  ;;  %v188_v12 = vadd.f32 %v184_v59, %v1816_v36  ;;  %v699_v36 = vmul.f32 %v1908_v31, %v698_v14  ;;  %v758_v54 = vmul.f32 %v756_v45, %v1959_v20  ;;  %v785_v14 = vmul.f32 %v784_v3, %v1964_v23 }
  0x9f   : > { %633 = vrot.lane.b32.xlu0 %v629_v56, %s1720_s8 }
  0xa0   : > { %v212_v63 = vpop.permute.xlu1 %211  ;;  %v202_v19 = vadd.f32 %v198_v58, %v188_v12  ;;  %v770_v58 = vstv %s1974_s24  ;;  %s2093_s24 = sld [smem:[#allocation2 + $0x40]] }
  0xa1   : > { %v210_v0 = vpop.permute.xlu0 %209 }
  0xa2   : > { %649 = vrot.lane.b32.xlu1 %v644_v60, %s1720_s8  ;;  %v216_v28 = vadd.f32 %v212_v63, %v202_v19  ;;  %v215_v34 = vadd.f32 %v210_v0, %v201_v25  ;;  %v772_v0 = vmul.f32 %v1971_v32, %v770_v58 }
  0xa3   : > { %647 = vrot.lane.b32.xlu0 %v643_v61, %s1720_s8 }
  0xa4   : > { %v226_v4 = vpop.permute.xlu1 %225 }
  0xa5   : > { %v224_v5 = vpop.permute.xlu0 %223  ;;  %v230_v39 = vadd.f32 %v226_v4, %v216_v28  ;;  %v812_v28 = vstv %s2002_s3  ;;  %s1617_s3 = sld [smem:[#allocation2 + $0x45]] }
  0xa6   : > { %663 = vrot.lane.b32.xlu1 %v658_v1, %s1721_s13  ;;  %v229_v41 = vadd.f32 %v224_v5, %v215_v34 }
  0xa7   : > { %661 = vrot.lane.b32.xlu0 %v657_v2, %s1721_s13  ;;  %v771_v2 = vmul.f32 %v1977_v38, %v770_v58  ;;  %v868_v58 = vstv %s1600_s11  ;;  %s2156_s11 = sld [smem:[#allocation2 + $0x4b]] }
  0xa8   : > { %v240_v9 = vpop.permute.xlu1 %239 }
  0xa9   : > { %v238_v10 = vpop.permute.xlu0 %237  ;;  %v244_v43 = vadd.f32 %v240_v9, %v230_v39  ;;  %v826_v39 = vstv %s2012_s4  ;;  %s1622_s4 = sld [smem:[#allocation2 + $0x48]] }
  0xaa   : > { %677 = vrot.lane.b32.xlu1 %v672_v6, %s1721_s13  ;;  %v243_v46 = vadd.f32 %v238_v10, %v229_v41  ;;  %v346_v6 = vstv %s1986_s27  ;;  %v354_v10 = vstv %s1990_s29  ;;  %s1614_s27 = sld [smem:[#allocation2 + $0x42]]  ;;  %s1615_s29 = sld [smem:[#allocation2 + $0x43]] }
  0xab   : > { %675 = vrot.lane.b32.xlu0 %v671_v7, %s1721_s13  ;;  %v356_v19 = vmul.f32 %v1845_v53, %v354_v10 }
  0xac   : > { %v254_v15 = vpop.permute.xlu1 %253 }
  0xad   : > { %v252_v16 = vpop.permute.xlu0 %251  ;;  %v258_v49 = vadd.f32 %v254_v15, %v244_v43  ;;  %v798_v15 = vstv %s1995_s30  ;;  %v827_v43 = vmul.f32 %v1977_v38, %v826_v39  ;;  %s1616_s30 = sld [smem:[#allocation2 + $0x44]] }
  0xae   : > { %691 = vrot.lane.b32.xlu1 %v686_v11, %s1722_s16  ;;  %v257_v52 = vadd.f32 %v252_v16, %v243_v46  ;;  %v786_v11 = vmul.f32 %v784_v3, %v1959_v20 }
  0xaf   : > { %689 = vrot.lane.b32.xlu0 %v685_v13, %s1722_s16  ;;  %v348_v13 = vmul.f32 %v346_v6, %v1835_v48  ;;  %v800_v48 = vmul.f32 %v1971_v32, %v798_v15 }
  0xb0   : > { %v268_v22 = vpop.permute.xlu1 %267 }
  0xb1   : > { %v266_v35 = vpop.permute.xlu0 %265  ;;  %v272_v56 = vadd.f32 %v268_v22, %v258_v49  ;;  %v355_v22 = vmul.f32 %v1848_v55, %v354_v10  ;;  %v814_v55 = vmul.f32 %v812_v28, %v1959_v20 }
  0xb2   : > { %705 = vrot.lane.b32.xlu1 %v700_v18, %s1722_s16  ;;  %v271_v59 = vadd.f32 %v266_v35, %v257_v52  ;;  %v347_v18 = vmul.f32 %v346_v6, %v1838_v50  ;;  %v2050_v6 = vld [vmem:[%s1766_s23 + $0xc] sm:$0xff] }
  0xb3   : > { %703 = vrot.lane.b32.xlu0 %v699_v36, %s1722_s16 }
  0xb4   : > { %v282_v37 = vpop.permute.xlu1 %281 }
  0xb5   : > { %v280_v40 = vpop.permute.xlu0 %279  ;;  %v286_v61 = vadd.f32 %v282_v37, %v272_v56  ;;  %v813_v37 = vmul.f32 %v812_v28, %v1964_v23  ;;  %v940_v28 = vstv %s2052_s17  ;;  %s2177_s17 = sld [smem:[#allocation2 + $0x4d]] }
  0xb6   : > { %735 = vrot.lane.b32.xlu1 %v730_v27, %s1717_s25  ;;  %v285_v63 = vadd.f32 %v280_v40, %v271_v59  ;;  %v799_v27 = vmul.f32 %v1977_v38, %v798_v15 }
  0xb7   : > { %733 = vrot.lane.b32.xlu0 %v729_v30, %s1717_s25 }
  0xb8   : > { %v296_v47 = vpop.permute.xlu1 %295 }
  0xb9   : > { %v294_v51 = vpop.permute.xlu0 %293  ;;  %v300_v1 = vadd.f32 %v296_v47, %v286_v61  ;;  %v870_v61 = vmul.f32 %v868_v58, %v1959_v20 }
  0xba   : > { %749 = vrot.lane.b32.xlu1 %v744_v42, %s1717_s25  ;;  %v299_v4 = vadd.f32 %v294_v51, %v285_v63  ;;  %v828_v42 = vmul.f32 %v1971_v32, %v826_v39  ;;  %v854_v51 = vstv %s1599_s7  ;;  %v882_v63 = vstv %s1601_s12  ;;  %s2143_s7 = sld [smem:[#allocation2 + $0x4a]]  ;;  %s2166_s12 = sld [smem:[#allocation2 + $0x4c]] }
  0xbb   : > { %747 = vrot.lane.b32.xlu0 %v743_v44, %s1717_s25  ;;  %v840_v44 = vstv %s1598_s6  ;;  %v856_v56 = vmul.f32 %v1971_v32, %v854_v51  ;;  %s2134_s6 = sld [smem:[#allocation2 + $0x49]] }
  0xbc   : > { %v310_v60 = vpop.permute.xlu1 %309  ;;  %v842_v47 = vmul.f32 %v840_v44, %v1959_v20  ;;  %v841_v49 = vmul.f32 %v840_v44, %v1964_v23 }
  0xbd   : > { %v308_v62 = vpop.permute.xlu0 %307  ;;  %v314_v7 = vadd.f32 %v310_v60, %v300_v1 }
  0xbe   : > { %763 = vrot.lane.b32.xlu1 %v758_v54, %s1718_s28  ;;  %v313_v9 = vadd.f32 %v308_v62, %v299_v4  ;;  %v869_v62 = vmul.f32 %v868_v58, %v1964_v23  ;;  %v884_v4 = vmul.f32 %v1971_v32, %v882_v63 }
  0xbf   : > { %761 = vrot.lane.b32.xlu0 %v757_v57, %s1718_s28  ;;  %v855_v57 = vmul.f32 %v1977_v38, %v854_v51  ;;  %v968_v51 = vstv %s2075_s19  ;;  %s2194_s19 = sld [smem:[#allocation2 + $0x4f]] }
  0xc0   : > { %v324_v5 = vpop.permute.xlu1 %323 }
  0xc1   : > { %v322_v8 = vpop.permute.xlu0 %321  ;;  %v328_v12 = vadd.f32 %v324_v5, %v314_v7  ;;  %v883_v5 = vmul.f32 %v1977_v38, %v882_v63  ;;  %v912_v7 = vstv %s1606_s14  ;;  %s2168_s14 = sld [smem:[#allocation2 + $0x2a]] }
  0xc2   : > { %777 = vrot.lane.b32.xlu1 %v772_v0, %s1718_s28  ;;  %v327_v16 = vadd.f32 %v322_v8, %v313_v9  ;;  %v2055_v9 = vld [vmem:[%s1766_s23 + $0x4] sm:$0xff] }
  0xc3   : > { %775 = vrot.lane.b32.xlu0 %v771_v2, %s1718_s28  ;;  %v913_v15 = vmul.f32 %v912_v7, %v2055_v9  ;;  %v941_v39 = vmul.f32 %v940_v28, %v2055_v9 }
  0xc4   : > { %v338_v17 = vpop.permute.xlu1 %337 }
  0xc5   : > { %v342_v36 = vadd.f32 %v338_v17, %v328_v12  ;;  %v336_v21 = vpop.permute.xlu0 %335  ;;  %v926_v17 = vstv %s2043_s15  ;;  %s2172_s15 = sld [smem:[#allocation2 + $0x2b]] }
  0xc6   : > { %v341_v35 = vadd.f32 %v336_v21, %v327_v16  ;;  %791 = vrot.lane.b32.xlu1 %v786_v11, %s1719_s5  ;;  %v2062_v16 = vld [vmem:[%s1766_s23 + $0x24] sm:$0xff] }
  0xc7   : > { %v350_v25 = vadd.f32 %v348_v13, %v342_v36  ;;  %789 = vrot.lane.b32.xlu0 %v785_v14, %s1719_s5  ;;  %v914_v13 = vmul.f32 %v912_v7, %v2050_v6  ;;  %v2068_v36 = vld [vmem:[%s1766_s23 + $0x1c] sm:$0xff] }
  0xc8   : > { %v349_v50 = vadd.f32 %v347_v18, %v341_v35  ;;  %v368_v30 = vpop.permute.xlu1 %367 }
  0xc9   : > { %v358_v53 = vadd.f32 %v356_v19, %v350_v25  ;;  %v366_v33 = vpop.permute.xlu0 %365 }
  0xca   : > { %v357_v34 = vadd.f32 %v355_v22, %v349_v50  ;;  %805 = vrot.lane.b32.xlu1 %v800_v48, %s1719_s5  ;;  %v928_v48 = vmul.f32 %v2062_v16, %v926_v17 }
  0xcb   : > { %803 = vrot.lane.b32.xlu0 %v799_v27, %s1719_s5  ;;  %v372_v1 = vadd.f32 %v368_v30, %v358_v53  ;;  %v927_v27 = vmul.f32 %v2068_v36, %v926_v17 }
  0xcc   : > { %v382_v40 = vpop.permute.xlu1 %381  ;;  %v371_v3 = vadd.f32 %v366_v33, %v357_v34 }
  0xcd   : > { %v380_v41 = vpop.permute.xlu0 %379  ;;  %v386_v10 = vadd.f32 %v382_v40, %v372_v1  ;;  %v954_v40 = vstv %s2065_s18  ;;  %v982_v1 = vstv %s2086_s22  ;;  %s2184_s18 = sld [smem:[#allocation2 + $0x4e]]  ;;  %s1632_s22 = sld [smem:[#allocation2 + $0x52]] }
  0xce   : > { %819 = vrot.lane.b32.xlu1 %v814_v55, %s1720_s8  ;;  %v385_v12 = vadd.f32 %v380_v41, %v371_v3  ;;  %v942_v55 = vmul.f32 %v940_v28, %v2050_v6 }
  0xcf   : > { %817 = vrot.lane.b32.xlu0 %v813_v37, %s1720_s8 }
  0xd0   : > { %v396_v45 = vpop.permute.xlu1 %395 }
  0xd1   : > { %v394_v46 = vpop.permute.xlu0 %393  ;;  %v400_v14 = vadd.f32 %v396_v45, %v386_v10 }
  0xd2   : > { %833 = vrot.lane.b32.xlu1 %v828_v42, %s1720_s8  ;;  %v399_v18 = vadd.f32 %v394_v46, %v385_v12  ;;  %v956_v46 = vmul.f32 %v2062_v16, %v954_v40 }
  0xd3   : > { %831 = vrot.lane.b32.xlu0 %v827_v43, %s1720_s8 }
  0xd4   : > { %v410_v52 = vpop.permute.xlu1 %409 }
  0xd5   : > { %v408_v54 = vpop.permute.xlu0 %407  ;;  %v414_v21 = vadd.f32 %v410_v52, %v400_v14  ;;  %v996_v14 = vstv %s2093_s24  ;;  %s1633_s24 = sld [smem:[#allocation2 + $0x53]] }
  0xd6   : > { %847 = vrot.lane.b32.xlu1 %v842_v47, %s1721_s13  ;;  %v413_v35 = vadd.f32 %v408_v54, %v399_v18 }
  0xd7   : > { %845 = vrot.lane.b32.xlu0 %v841_v49, %s1721_s13  ;;  %v955_v49 = vmul.f32 %v2068_v36, %v954_v40  ;;  %v1052_v40 = vstv %s1616_s30  ;;  %s1641_s30 = sld [smem:[#allocation2 + $0x59]] }
  0xd8   : > { %v424_v59 = vpop.permute.xlu1 %423 }
  0xd9   : > { %v422_v60 = vpop.permute.xlu0 %421  ;;  %v428_v25 = vadd.f32 %v424_v59, %v414_v21  ;;  %v1010_v21 = vstv %s2103_s26  ;;  %s2224_s26 = sld [smem:[#allocation2 + $0x56]] }
  0xda   : > { %861 = vrot.lane.b32.xlu1 %v856_v56, %s1721_s13  ;;  %v427_v50 = vadd.f32 %v422_v60, %v413_v35  ;;  %v530_v56 = vstv %s2077_s20  ;;  %v538_v60 = vstv %s2081_s21  ;;  %s2204_s20 = sld [smem:[#allocation2 + $0x50]]  ;;  %s1631_s21 = sld [smem:[#allocation2 + $0x51]] }
  0xdb   : > { %859 = vrot.lane.b32.xlu0 %v855_v57, %s1721_s13  ;;  %v532_v63 = vmul.f32 %v530_v56, %v1895_v24  ;;  %v539_v10 = vmul.f32 %v1908_v31, %v538_v60  ;;  %v984_v24 = vmul.f32 %v2062_v16, %v982_v1  ;;  %v998_v31 = vmul.f32 %v996_v14, %v2050_v6 }
  0xdc   : > { %v438_v0 = vpop.permute.xlu1 %437 }
  0xdd   : > { %v436_v2 = vpop.permute.xlu0 %435  ;;  %v442_v53 = vadd.f32 %v438_v0, %v428_v25  ;;  %v969_v0 = vmul.f32 %v968_v51, %v2055_v9  ;;  %v1011_v25 = vmul.f32 %v2068_v36, %v1010_v21 }
  0xde   : > { %875 = vrot.lane.b32.xlu1 %v870_v61, %s1722_s16  ;;  %v441_v34 = vadd.f32 %v436_v2, %v427_v50  ;;  %v970_v61 = vmul.f32 %v968_v51, %v2050_v6 }
  0xdf   : > { %873 = vrot.lane.b32.xlu0 %v869_v62, %s1722_s16 }
  0xe0   : > { %v452_v8 = vpop.permute.xlu1 %451 }
  0xe1   : > { %v450_v11 = vpop.permute.xlu0 %449  ;;  %v456_v37 = vadd.f32 %v452_v8, %v442_v53 }
  0xe2   : > { %889 = vrot.lane.b32.xlu1 %v884_v4, %s1722_s16  ;;  %v455_v41 = vadd.f32 %v450_v11, %v441_v34  ;;  %v531_v4 = vmul.f32 %v530_v56, %v1898_v26  ;;  %v2141_v56 = vld [vmem:[%s1766_s23 + $0xd] sm:$0xff] }
  0xe3   : > { %887 = vrot.lane.b32.xlu0 %v883_v5, %s1722_s16  ;;  %v540_v5 = vmul.f32 %v1905_v29, %v538_v60 }
  0xe4   : > { %v466_v19 = vpop.permute.xlu1 %465 }
  0xe5   : > { %v464_v22 = vpop.permute.xlu0 %463  ;;  %v470_v43 = vadd.f32 %v466_v19, %v456_v37  ;;  %v997_v19 = vmul.f32 %v996_v14, %v2055_v9  ;;  %v1124_v14 = vstv %s2143_s7  ;;  %s1648_s7 = sld [smem:[#allocation2 + $0x60]] }
  0xe6   : > { %919 = vrot.lane.b32.xlu1 %v914_v13, %s1717_s25  ;;  %v469_v45 = vadd.f32 %v464_v22, %v455_v41  ;;  %v983_v13 = vmul.f32 %v2068_v36, %v982_v1 }
  0xe7   : > { %917 = vrot.lane.b32.xlu0 %v913_v15, %s1717_s25 }
  0xe8   : > { %v480_v30 = vpop.permute.xlu1 %479 }
  0xe9   : > { %v478_v33 = vpop.permute.xlu0 %477  ;;  %v484_v47 = vadd.f32 %v480_v30, %v470_v43  ;;  %v1054_v43 = vmul.f32 %v1052_v40, %v2050_v6 }
  0xea   : > { %933 = vrot.lane.b32.xlu1 %v928_v48, %s1717_s25  ;;  %v483_v52 = vadd.f32 %v478_v33, %v469_v45  ;;  %v1012_v48 = vmul.f32 %v2062_v16, %v1010_v21  ;;  %v1038_v33 = vstv %s1615_s29  ;;  %v1066_v45 = vstv %s1617_s3  ;;  %s2240_s29 = sld [smem:[#allocation2 + $0x58]]  ;;  %s1642_s3 = sld [smem:[#allocation2 + $0x5a]] }
  0xeb   : > { %931 = vrot.lane.b32.xlu0 %v927_v27, %s1717_s25  ;;  %v1024_v27 = vstv %s1614_s27  ;;  %v1040_v37 = vmul.f32 %v2062_v16, %v1038_v33  ;;  %s2230_s27 = sld [smem:[#allocation2 + $0x57]] }
  0xec   : > { %v494_v42 = vpop.permute.xlu1 %493  ;;  %v1026_v30 = vmul.f32 %v1024_v27, %v2050_v6  ;;  %v1025_v53 = vmul.f32 %v1024_v27, %v2055_v9 }
  0xed   : > { %v492_v44 = vpop.permute.xlu0 %491  ;;  %v498_v57 = vadd.f32 %v494_v42, %v484_v47 }
  0xee   : > { %947 = vrot.lane.b32.xlu1 %v942_v55, %s1718_s28  ;;  %v497_v59 = vadd.f32 %v492_v44, %v483_v52  ;;  %v1053_v44 = vmul.f32 %v1052_v40, %v2055_v9  ;;  %v1068_v52 = vmul.f32 %v2062_v16, %v1066_v45 }
  0xef   : > { %945 = vrot.lane.b32.xlu0 %v941_v39, %s1718_s28  ;;  %v1039_v39 = vmul.f32 %v2068_v36, %v1038_v33  ;;  %v1152_v33 = vstv %s2166_s12  ;;  %s1634_s12 = sld [smem:[#allocation2 + $0x54]] }
  0xf0   : > { %v508_v54 = vpop.permute.xlu1 %507 }
  0xf1   : > { %v506_v58 = vpop.permute.xlu0 %505  ;;  %v512_v62 = vadd.f32 %v508_v54, %v498_v57  ;;  %v1067_v54 = vmul.f32 %v2068_v36, %v1066_v45  ;;  %v1096_v57 = vstv %s1622_s4  ;;  %s1645_s4 = sld [smem:[#allocation2 + $0x5d]] }
  0xf2   : > { %961 = vrot.lane.b32.xlu1 %v956_v46, %s1718_s28  ;;  %v511_v2 = vadd.f32 %v506_v58, %v497_v59  ;;  %v2146_v59 = vld [vmem:[%s1766_s23 + $0x5] sm:$0xff] }
  0xf3   : > { %959 = vrot.lane.b32.xlu0 %v955_v49, %s1718_s28  ;;  %v1097_v1 = vmul.f32 %v1096_v57, %v2146_v59  ;;  %v1125_v21 = vmul.f32 %v1124_v14, %v2146_v59 }
  0xf4   : > { %v522_v3 = vpop.permute.xlu1 %521 }
  0xf5   : > { %v526_v7 = vadd.f32 %v522_v3, %v512_v62  ;;  %v520_v8 = vpop.permute.xlu0 %519  ;;  %v1110_v3 = vstv %s2134_s6  ;;  %s1646_s6 = sld [smem:[#allocation2 + $0x5e]] }
  0xf6   : > { %v525_v11 = vadd.f32 %v520_v8, %v511_v2  ;;  %975 = vrot.lane.b32.xlu1 %v970_v61, %s1719_s5  ;;  %v2153_v2 = vld [vmem:[%s1766_s23 + $0x25] sm:$0xff] }
  0xf7   : > { %v534_v12 = vadd.f32 %v532_v63, %v526_v7  ;;  %973 = vrot.lane.b32.xlu0 %v969_v0, %s1719_s5  ;;  %v1098_v63 = vmul.f32 %v1096_v57, %v2141_v56  ;;  %v2159_v7 = vld [vmem:[%s1766_s23 + $0x1d] sm:$0xff] }
  0xf8   : > { %v533_v26 = vadd.f32 %v531_v4, %v525_v11  ;;  %v552_v15 = vpop.permute.xlu1 %551 }
  0xf9   : > { %v542_v29 = vadd.f32 %v540_v5, %v534_v12  ;;  %v550_v17 = vpop.permute.xlu0 %549 }
  0xfa   : > { %v541_v18 = vadd.f32 %v539_v10, %v533_v26  ;;  %989 = vrot.lane.b32.xlu1 %v984_v24, %s1719_s5  ;;  %v1112_v24 = vmul.f32 %v2153_v2, %v1110_v3 }
  0xfb   : > { %987 = vrot.lane.b32.xlu0 %v983_v13, %s1719_s5  ;;  %v556_v47 = vadd.f32 %v552_v15, %v542_v29  ;;  %v1111_v13 = vmul.f32 %v2159_v7, %v1110_v3 }
  0xfc   : > { %v566_v22 = vpop.permute.xlu1 %565  ;;  %v555_v51 = vadd.f32 %v550_v17, %v541_v18 }
  0xfd   : > { %v564_v35 = vpop.permute.xlu0 %563  ;;  %v570_v60 = vadd.f32 %v566_v22, %v556_v47  ;;  %v1138_v22 = vstv %s2156_s11  ;;  %v1166_v47 = vstv %s2177_s17  ;;  %s1605_s11 = sld [smem:[#allocation2 + $0x39]] }
  0xfe   : > { %1003 = vrot.lane.b32.xlu1 %v998_v31, %s1720_s8  ;;  %v569_v62 = vadd.f32 %v564_v35, %v555_v51  ;;  %v1126_v31 = vmul.f32 %v1124_v14, %v2141_v56 }
  0xff   : > { %1001 = vrot.lane.b32.xlu0 %v997_v19, %s1720_s8 }
 0x100   : > { %v580_v28 = vpop.permute.xlu1 %579 }
 0x101   : > { %v578_v50 = vpop.permute.xlu0 %577  ;;  %v584_v0 = vadd.f32 %v580_v28, %v570_v60 }
 0x102   : > { %1017 = vrot.lane.b32.xlu1 %v1012_v48, %s1720_s8  ;;  %v583_v4 = vadd.f32 %v578_v50, %v569_v62  ;;  %v1140_v50 = vmul.f32 %v2153_v2, %v1138_v22 }
 0x103   : > { %1015 = vrot.lane.b32.xlu0 %v1011_v25, %s1720_s8 }
 0x104   : > { %v594_v34 = vpop.permute.xlu1 %593 }
 0x105   : > { %v592_v55 = vpop.permute.xlu0 %591  ;;  %v598_v8 = vadd.f32 %v594_v34, %v584_v0  ;;  %v1180_v0 = vstv %s2184_s18 }
 0x106   : > { %1031 = vrot.lane.b32.xlu1 %v1026_v30, %s1721_s13  ;;  %v597_v11 = vadd.f32 %v592_v55, %v583_v4 }
 0x107   : > { %1029 = vrot.lane.b32.xlu0 %v1025_v53, %s1721_s13  ;;  %v1139_v53 = vmul.f32 %v2159_v7, %v1138_v22 }
 0x108   : > { %v608_v41 = vpop.permute.xlu1 %607 }
 0x109   : > { %v606_v42 = vpop.permute.xlu0 %605  ;;  %v612_v12 = vadd.f32 %v608_v41, %v598_v8  ;;  %v1181_v8 = vmul.f32 %v1180_v0, %v2146_v59 }
 0x10a   : > { %1045 = vrot.lane.b32.xlu1 %v1040_v37, %s1721_s13  ;;  %v611_v26 = vadd.f32 %v606_v42, %v597_v11  ;;  %v714_v37 = vstv %s2168_s14  ;;  %v722_v42 = vstv %s2172_s15  ;;  %s1637_s14 = sld [smem:[#allocation2 + $0x55]]  ;;  %s1654_s15 = sshll.u32 %s2363_s10, 4 }
 0x10b   : > { %1043 = vrot.lane.b32.xlu0 %v1039_v39, %s1721_s13  ;;  %v716_v45 = vmul.f32 %v714_v37, %v1959_v20  ;;  %v723_v60 = vmul.f32 %v1977_v38, %v722_v42  ;;  %v1168_v20 = vmul.f32 %v2153_v2, %v1166_v47  ;;  %v1182_v38 = vmul.f32 %v1180_v0, %v2141_v56 }
 0x10c   : > { %v622_v46 = vpop.permute.xlu1 %621 }
 0x10d   : > { %v620_v49 = vpop.permute.xlu0 %619  ;;  %v626_v29 = vadd.f32 %v622_v46, %v612_v12  ;;  %v1153_v46 = vmul.f32 %v1152_v33, %v2146_v59 }
 0x10e   : > { %1059 = vrot.lane.b32.xlu1 %v1054_v43, %s1722_s16  ;;  %v625_v18 = vadd.f32 %v620_v49, %v611_v26  ;;  %v1154_v43 = vmul.f32 %v1152_v33, %v2141_v56 }
 0x10f   : > { %1057 = vrot.lane.b32.xlu0 %v1053_v44, %s1722_s16 }
 0x110   : > { %v636_v58 = vpop.permute.xlu1 %635 }
 0x111   : > { %v634_v61 = vpop.permute.xlu0 %633  ;;  %v640_v19 = vadd.f32 %v636_v58, %v626_v29  ;;  %v1208_v29 = vstv %s2204_s20 }
 0x112   : > { %1073 = vrot.lane.b32.xlu1 %v1068_v52, %s1722_s16  ;;  %v639_v35 = vadd.f32 %v634_v61, %v625_v18  ;;  %v715_v52 = vmul.f32 %v714_v37, %v1964_v23  ;;  %v1209_v22 = vmul.f32 %v1208_v29, %v2146_v59 }
 0x113   : > { %1071 = vrot.lane.b32.xlu0 %v1067_v54, %s1722_s16  ;;  %v724_v54 = vmul.f32 %v1971_v32, %v722_v42 }
 0x114   : > { %v650_v5 = vpop.permute.xlu1 %649 }
 0x115   : > { %v648_v10 = vpop.permute.xlu0 %647  ;;  %v654_v25 = vadd.f32 %v650_v5, %v640_v19 }
 0x116   : > { %1103 = vrot.lane.b32.xlu1 %v1098_v63, %s1717_s25  ;;  %v653_v28 = vadd.f32 %v648_v10, %v639_v35  ;;  %v1167_v63 = vmul.f32 %v2159_v7, %v1166_v47  ;;  %v1194_v10 = vstv %s2194_s19  ;;  %v1222_v35 = vstv %s1631_s21  ;;  %s157_s19 = scalar_lea.vmem %s2360_s2, %s1654_s15 }
 0x117   : > { %1101 = vrot.lane.b32.xlu0 %v1097_v1, %s1717_s25  ;;  %v1196_v26 = vmul.f32 %v2153_v2, %v1194_v10 }
 0x118   : > { %v664_v15 = vpop.permute.xlu1 %663 }
 0x119   : > { %v662_v17 = vpop.permute.xlu0 %661  ;;  %v668_v30 = vadd.f32 %v664_v15, %v654_v25  ;;  %v1195_v15 = vmul.f32 %v2159_v7, %v1194_v10 }
 0x11a   : > { %1117 = vrot.lane.b32.xlu1 %v1112_v24, %s1717_s25  ;;  %v667_v34 = vadd.f32 %v662_v17, %v653_v28 }
 0x11b   : > { %1115 = vrot.lane.b32.xlu0 %v1111_v13, %s1717_s25 }
 0x11c   : > { %v678_v48 = vpop.permute.xlu1 %677 }
 0x11d   : > { %v676_v27 = vpop.permute.xlu0 %675  ;;  %v682_v39 = vadd.f32 %v678_v48, %v668_v30  ;;  %v1223_v30 = vmul.f32 %v2159_v7, %v1222_v35 }
 0x11e   : > { %1131 = vrot.lane.b32.xlu1 %v1126_v31, %s1718_s28  ;;  %v681_v41 = vadd.f32 %v676_v27, %v667_v34 }
 0x11f   : > { %1129 = vrot.lane.b32.xlu0 %v1125_v21, %s1718_s28  ;;  %v1210_v21 = vmul.f32 %v1208_v29, %v2141_v56 }
 0x120   : > { %v692_v55 = vpop.permute.xlu1 %691 }
 0x121   : > { %v690_v40 = vpop.permute.xlu0 %689  ;;  %v696_v44 = vadd.f32 %v692_v55, %v682_v39 }
 0x122   : > { %1145 = vrot.lane.b32.xlu1 %v1140_v50, %s1718_s28  ;;  %v695_v49 = vadd.f32 %v690_v40, %v681_v41  ;;  %v1224_v50 = vmul.f32 %v2153_v2, %v1222_v35  ;;  %v1250_v41 = vstv %s1633_s24 }
 0x123   : > { %1143 = vrot.lane.b32.xlu0 %v1139_v53, %s1718_s28  ;;  %v1236_v53 = vstv %s1632_s22  ;;  %v1251_v47 = vmul.f32 %v2159_v7, %v1250_v41 }
 0x124   : > { %v706_v51 = vpop.permute.xlu1 %705  ;;  %v1238_v39 = vmul.f32 %v1236_v53, %v2141_v56  ;;  %v1237_v40 = vmul.f32 %v1236_v53, %v2146_v59 }
 0x125   : > { %v710_v57 = vadd.f32 %v706_v51, %v696_v44  ;;  %v704_v58 = vpop.permute.xlu0 %703  ;;  %v1280_v51 = vstv %s2224_s26 }
 0x126   : > { %v709_v61 = vadd.f32 %v704_v58, %v695_v49  ;;  %1159 = vrot.lane.b32.xlu1 %v1154_v43, %s1719_s5  ;;  %v2237_v49 = vld [vmem:[%s1766_s23 + $0xe] sm:$0xff] }
 0x127   : > { %v718_v62 = vadd.f32 %v716_v45, %v710_v57  ;;  %1157 = vrot.lane.b32.xlu0 %v1153_v46, %s1719_s5  ;;  %v1252_v46 = vmul.f32 %v2153_v2, %v1250_v41 }
 0x128   : > { %v717_v23 = vadd.f32 %v715_v52, %v709_v61  ;;  %v736_v32 = vpop.permute.xlu1 %735  ;;  %v1282_v61 = vmul.f32 %v1280_v51, %v2237_v49 }
 0x129   : > { %v726_v1 = vadd.f32 %v724_v54, %v718_v62  ;;  %v734_v3 = vpop.permute.xlu0 %733  ;;  %v2243_v54 = vld [vmem:[%s1766_s23 + $0x6] sm:$0xff] }
 0x12a   : > { %v725_v4 = vadd.f32 %v723_v60, %v717_v23  ;;  %1173 = vrot.lane.b32.xlu1 %v1168_v20, %s1719_s5  ;;  %v1281_v20 = vmul.f32 %v1280_v51, %v2243_v54  ;;  %v2250_v62 = vld [vmem:[%s1766_s23 + $0x26] sm:$0xff]  ;;  %v2254_v23 = vld [vmem:[%s1766_s23 + $0x1e] sm:$0xff]  ;;  %s1643_s23 = sld [smem:[#allocation2 + $0x5b]] }
 0x12b   : > { %v740_v5 = vadd.f32 %v736_v32, %v726_v1  ;;  %1171 = vrot.lane.b32.xlu0 %v1167_v63, %s1719_s5  ;;  %v1294_v63 = vstv %s2230_s27 }
 0x12c   : > { %v739_v11 = vadd.f32 %v734_v3, %v725_v4  ;;  %v750_v24 = vpop.permute.xlu1 %749  ;;  %v1296_v4 = vmul.f32 %v2250_v62, %v1294_v63 }
 0x12d   : > { %v754_v12 = vadd.f32 %v750_v24, %v740_v5  ;;  %v748_v13 = vpop.permute.xlu0 %747  ;;  %v1308_v5 = vstv %s2240_s29 }
 0x12e   : > { %v753_v14 = vadd.f32 %v748_v13, %v739_v11  ;;  %1187 = vrot.lane.b32.xlu1 %v1182_v38, %s1720_s8  ;;  %v1295_v38 = vmul.f32 %v2254_v23, %v1294_v63  ;;  %v1309_v13 = vmul.f32 %v1308_v5, %v2243_v54 }
 0x12f   : > { %1185 = vrot.lane.b32.xlu0 %v1181_v8, %s1720_s8 }
 0x130   : > { %v764_v17 = vpop.permute.xlu1 %763 }
 0x131   : > { %v768_v18 = vadd.f32 %v764_v17, %v754_v12  ;;  %v762_v31 = vpop.permute.xlu0 %761  ;;  %v1310_v12 = vmul.f32 %v1308_v5, %v2237_v49 }
 0x132   : > { %v767_v19 = vadd.f32 %v762_v31, %v753_v14  ;;  %1201 = vrot.lane.b32.xlu1 %v1196_v26, %s1720_s8  ;;  %v1322_v14 = vstv %s1641_s30 }
 0x133   : > { %1199 = vrot.lane.b32.xlu0 %v1195_v15, %s1720_s8  ;;  %v1323_v31 = vmul.f32 %v2254_v23, %v1322_v14 }
 0x134   : > { %v778_v48 = vpop.permute.xlu1 %777 }
 0x135   : > { %v782_v25 = vadd.f32 %v778_v48, %v768_v18  ;;  %v776_v27 = vpop.permute.xlu0 %775  ;;  %v1324_v18 = vmul.f32 %v2250_v62, %v1322_v14 }
 0x136   : > { %v781_v28 = vadd.f32 %v776_v27, %v767_v19  ;;  %1215 = vrot.lane.b32.xlu1 %v1210_v21, %s1721_s13  ;;  %v1336_v19 = vstv %s1642_s3 }
 0x137   : > { %1213 = vrot.lane.b32.xlu0 %v1209_v22, %s1721_s13  ;;  %v1338_v35 = vmul.f32 %v1336_v19, %v2237_v49  ;;  %v1337_v48 = vmul.f32 %v1336_v19, %v2243_v54 }
 0x138   : > { %v792_v33 = vpop.permute.xlu1 %791 }
 0x139   : > { %v796_v34 = vadd.f32 %v792_v33, %v782_v25  ;;  %v790_v55 = vpop.permute.xlu0 %789  ;;  %v1350_v25 = vstv %s1643_s23 }
 0x13a   : > { %v795_v37 = vadd.f32 %v790_v55, %v781_v28  ;;  %1229 = vrot.lane.b32.xlu1 %v1224_v50, %s1721_s13  ;;  %v1352_v50 = vmul.f32 %v2250_v62, %v1350_v25 }
 0x13b   : > { %1227 = vrot.lane.b32.xlu0 %v1223_v30, %s1721_s13  ;;  %v1351_v30 = vmul.f32 %v2254_v23, %v1350_v25 }
 0x13c   : > { %v806_v42 = vpop.permute.xlu1 %805 }
 0x13d   : > { %v810_v43 = vadd.f32 %v806_v42, %v796_v34  ;;  %v804_v44 = vpop.permute.xlu0 %803 }
 0x13e   : > { %v809_v45 = vadd.f32 %v804_v44, %v795_v37  ;;  %1243 = vrot.lane.b32.xlu1 %v1238_v39, %s1722_s16  ;;  %v1378_v39 = vstv %s1645_s4  ;;  %v1392_v44 = vstv %s1646_s6 }
 0x13f   : > { %1241 = vrot.lane.b32.xlu0 %v1237_v40, %s1722_s16  ;;  %v1380_v42 = vmul.f32 %v2250_v62, %v1378_v39  ;;  %v1393_v51 = vmul.f32 %v1392_v44, %v2243_v54 }
 0x140   : > { %v820_v52 = vpop.permute.xlu1 %819 }
 0x141   : > { %v824_v57 = vadd.f32 %v820_v52, %v810_v43  ;;  %v818_v58 = vpop.permute.xlu0 %817  ;;  %v1379_v43 = vmul.f32 %v2254_v23, %v1378_v39 }
 0x142   : > { %v823_v60 = vadd.f32 %v818_v58, %v809_v45  ;;  %1257 = vrot.lane.b32.xlu1 %v1252_v46, %s1722_s16 }
 0x143   : > { %1255 = vrot.lane.b32.xlu0 %v1251_v47, %s1722_s16  ;;  %v1394_v47 = vmul.f32 %v1392_v44, %v2237_v49 }
 0x144   : > { %v834_v0 = vpop.permute.xlu1 %833 }
 0x145   : > { %v838_v32 = vadd.f32 %v834_v0, %v824_v57  ;;  %v832_v1 = vpop.permute.xlu0 %831 }
 0x146   : > { %v837_v3 = vadd.f32 %v832_v1, %v823_v60  ;;  %1287 = vrot.lane.b32.xlu1 %v1282_v61, %s1717_s25 }
 0x147   : > { %1285 = vrot.lane.b32.xlu0 %v1281_v20, %s1717_s25  ;;  %v1420_v20 = vstv %s1648_s7 }
 0x148   : > { %v848_v8 = vpop.permute.xlu1 %847  ;;  %v1421_v1 = vmul.f32 %v1420_v20, %v2243_v54 }
 0x149   : > { %v852_v10 = vadd.f32 %v848_v8, %v838_v32  ;;  %v846_v11 = vpop.permute.xlu0 %845  ;;  %v1422_v32 = vmul.f32 %v1420_v20, %v2237_v49 }
 0x14a   : > { %v851_v24 = vadd.f32 %v846_v11, %v837_v3  ;;  %1301 = vrot.lane.b32.xlu1 %v1296_v4, %s1717_s25 }
 0x14b   : > { %1299 = vrot.lane.b32.xlu0 %v1295_v38, %s1717_s25  ;;  %s1644_s25 = sld [smem:[#allocation2 + $0x5c]] }
 0x14c   : > { %v862_v26 = vpop.permute.xlu1 %861 }
 0x14d   : > { %v2265_v15 = vadd.f32 %v862_v26, %v852_v10  ;;  %v860_v29 = vpop.permute.xlu0 %859 }
 0x14e   : > { %v2267_v17 = vadd.f32 %v860_v29, %v851_v24  ;;  %1315 = vrot.lane.b32.xlu1 %v1310_v12, %s1718_s28 }
 0x14f   : > { %1313 = vrot.lane.b32.xlu0 %v1309_v13, %s1718_s28 }
 0x150   : > { %v2273_v21 = vpop.permute.xlu1 %875 }
 0x151   : > { %v2275_v22 = vpop.permute.xlu0 %873  ;;  %v1364_v53 = vstv %s1644_s25  ;;  %v880_v14 = vadd.f32 %v2273_v21, %v2265_v15 }
 0x152   : > { %1329 = vrot.lane.b32.xlu1 %v1324_v18, %s1718_s28  ;;  %v1366_v55 = vmul.f32 %v1364_v53, %v2237_v49  ;;  %v1365_v37 = vmul.f32 %v1364_v53, %v2243_v54  ;;  %v879_v26 = vadd.f32 %v2275_v22, %v2267_v17 }
 0x153   : > { %1327 = vrot.lane.b32.xlu0 %v1323_v31, %s1718_s28  ;;  %s1647_s28 = sld [smem:[#allocation2 + $0x5f]] }
 0x154   : > { %v2281_v27 = vpop.permute.xlu1 %889 }
 0x155   : > { %v2283_v28 = vpop.permute.xlu0 %887  ;;  %v894_v31 = vadd.f32 %v2281_v27, %v880_v14 }
 0x156   : > { %1343 = vrot.lane.b32.xlu1 %v1338_v35, %s1719_s5  ;;  %v906_v35 = vstv %s1605_s11  ;;  %v893_v25 = vadd.f32 %v2283_v28, %v879_v26 }
 0x157   : > { %1341 = vrot.lane.b32.xlu0 %v1337_v48, %s1719_s5  ;;  %v907_v15 = vmul.f32 %v2068_v36, %v906_v35 }
 0x158   : > { %v2289_v33 = vpop.permute.xlu1 %919 }
 0x159   : > { %v2291_v34 = vpop.permute.xlu0 %917  ;;  %v1406_v52 = vstv %s1647_s28 }
 0x15a   : > { %1357 = vrot.lane.b32.xlu1 %v1352_v50, %s1719_s5  ;;  %v1408_v60 = vmul.f32 %v2250_v62, %v1406_v52  ;;  %v1407_v61 = vmul.f32 %v2254_v23, %v1406_v52 }
 0x15b   : > { %1355 = vrot.lane.b32.xlu0 %v1351_v30, %s1719_s5  ;;  %s1649_s5 = sld [smem:[#allocation2 + $0x61]]  ;;  %v908_v30 = vmul.f32 %v2062_v16, %v906_v35 }
 0x15c   : > { %v2297_v40 = vpop.permute.xlu1 %933 }
 0x15d   : > { %v2299_v41 = vpop.permute.xlu0 %931 }
 0x15e   : > { %1371 = vrot.lane.b32.xlu1 %v1366_v55, %s1720_s8 }
 0x15f   : > { %1369 = vrot.lane.b32.xlu0 %v1365_v37, %s1720_s8 }
 0x160   : > { %v2305_v45 = vpop.permute.xlu1 %947 }
 0x161   : > { %v2307_v46 = vpop.permute.xlu0 %945  ;;  %v1434_v3 = vstv %s1649_s5 }
 0x162   : > { %1385 = vrot.lane.b32.xlu1 %v1380_v42, %s1720_s8  ;;  %v1436_v5 = vmul.f32 %v2250_v62, %v1434_v3  ;;  %v1435_v8 = vmul.f32 %v2254_v23, %v1434_v3 }
 0x163   : > { %1383 = vrot.lane.b32.xlu0 %v1379_v43, %s1720_s8  ;;  %s1602_s8 = sld [smem:[#allocation2 + $0x38]] }
 0x164   : > { %v962_v57 = vpop.permute.xlu1 %961 }
 0x165   : > { %v960_v58 = vpop.permute.xlu0 %959 }
 0x166   : > { %1399 = vrot.lane.b32.xlu1 %v1394_v47, %s1721_s13 }
 0x167   : > { %1397 = vrot.lane.b32.xlu0 %v1393_v51, %s1721_s13 }
 0x168   : > { %v976_v63 = vpop.permute.xlu1 %975 }
 0x169   : > { %v974_v0 = vpop.permute.xlu0 %973  ;;  %v898_v13 = vstv %s1602_s8 }
 0x16a   : > { %1413 = vrot.lane.b32.xlu1 %v1408_v60, %s1721_s13  ;;  %v900_v18 = vmul.f32 %v898_v13, %v2050_v6  ;;  %v899_v48 = vmul.f32 %v898_v13, %v2055_v9 }
 0x16b   : > { %1411 = vrot.lane.b32.xlu0 %v1407_v61, %s1721_s13  ;;  %s1618_s13 = sld [smem:[#allocation2 + $0x46]] }
 0x16c   : > { %v990_v4 = vpop.permute.xlu1 %989  ;;  %v902_v53 = vadd.f32 %v900_v18, %v894_v31  ;;  %v901_v21 = vadd.f32 %v899_v48, %v893_v25 }
 0x16d   : > { %v988_v38 = vpop.permute.xlu0 %987 }
 0x16e   : > { %1427 = vrot.lane.b32.xlu1 %v1422_v32, %s1722_s16  ;;  %v910_v22 = vadd.f32 %v908_v30, %v902_v53  ;;  %v909_v6 = vadd.f32 %v907_v15, %v901_v21 }
 0x16f   : > { %1425 = vrot.lane.b32.xlu0 %v1421_v1, %s1722_s16 }
 0x170   : > { %v1004_v10 = vpop.permute.xlu1 %1003  ;;  %v924_v27 = vadd.f32 %v2289_v33, %v910_v22  ;;  %v923_v9 = vadd.f32 %v2291_v34, %v909_v6 }
 0x171   : > { %v1002_v11 = vpop.permute.xlu0 %1001 }
 0x172   : > { %1441 = vrot.lane.b32.xlu1 %v1436_v5, %s1722_s16  ;;  %v938_v28 = vadd.f32 %v2297_v40, %v924_v27  ;;  %v937_v16 = vadd.f32 %v2299_v41, %v923_v9 }
 0x173   : > { %1439 = vrot.lane.b32.xlu0 %v1435_v8, %s1722_s16  ;;  %s1621_s16 = sld [smem:[#allocation2 + $0x47]] }
 0x174   : > { %v1018_v24 = vpop.permute.xlu1 %1017  ;;  %v952_v47 = vadd.f32 %v2305_v45, %v938_v28  ;;  %v951_v36 = vadd.f32 %v2307_v46, %v937_v16 }
 0x175   : > { %v1016_v12 = vpop.permute.xlu0 %1015 }
 0x176   : > { %v966_v52 = vadd.f32 %v962_v57, %v952_v47  ;;  %v965_v61 = vadd.f32 %v960_v58, %v951_v36 }
 0x178   : > { %v1032_v29 = vpop.permute.xlu1 %1031  ;;  %v980_v20 = vadd.f32 %v976_v63, %v966_v52  ;;  %v979_v32 = vadd.f32 %v974_v0, %v965_v61  ;;  %v1082_v63 = vstv %s1618_s13 }
 0x179   : > { %v1030_v19 = vpop.permute.xlu0 %1029  ;;  %v1090_v48 = vstv %s1621_s16 }
 0x17a   : > { %v994_v1 = vadd.f32 %v990_v4, %v980_v20  ;;  %v993_v34 = vadd.f32 %v988_v38, %v979_v32  ;;  %v1084_v38 = vmul.f32 %v1082_v63, %v2141_v56  ;;  %v1091_v30 = vmul.f32 %v2159_v7, %v1090_v48 }
 0x17c   : > { %v1046_v50 = vpop.permute.xlu1 %1045  ;;  %v1008_v5 = vadd.f32 %v1004_v10, %v994_v1  ;;  %v1007_v40 = vadd.f32 %v1002_v11, %v993_v34  ;;  %v1083_v11 = vmul.f32 %v1082_v63, %v2146_v59 }
 0x17d   : > { %v1044_v55 = vpop.permute.xlu0 %1043 }
 0x17e   : > { %v1022_v13 = vadd.f32 %v1018_v24, %v1008_v5  ;;  %v1021_v14 = vadd.f32 %v1016_v12, %v1007_v40 }
 0x180   : > { %v1060_v17 = vpop.permute.xlu1 %1059  ;;  %v1036_v45 = vadd.f32 %v1032_v29, %v1022_v13  ;;  %v1035_v46 = vadd.f32 %v1030_v19, %v1021_v14  ;;  %v1092_v29 = vmul.f32 %v2153_v2, %v1090_v48 }
 0x181   : > { %v1058_v37 = vpop.permute.xlu0 %1057 }
 0x182   : > { %v1050_v57 = vadd.f32 %v1046_v50, %v1036_v45  ;;  %v1049_v58 = vadd.f32 %v1044_v55, %v1035_v46 }
 0x184   : > { %v1074_v39 = vpop.permute.xlu1 %1073  ;;  %v1064_v0 = vadd.f32 %v1060_v17, %v1050_v57  ;;  %v1063_v31 = vadd.f32 %v1058_v37, %v1049_v58 }
 0x185   : > { %v1072_v42 = vpop.permute.xlu0 %1071 }
 0x186   : > { %v1078_v35 = vadd.f32 %v1074_v39, %v1064_v0  ;;  %v1077_v24 = vadd.f32 %v1072_v42, %v1063_v31  ;;  %v1274_v0 = vstv %s1637_s14 }
 0x188   : > { %v1104_v43 = vpop.permute.xlu1 %1103  ;;  %v1086_v25 = vadd.f32 %v1084_v38, %v1078_v35  ;;  %v1085_v50 = vadd.f32 %v1083_v11, %v1077_v24  ;;  %v1276_v38 = vmul.f32 %v2250_v62, %v1274_v0  ;;  %v1275_v11 = vmul.f32 %v2254_v23, %v1274_v0 }
 0x189   : > { %v1102_v44 = vpop.permute.xlu0 %1101 }
 0x18a   : > { %v1094_v55 = vadd.f32 %v1092_v29, %v1086_v25  ;;  %v1093_v21 = vadd.f32 %v1091_v30, %v1085_v50 }
 0x18c   : > { %v1118_v51 = vpop.permute.xlu1 %1117  ;;  %v1108_v56 = vadd.f32 %v1104_v43, %v1094_v55  ;;  %v1107_v37 = vadd.f32 %v1102_v44, %v1093_v21 }
 0x18d   : > { %v1116_v60 = vpop.permute.xlu0 %1115 }
 0x18e   : > { %v1122_v59 = vadd.f32 %v1118_v51, %v1108_v56  ;;  %v1121_v27 = vadd.f32 %v1116_v60, %v1107_v37 }
 0x190   : > { %v1132_v33 = vpop.permute.xlu1 %1131 }
 0x191   : > { %v1130_v3 = vpop.permute.xlu0 %1129  ;;  %v1136_v42 = vadd.f32 %v1132_v33, %v1122_v59 }
 0x192   : > { %v1135_v9 = vadd.f32 %v1130_v3, %v1121_v27 }
 0x194   : > { %v1146_v8 = vpop.permute.xlu1 %1145 }
 0x195   : > { %v1144_v41 = vpop.permute.xlu0 %1143  ;;  %v1150_v2 = vadd.f32 %v1146_v8, %v1136_v42 }
 0x196   : > { %v1149_v47 = vadd.f32 %v1144_v41, %v1135_v9  ;;  %v1266_v41 = vstv %s1634_s12 }
 0x197   : > { %v1267_v58 = vmul.f32 %v1266_v41, %v2243_v54 }
 0x198   : > { %v1160_v26 = vpop.permute.xlu1 %1159 }
 0x199   : > { %v1158_v18 = vpop.permute.xlu0 %1157  ;;  %v1164_v36 = vadd.f32 %v1160_v26, %v1150_v2  ;;  %v1268_v26 = vmul.f32 %v1266_v41, %v2237_v49 }
 0x19a   : > { %v1163_v7 = vadd.f32 %v1158_v18, %v1149_v47 }
 0x19c   : > { %v1174_v4 = vpop.permute.xlu1 %1173 }
 0x19d   : > { %v1172_v10 = vpop.permute.xlu0 %1171  ;;  %v1178_v61 = vadd.f32 %v1174_v4, %v1164_v36 }
 0x19e   : > { %v1177_v32 = vadd.f32 %v1172_v10, %v1163_v7 }
 0x1a0   : > { %v1188_v12 = vpop.permute.xlu1 %1187 }
 0x1a1   : > { %v1186_v19 = vpop.permute.xlu0 %1185  ;;  %v1192_v43 = vadd.f32 %v1188_v12, %v1178_v61 }
 0x1a2   : > { %v1191_v1 = vadd.f32 %v1186_v19, %v1177_v32 }
 0x1a4   : > { %v1202_v53 = vpop.permute.xlu1 %1201 }
 0x1a5   : > { %v1200_v15 = vpop.permute.xlu0 %1199  ;;  %v1206_v34 = vadd.f32 %v1202_v53, %v1192_v43 }
 0x1a6   : > { %v1205_v5 = vadd.f32 %v1200_v15, %v1191_v1 }
 0x1a8   : > { %v1216_v17 = vpop.permute.xlu1 %1215 }
 0x1a9   : > { %v1214_v22 = vpop.permute.xlu0 %1213  ;;  %v1220_v60 = vadd.f32 %v1216_v17, %v1206_v34 }
 0x1aa   : > { %v1219_v33 = vadd.f32 %v1214_v22, %v1205_v5 }
 0x1ac   : > { %v1230_v6 = vpop.permute.xlu1 %1229 }
 0x1ad   : > { %v1228_v39 = vpop.permute.xlu0 %1227  ;;  %v1234_v40 = vadd.f32 %v1230_v6, %v1220_v60 }
 0x1ae   : > { %v1233_v13 = vadd.f32 %v1228_v39, %v1219_v33 }
 0x1b0   : > { %v1244_v28 = vpop.permute.xlu1 %1243 }
 0x1b1   : > { %v1242_v16 = vpop.permute.xlu0 %1241  ;;  %v1248_v14 = vadd.f32 %v1244_v28, %v1234_v40 }
 0x1b2   : > { %v1247_v45 = vadd.f32 %v1242_v16, %v1233_v13 }
 0x1b4   : > { %v1258_v52 = vpop.permute.xlu1 %1257 }
 0x1b5   : > { %v1256_v20 = vpop.permute.xlu0 %1255  ;;  %v1262_v57 = vadd.f32 %v1258_v52, %v1248_v14 }
 0x1b6   : > { %v1261_v63 = vadd.f32 %v1256_v20, %v1247_v45 }
 0x1b7   : > { %v1270_v4 = vadd.f32 %v1268_v26, %v1262_v57 }
 0x1b8   : > { %v1288_v44 = vpop.permute.xlu1 %1287  ;;  %v1269_v10 = vadd.f32 %v1267_v58, %v1261_v63 }
 0x1b9   : > { %v1286_v51 = vpop.permute.xlu0 %1285  ;;  %v1278_v48 = vadd.f32 %v1276_v38, %v1270_v4 }
 0x1ba   : > { %v1277_v25 = vadd.f32 %v1275_v11, %v1269_v10 }
 0x1bb   : > { %v1292_v49 = vadd.f32 %v1288_v44, %v1278_v48 }
 0x1bc   : > { %v1302_v3 = vpop.permute.xlu1 %1301  ;;  %v1291_v50 = vadd.f32 %v1286_v51, %v1277_v25 }
 0x1bd   : > { %v1300_v8 = vpop.permute.xlu0 %1299  ;;  %v1306_v54 = vadd.f32 %v1302_v3, %v1292_v49 }
 0x1be   : > { %v1305_v55 = vadd.f32 %v1300_v8, %v1291_v50 }
 0x1c0   : > { %v1316_v46 = vpop.permute.xlu1 %1315 }
 0x1c1   : > { %v1314_v18 = vpop.permute.xlu0 %1313  ;;  %v1320_v15 = vadd.f32 %v1316_v46, %v1306_v54 }
 0x1c2   : > { %v1319_v21 = vadd.f32 %v1314_v18, %v1305_v55 }
 0x1c4   : > { %v1330_v31 = vpop.permute.xlu1 %1329 }
 0x1c5   : > { %v1328_v35 = vpop.permute.xlu0 %1327  ;;  %v1334_v62 = vadd.f32 %v1330_v31, %v1320_v15 }
 0x1c6   : > { %v1333_v22 = vadd.f32 %v1328_v35, %v1319_v21 }
 0x1c8   : > { %v1344_v24 = vpop.permute.xlu1 %1343 }
 0x1c9   : > { %v1342_v12 = vpop.permute.xlu0 %1341  ;;  %v1348_v37 = vadd.f32 %v1344_v24, %v1334_v62 }
 0x1ca   : > { %v1347_v23 = vadd.f32 %v1342_v12, %v1333_v22 }
 0x1cc   : > { %v1358_v29 = vpop.permute.xlu1 %1357 }
 0x1cd   : > { %v1356_v19 = vpop.permute.xlu0 %1355  ;;  %v1362_v59 = vadd.f32 %v1358_v29, %v1348_v37 }
 0x1ce   : > { %v1361_v27 = vadd.f32 %v1356_v19, %v1347_v23 }
 0x1d0   : > { %v1372_v30 = vpop.permute.xlu1 %1371 }
 0x1d1   : > { %v1370_v53 = vpop.permute.xlu0 %1369  ;;  %v1376_v42 = vadd.f32 %v1372_v30, %v1362_v59 }
 0x1d2   : > { %v1375_v9 = vadd.f32 %v1370_v53, %v1361_v27 }
 0x1d4   : > { %v1386_v17 = vpop.permute.xlu1 %1385 }
 0x1d5   : > { %v1384_v56 = vpop.permute.xlu0 %1383  ;;  %v1390_v2 = vadd.f32 %v1386_v17, %v1376_v42 }
 0x1d6   : > { %v1389_v47 = vadd.f32 %v1384_v56, %v1375_v9 }
 0x1d8   : > { %v1400_v6 = vpop.permute.xlu1 %1399 }
 0x1d9   : > { %v1398_v39 = vpop.permute.xlu0 %1397  ;;  %v1404_v36 = vadd.f32 %v1400_v6, %v1390_v2 }
 0x1da   : > { %v1403_v7 = vadd.f32 %v1398_v39, %v1389_v47 }
 0x1dc   : > { %v1414_v28 = vpop.permute.xlu1 %1413 }
 0x1dd   : > { %v1412_v16 = vpop.permute.xlu0 %1411  ;;  %v1418_v61 = vadd.f32 %v1414_v28, %v1404_v36 }
 0x1de   : > { %v1417_v32 = vadd.f32 %v1412_v16, %v1403_v7 }
 0x1e0   : > { %v1428_v52 = vpop.permute.xlu1 %1427 }
 0x1e1   : > { %v1426_v20 = vpop.permute.xlu0 %1425  ;;  %v1432_v43 = vadd.f32 %v1428_v52, %v1418_v61 }
 0x1e2   : > { %v1431_v1 = vadd.f32 %v1426_v20, %v1417_v32 }
 0x1e4   : > { %v1442_v44 = vpop.permute.xlu1 %1441 }
 0x1e5   : > { %v1446_v34 = vadd.f32 %v1442_v44, %v1432_v43  ;;  %v1440_v51 = vpop.permute.xlu0 %1439 }
 0x1e6   : > { %v1445_v5 = vadd.f32 %v1440_v51, %v1431_v1 }
 0x1e7   : > { %v1651_v60 = vmul.f32 -1.442695, %v1446_v34 }
 0x1e8   : > { %v1650_v33 = vmul.f32 -1.442695, %v1445_v5 }
 0x1e9   : > { %1681 = vpow2.f32 %v1651_v60 }
 0x1ea   : > { %1683 = vpow2.f32 %v1650_v33 }
 0x1f3   : > { %v1682_v3 = vpop.eup %1681 }
 0x1f4   : > { %v1684_v40 = vpop.eup %1683  ;;  %v1454_v8 = vadd.f32 1.0, %v1682_v3 }
 0x1f5   : > { %v1453_v13 = vadd.f32 1.0, %v1684_v40 }
 0x1f6   : > { %1685 = vrcp.f32 %v1454_v8 }
 0x1f7   : > { %1687 = vrcp.f32 %v1453_v13 }
 0x200   : > { %v1686_v41 = vpop.eup %1685 }
 0x201   : > { %v1688_v14 = vpop.eup %1687  ;;  %1461 = vst.msk [vmem:[%s157_s19 + $0x8] sm:$0xff] %vm1459_vm0, %v1686_v41 }
 0x202   : > { %1460 = vst.msk [vmem:[%s157_s19] sm:$0xff] %vm1459_vm0, %v1688_v14 }
 0x203 PF: > { %s13_s9 = sadd.s32 1, %s1714_s9  }
 0x204   : > { %p10_p1 = scmp.ge.s32.totalorder %s13_s9, 4  }
 0x206   :  { %12 = sbr.rel (!%p10_p1) target bundleno = 1 (0x1), region = 64 }
 0x20d   :  { %1483 = vsyncpa [#allocation3], 1 }
 0x20e   :  { %1485 = vsyncpa [#allocation3 + $0x1], 1 }

// kernel: sep_conv2d_forward.4
= control target key start
LH: loop header
LB: loop body
LE: loop exit
PB: predicated region body
PF: predicated region fallthrough
CT: control target
= control target key end

     0   :  { %s5593_s12 = smov 0   ;;  %s8505_s0 = inlined_call_operand.vmem [shape: bf16[2,18,18,8], index: 0, kind: input, shape index: {}]   ;;  %s8506_s1 = inlined_call_operand.vmem [shape: bf16[72,216], index: 1, kind: input, shape index: {}]   ;;  %s8507_s2 = inlined_call_operand.vmem [shape: f32[2,16,16,216], index: 2, kind: output, shape index: {0}]   ;;  %s8508_s3 = inlined_call_operand.vmem [shape: f32[2,16,16,2], index: 3, kind: output, shape index: {1}]  }
   0x1 LB: > { %s4612_s13 = sadd.s32 4294967295, %s5562_s12   ;;  %p4616_p0 = scmp.ge.s32.totalorder %s5562_s12, 1  ;;  %s5562_s12 = sphi %s5593_s12, %s14_s12  }
   0x2   : > { %p140_p1 = scmp.lt.s32.totalorder %s5562_s12, 3 }
   0x4   : > { %p141_p2 = pnand %p4616_p0, %p140_p1 }
   0x6   : > { %144 = sbr.rel (%p141_p2) target bundleno = 954 (0x3ba), region = 28 }
   0xd   : > { %p169_p3 = scmp.lt.s32.totalorder %s4612_s13, 1  ;;  %vm265_vm0 = vsmask.f32 3328  ;;  %vm266_vm1 = vsmask.f32 7440  ;;  %s5564_s18 = smov 8  }
   0xe   : > { %vm5635_vm2 = vmor %vm265_vm0, %vm266_vm1  ;;  %vm780_vm3 = vcmask 1042432   ;;  %vm781_vm4 = vcmask 1046532   ;;  %s5565_s19 = smov 16   ;;  %s5566_s20 = smov 24   ;;  %vm3521_vm6 = vcmask 64512   ;;  %vm3554_vm7 = vcmask 130048  }
   0xf   : > { %s8679_s13 = smov (!%p169_p3, %s4612_s13), 1  ;;  %vm5847_vm5 = vmor %vm780_vm3, %vm781_vm4  ;;  %s5567_s21 = smov 32   ;;  %vm3587_vm8 = vcmask 195584   ;;  %vm3620_vm9 = vcmask 261120   ;;  %vm3653_vm10 = vcmask 326656   ;;  %vm3686_vm11 = vcmask 392192  }
  0x10   : > { %s4839_s14 = smul.u32 216, %s8679_s13  ;;  %s5568_s22 = smov 40   ;;  %vm3719_vm12 = vcmask 457728   ;;  %vm3752_vm13 = vcmask 523264   ;;  %vm3904_vm14 = vcmask 1043456   ;;  %vm3855_vm15 = vcmask 588800  }
  0x11   : > { %s5569_s23 = smov 48   ;;  %s5570_s24 = smov 56   ;;  %vm4105_vm0 = vcmask 719872   ;;  %vm4458_vm1 = vcmask 7168  }
  0x12   : > { %s5607_s17 = scalar_lea.vmem %s8505_s0, %s4839_s14  ;;  %s5571_s25 = smov 64  }
  0x13   : > { %v189_v0 = vld [vmem:[%s5607_s17 + $0x18] sm:$0xf]  ;;  %v5611_v1 = vld [vmem:[%s5607_s17 + $0x1c] sm:$0xf]  ;;  %v5614_v2 = vld [vmem:[%s5607_s17 + $0x20] sm:$0x1] }
  0x14   : > { %v317_v3 = vshrl.u32 %v189_v0, 16  ;;  %v320_v4 = vshll.u32 %v189_v0, 16  ;;  %v326_v5 = vshll.u32 %v5611_v1, 16  ;;  %v330_v6 = vshrl.u32 %v5611_v1, 16  ;;  %v185_v7 = vld [vmem:[%s5607_s17] sm:$0xf] }
  0x15   : > { %v336_v8 = vshll.u32 %v5614_v2, 16  ;;  %v5621_v9 = vld [vmem:[%s5607_s17 + $0x4] sm:$0xf]  ;;  %v5624_v10 = vld [vmem:[%s5607_s17 + $0x8] sm:$0x1]  ;;  %v269_v11 = vshrl.u32 %v185_v7, 16 }
  0x16   : > { %v319_v12 = vrot.slane %v317_v3, 4  ;;  %v322_v13 = vrot.slane %v320_v4, 5  ;;  %v328_v14 = vrot.slane %v326_v5, 5  ;;  %v332_v15 = vrot.slane %v330_v6, 4  ;;  %v191_v16 = vld [vmem:[%s5607_s17 + $0x24] sm:$0xf] }
  0x17   : > { %v338_v17 = vrot.slane %v336_v8, 5  ;;  %v271_v18 = vrot.slane %v269_v11, 4  ;;  %v272_v19 = vshll.u32 %v185_v7, 16  ;;  %v278_v20 = vshll.u32 %v5621_v9, 16  ;;  %v5631_v25 = vld [vmem:[%s5607_s17 + $0x28] sm:$0xf] }
  0x18   : > { %v323_v21 = vor.u32 %v322_v13, %v319_v12  ;;  %v333_v22 = vor.u32 %v332_v15, %v328_v14  ;;  %v282_v23 = vshrl.u32 %v5621_v9, 16  ;;  %v288_v24 = vshll.u32 %v5624_v10, 16  ;;  %v5640_v36 = vld [vmem:[%s5607_s17 + $0x2c] sm:$0x1]  ;;  %v5653_v56 = vld [vmem:[%s5607_s17 + $0x10] sm:$0xf] }
  0x19   : > { %v274_v27 = vrot.slane %v272_v19, 5  ;;  %v280_v28 = vrot.slane %v278_v20, 5  ;;  %v341_v29 = vshrl.u32 %v191_v16, 16  ;;  %v344_v30 = vshll.u32 %v191_v16, 16  ;;  %v187_v44 = vld [vmem:[%s5607_s17 + $0xc] sm:$0xf] }
  0x1a   : > { %v324_v31 = vrot.slane %v323_v21, 4  ;;  %v334_v32 = vrot.slane %v333_v22, 4  ;;  %v284_v33 = vrot.slane %v282_v23, 4  ;;  %v290_v34 = vrot.slane %v288_v24, 5  ;;  %v5658_v62 = vld [vmem:[%s5607_s17 + $0x14] sm:$0x1] }
  0x1b   : > { %v275_v35 = vor.u32 %v274_v27, %v271_v18  ;;  %v343_v37 = vrot.slane %v341_v29, 4  ;;  %v346_v38 = vrot.slane %v344_v30, 5  ;;  %v350_v39 = vshll.u32 %v5631_v25, 16  ;;  %v195_v63 = vld [vmem:[%s5607_s17 + $0x3c] sm:$0xf] }
  0x1c   : > { %v329_v40 = vsel %vm5635_vm2, %v324_v31, %v328_v14  ;;  %v339_v41 = vsel %vm5635_vm2, %v334_v32, %v338_v17  ;;  %v285_v42 = vor.u32 %v284_v33, %v280_v28  ;;  %v354_v43 = vshrl.u32 %v5631_v25, 16  ;;  %v5667_v12 = vld [vmem:[%s5607_s17 + $0x40] sm:$0xf]  ;;  %v5671_v16 = vld [vmem:[%s5607_s17 + $0x44] sm:$0x1] }
  0x1d   : > { %v688_v45 = vunpack.c.l.bf16 %v329_v40  ;;  %v689_v46 = vunpack.c.l.bf16 %v339_v41  ;;  %v276_v47 = vrot.slane %v275_v35, 4  ;;  %v347_v48 = vor.u32 %v346_v38, %v343_v37  ;;  %v193_v22 = vld [vmem:[%s5607_s17 + $0x30] sm:$0xf]  ;;  %v5681_v37 = vld [vmem:[%s5607_s17 + $0x34] sm:$0xf] }
  0x1e   : > { %v286_v49 = vrot.slane %v285_v42, 4  ;;  %v352_v50 = vrot.slane %v350_v39, 5  ;;  %v356_v51 = vrot.slane %v354_v43, 4  ;;  %v360_v52 = vshll.u32 %v5640_v36, 16  ;;  %v5684_v43 = vld [vmem:[%s5607_s17 + $0x38] sm:$0x1] }
  0x1f   : > { %v4867_v53 = vpack.i.bf16 %v689_v46, %v688_v45  ;;  %v281_v54 = vsel %vm5635_vm2, %v276_v47, %v280_v28  ;;  %v348_v55 = vrot.slane %v347_v48, 4  ;;  %v293_v57 = vshrl.u32 %v187_v44, 16  ;;  %v199_v48 = vld [vmem:[%s5607_s17 + $0x54] sm:$0xf] }
  0x20   : > { %v291_v58 = vsel %vm5635_vm2, %v286_v49, %v290_v34  ;;  %v684_v59 = vunpack.c.l.bf16 %v281_v54  ;;  %v357_v60 = vor.u32 %v356_v51, %v352_v50  ;;  %v362_v61 = vrot.slane %v360_v52, 5 }
  0x21   : > { %4868 = vrot.lane.b32.xlu1 %v4867_v53, %s5564_s18  ;;  %v685_v0 = vunpack.c.l.bf16 %v291_v58  ;;  %v353_v3 = vsel %vm5635_vm2, %v348_v55, %v352_v50  ;;  %v295_v4 = vrot.slane %v293_v57, 4  ;;  %v296_v5 = vshll.u32 %v187_v44, 16 }
  0x22   : > { %v358_v6 = vrot.slane %v357_v60, 4  ;;  %v690_v7 = vunpack.c.l.bf16 %v353_v3  ;;  %v302_v8 = vshll.u32 %v5653_v56, 16  ;;  %v306_v11 = vshrl.u32 %v5653_v56, 16 }
  0x23   : > { %v4857_v13 = vpack.i.bf16 %v685_v0, %v684_v59  ;;  %v298_v14 = vrot.slane %v296_v5, 5  ;;  %v312_v15 = vshll.u32 %v5658_v62, 16  ;;  %v389_v17 = vshrl.u32 %v195_v63, 16 }
  0x24   : > { %v363_v18 = vsel %vm5635_vm2, %v358_v6, %v362_v61  ;;  %v304_v19 = vrot.slane %v302_v8, 5  ;;  %v308_v20 = vrot.slane %v306_v11, 4  ;;  %v392_v21 = vshll.u32 %v195_v63, 16  ;;  %v5698_v61 = vld [vmem:[%s5607_s17 + $0x58] sm:$0xf] }
  0x25   : > { %4858 = vrot.lane.b32.xlu0 %v4857_v13, %s5564_s18  ;;  %v691_v23 = vunpack.c.l.bf16 %v363_v18  ;;  %v299_v24 = vor.u32 %v298_v14, %v295_v4  ;;  %v314_v27 = vrot.slane %v312_v15, 5  ;;  %v391_v28 = vrot.slane %v389_v17, 4  ;;  %v5701_v6 = vld [vmem:[%s5607_s17 + $0x5c] sm:$0x1] }
  0x26   : > { %v309_v29 = vor.u32 %v308_v20, %v304_v19  ;;  %v394_v30 = vrot.slane %v392_v21, 5  ;;  %v398_v31 = vshll.u32 %v5667_v12, 16  ;;  %v402_v32 = vshrl.u32 %v5667_v12, 16 }
  0x27   : > { %v4872_v33 = vpack.i.bf16 %v691_v23, %v690_v7  ;;  %v300_v34 = vrot.slane %v299_v24, 4  ;;  %v408_v35 = vshll.u32 %v5671_v16, 16  ;;  %v365_v38 = vshrl.u32 %v193_v22, 16  ;;  %v197_v7 = vld [vmem:[%s5607_s17 + $0x48] sm:$0xf] }
  0x28   : > { %v310_v39 = vrot.slane %v309_v29, 4  ;;  %v395_v40 = vor.u32 %v394_v30, %v391_v28  ;;  %v400_v41 = vrot.slane %v398_v31, 5  ;;  %v404_v42 = vrot.slane %v402_v32, 4  ;;  %v5711_v23 = vld [vmem:[%s5607_s17 + $0x4c] sm:$0xf] }
  0x29   : > { %4873 = vrot.lane.b32.xlu1 %v4872_v33, %s5564_s18  ;;  %v305_v44 = vsel %vm5635_vm2, %v300_v34, %v304_v19  ;;  %v410_v45 = vrot.slane %v408_v35, 5  ;;  %v367_v46 = vrot.slane %v365_v38, 4  ;;  %v368_v47 = vshll.u32 %v193_v22, 16  ;;  %v5716_v31 = vld [vmem:[%s5607_s17 + $0x50] sm:$0x1] }
  0x2a   : > { %v315_v49 = vsel %vm5635_vm2, %v310_v39, %v314_v27  ;;  %v686_v50 = vunpack.c.l.bf16 %v305_v44  ;;  %v396_v51 = vrot.slane %v395_v40, 4  ;;  %v405_v52 = vor.u32 %v404_v42, %v400_v41  ;;  %v203_v42 = vld [vmem:[%s5607_s17 + $0x6c] sm:$0xf] }
  0x2b   : > { %v687_v53 = vunpack.c.l.bf16 %v315_v49  ;;  %v370_v54 = vrot.slane %v368_v47, 5  ;;  %v374_v55 = vshll.u32 %v5681_v37, 16  ;;  %v378_v57 = vshrl.u32 %v5681_v37, 16 }
  0x2c   : > { %v401_v58 = vsel %vm5635_vm2, %v396_v51, %v400_v41  ;;  %v406_v59 = vrot.slane %v405_v52, 4  ;;  %v384_v60 = vshll.u32 %v5684_v43, 16  ;;  %v437_v63 = vshrl.u32 %v199_v48, 16 }
  0x2d   : > { %v4862_v0 = vpack.i.bf16 %v687_v53, %v686_v50  ;;  %v694_v3 = vunpack.c.l.bf16 %v401_v58  ;;  %v371_v4 = vor.u32 %v370_v54, %v367_v46  ;;  %v376_v5 = vrot.slane %v374_v55, 5  ;;  %v5726_v55 = vld [vmem:[%s5607_s17 + $0x70] sm:$0xf] }
  0x2e   : > { %v411_v8 = vsel %vm5635_vm2, %v406_v59, %v410_v45  ;;  %v380_v11 = vrot.slane %v378_v57, 4  ;;  %v386_v13 = vrot.slane %v384_v60, 5  ;;  %v439_v14 = vrot.slane %v437_v63, 4  ;;  %v5731_v63 = vld [vmem:[%s5607_s17 + $0x74] sm:$0x1] }
  0x2f   : > { %4863 = vrot.lane.b32.xlu0 %v4862_v0, %s5564_s18  ;;  %v695_v15 = vunpack.c.l.bf16 %v411_v8  ;;  %v372_v17 = vrot.slane %v371_v4, 4  ;;  %v440_v18 = vshll.u32 %v199_v48, 16  ;;  %v446_v19 = vshll.u32 %v5698_v61, 16 }
  0x30   : > { %v381_v20 = vor.u32 %v380_v11, %v376_v5  ;;  %v450_v21 = vshrl.u32 %v5698_v61, 16  ;;  %v456_v22 = vshll.u32 %v5701_v6, 16  ;;  %v413_v24 = vshrl.u32 %v197_v7, 16 }
  0x31   : > { %v4882_v27 = vpack.i.bf16 %v695_v15, %v694_v3  ;;  %v377_v28 = vsel %vm5635_vm2, %v372_v17, %v376_v5  ;;  %v442_v29 = vrot.slane %v440_v18, 5  ;;  %v448_v30 = vrot.slane %v446_v19, 5  ;;  %v201_v3 = vld [vmem:[%s5607_s17 + $0x60] sm:$0xf] }
  0x32   : > { %v382_v32 = vrot.slane %v381_v20, 4  ;;  %v692_v33 = vunpack.c.l.bf16 %v377_v28  ;;  %v452_v34 = vrot.slane %v450_v21, 4  ;;  %v458_v35 = vrot.slane %v456_v22, 5  ;;  %v5743_v28 = vld [vmem:[%s5607_s17 + $0x64] sm:$0xf] }
  0x33   : > { %4883 = vrot.lane.b32.xlu1 %v4882_v27, %s5564_s18  ;;  %v443_v38 = vor.u32 %v442_v29, %v439_v14  ;;  %v415_v39 = vrot.slane %v413_v24, 4  ;;  %v416_v40 = vshll.u32 %v197_v7, 16  ;;  %v422_v41 = vshll.u32 %v5711_v23, 16  ;;  %v5746_v29 = vld [vmem:[%s5607_s17 + $0x68] sm:$0x1] }
  0x34   : > { %v387_v44 = vsel %vm5635_vm2, %v382_v32, %v386_v13  ;;  %v453_v45 = vor.u32 %v452_v34, %v448_v30  ;;  %v426_v46 = vshrl.u32 %v5711_v23, 16  ;;  %v432_v47 = vshll.u32 %v5716_v31, 16 }
  0x35   : > { %v693_v48 = vunpack.c.l.bf16 %v387_v44  ;;  %v444_v49 = vrot.slane %v443_v38, 4  ;;  %v418_v50 = vrot.slane %v416_v40, 5  ;;  %v424_v51 = vrot.slane %v422_v41, 5 }
  0x36   : > { %v454_v52 = vrot.slane %v453_v45, 4  ;;  %v428_v53 = vrot.slane %v426_v46, 4  ;;  %v434_v54 = vrot.slane %v432_v47, 5  ;;  %v485_v57 = vshrl.u32 %v203_v42, 16 }
  0x37   : > { %v4877_v58 = vpack.i.bf16 %v693_v48, %v692_v33  ;;  %v449_v59 = vsel %vm5635_vm2, %v444_v49, %v448_v30  ;;  %v419_v60 = vor.u32 %v418_v50, %v415_v39  ;;  %v488_v0 = vshll.u32 %v203_v42, 16  ;;  %v5758_v50 = vld [vmem:[%s5607_s17 + $0x88] sm:$0xf] }
  0x38   : > { %v459_v4 = vsel %vm5635_vm2, %v454_v52, %v458_v35  ;;  %v698_v5 = vunpack.c.l.bf16 %v449_v59  ;;  %v429_v7 = vor.u32 %v428_v53, %v424_v51  ;;  %v487_v8 = vrot.slane %v485_v57, 4  ;;  %v207_v35 = vld [vmem:[%s5607_s17 + $0x84] sm:$0xf] }
  0x39   : > { %4878 = vrot.lane.b32.xlu0 %v4877_v58, %s5564_s18  ;;  %v699_v11 = vunpack.c.l.bf16 %v459_v4  ;;  %v420_v13 = vrot.slane %v419_v60, 4  ;;  %v490_v14 = vrot.slane %v488_v0, 5  ;;  %v494_v15 = vshll.u32 %v5726_v55, 16  ;;  %v5761_v58 = vld [vmem:[%s5607_s17 + $0x8c] sm:$0x1] }
  0x3a   : > { %v430_v17 = vrot.slane %v429_v7, 4  ;;  %v498_v18 = vshrl.u32 %v5726_v55, 16  ;;  %v504_v19 = vshll.u32 %v5731_v63, 16  ;;  %v461_v20 = vshrl.u32 %v201_v3, 16  ;;  %v205_v4 = vld [vmem:[%s5607_s17 + $0x78] sm:$0xf] }
  0x3b   : > { %v4892_v21 = vpack.i.bf16 %v699_v11, %v698_v5  ;;  %v425_v22 = vsel %vm5635_vm2, %v420_v13, %v424_v51  ;;  %v491_v24 = vor.u32 %v490_v14, %v487_v8  ;;  %v496_v27 = vrot.slane %v494_v15, 5 }
  0x3c   : > { %v435_v30 = vsel %vm5635_vm2, %v430_v17, %v434_v54  ;;  %v696_v32 = vunpack.c.l.bf16 %v425_v22  ;;  %v500_v33 = vrot.slane %v498_v18, 4  ;;  %v506_v34 = vrot.slane %v504_v19, 5 }
  0x3d   : > { %4893 = vrot.lane.b32.xlu1 %v4892_v21, %s5564_s18  ;;  %v697_v38 = vunpack.c.l.bf16 %v435_v30  ;;  %v492_v39 = vrot.slane %v491_v24, 4  ;;  %v463_v40 = vrot.slane %v461_v20, 4  ;;  %v464_v41 = vshll.u32 %v201_v3, 16  ;;  %v5771_v21 = vld [vmem:[%s5607_s17 + $0x7c] sm:$0xf] }
  0x3e   : > { %v501_v42 = vor.u32 %v500_v33, %v496_v27  ;;  %v470_v44 = vshll.u32 %v5743_v28, 16  ;;  %v474_v45 = vshrl.u32 %v5743_v28, 16  ;;  %v480_v46 = vshll.u32 %v5746_v29, 16  ;;  %v5776_v33 = vld [vmem:[%s5607_s17 + $0x80] sm:$0x1] }
  0x3f   : > { %v4887_v47 = vpack.i.bf16 %v697_v38, %v696_v32  ;;  %v497_v48 = vsel %vm5635_vm2, %v492_v39, %v496_v27  ;;  %v466_v49 = vrot.slane %v464_v41, 5  ;;  %v533_v51 = vshrl.u32 %v207_v35, 16 }
  0x40   : > { %v502_v52 = vrot.slane %v501_v42, 4  ;;  %v702_v53 = vunpack.c.l.bf16 %v497_v48  ;;  %v472_v54 = vrot.slane %v470_v44, 5  ;;  %v476_v57 = vrot.slane %v474_v45, 4 }
  0x41   : > { %4888 = vrot.lane.b32.xlu0 %v4887_v47, %s5564_s18  ;;  %v467_v59 = vor.u32 %v466_v49, %v463_v40  ;;  %v482_v60 = vrot.slane %v480_v46, 5  ;;  %v535_v0 = vrot.slane %v533_v51, 4  ;;  %v536_v3 = vshll.u32 %v207_v35, 16 }
  0x42   : > { %v507_v5 = vsel %vm5635_vm2, %v502_v52, %v506_v34  ;;  %v477_v7 = vor.u32 %v476_v57, %v472_v54  ;;  %v542_v8 = vshll.u32 %v5758_v50, 16  ;;  %v546_v11 = vshrl.u32 %v5758_v50, 16  ;;  %v211_v34 = vld [vmem:[%s5607_s17 + $0x9c] sm:$0xf]  ;;  %v5788_v57 = vld [vmem:[%s5607_s17 + $0xa0] sm:$0xf] }
  0x43   : > { %v703_v13 = vunpack.c.l.bf16 %v507_v5  ;;  %v468_v14 = vrot.slane %v467_v59, 4  ;;  %v538_v15 = vrot.slane %v536_v3, 5  ;;  %v552_v17 = vshll.u32 %v5761_v58, 16  ;;  %v5791_v59 = vld [vmem:[%s5607_s17 + $0xa4] sm:$0x1] }
  0x44   : > { %v478_v18 = vrot.slane %v477_v7, 4  ;;  %v544_v19 = vrot.slane %v542_v8, 5  ;;  %v548_v20 = vrot.slane %v546_v11, 4  ;;  %v509_v22 = vshrl.u32 %v205_v4, 16  ;;  %v209_v5 = vld [vmem:[%s5607_s17 + $0x90] sm:$0xf] }
  0x45   : > { %v4902_v24 = vpack.i.bf16 %v703_v13, %v702_v53  ;;  %v473_v27 = vsel %vm5635_vm2, %v468_v14, %v472_v54  ;;  %v539_v30 = vor.u32 %v538_v15, %v535_v0  ;;  %v554_v32 = vrot.slane %v552_v17, 5 }
  0x46   : > { %v483_v35 = vsel %vm5635_vm2, %v478_v18, %v482_v60  ;;  %v700_v38 = vunpack.c.l.bf16 %v473_v27  ;;  %v549_v39 = vor.u32 %v548_v20, %v544_v19  ;;  %v511_v40 = vrot.slane %v509_v22, 4 }
  0x47   : > { %4903 = vrot.lane.b32.xlu1 %v4902_v24, %s5564_s18  ;;  %v701_v41 = vunpack.c.l.bf16 %v483_v35  ;;  %v540_v42 = vrot.slane %v539_v30, 4  ;;  %v512_v44 = vshll.u32 %v205_v4, 16  ;;  %v518_v45 = vshll.u32 %v5771_v21, 16  ;;  %v5801_v24 = vld [vmem:[%s5607_s17 + $0x94] sm:$0xf] }
  0x48   : > { %v550_v46 = vrot.slane %v549_v39, 4  ;;  %v522_v47 = vshrl.u32 %v5771_v21, 16  ;;  %v528_v48 = vshll.u32 %v5776_v33, 16  ;;  %v581_v49 = vshrl.u32 %v211_v34, 16 }
  0x49   : > { %v4897_v51 = vpack.i.bf16 %v701_v41, %v700_v38  ;;  %v545_v52 = vsel %vm5635_vm2, %v540_v42, %v544_v19  ;;  %v514_v53 = vrot.slane %v512_v44, 5  ;;  %v520_v54 = vrot.slane %v518_v45, 5  ;;  %v215_v44 = vld [vmem:[%s5607_s17 + $0xb4] sm:$0xf] }
  0x4a   : > { %v555_v60 = vsel %vm5635_vm2, %v550_v46, %v554_v32  ;;  %v706_v0 = vunpack.c.l.bf16 %v545_v52  ;;  %v524_v3 = vrot.slane %v522_v47, 4  ;;  %v530_v4 = vrot.slane %v528_v48, 5 }
  0x4b   : > { %4898 = vrot.lane.b32.xlu0 %v4897_v51, %s5564_s18  ;;  %v707_v7 = vunpack.c.l.bf16 %v555_v60  ;;  %v515_v8 = vor.u32 %v514_v53, %v511_v40  ;;  %v583_v11 = vrot.slane %v581_v49, 4  ;;  %v584_v13 = vshll.u32 %v211_v34, 16  ;;  %v5807_v40 = vld [vmem:[%s5607_s17 + $0x98] sm:$0x1] }
  0x4c   : > { %v525_v14 = vor.u32 %v524_v3, %v520_v54  ;;  %v590_v15 = vshll.u32 %v5788_v57, 16  ;;  %v594_v17 = vshrl.u32 %v5788_v57, 16  ;;  %v600_v18 = vshll.u32 %v5791_v59, 16  ;;  %v5816_v3 = vld [vmem:[%s5607_s17 + $0xb8] sm:$0xf] }
  0x4d   : > { %v4912_v19 = vpack.i.bf16 %v707_v7, %v706_v0  ;;  %v516_v20 = vrot.slane %v515_v8, 4  ;;  %v586_v22 = vrot.slane %v584_v13, 5  ;;  %v557_v27 = vshrl.u32 %v209_v5, 16  ;;  %v5821_v13 = vld [vmem:[%s5607_s17 + $0xbc] sm:$0x1] }
  0x4e   : > { %v526_v30 = vrot.slane %v525_v14, 4  ;;  %v592_v32 = vrot.slane %v590_v15, 5  ;;  %v596_v35 = vrot.slane %v594_v17, 4  ;;  %v602_v38 = vrot.slane %v600_v18, 5  ;;  %v213_v14 = vld [vmem:[%s5607_s17 + $0xa8] sm:$0xf] }
  0x4f   : > { %4913 = vrot.lane.b32.xlu1 %v4912_v19, %s5564_s18  ;;  %v521_v34 = vsel %vm5635_vm2, %v516_v20, %v520_v54  ;;  %v587_v39 = vor.u32 %v586_v22, %v583_v11  ;;  %v559_v41 = vrot.slane %v557_v27, 4  ;;  %v560_v42 = vshll.u32 %v209_v5, 16 }
  0x50   : > { %v531_v45 = vsel %vm5635_vm2, %v526_v30, %v530_v4  ;;  %v704_v46 = vunpack.c.l.bf16 %v521_v34  ;;  %v597_v47 = vor.u32 %v596_v35, %v592_v32  ;;  %v566_v48 = vshll.u32 %v5801_v24, 16 }
  0x51   : > { %v705_v49 = vunpack.c.l.bf16 %v531_v45  ;;  %v588_v51 = vrot.slane %v587_v39, 4  ;;  %v562_v52 = vrot.slane %v560_v42, 5  ;;  %v570_v53 = vshrl.u32 %v5801_v24, 16 }
  0x52   : > { %v598_v54 = vrot.slane %v597_v47, 4  ;;  %v568_v60 = vrot.slane %v566_v48, 5  ;;  %v576_v0 = vshll.u32 %v5807_v40, 16  ;;  %v629_v4 = vshrl.u32 %v215_v44, 16  ;;  %v5836_v47 = vld [vmem:[%s5607_s17 + $0xb0] sm:$0x1] }
  0x53   : > { %v4907_v5 = vpack.i.bf16 %v705_v49, %v704_v46  ;;  %v593_v7 = vsel %vm5635_vm2, %v588_v51, %v592_v32  ;;  %v563_v8 = vor.u32 %v562_v52, %v559_v41  ;;  %v572_v11 = vrot.slane %v570_v53, 4  ;;  %v5833_v46 = vld [vmem:[%s5607_s17 + $0xac] sm:$0xf] }
  0x54   : > { %v603_v15 = vsel %vm5635_vm2, %v598_v54, %v602_v38  ;;  %v710_v17 = vunpack.c.l.bf16 %v593_v7  ;;  %v578_v18 = vrot.slane %v576_v0, 5  ;;  %v631_v19 = vrot.slane %v629_v4, 4  ;;  %v717_v52 = vld [vmem:[%s5607_s17 + $0xc] sm:$0xe] }
  0x55   : > { %4908 = vrot.lane.b32.xlu0 %v4907_v5, %s5564_s18  ;;  %v711_v20 = vunpack.c.l.bf16 %v603_v15  ;;  %v564_v22 = vrot.slane %v563_v8, 4  ;;  %v573_v27 = vor.u32 %v572_v11, %v568_v60  ;;  %v632_v30 = vshll.u32 %v215_v44, 16 }
  0x56   : > { %v638_v32 = vshll.u32 %v5816_v3, 16  ;;  %v642_v35 = vshrl.u32 %v5816_v3, 16  ;;  %v648_v34 = vshll.u32 %v5821_v13, 16  ;;  %v605_v39 = vshrl.u32 %v213_v14, 16 }
  0x57   : > { %v4922_v38 = vpack.i.bf16 %v711_v20, %v710_v17  ;;  %v569_v41 = vsel %vm5635_vm2, %v564_v22, %v568_v60  ;;  %v574_v42 = vrot.slane %v573_v27, 4  ;;  %v634_v45 = vrot.slane %v632_v30, 5 }
  0x58   : > { %v708_v48 = vunpack.c.l.bf16 %v569_v41  ;;  %v640_v49 = vrot.slane %v638_v32, 5  ;;  %v644_v44 = vrot.slane %v642_v35, 4  ;;  %v650_v51 = vrot.slane %v648_v34, 5 }
  0x59   : > { %4923 = vrot.lane.b32.xlu1 %v4922_v38, %s5564_s18  ;;  %v579_v53 = vsel %vm5635_vm2, %v574_v42, %v578_v18  ;;  %v635_v54 = vor.u32 %v634_v45, %v631_v19  ;;  %v607_v0 = vrot.slane %v605_v39, 4  ;;  %v608_v4 = vshll.u32 %v213_v14, 16  ;;  %v716_v39 = vld [vmem:[%s5607_s17] sm:$0xe] }
  0x5a   : > { %v709_v60 = vunpack.c.l.bf16 %v579_v53  ;;  %v645_v5 = vor.u32 %v644_v44, %v640_v49  ;;  %v614_v7 = vshll.u32 %v5833_v46, 16  ;;  %v618_v8 = vshrl.u32 %v5833_v46, 16 }
  0x5b   : > { %v636_v11 = vrot.slane %v635_v54, 4  ;;  %v610_v15 = vrot.slane %v608_v4, 5  ;;  %v624_v17 = vshll.u32 %v5836_v47, 16  ;;  %v4623_v20 = vrot.slane %v717_v52, 9  ;;  %v719_v4 = vld [vmem:[%s5607_s17 + $0x24] sm:$0xe] }
  0x5c   : > { %v4917_v22 = vpack.i.bf16 %v709_v60, %v708_v48  ;;  %v646_v27 = vrot.slane %v645_v5, 4  ;;  %v616_v30 = vrot.slane %v614_v7, 5  ;;  %v620_v32 = vrot.slane %v618_v8, 4  ;;  %v718_v7 = vld [vmem:[%s5607_s17 + $0x18] sm:$0xe] }
  0x5d   : > { %v641_v18 = vsel %vm5635_vm2, %v636_v11, %v640_v49  ;;  %v611_v19 = vor.u32 %v610_v15, %v607_v0  ;;  %v626_v35 = vrot.slane %v624_v17, 5  ;;  %v792_v34 = vrot.slane %v5653_v56, 5 }
  0x5e   : > { %4918 = vrot.lane.b32.xlu0 %v4917_v22, %s5564_s18  ;;  %v651_v38 = vsel %vm5635_vm2, %v646_v27, %v650_v51  ;;  %v714_v41 = vunpack.c.l.bf16 %v641_v18  ;;  %v621_v42 = vor.u32 %v620_v32, %v616_v30  ;;  %v795_v45 = vrot.slane %v5658_v62, 5 }
  0x5f   : > { %v715_v48 = vunpack.c.l.bf16 %v651_v38  ;;  %v612_v44 = vrot.slane %v611_v19, 4  ;;  %v793_v49 = vsel %vm5847_vm5, %v4623_v20, %v792_v34  ;;  %v794_v52 = vrot.slane %v792_v34, 4 }
  0x60   : > { %v622_v53 = vrot.slane %v621_v42, 4  ;;  %v929_v54 = vunpack.c.l.bf16 %v793_v49  ;;  %v4622_v56 = vrot.slane %v716_v39, 9  ;;  %v785_v0 = vrot.slane %v5621_v9, 5 }
  0x61   : > { %v4932_v60 = vpack.i.bf16 %v715_v48, %v714_v41  ;;  %v617_v51 = vsel %vm5635_vm2, %v612_v44, %v616_v30  ;;  %v796_v62 = vsel %vm5847_vm5, %v794_v52, %v795_v45  ;;  %v788_v5 = vrot.slane %v5624_v10, 5  ;;  %v721_v30 = vld [vmem:[%s5607_s17 + $0x3c] sm:$0xe] }
  0x62   : > { %v627_v8 = vsel %vm5635_vm2, %v622_v53, %v626_v35  ;;  %v712_v11 = vunpack.c.l.bf16 %v617_v51  ;;  %v930_v15 = vunpack.c.l.bf16 %v796_v62  ;;  %v786_v9 = vsel %vm5847_vm5, %v4622_v56, %v785_v0  ;;  %v723_v56 = vld [vmem:[%s5607_s17 + $0x54] sm:$0xe] }
  0x63   : > { %4933 = vrot.lane.b32.xlu1 %v4932_v60, %s5564_s18  ;;  %v713_v17 = vunpack.c.l.bf16 %v627_v8  ;;  %v787_v20 = vrot.slane %v785_v0, 4  ;;  %v927_v22 = vunpack.c.l.bf16 %v786_v9  ;;  %v4625_v27 = vrot.slane %v719_v4, 9  ;;  %v722_v8 = vld [vmem:[%s5607_s17 + $0x48] sm:$0xe] }
  0x64   : > { %v4942_v32 = vpack.i.bf16 %v930_v15, %v929_v54  ;;  %v806_v18 = vrot.slane %v5631_v25, 5  ;;  %v809_v10 = vrot.slane %v5640_v36, 5  ;;  %v4624_v19 = vrot.slane %v718_v7, 9 }
  0x65   : > { %v4927_v35 = vpack.i.bf16 %v713_v17, %v712_v11  ;;  %v789_v34 = vsel %vm5847_vm5, %v787_v20, %v788_v5  ;;  %v799_v39 = vrot.slane %v5611_v1, 5  ;;  %v802_v38 = vrot.slane %v5614_v2, 5  ;;  %v720_v2 = vld [vmem:[%s5607_s17 + $0x30] sm:$0xe] }
  0x66   : > { %v928_v41 = vunpack.c.l.bf16 %v789_v34  ;;  %v807_v42 = vsel %vm5847_vm5, %v4625_v27, %v806_v18  ;;  %v808_v45 = vrot.slane %v806_v18, 4  ;;  %v4627_v48 = vrot.slane %v721_v30, 9  ;;  %v725_v30 = vld [vmem:[%s5607_s17 + $0x6c] sm:$0xe] }
  0x67   : > { %4928 = vrot.lane.b32.xlu0 %v4927_v35, %s5564_s18  ;;  %4943 = vrot.lane.b32.xlu1 %v4942_v32, %s5565_s19  ;;  %v933_v25 = vunpack.c.l.bf16 %v807_v42  ;;  %v800_v36 = vsel %vm5847_vm5, %v4624_v19, %v799_v39  ;;  %v801_v44 = vrot.slane %v799_v39, 4  ;;  %v820_v1 = vrot.slane %v5667_v12, 5 }
  0x68   : > { %v4937_v49 = vpack.i.bf16 %v928_v41, %v927_v22  ;;  %v810_v52 = vsel %vm5847_vm5, %v808_v45, %v809_v10  ;;  %v931_v53 = vunpack.c.l.bf16 %v800_v36  ;;  %v823_v54 = vrot.slane %v5671_v16, 5 }
  0x69   : > { %v934_v0 = vunpack.c.l.bf16 %v810_v52  ;;  %v803_v4 = vsel %vm5847_vm5, %v801_v44, %v802_v38  ;;  %v821_v60 = vsel %vm5847_vm5, %v4627_v48, %v820_v1  ;;  %v822_v51 = vrot.slane %v820_v1, 4  ;;  %v727_v1 = vld [vmem:[%s5607_s17 + $0x84] sm:$0xe] }
  0x6a   : > { %v932_v62 = vunpack.c.l.bf16 %v803_v4  ;;  %v937_v12 = vunpack.c.l.bf16 %v821_v60  ;;  %v4626_v5 = vrot.slane %v720_v2, 9  ;;  %v813_v7 = vrot.slane %v5681_v37, 5  ;;  %v726_v4 = vld [vmem:[%s5607_s17 + $0x78] sm:$0xe] }
  0x6b   : > { %4938 = vrot.lane.b32.xlu0 %v4937_v49, %s5565_s19  ;;  %v4952_v11 = vpack.i.bf16 %v934_v0, %v933_v25  ;;  %v824_v16 = vsel %vm5847_vm5, %v822_v51, %v823_v54  ;;  %v816_v15 = vrot.slane %v5684_v43, 5  ;;  %v4629_v9 = vrot.slane %v723_v56, 9  ;;  %v724_v25 = vld [vmem:[%s5607_s17 + $0x60] sm:$0xe] }
  0x6c   : > { %v4947_v17 = vpack.i.bf16 %v932_v62, %v931_v53  ;;  %v938_v20 = vunpack.c.l.bf16 %v824_v16  ;;  %v814_v22 = vsel %vm5847_vm5, %v4626_v5, %v813_v7  ;;  %v815_v27 = vrot.slane %v813_v7, 4 }
  0x6d   : > { %4953 = vrot.lane.b32.xlu1 %v4952_v11, %s5565_s19  ;;  %v935_v37 = vunpack.c.l.bf16 %v814_v22  ;;  %v834_v32 = vrot.slane %v5698_v61, 5  ;;  %v837_v18 = vrot.slane %v5701_v6, 5  ;;  %v4628_v10 = vrot.slane %v722_v8, 9  ;;  %v729_v11 = vld [vmem:[%s5607_s17 + $0x9c] sm:$0xe] }
  0x6e   : > { %v4962_v19 = vpack.i.bf16 %v938_v20, %v937_v12  ;;  %v817_v43 = vsel %vm5847_vm5, %v815_v27, %v816_v15  ;;  %v827_v35 = vrot.slane %v5711_v23, 5  ;;  %v830_v34 = vrot.slane %v5716_v31, 5 }
  0x6f   : > { %4948 = vrot.lane.b32.xlu0 %v4947_v17, %s5565_s19  ;;  %v936_v39 = vunpack.c.l.bf16 %v817_v43  ;;  %v835_v38 = vsel %vm5847_vm5, %v4629_v9, %v834_v32  ;;  %v836_v61 = vrot.slane %v834_v32, 4  ;;  %v4631_v41 = vrot.slane %v725_v30, 9 }
  0x70   : > { %v941_v42 = vunpack.c.l.bf16 %v835_v38  ;;  %v828_v6 = vsel %vm5847_vm5, %v4628_v10, %v827_v35  ;;  %v829_v45 = vrot.slane %v827_v35, 4  ;;  %v848_v48 = vrot.slane %v5726_v55, 5 }
  0x71   : > { %4963 = vrot.lane.b32.xlu1 %v4962_v19, %s5565_s19  ;;  %v4957_v23 = vpack.i.bf16 %v936_v39, %v935_v37  ;;  %v838_v31 = vsel %vm5847_vm5, %v836_v61, %v837_v18  ;;  %v939_v36 = vunpack.c.l.bf16 %v828_v6  ;;  %v851_v44 = vrot.slane %v5731_v63, 5  ;;  %v728_v19 = vld [vmem:[%s5607_s17 + $0x90] sm:$0xe] }
  0x72   : > { %v942_v2 = vunpack.c.l.bf16 %v838_v31  ;;  %v831_v49 = vsel %vm5847_vm5, %v829_v45, %v830_v34  ;;  %v849_v52 = vsel %vm5847_vm5, %v4631_v41, %v848_v48  ;;  %v850_v55 = vrot.slane %v848_v48, 4  ;;  %v731_v34 = vld [vmem:[%s5607_s17 + $0xb4] sm:$0xe]  ;;  %v730_v48 = vld [vmem:[%s5607_s17 + $0xa8] sm:$0xe] }
  0x73   : > { %4958 = vrot.lane.b32.xlu0 %v4957_v23, %s5565_s19  ;;  %v940_v53 = vunpack.c.l.bf16 %v831_v49  ;;  %v945_v54 = vunpack.c.l.bf16 %v849_v52  ;;  %v4630_v56 = vrot.slane %v724_v25, 9  ;;  %v841_v0 = vrot.slane %v5743_v28, 5 }
  0x74   : > { %v4972_v60 = vpack.i.bf16 %v942_v2, %v941_v42  ;;  %v852_v63 = vsel %vm5847_vm5, %v850_v55, %v851_v44  ;;  %v844_v51 = vrot.slane %v5746_v29, 5  ;;  %v4633_v62 = vrot.slane %v727_v1, 9 }
  0x75   : > { %v4967_v12 = vpack.i.bf16 %v940_v53, %v939_v36  ;;  %v946_v5 = vunpack.c.l.bf16 %v852_v63  ;;  %v842_v7 = vsel %vm5847_vm5, %v4630_v56, %v841_v0  ;;  %v843_v8 = vrot.slane %v841_v0, 4 }
  0x76   : > { %4973 = vrot.lane.b32.xlu1 %v4972_v60, %s5565_s19  ;;  %v943_v16 = vunpack.c.l.bf16 %v842_v7  ;;  %v862_v28 = vrot.slane %v5758_v50, 5  ;;  %v865_v15 = vrot.slane %v5761_v58, 5  ;;  %v4632_v9 = vrot.slane %v726_v4, 9  ;;  %v5980_v60 = vld [vmem:[%s5607_s17 + $0x18] sm:$0xf] }
  0x77   : > { %4968 = vrot.lane.b32.xlu0 %v4967_v12, %s5565_s19  ;;  %v4982_v29 = vpack.i.bf16 %v946_v5, %v945_v54  ;;  %v845_v17 = vsel %vm5847_vm5, %v843_v8, %v844_v51  ;;  %v855_v20 = vrot.slane %v5771_v21, 5  ;;  %v858_v22 = vrot.slane %v5776_v33, 5  ;;  %v5988_v12 = vld [vmem:[%s5607_s17 + $0xc] sm:$0xf] }
  0x78   : > { %v944_v27 = vunpack.c.l.bf16 %v845_v17  ;;  %v863_v30 = vsel %vm5847_vm5, %v4633_v62, %v862_v28  ;;  %v864_v50 = vrot.slane %v862_v28, 4  ;;  %v4635_v37 = vrot.slane %v729_v11, 9  ;;  %v6004_v17 = vld [vmem:[%s5607_s17 + $0x30] sm:$0xf] }
  0x79   : > { %v949_v32 = vunpack.c.l.bf16 %v863_v30  ;;  %v856_v58 = vsel %vm5847_vm5, %v4632_v9, %v855_v20  ;;  %v857_v18 = vrot.slane %v855_v20, 4  ;;  %v876_v10 = vrot.slane %v5788_v57, 5  ;;  %v6007_v20 = vld [vmem:[%s5607_s17 + $0x34] sm:$0xf]  ;;  %v6013_v30 = vld [vmem:[%s5607_s17 + $0x28] sm:$0xf] }
  0x7a   : > { %4983 = vrot.lane.b32.xlu1 %v4982_v29, %s5565_s19  ;;  %v4977_v21 = vpack.i.bf16 %v944_v27, %v943_v16  ;;  %v866_v33 = vsel %vm5847_vm5, %v864_v50, %v865_v15  ;;  %v947_v43 = vunpack.c.l.bf16 %v856_v58  ;;  %v879_v35 = vrot.slane %v5791_v59, 5  ;;  %v6010_v27 = vld [vmem:[%s5607_s17 + $0x24] sm:$0xf] }
  0x7b   : > { %v950_v39 = vunpack.c.l.bf16 %v866_v33  ;;  %v859_v38 = vsel %vm5847_vm5, %v857_v18, %v858_v22  ;;  %v877_v61 = vsel %vm5847_vm5, %v4635_v37, %v876_v10  ;;  %v878_v57 = vrot.slane %v876_v10, 4  ;;  %v6025_v33 = vld [vmem:[%s5607_s17 + $0x4c] sm:$0xf] }
  0x7c   : > { %4978 = vrot.lane.b32.xlu0 %v4977_v21, %s5565_s19  ;;  %v948_v41 = vunpack.c.l.bf16 %v859_v38  ;;  %v953_v42 = vunpack.c.l.bf16 %v877_v61  ;;  %v4634_v6 = vrot.slane %v728_v19, 9  ;;  %v869_v45 = vrot.slane %v5801_v24, 5  ;;  %v6022_v21 = vld [vmem:[%s5607_s17 + $0x48] sm:$0xf]  ;;  %8546 = vst [vmem:[#allocation2_spill] sm:$0xff] %v6025_v33 }
  0x7d   : > { %v4992_v25 = vpack.i.bf16 %v950_v39, %v949_v32  ;;  %v880_v59 = vsel %vm5847_vm5, %v878_v57, %v879_v35  ;;  %v872_v23 = vrot.slane %v5807_v40, 5  ;;  %v4637_v31 = vrot.slane %v731_v34, 9  ;;  %v6031_v35 = vld [vmem:[%s5607_s17 + $0x40] sm:$0xf] }
  0x7e   : > { %v4987_v36 = vpack.i.bf16 %v948_v41, %v947_v43  ;;  %v954_v44 = vunpack.c.l.bf16 %v880_v59  ;;  %v870_v1 = vsel %vm5847_vm5, %v4634_v6, %v869_v45  ;;  %v871_v2 = vrot.slane %v869_v45, 4  ;;  %v6028_v43 = vld [vmem:[%s5607_s17 + $0x3c] sm:$0xf]  ;;  %v6043_v6 = vld [vmem:[%s5607_s17 + $0x64] sm:$0xf] }
  0x7f   : > { %4993 = vrot.lane.b32.xlu1 %v4992_v25, %s5565_s19  ;;  %v951_v49 = vunpack.c.l.bf16 %v870_v1  ;;  %v890_v24 = vrot.slane %v5816_v3, 5  ;;  %v893_v52 = vrot.slane %v5821_v13, 5  ;;  %v4636_v55 = vrot.slane %v730_v48, 9  ;;  %v5983_v13 = vld [vmem:[%s5607_s17 + $0x1c] sm:$0xf]  ;;  %8547 = vst [vmem:[#allocation3_spill] sm:$0xff] %v6043_v6 }
  0x80   : > { %4988 = vrot.lane.b32.xlu0 %v4987_v36, %s5565_s19  ;;  %v5002_v40 = vpack.i.bf16 %v954_v44, %v953_v42  ;;  %v873_v53 = vsel %vm5847_vm5, %v871_v2, %v872_v23  ;;  %v883_v54 = vrot.slane %v5833_v46, 5  ;;  %v886_v56 = vrot.slane %v5836_v47, 5  ;;  %v5991_v46 = vld [vmem:[%s5607_s17 + $0x10] sm:$0xf]  ;;  %v6040_v42 = vld [vmem:[%s5607_s17 + $0x60] sm:$0xf] }
  0x81   : > { %v952_v0 = vunpack.c.l.bf16 %v873_v53  ;;  %v891_v4 = vsel %vm5847_vm5, %v4637_v31, %v890_v24  ;;  %v892_v3 = vrot.slane %v890_v24, 4  ;;  %v994_v16 = vunpack.c.l.bf16 %v5980_v60  ;;  %v6046_v45 = vld [vmem:[%s5607_s17 + $0x54] sm:$0xf]  ;;  %v6049_v48 = vld [vmem:[%s5607_s17 + $0x58] sm:$0xf] }
  0x82   : > { %v957_v63 = vunpack.c.l.bf16 %v891_v4  ;;  %v884_v51 = vsel %vm5847_vm5, %v4636_v55, %v883_v54  ;;  %v885_v62 = vrot.slane %v883_v54, 4  ;;  %v995_v28 = vunpack.c.l.bf16 %v5983_v13  ;;  %8548 = vst [vmem:[#allocation4_spill] sm:$0xff] %v6049_v48  ;;  %v6058_v1 = vld [vmem:[%s5607_s17 + $0x78] sm:$0xf]  ;;  %v6061_v2 = vld [vmem:[%s5607_s17 + $0x7c] sm:$0xf] }
  0x83   : > { %5003 = vrot.lane.b32.xlu1 %v5002_v40, %s5565_s19  ;;  %v4997_v47 = vpack.i.bf16 %v952_v0, %v951_v49  ;;  %v894_v5 = vsel %vm5847_vm5, %v892_v3, %v893_v52  ;;  %v955_v7 = vunpack.c.l.bf16 %v884_v51  ;;  %v992_v9 = vunpack.c.l.bf16 %v5988_v12  ;;  %v6064_v49 = vld [vmem:[%s5607_s17 + $0x6c] sm:$0xf]  ;;  %v6067_v24 = vld [vmem:[%s5607_s17 + $0x70] sm:$0xf]  ;;  %v6079_v4 = vld [vmem:[%s5607_s17 + $0x94] sm:$0xf] }
  0x84   : > { %v958_v8 = vunpack.c.l.bf16 %v894_v5  ;;  %v887_v11 = vsel %vm5847_vm5, %v885_v62, %v886_v56  ;;  %v993_v29 = vunpack.c.l.bf16 %v5991_v46  ;;  %v5022_v37 = vpack.i.bf16 %v995_v28, %v994_v16  ;;  %v6076_v0 = vld [vmem:[%s5607_s17 + $0x90] sm:$0xf]  ;;  %v6082_v3 = vld [vmem:[%s5607_s17 + $0x84] sm:$0xf] }
  0x85   : > { %4998 = vrot.lane.b32.xlu0 %v4997_v47, %s5565_s19  ;;  %v956_v15 = vunpack.c.l.bf16 %v887_v11  ;;  %v998_v32 = vunpack.c.l.bf16 %v6004_v17  ;;  %v999_v58 = vunpack.c.l.bf16 %v6007_v20  ;;  %v996_v10 = vunpack.c.l.bf16 %v6010_v27  ;;  %v6088_v47 = vld [vmem:[%s5607_s17 + $0x88] sm:$0xf] }
  0x86   : > { %v5012_v22 = vpack.i.bf16 %v958_v8, %v957_v63  ;;  %v5017_v18 = vpack.i.bf16 %v993_v29, %v992_v9  ;;  %v997_v19 = vunpack.c.l.bf16 %v6013_v30  ;;  %v1002_v39 = vunpack.c.l.bf16 %v6022_v21  ;;  %v6101_v29 = vld [vmem:[%s5607_s17 + $0xa8] sm:$0xf] }
  0x87   : > { %v5007_v50 = vpack.i.bf16 %v956_v15, %v955_v7  ;;  %v5032_v34 = vpack.i.bf16 %v999_v58, %v998_v32  ;;  %v1003_v38 = vunpack.c.l.bf16 %v6025_v33  ;;  %v1000_v57 = vunpack.c.l.bf16 %v6028_v43 }
  0x88   : > { %5013 = vrot.lane.b32.xlu1 %v5012_v22, %s5565_s19  ;;  %v5027_v61 = vpack.i.bf16 %v997_v19, %v996_v10  ;;  %v1001_v41 = vunpack.c.l.bf16 %v6031_v35  ;;  %v1006_v59 = vunpack.c.l.bf16 %v6040_v42  ;;  %v1007_v23 = vunpack.c.l.bf16 %v6043_v6  ;;  %v6107_v22 = vld [vmem:[%s5607_s17 + $0x9c] sm:$0xf] }
  0x89   : > { %5008 = vrot.lane.b32.xlu0 %v5007_v50, %s5565_s19  ;;  %v5042_v25 = vpack.i.bf16 %v1003_v38, %v1002_v39  ;;  %v1004_v36 = vunpack.c.l.bf16 %v6046_v45  ;;  %v1005_v44 = vunpack.c.l.bf16 %v6049_v48  ;;  %v1010_v55 = vunpack.c.l.bf16 %v6058_v1 }
  0x8a   : > { %v5037_v31 = vpack.i.bf16 %v1001_v41, %v1000_v57  ;;  %v5052_v52 = vpack.i.bf16 %v1007_v23, %v1006_v59  ;;  %v1011_v40 = vunpack.c.l.bf16 %v6061_v2  ;;  %v1008_v54 = vunpack.c.l.bf16 %v6064_v49 }
  0x8b   : > { %v5047_v53 = vpack.i.bf16 %v1005_v44, %v1004_v36  ;;  %v1009_v56 = vunpack.c.l.bf16 %v6067_v24  ;;  %v1065_v63 = vshrl.u32 %v5980_v60, 16  ;;  %v1068_v51 = vshll.u32 %v5980_v60, 16  ;;  %v6135_v36 = vld [vmem:[%s5607_s17 + $0xc4] sm:$0xf] }
  0x8c   : > { %5023 = vrot.lane.b32.xlu1 %v5022_v37, %s5566_s20  ;;  %v1041_v62 = vshrl.u32 %v5988_v12, 16  ;;  %v1044_v5 = vshll.u32 %v5988_v12, 16  ;;  %v1113_v7 = vshrl.u32 %v6004_v17, 16  ;;  %v1116_v8 = vshll.u32 %v6004_v17, 16  ;;  %v6104_v17 = vld [vmem:[%s5607_s17 + $0xac] sm:$0xf] }
  0x8d   : > { %5018 = vrot.lane.b32.xlu0 %v5017_v18, %s5566_s20  ;;  %v1089_v11 = vshrl.u32 %v6010_v27, 16  ;;  %v5062_v16 = vpack.i.bf16 %v1011_v40, %v1010_v55  ;;  %v1014_v60 = vunpack.c.l.bf16 %v6076_v0  ;;  %v1015_v28 = vunpack.c.l.bf16 %v6079_v4  ;;  %8549 = vst [vmem:[#allocation5_spill] sm:$0xff] %v6104_v17  ;;  %v6113_v18 = vld [vmem:[%s5607_s17 + $0xa0] sm:$0xf]  ;;  %8550 = vst [vmem:[#allocation6_spill] sm:$0xff] %v6135_v36 }
  0x8e   : > { %v5057_v15 = vpack.i.bf16 %v1009_v56, %v1008_v54  ;;  %v1012_v9 = vunpack.c.l.bf16 %v6082_v3  ;;  %v1013_v12 = vunpack.c.l.bf16 %v6088_v47  ;;  %v1067_v50 = vrot.slane %v1065_v63, 4  ;;  %v6143_v40 = vld [vmem:[%s5607_s17 + $0xb4] sm:$0xf] }
  0x8f   : > { %v1070_v37 = vrot.slane %v1068_v51, 5  ;;  %v6109_v32 = vrot.slane %v1041_v62, 4  ;;  %v1092_v58 = vshll.u32 %v6010_v27, 16  ;;  %v6115_v10 = vrot.slane %v1044_v5, 5  ;;  %v6150_v51 = vld [vmem:[%s5607_s17 + $0xb8] sm:$0xf] }
  0x90   : > { %5033 = vrot.lane.b32.xlu1 %v5032_v34, %s5566_s20  ;;  %v6117_v19 = vrot.slane %v1113_v7, 4  ;;  %v6119_v34 = vrot.slane %v1116_v8, 5  ;;  %v6121_v39 = vrot.slane %v1089_v11, 4  ;;  %v1161_v38 = vshrl.u32 %v6022_v21, 16  ;;  %8551 = vst [vmem:[#allocation7_spill] sm:$0xff] %v6150_v51 }
  0x91   : > { %5028 = vrot.lane.b32.xlu0 %v5027_v61, %s5566_s20  ;;  %v5072_v61 = vpack.i.bf16 %v1015_v28, %v1014_v60  ;;  %v1018_v27 = vunpack.c.l.bf16 %v6101_v29  ;;  %v1019_v57 = vunpack.c.l.bf16 %v6104_v17  ;;  %v1164_v41 = vshll.u32 %v6022_v21, 16 }
  0x92   : > { %v1016_v59 = vunpack.c.l.bf16 %v6107_v22  ;;  %v1017_v23 = vunpack.c.l.bf16 %v6113_v18  ;;  %v6137_v44 = vrot.slane %v1092_v58, 5  ;;  %v1140_v55 = vshll.u32 %v6028_v43, 16 }
  0x93   : > { %v1209_v21 = vshrl.u32 %v6040_v42, 16  ;;  %v1185_v54 = vshrl.u32 %v6046_v45, 16  ;;  %v1188_v56 = vshll.u32 %v6046_v45, 16  ;;  %v1257_v63 = vshrl.u32 %v6058_v1, 16 }
  0x94   : > { %5043 = vrot.lane.b32.xlu1 %v5042_v25, %s5566_s20  ;;  %v5067_v25 = vpack.i.bf16 %v1013_v12, %v1012_v9  ;;  %v1260_v62 = vshll.u32 %v6058_v1, 16  ;;  %v5082_v5 = vpack.i.bf16 %v1019_v57, %v1018_v27  ;;  %v1023_v7 = vunpack.c.l.bf16 %v6135_v36 }
  0x95   : > { %5038 = vrot.lane.b32.xlu0 %v5037_v31, %s5566_s20  ;;  %v6132_v31 = vld [vmem:[%s5607_s17 + $0xc0] sm:$0xf]  ;;  %v6156_v8 = vrot.slane %v1161_v38, 4  ;;  %v5077_v45 = vpack.i.bf16 %v1017_v23, %v1016_v59  ;;  %v1020_v11 = vunpack.c.l.bf16 %v6143_v40  ;;  %v6164_v1 = vrot.slane %v1140_v55, 5  ;;  %v6189_v55 = vld [vmem:[%s5607_s17 + $0x14] sm:$0x1] }
  0x96   : > { %v6166_v60 = vrot.slane %v1209_v21, 4  ;;  %v1021_v28 = vunpack.c.l.bf16 %v6150_v51  ;;  %v6171_v9 = vrot.slane %v1185_v54, 4  ;;  %v6173_v12 = vrot.slane %v1188_v56, 5  ;;  %v6178_v38 = vld [vmem:[%s5607_s17 + $0x20] sm:$0x1] }
  0x97   : > { %v6175_v58 = vrot.slane %v1257_v63, 4  ;;  %v1233_v27 = vshrl.u32 %v6064_v49, 16  ;;  %v1074_v23 = vshll.u32 %v5983_v13, 16  ;;  %v1305_v21 = vshrl.u32 %v6076_v0, 16 }
  0x98   : > { %5053 = vrot.lane.b32.xlu1 %v5052_v52, %s5566_s20  ;;  %v1137_v52 = vshrl.u32 %v6028_v43, 16  ;;  %v1022_v43 = vunpack.c.l.bf16 %v6132_v31  ;;  %v5087_v59 = vpack.i.bf16 %v1021_v28, %v1020_v11  ;;  %v1084_v54 = vshll.u32 %v6178_v38, 16  ;;  %v4673_v11 = vld [vmem:[%s5607_s17 + $0x38] sm:$0x1] }
  0x99   : > { %5048 = vrot.lane.b32.xlu0 %v5047_v53, %s5566_s20  ;;  %v1212_v53 = vshll.u32 %v6040_v42, 16  ;;  %v6158_v42 = vrot.slane %v1164_v41, 5  ;;  %v1071_v41 = vor.u32 %v1070_v37, %v1067_v50  ;;  %v1047_v50 = vor.u32 %v6115_v10, %v6109_v32 }
  0x9a   : > { %v5092_v57 = vpack.i.bf16 %v1023_v7, %v1022_v43  ;;  %v1076_v37 = vrot.slane %v1074_v23, 5  ;;  %v1050_v56 = vshll.u32 %v5991_v46, 16  ;;  %v1054_v63 = vshrl.u32 %v5991_v46, 16 }
  0x9b   : > { %v1060_v43 = vshll.u32 %v6189_v55, 16 }
  0x9c   : > { %5063 = vrot.lane.b32.xlu1 %v5062_v16, %s5566_s20  ;;  %v6162_v16 = vrot.slane %v1137_v52, 4  ;;  %v1078_v52 = vshrl.u32 %v5983_v13, 16  ;;  %v1086_v13 = vrot.slane %v1084_v54, 5  ;;  %v1052_v10 = vrot.slane %v1050_v56, 5 }
  0x9d   : > { %5058 = vrot.lane.b32.xlu0 %v5057_v15, %s5566_s20  ;;  %v6169_v15 = vrot.slane %v1212_v53, 5  ;;  %v1072_v53 = vrot.slane %v1071_v41, 4  ;;  %v1062_v41 = vrot.slane %v1060_v43, 5 }
  0x9f   : > { %v1077_v7 = vsel %vm5635_vm2, %v1072_v53, %v1076_v37  ;;  %v1126_v53 = vshrl.u32 %v6007_v20, 16 }
  0xa0   : > { %5073 = vrot.lane.b32.xlu1 %v5072_v61, %s5566_s20  ;;  %v6180_v61 = vrot.slane %v1260_v62, 5  ;;  %v6197_v62 = vrot.slane %v1233_v27, 4  ;;  %v1119_v27 = vor.u32 %v6119_v34, %v6117_v19  ;;  %v1458_v54 = vunpack.c.l.bf16 %v1077_v7 }
  0xa1   : > { %5068 = vrot.lane.b32.xlu0 %v5067_v25, %s5566_s20  ;;  %v1236_v25 = vshll.u32 %v6064_v49, 16  ;;  %v1080_v49 = vrot.slane %v1078_v52, 4  ;;  %v1095_v19 = vor.u32 %v6137_v44, %v6121_v39  ;;  %v1102_v39 = vshrl.u32 %v6013_v30, 16 }
  0xa3   : > { %v1081_v32 = vor.u32 %v1080_v49, %v1076_v37  ;;  %v6205_v28 = vrot.slane %v1236_v25, 5  ;;  %v1132_v49 = vshll.u32 %v4673_v11, 16 }
  0xa4   : > { %5083 = vrot.lane.b32.xlu1 %v5082_v5, %s5566_s20  ;;  %v1048_v5 = vrot.slane %v1047_v50, 4  ;;  %v1120_v50 = vrot.slane %v1119_v27, 4 }
  0xa5   : > { %5078 = vrot.lane.b32.xlu0 %v5077_v45, %s5566_s20  ;;  %v1056_v45 = vrot.slane %v1054_v63, 4  ;;  %v1082_v23 = vrot.slane %v1081_v32, 4  ;;  %v1128_v63 = vrot.slane %v1126_v53, 4  ;;  %v4672_v32 = vld [vmem:[%s5607_s17 + $0x2c] sm:$0x1] }
  0xa7   : > { %v1057_v52 = vor.u32 %v1056_v45, %v1052_v10  ;;  %v1087_v25 = vsel %vm5635_vm2, %v1082_v23, %v1086_v13  ;;  %v1134_v45 = vrot.slane %v1132_v49, 5  ;;  %v1096_v13 = vrot.slane %v1095_v19, 4 }
  0xa8   : > { %5093 = vrot.lane.b32.xlu1 %v5092_v57, %s5566_s20  ;;  %v1122_v57 = vshll.u32 %v6007_v20, 16  ;;  %v1459_v34 = vunpack.c.l.bf16 %v1087_v25  ;;  %v1098_v20 = vshll.u32 %v6013_v30, 16  ;;  %v1108_v23 = vshll.u32 %v4672_v32, 16 }
  0xa9   : > { %5088 = vrot.lane.b32.xlu0 %v5087_v59, %s5566_s20  ;;  %v1053_v59 = vsel %vm5635_vm2, %v1048_v5, %v1052_v10  ;;  %v1058_v56 = vrot.slane %v1057_v52, 4  ;;  %v1170_v52 = vshll.u32 %v6025_v33, 16  ;;  %v1143_v32 = vor.u32 %v6164_v1, %v6162_v16 }
  0xaa   : > { %v1124_v37 = vrot.slane %v1122_v57, 5  ;;  %v1456_v43 = vunpack.c.l.bf16 %v1053_v59  ;;  %v5102_v11 = vpack.i.bf16 %v1459_v34, %v1458_v54  ;;  %v1100_v57 = vrot.slane %v1098_v20, 5 }
  0xab   : > { %v1063_v7 = vsel %vm5635_vm2, %v1058_v56, %v1062_v41  ;;  %v1167_v59 = vor.u32 %v6158_v42, %v6156_v8  ;;  %v1174_v54 = vshrl.u32 %v6025_v33, 16  ;;  %v1110_v8 = vrot.slane %v1108_v23, 5 }
  0xac   : > { %v1125_v5 = vsel %vm5635_vm2, %v1120_v50, %v1124_v37  ;;  %v1129_v10 = vor.u32 %v1128_v63, %v1124_v37  ;;  %v1457_v27 = vunpack.c.l.bf16 %v1063_v7  ;;  %5103 = vrot.lane.b32.xlu1 %v5102_v11, %s5567_s21  ;;  %v1104_v50 = vrot.slane %v1102_v39, 4  ;;  %v6229_v37 = vld [vmem:[%s5607_s17 + $0x50] sm:$0x1] }
  0xad   : > { %v1462_v53 = vunpack.c.l.bf16 %v1125_v5  ;;  %8552 = vst [vmem:[#allocation8_spill] sm:$0xff] %v6229_v37  ;;  %v1101_v49 = vsel %vm5635_vm2, %v1096_v13, %v1100_v57  ;;  %v1168_v42 = vrot.slane %v1167_v59, 4  ;;  %v1172_v63 = vrot.slane %v1170_v52, 5  ;;  %v4674_v5 = vld [vmem:[%s5607_s17 + $0x44] sm:$0x1] }
  0xae   : > { %v1130_v44 = vrot.slane %v1129_v10, 4  ;;  %v5097_v41 = vpack.i.bf16 %v1457_v27, %v1456_v43  ;;  %v1105_v56 = vor.u32 %v1104_v50, %v1100_v57  ;;  %v1176_v19 = vrot.slane %v1174_v54, 4 }
  0xaf   : > { %v1308_v34 = vshll.u32 %v6076_v0, 16  ;;  %v1180_v43 = vshll.u32 %v6229_v37, 16  ;;  %v1146_v20 = vshll.u32 %v6031_v35, 16  ;;  %v1460_v11 = vunpack.c.l.bf16 %v1101_v49 }
  0xb0   : > { %v1135_v30 = vsel %vm5635_vm2, %v1130_v44, %v1134_v45  ;;  %5098 = vrot.lane.b32.xlu0 %v5097_v41, %s5567_s21  ;;  %v1106_v10 = vrot.slane %v1105_v56, 4  ;;  %v1173_v45 = vsel %vm5635_vm2, %v1168_v42, %v1172_v63  ;;  %v1177_v13 = vor.u32 %v1176_v19, %v1172_v63  ;;  %v6250_v41 = vld [vmem:[%s5607_s17 + $0x68] sm:$0x1] }
  0xb1   : > { %v1463_v25 = vunpack.c.l.bf16 %v1135_v30  ;;  %v1182_v27 = vrot.slane %v1180_v43, 5  ;;  %v1144_v57 = vrot.slane %v1143_v32, 4  ;;  %v1148_v39 = vrot.slane %v1146_v20, 5  ;;  %8553 = vst [vmem:[#allocation9_spill] sm:$0xff] %v6250_v41  ;;  %v6266_v43 = vld [vmem:[%s5607_s17 + $0x5c] sm:$0x1] }
  0xb2   : > { %v1111_v44 = vsel %vm5635_vm2, %v1106_v10, %v1110_v8  ;;  %v1178_v23 = vrot.slane %v1177_v13, 4  ;;  %v1150_v16 = vshrl.u32 %v6031_v35, 16  ;;  %v1156_v1 = vshll.u32 %v4674_v5, 16  ;;  %8554 = vst [vmem:[#allocation10_spill] sm:$0xff] %v6266_v43 }
  0xb3   : > { %v5112_v7 = vpack.i.bf16 %v1463_v25, %v1462_v53  ;;  %v1461_v59 = vunpack.c.l.bf16 %v1111_v44  ;;  %v1466_v52 = vunpack.c.l.bf16 %v1173_v45  ;;  %v1215_v53 = vor.u32 %v6169_v15, %v6166_v60 }
  0xb4   : > { %v1218_v50 = vshll.u32 %v6043_v6, 16  ;;  %v6257_v54 = vrot.slane %v1305_v21, 4  ;;  %v1183_v30 = vsel %vm5635_vm2, %v1178_v23, %v1182_v27  ;;  %v1149_v35 = vsel %vm5635_vm2, %v1144_v57, %v1148_v39  ;;  %v6281_v23 = vld [vmem:[%s5607_s17 + $0x80] sm:$0x1] }
  0xb5   : > { %5113 = vrot.lane.b32.xlu1 %v5112_v7, %s5567_s21  ;;  %v1152_v49 = vrot.slane %v1150_v16, 4  ;;  %v5107_v8 = vpack.i.bf16 %v1461_v59, %v1460_v11  ;;  %v1467_v42 = vunpack.c.l.bf16 %v1183_v30  ;;  %v1158_v25 = vrot.slane %v1156_v1, 5  ;;  %v6285_v1 = vpop.permute.xlu1 %4868  ;;  %v6287_v59 = vpop.permute.xlu0 %4858 }
  0xb6   : > { %v1216_v56 = vrot.slane %v1215_v53, 4  ;;  %v1220_v19 = vrot.slane %v1218_v50, 5  ;;  %v1222_v60 = vshrl.u32 %v6043_v6, 16  ;;  %v1228_v15 = vshll.u32 %v6250_v41, 16 }
  0xb7   : > { %v1153_v63 = vor.u32 %v1152_v49, %v1148_v39  ;;  %v1281_v21 = vshrl.u32 %v6082_v3, 16  ;;  %5108 = vrot.lane.b32.xlu0 %v5107_v8, %s5567_s21  ;;  %v5122_v5 = vpack.i.bf16 %v1467_v42, %v1466_v52  ;;  %v1191_v32 = vor.u32 %v6173_v12, %v6171_v9 }
  0xb8   : > { %v1194_v20 = vshll.u32 %v6049_v48, 16  ;;  %v1464_v10 = vunpack.c.l.bf16 %v1149_v35  ;;  %v1221_v45 = vsel %vm5635_vm2, %v1216_v56, %v1220_v19  ;;  %v1224_v13 = vrot.slane %v1222_v60, 4 }
  0xb9   : > { %v1154_v7 = vrot.slane %v1153_v63, 4  ;;  %5123 = vrot.lane.b32.xlu1 %v5122_v5, %s5567_s21  ;;  %v1192_v11 = vrot.slane %v1191_v32, 4  ;;  %v1198_v57 = vshrl.u32 %v6049_v48, 16  ;;  %v1204_v39 = vshll.u32 %v6266_v43, 16 }
  0xba   : > { %v1196_v27 = vrot.slane %v1194_v20, 5  ;;  %v1225_v9 = vor.u32 %v1224_v13, %v1220_v19  ;;  %v1230_v12 = vrot.slane %v1228_v15, 5  ;;  %v1263_v16 = vor.u32 %v6180_v61, %v6175_v58 }
  0xbb   : > { %v1159_v44 = vsel %vm5635_vm2, %v1154_v7, %v1158_v25  ;;  %v1470_v53 = vunpack.c.l.bf16 %v1221_v45  ;;  %v1200_v30 = vrot.slane %v1198_v57, 4  ;;  %v1206_v49 = vrot.slane %v1204_v39, 5 }
  0xbc   : > { %v1465_v52 = vunpack.c.l.bf16 %v1159_v44  ;;  %v1197_v50 = vsel %vm5635_vm2, %v1192_v11, %v1196_v27  ;;  %v1226_v35 = vrot.slane %v1225_v9, 4  ;;  %v1264_v8 = vrot.slane %v1263_v16, 4 }
  0xbd   : > { %v1266_v42 = vshll.u32 %v6061_v2, 16  ;;  %v1201_v56 = vor.u32 %v1200_v30, %v1196_v27  ;;  %v1270_v58 = vshrl.u32 %v6061_v2, 16  ;;  %v1276_v61 = vshll.u32 %v6281_v23, 16  ;;  %v6306_v27 = vpop.permute.xlu1 %4873 }
  0xbe   : > { %v5117_v25 = vpack.i.bf16 %v1465_v52, %v1464_v10  ;;  %v1231_v63 = vsel %vm5635_vm2, %v1226_v35, %v1230_v12  ;;  %v1239_v60 = vor.u32 %v6205_v28, %v6197_v62  ;;  %v1242_v15 = vshll.u32 %v6067_v24, 16  ;;  %v6301_v10 = vld [vmem:[%s5607_s17 + $0x74] sm:$0x1]  ;;  %v6308_v62 = vpop.permute.xlu0 %4863 }
  0xbf   : > { %v1268_v19 = vrot.slane %v1266_v42, 5  ;;  %v1471_v5 = vunpack.c.l.bf16 %v1231_v63  ;;  %v1202_v32 = vrot.slane %v1201_v56, 4  ;;  %v1468_v20 = vunpack.c.l.bf16 %v1197_v50  ;;  %v4766_v56 = vld [vmem:[%s5607_s17 + $0x18] sm:$0xe] }
  0xc0   : > { %5118 = vrot.lane.b32.xlu0 %v5117_v25, %s5567_s21  ;;  %v1272_v7 = vrot.slane %v1270_v58, 4  ;;  %v1240_v45 = vrot.slane %v1239_v60, 4  ;;  %v1244_v13 = vrot.slane %v1242_v15, 5  ;;  %v1246_v11 = vshrl.u32 %v6067_v24, 16 }
  0xc1   : > { %v1269_v2 = vsel %vm5635_vm2, %v1264_v8, %v1268_v19  ;;  %v5132_v28 = vpack.i.bf16 %v1471_v5, %v1470_v53  ;;  %v1207_v57 = vsel %vm5635_vm2, %v1202_v32, %v1206_v49  ;;  %v1278_v44 = vrot.slane %v1276_v61, 5 }
  0xc2   : > { %v1273_v39 = vor.u32 %v1272_v7, %v1268_v19  ;;  %v1284_v9 = vshll.u32 %v6082_v3, 16  ;;  %v1469_v12 = vunpack.c.l.bf16 %v1207_v57  ;;  %v1248_v16 = vrot.slane %v1246_v11, 4  ;;  %v6326_v19 = vpop.permute.xlu1 %4883  ;;  %v6328_v60 = vpop.permute.xlu0 %4878 }
  0xc3   : > { %v1252_v52 = vshll.u32 %v6301_v10, 16  ;;  %v1310_v50 = vrot.slane %v1308_v34, 5  ;;  %v1353_v30 = vshrl.u32 %v6101_v29, 16  ;;  %5133 = vrot.lane.b32.xlu1 %v5132_v28, %s5567_s21  ;;  %v1474_v53 = vunpack.c.l.bf16 %v1269_v2  ;;  %8555 = vst [vmem:[#allocation11_spill] sm:$0xff] %v6326_v19 }
  0xc4   : > { %v1274_v35 = vrot.slane %v1273_v39, 4  ;;  %v5127_v8 = vpack.i.bf16 %v1469_v12, %v1468_v20  ;;  %v1245_v49 = vsel %vm5635_vm2, %v1240_v45, %v1244_v13  ;;  %v1249_v42 = vor.u32 %v1248_v16, %v1244_v13  ;;  %v4681_v20 = vld [vmem:[%s5607_s17 + $0x98] sm:$0x1]  ;;  %v6340_v13 = vld [vmem:[%s5607_s17 + $0x8c] sm:$0x1] }
  0xc5   : > { %v1254_v25 = vrot.slane %v1252_v52, 5  ;;  %v1283_v0 = vrot.slane %v1281_v21, 4  ;;  %v1286_v34 = vrot.slane %v1284_v9, 5  ;;  %v6330_v15 = vrot.slane %v1353_v30, 4 }
  0xc6   : > { %v1279_v58 = vsel %vm5635_vm2, %v1274_v35, %v1278_v44  ;;  %5128 = vrot.lane.b32.xlu0 %v5127_v8, %s5567_s21  ;;  %v1250_v63 = vrot.slane %v1249_v42, 4  ;;  %v1356_v5 = vshll.u32 %v6101_v29, 16  ;;  %v1472_v32 = vunpack.c.l.bf16 %v1245_v49  ;;  %v6353_v8 = vpop.permute.xlu0 %4888 }
  0xc7   : > { %v1475_v61 = vunpack.c.l.bf16 %v1279_v58  ;;  %v1311_v7 = vor.u32 %v1310_v50, %v6257_v54  ;;  %v1329_v3 = vshrl.u32 %v6107_v22, 16  ;;  %v1314_v45 = vshll.u32 %v6079_v4, 16 }
  0xc8   : > { %v1255_v2 = vsel %vm5635_vm2, %v1250_v63, %v1254_v25  ;;  %v1332_v11 = vshll.u32 %v6107_v22, 16  ;;  %v1318_v29 = vshrl.u32 %v6079_v4, 16  ;;  %v1324_v54 = vshll.u32 %v4681_v20, 16  ;;  %v6351_v4 = vpop.permute.xlu1 %4893 }
  0xc9   : > { %v5142_v21 = vpack.i.bf16 %v1475_v61, %v1474_v53  ;;  %v1473_v28 = vunpack.c.l.bf16 %v1255_v2  ;;  %v1312_v57 = vrot.slane %v1311_v7, 4  ;;  %v1316_v39 = vrot.slane %v1314_v45, 5  ;;  %v4686_v7 = vld [vmem:[%s5607_s17 + $0xc] sm:$0xe] }
  0xca   : > { %v1287_v44 = vor.u32 %v1286_v34, %v1283_v0  ;;  %v1290_v9 = vshll.u32 %v6088_v47, 16  ;;  %v1320_v16 = vrot.slane %v1318_v29, 4  ;;  %v1294_v52 = vshrl.u32 %v6088_v47, 16 }
  0xcb   : > { %5143 = vrot.lane.b32.xlu1 %v5142_v21, %s5567_s21  ;;  %v5137_v12 = vpack.i.bf16 %v1473_v28, %v1472_v32  ;;  %v1300_v50 = vshll.u32 %v6340_v13, 16  ;;  %v6348_v30 = vrot.slane %v1356_v5, 5  ;;  %v1401_v22 = vshrl.u32 %v6132_v31, 16 }
  0xcc   : > { %v1288_v35 = vrot.slane %v1287_v44, 4  ;;  %v1292_v53 = vrot.slane %v1290_v9, 5  ;;  %v1317_v49 = vsel %vm5635_vm2, %v1312_v57, %v1316_v39  ;;  %v1321_v42 = vor.u32 %v1320_v16, %v1316_v39 }
  0xcd   : > { %5138 = vrot.lane.b32.xlu0 %v5137_v12, %s5567_s21  ;;  %v1326_v47 = vrot.slane %v1324_v54, 5  ;;  %v1296_v25 = vrot.slane %v1294_v52, 4  ;;  %v1331_v34 = vrot.slane %v1329_v3, 4  ;;  %v1334_v61 = vrot.slane %v1332_v11, 5  ;;  %v6375_v12 = vpop.permute.xlu0 %4898 }
  0xce   : > { %v1322_v63 = vrot.slane %v1321_v42, 4  ;;  %v1293_v5 = vsel %vm5635_vm2, %v1288_v35, %v1292_v53  ;;  %v1302_v20 = vrot.slane %v1300_v50, 5  ;;  %v1359_v21 = vor.u32 %v6348_v30, %v6330_v15  ;;  %v6373_v15 = vpop.permute.xlu1 %4903  ;;  %v4682_v50 = vld [vmem:[%s5607_s17 + $0xa4] sm:$0x1] }
  0xcf   : > { %v1297_v32 = vor.u32 %v1296_v25, %v1292_v53  ;;  %v1366_v2 = vshrl.u32 %v6104_v17, 16  ;;  %v1404_v45 = vshll.u32 %v6132_v31, 16  ;;  %v1478_v28 = vunpack.c.l.bf16 %v1317_v49 }
  0xd0   : > { %v6367_v57 = vrot.slane %v1401_v22, 4  ;;  %v1377_v3 = vshrl.u32 %v6143_v40, 16  ;;  %v1327_v11 = vsel %vm5635_vm2, %v1322_v63, %v1326_v47  ;;  %v1476_v54 = vunpack.c.l.bf16 %v1293_v5 }
  0xd1   : > { %v1298_v29 = vrot.slane %v1297_v32, 4  ;;  %v1479_v39 = vunpack.c.l.bf16 %v1327_v11  ;;  %v4702_v44 = vrot.slane %v4686_v7, 9  ;;  %v1554_v9 = vrot.slane %v5991_v46, 5 }
  0xd2   : > { %v1380_v31 = vshll.u32 %v6143_v40, 16  ;;  %v1557_v52 = vrot.slane %v6189_v55, 5  ;;  %v1335_v30 = vor.u32 %v1334_v61, %v1331_v34  ;;  %v1338_v47 = vshll.u32 %v6113_v18, 16  ;;  %v6394_v11 = vpop.permute.xlu1 %4913 }
  0xd3   : > { %v1303_v16 = vsel %vm5635_vm2, %v1298_v29, %v1302_v20  ;;  %v5152_v22 = vpack.i.bf16 %v1479_v39, %v1478_v28  ;;  %v1555_v53 = vsel %vm5847_vm5, %v4702_v44, %v1554_v9  ;;  %v1556_v49 = vrot.slane %v1554_v9, 4  ;;  %v6396_v29 = vpop.permute.xlu0 %4908 }
  0xd4   : > { %v1477_v35 = vunpack.c.l.bf16 %v1303_v16  ;;  %v1696_v46 = vunpack.c.l.bf16 %v1555_v53  ;;  %v1336_v42 = vrot.slane %v1335_v30, 4  ;;  %v1342_v25 = vshrl.u32 %v6113_v18, 16  ;;  %v4718_v16 = vld [vmem:[%s5607_s17 + $0x18] sm:$0xf]  ;;  %v6408_v30 = vld [vmem:[%s5607_s17 + $0x1c] sm:$0xf] }
  0xd5   : > { %v1406_v40 = vrot.slane %v1404_v45, 5  ;;  %5153 = vrot.lane.b32.xlu1 %v5152_v22, %s5567_s21  ;;  %v1558_v55 = vsel %vm5847_vm5, %v1556_v49, %v1557_v52  ;;  %v1348_v34 = vshll.u32 %v4682_v50, 16  ;;  %v1340_v32 = vrot.slane %v1338_v47, 5 }
  0xd6   : > { %v5147_v63 = vpack.i.bf16 %v1477_v35, %v1476_v54  ;;  %v1697_v5 = vunpack.c.l.bf16 %v1558_v55  ;;  %v1344_v20 = vrot.slane %v1342_v25, 4  ;;  %v6390_v7 = vrot.slane %v1366_v2, 4  ;;  %v4694_v2 = vld [vmem:[%s5607_s17 + $0x6c] sm:$0xe] }
  0xd7   : > { %v1379_v18 = vrot.slane %v1377_v3, 4  ;;  %v1382_v45 = vrot.slane %v1380_v31, 5  ;;  %v1341_v54 = vsel %vm5635_vm2, %v1336_v42, %v1340_v32  ;;  %v1350_v9 = vrot.slane %v1348_v34, 5  ;;  %v5512_v3 = vld [vmem:[%s5607_s17 + $0x18] sm:$0xf] }
  0xd8   : > { %8556 = vst [vmem:[#allocation12_spill] sm:$0xff] %v6390_v7  ;;  %5148 = vrot.lane.b32.xlu0 %v5147_v63, %s5567_s21  ;;  %v5162_v39 = vpack.i.bf16 %v1697_v5, %v1696_v46  ;;  %v1345_v44 = vor.u32 %v1344_v20, %v1340_v32  ;;  %v6402_v52 = vrot.slane %v1359_v21, 4  ;;  %v1407_v50 = vor.u32 %v1406_v40, %v6367_v57  ;;  %v6420_v20 = vpop.permute.xlu1 %4923 }
  0xd9   : > { %v1414_v31 = vshrl.u32 %v6135_v36, 16  ;;  %v1390_v22 = vshrl.u32 %v6150_v51, 16  ;;  %v1761_v53 = vunpack.c.l.bf16 %v4718_v16  ;;  %v1762_v49 = vunpack.c.l.bf16 %v6408_v30  ;;  %8559 = vst [vmem:[#allocation15_spill] sm:$0xff] %v6420_v20  ;;  %v4736_v36 = vld [vmem:[%s5607_s17 + $0x84] sm:$0xf] }
  0xda   : > { %8557 = vst [vmem:[#allocation13_spill] sm:$0xff] %v6402_v52  ;;  %5163 = vrot.lane.b32.xlu1 %v5162_v39, %s5568_s22  ;;  %v1346_v35 = vrot.slane %v1345_v44, 4  ;;  %v1480_v46 = vunpack.c.l.bf16 %v1341_v54  ;;  %v1810_v21 = vshrl.u32 %v4718_v16, 16  ;;  %v1813_v42 = vshll.u32 %v4718_v16, 16  ;;  %v6422_v39 = vpop.permute.xlu0 %4918 }
  0xdb   : > { %v4710_v47 = vrot.slane %v4694_v2, 9  ;;  %v1383_v57 = vor.u32 %v1382_v45, %v1379_v18  ;;  %v5172_v40 = vpack.i.bf16 %v1762_v49, %v1761_v53  ;;  %v1610_v63 = vrot.slane %v6067_v24, 5  ;;  %v6438_v49 = vld [vmem:[%s5607_s17 + $0x20] sm:$0x1] }
  0xdc   : > { %v1351_v25 = vsel %vm5635_vm2, %v1346_v35, %v1350_v9  ;;  %v6416_v55 = vrot.slane %v1414_v31, 4  ;;  %v1613_v32 = vrot.slane %v6301_v10, 5  ;;  %v1812_v54 = vrot.slane %v1810_v21, 4 }
  0xdd   : > { %v1481_v5 = vunpack.c.l.bf16 %v1351_v25  ;;  %v1815_v18 = vrot.slane %v1813_v42, 5  ;;  %v1611_v24 = vsel %vm5847_vm5, %v4710_v47, %v1610_v63  ;;  %v1612_v45 = vrot.slane %v1610_v63, 4  ;;  %v6443_v47 = vld [vmem:[%s5607_s17 + $0x1c] sm:$0xf]  ;;  %v4734_v63 = vld [vmem:[%s5607_s17 + $0x78] sm:$0xf] }
  0xde   : > { %8558 = vst [vmem:[#allocation14_spill] sm:$0xff] %v6416_v55  ;;  %5173 = vrot.lane.b32.xlu1 %v5172_v40, %s5569_s23  ;;  %v1712_v16 = vunpack.c.l.bf16 %v1611_v24  ;;  %v6429_v2 = vrot.slane %v1407_v50, 4  ;;  %v6431_v31 = vrot.slane %v1383_v57, 4  ;;  %v6433_v35 = vrot.slane %v1390_v22, 4 }
  0xdf   : > { %v5157_v10 = vpack.i.bf16 %v1481_v5, %v1480_v46  ;;  %v1614_v53 = vsel %vm5847_vm5, %v1612_v45, %v1613_v32  ;;  %v1816_v57 = vor.u32 %v1815_v18, %v1812_v54  ;;  %v1819_v25 = vshll.u32 %v6408_v30, 16  ;;  %v6454_v45 = vld [vmem:[%s5607_s17 + $0x7c] sm:$0xf] }
  0xe0   : > { %8560 = vst [vmem:[#allocation16_spill] sm:$0xff] %v6429_v2  ;;  %8561 = vst [vmem:[#allocation17_spill] sm:$0xff] %v6431_v31  ;;  %v1713_v50 = vunpack.c.l.bf16 %v1614_v53  ;;  %v1823_v40 = vshrl.u32 %v6408_v30, 16  ;;  %v1829_v24 = vshll.u32 %v6438_v49, 16  ;;  %v1777_v42 = vunpack.c.l.bf16 %v4734_v63  ;;  %v6458_v53 = vpop.permute.xlu0 %4928 }
  0xe1   : > { %8562 = vst [vmem:[#allocation18_spill] sm:$0xff] %v6433_v35  ;;  %5158 = vrot.lane.b32.xlu0 %v5157_v10, %s5567_s21  ;;  %v6456_v10 = vpop.permute.xlu1 %4933  ;;  %v1817_v54 = vrot.slane %v1816_v57, 4  ;;  %v1821_v18 = vrot.slane %v1819_v25, 5  ;;  %v1778_v34 = vunpack.c.l.bf16 %v6454_v45  ;;  %v221_v9 = vunpack.c.l.bf16 %v5512_v3 }
  0xe2   : > { %v5167_v32 = vpack.i.bf16 %v1713_v50, %v1712_v16  ;;  %v1825_v58 = vrot.slane %v1823_v40, 4  ;;  %v5513_v16 = vld [vmem:[%s5607_s17 + $0x4] sm:$0xf]  ;;  %v2002_v44 = vshrl.u32 %v4734_v63, 16  ;;  %v2005_v0 = vshll.u32 %v4734_v63, 16 }
  0xe3   : > { %v218_v50 = vunpack.c.l.bf16 %v5513_v16  ;;  %v1822_v57 = vsel %vm5635_vm2, %v1817_v54, %v1821_v18  ;;  %v1831_v25 = vrot.slane %v1829_v24, 5  ;;  %v5177_v40 = vpack.i.bf16 %v1778_v34, %v1777_v42  ;;  %v5514_v16 = vld [vmem:[%s5607_s17] sm:$0xf]  ;;  %v5516_v63 = vld [vmem:[%s5607_s17 + $0x28] sm:$0xf] }
  0xe4   : > { %v1826_v21 = vor.u32 %v1825_v58, %v1821_v18  ;;  %v4861_v28 = vunpack.i.h.bf16 %v6287_v59  ;;  %v4860_v61 = vunpack.i.l.bf16 %v6287_v59  ;;  %v2004_v3 = vrot.slane %v2002_v44, 4  ;;  %v5517_v24 = vld [vmem:[%s5607_s17 + $0xc] sm:$0xf] }
  0xe5   : > { %5168 = vrot.lane.b32.xlu0 %v5167_v32, %s5568_s22  ;;  %v2007_v5 = vrot.slane %v2005_v0, 5  ;;  %v217_v46 = vunpack.c.l.bf16 %v5514_v16  ;;  %v5515_v32 = vld [vmem:[%s5607_s17 + $0x24] sm:$0xf]  ;;  %v224_v20 = vunpack.c.l.bf16 %v5516_v63  ;;  %v4876_v58 = vunpack.i.h.bf16 %v6306_v27  ;;  %v6475_v44 = vpop.permute.xlu1 %4943  ;;  %v6477_v0 = vpop.permute.xlu0 %4938  ;;  %v6485_v63 = vld [vmem:[%s5607_s17 + $0x80] sm:$0x1] }
  0xe6   : > { %v223_v22 = vunpack.c.l.bf16 %v5515_v32  ;;  %v1827_v54 = vrot.slane %v1826_v21, 4  ;;  %v4875_v34 = vunpack.i.l.bf16 %v6306_v27  ;;  %v2225_v42 = vunpack.c.l.bf16 %v1822_v57  ;;  %v5518_v27 = vld [vmem:[%s5607_s17 + $0x10] sm:$0xf] }
  0xe7   : > { %v4782_v59 = vrot.slane %v4766_v56, 9  ;;  %v219_v18 = vunpack.c.l.bf16 %v5517_v24  ;;  %v2323_v32 = vrot.slane %v6408_v30, 5  ;;  %v2326_v21 = vrot.slane %v6438_v49, 5 }
  0xe8   : > { %v1832_v16 = vsel %vm5635_vm2, %v1827_v54, %v1831_v25  ;;  %v220_v57 = vunpack.c.l.bf16 %v5518_v27  ;;  %v2008_v19 = vor.u32 %v2007_v5, %v2004_v3  ;;  %v2011_v24 = vshll.u32 %v6454_v45, 16 }
  0xe9   : > { %5178 = vrot.lane.b32.xlu0 %v5177_v40, %s5569_s23  ;;  %v4866_v40 = vunpack.i.h.bf16 %v6308_v62  ;;  %v2226_v56 = vunpack.c.l.bf16 %v1832_v16  ;;  %v2324_v41 = vsel %vm5847_vm5, %v4782_v59, %v2323_v32  ;;  %v2325_v6 = vrot.slane %v2323_v32, 4 }
  0xea   : > { %v2015_v25 = vshrl.u32 %v6454_v45, 16  ;;  %v2465_v30 = vunpack.c.l.bf16 %v2324_v41  ;;  %v2009_v55 = vrot.slane %v2008_v19, 4  ;;  %v2021_v49 = vshll.u32 %v6485_v63, 16 }
  0xeb   : > { %v5182_v54 = vpack.i.bf16 %v2226_v56, %v2225_v42  ;;  %v4865_v2 = vunpack.i.l.bf16 %v6308_v62  ;;  %v2327_v16 = vsel %vm5847_vm5, %v2325_v6, %v2326_v21  ;;  %v2013_v5 = vrot.slane %v2011_v24, 5  ;;  %v6511_v42 = vpop.permute.xlu1 %4953  ;;  %v6513_v21 = vpop.permute.xlu0 %4948 }
  0xec   : > { %v2017_v3 = vrot.slane %v2015_v25, 4  ;;  %v8563_v32 = vunpack.i.h.bf16 %v6285_v1  ;;  %v8564_v27 = vunpack.c.l.bf16 %v6443_v47  ;;  %v8565_v19 = vunpack.i.l.bf16 %v6285_v1  ;;  %v4687_v25 = vld [vmem:[%s5607_s17 + $0x18] sm:$0xe] }
  0xed   : > { %5183 = vrot.lane.b32.xlu1 %v5182_v54, %s5570_s24  ;;  %v2466_v6 = vunpack.c.l.bf16 %v2327_v16  ;;  %v6516_v56 = vsel %vm3521_vm6, %v218_v50, %v4861_v28  ;;  %v2014_v47 = vsel %vm5635_vm2, %v2009_v55, %v2013_v5  ;;  %v2023_v1 = vrot.slane %v2021_v49, 5 }
  0xee   : > { %v6503_v41 = vsel %vm3521_vm6, %v8564_v27, %v8563_v32  ;;  %v6508_v62 = vsel %vm3521_vm6, %v221_v9, %v8565_v19  ;;  %v2018_v24 = vor.u32 %v2017_v3, %v2013_v5  ;;  %v4774_v9 = vld [vmem:[%s5607_s17 + $0x78] sm:$0xe]  ;;  %v6523_v32 = vsel %vm3521_vm6, %v217_v46, %v4860_v61  ;;  %v5519_v46 = vld [vmem:[%s5607_s17 + $0x1c] sm:$0xf] }
  0xef   : > { %v6526_v54 = vsel %vm3521_vm6, %v224_v20, %v4876_v58  ;;  %v6529_v16 = vsel %vm3521_vm6, %v223_v22, %v4875_v34  ;;  %v5192_v28 = vpack.i.bf16 %v2466_v6, %v2465_v30  ;;  %v6532_v50 = vsel %vm3521_vm6, %v220_v57, %v4866_v40  ;;  %v5520_v34 = vld [vmem:[%s5607_s17 + $0x34] sm:$0xf]  ;;  %v6548_v6 = vpop.permute.xlu1 %4963 }
  0xf0   : > { %v6535_v55 = vsel %vm3521_vm6, %v219_v18, %v4865_v2  ;;  %v2019_v49 = vrot.slane %v2018_v24, 4  ;;  %v2241_v5 = vunpack.c.l.bf16 %v2014_v47  ;;  %v4703_v61 = vrot.slane %v4687_v25, 9  ;;  %8566 = vst [vmem:[#allocation19_spill] sm:$0xff] %v6548_v6  ;;  %v5521_v47 = vld [vmem:[%s5607_s17 + $0x30] sm:$0xf] }
  0xf1   : > { %5193 = vrot.lane.b32.xlu1 %v5192_v28, %s5571_s25  ;;  %v1561_v20 = vrot.slane %v5519_v46, 5  ;;  %v1564_v58 = vrot.slane %v6178_v38, 5  ;;  %v4790_v22 = vrot.slane %v4774_v9, 9  ;;  %v226_v30 = vunpack.c.l.bf16 %v5520_v34  ;;  %v6550_v38 = vpop.permute.xlu0 %4958  ;;  %v5522_v46 = vld [vmem:[%s5607_s17 + $0x54] sm:$0xf] }
  0xf2   : > { %v4881_v57 = vunpack.i.h.bf16 %v6328_v60  ;;  %v2024_v2 = vsel %vm5635_vm2, %v2019_v49, %v2023_v1  ;;  %v2379_v18 = vrot.slane %v6454_v45, 5  ;;  %v2382_v19 = vrot.slane %v6485_v63, 5 }
  0xf3   : > { %v2242_v40 = vunpack.c.l.bf16 %v2024_v2  ;;  %v1562_v3 = vsel %vm5847_vm5, %v4703_v61, %v1561_v20  ;;  %v1563_v27 = vrot.slane %v1561_v20, 4  ;;  %v225_v24 = vunpack.c.l.bf16 %v5521_v47  ;;  %v5523_v2 = vld [vmem:[%s5607_s17 + $0x58] sm:$0xf] }
  0xf4   : > { %v1698_v25 = vunpack.c.l.bf16 %v1562_v3  ;;  %v2380_v1 = vsel %vm5847_vm5, %v4790_v22, %v2379_v18  ;;  %v2381_v45 = vrot.slane %v2379_v18, 4  ;;  %v4880_v9 = vunpack.i.l.bf16 %v6328_v60  ;;  %v4695_v3 = vld [vmem:[%s5607_s17 + $0x78] sm:$0xe] }
  0xf5   : > { %v5187_v28 = vpack.i.bf16 %v2242_v40, %v2241_v5  ;;  %v1565_v63 = vsel %vm5847_vm5, %v1563_v27, %v1564_v58  ;;  %v2481_v49 = vunpack.c.l.bf16 %v2380_v1  ;;  %v6559_v61 = vsel %vm3521_vm6, %v226_v30, %v4881_v57  ;;  %v4720_v40 = vld [vmem:[%s5607_s17 + $0x24] sm:$0xf]  ;;  %v5524_v30 = vld [vmem:[%s5607_s17 + $0x48] sm:$0xf]  ;;  %v5525_v27 = vld [vmem:[%s5607_s17 + $0x4c] sm:$0xf] }
  0xf6   : > { %v231_v20 = vunpack.c.l.bf16 %v5522_v46  ;;  %v1699_v34 = vunpack.c.l.bf16 %v1565_v63  ;;  %v2383_v22 = vsel %vm5847_vm5, %v2381_v45, %v2382_v19  ;;  %v232_v60 = vunpack.c.l.bf16 %v5523_v2  ;;  %v6574_v19 = vld [vmem:[%s5607_s17 + $0x28] sm:$0xf] }
  0xf7   : > { %v4896_v5 = vunpack.i.h.bf16 %v6351_v4  ;;  %v4895_v18 = vunpack.i.l.bf16 %v6351_v4  ;;  %5188 = vrot.lane.b32.xlu0 %v5187_v28, %s5570_s24  ;;  %v2482_v58 = vunpack.c.l.bf16 %v2383_v22  ;;  %v229_v57 = vunpack.c.l.bf16 %v5524_v30  ;;  %v6578_v28 = vpop.permute.xlu1 %4973  ;;  %v6580_v22 = vpop.permute.xlu0 %4968 }
  0xf8   : > { %v230_v47 = vunpack.c.l.bf16 %v5525_v27  ;;  %v4891_v1 = vunpack.i.h.bf16 %v6353_v8  ;;  %v5202_v63 = vpack.i.bf16 %v1699_v34, %v1698_v25  ;;  %v4890_v45 = vunpack.i.l.bf16 %v6353_v8 }
  0xf9   : > { %v5197_v46 = vpack.i.bf16 %v2482_v58, %v2481_v49  ;;  %v1763_v2 = vunpack.c.l.bf16 %v4720_v40  ;;  %v1764_v4 = vunpack.c.l.bf16 %v6574_v19  ;;  %v6583_v30 = vsel %vm3521_vm6, %v225_v24, %v4880_v9  ;;  %v5526_v58 = vld [vmem:[%s5607_s17 + $0x7c] sm:$0xf] }
  0xfa   : > { %5203 = vrot.lane.b32.xlu1 %v5202_v63, %s5568_s22  ;;  %v1834_v25 = vshrl.u32 %v4720_v40, 16  ;;  %v1837_v34 = vshll.u32 %v4720_v40, 16  ;;  %v4711_v27 = vrot.slane %v4695_v3, 9  ;;  %v6587_v8 = vsel %vm3521_vm6, %v232_v60, %v4896_v5  ;;  %v5527_v5 = vld [vmem:[%s5607_s17 + $0x6c] sm:$0xf] }
  0xfb   : > { %5198 = vrot.lane.b32.xlu0 %v5197_v46, %s5571_s25  ;;  %v5212_v49 = vpack.i.bf16 %v1764_v4, %v1763_v2  ;;  %v1617_v59 = vrot.slane %v5526_v58, 5  ;;  %v1620_v6 = vrot.slane %v6281_v23, 5  ;;  %v6593_v24 = vsel %vm3521_vm6, %v231_v20, %v4895_v18  ;;  %v5528_v2 = vld [vmem:[%s5607_s17 + $0x70] sm:$0xf]  ;;  %v6615_v58 = vpop.permute.xlu1 %4983 }
  0xfc   : > { %v6596_v9 = vsel %vm3521_vm6, %v230_v47, %v4891_v1  ;;  %v1836_v40 = vrot.slane %v1834_v25, 4  ;;  %v1839_v3 = vrot.slane %v1837_v34, 5  ;;  %v6599_v60 = vsel %vm3521_vm6, %v229_v57, %v4890_v45  ;;  %v6609_v1 = vld [vmem:[%s5607_s17 + $0x2c] sm:$0x1]  ;;  %v5529_v57 = vld [vmem:[%s5607_s17 + $0x60] sm:$0xf] }
  0xfd   : > { %v235_v63 = vunpack.c.l.bf16 %v5527_v5  ;;  %v1618_v46 = vsel %vm5847_vm5, %v4711_v27, %v1617_v59  ;;  %v1619_v23 = vrot.slane %v1617_v59, 4  ;;  %v236_v4 = vunpack.c.l.bf16 %v5528_v2  ;;  %v5530_v25 = vld [vmem:[%s5607_s17 + $0x64] sm:$0xf]  ;;  %v6617_v5 = vpop.permute.xlu0 %4978 }
  0xfe   : > { %v4906_v20 = vunpack.i.h.bf16 %v6373_v15  ;;  %v4905_v18 = vunpack.i.l.bf16 %v6373_v15  ;;  %5213 = vrot.lane.b32.xlu1 %v5212_v49, %s5569_s23  ;;  %v1714_v47 = vunpack.c.l.bf16 %v1618_v46  ;;  %v233_v45 = vunpack.c.l.bf16 %v5529_v57 }
  0xff   : > { %v234_v34 = vunpack.c.l.bf16 %v5530_v25  ;;  %v1621_v59 = vsel %vm5847_vm5, %v1619_v23, %v1620_v6  ;;  %v1840_v27 = vor.u32 %v1839_v3, %v1836_v40  ;;  %v4901_v15 = vunpack.i.h.bf16 %v6375_v12  ;;  %v6626_v6 = vld [vmem:[%s5607_s17 + $0x88] sm:$0xf] }
 0x100   : > { %v1715_v2 = vunpack.c.l.bf16 %v1621_v59  ;;  %v1843_v49 = vshll.u32 %v6574_v19, 16  ;;  %v1847_v46 = vshrl.u32 %v6574_v19, 16  ;;  %v4900_v57 = vunpack.i.l.bf16 %v6375_v12 }
 0x101   : > { %v1841_v35 = vrot.slane %v1840_v27, 4  ;;  %v1853_v25 = vshll.u32 %v6609_v1, 16  ;;  %v1779_v40 = vunpack.c.l.bf16 %v4736_v36  ;;  %v1780_v43 = vunpack.c.l.bf16 %v6626_v6 }
 0x102   : > { %v5207_v3 = vpack.i.bf16 %v1715_v2, %v1714_v47  ;;  %v1845_v23 = vrot.slane %v1843_v49, 5  ;;  %v1849_v31 = vrot.slane %v1847_v46, 4  ;;  %v6630_v59 = vsel %vm3521_vm6, %v236_v4, %v4906_v20  ;;  %v4767_v46 = vld [vmem:[%s5607_s17 + $0x24] sm:$0xe] }
 0x103   : > { %v6633_v51 = vsel %vm3521_vm6, %v235_v63, %v4905_v18  ;;  %v2026_v12 = vshrl.u32 %v4736_v36, 16  ;;  %v2029_v27 = vshll.u32 %v4736_v36, 16  ;;  %v1855_v2 = vrot.slane %v1853_v25, 5  ;;  %v6645_v36 = vpop.permute.xlu1 %4993  ;;  %v6647_v18 = vpop.permute.xlu0 %4988 }
 0x104   : > { %5208 = vrot.lane.b32.xlu0 %v5207_v3, %s5568_s22  ;;  %v1846_v48 = vsel %vm5635_vm2, %v1841_v35, %v1845_v23  ;;  %v1850_v47 = vor.u32 %v1849_v31, %v1845_v23  ;;  %v5217_v49 = vpack.i.bf16 %v1780_v43, %v1779_v40  ;;  %v6640_v37 = vsel %vm3521_vm6, %v234_v34, %v4901_v15  ;;  %v5531_v3 = vld [vmem:[%s5607_s17 + $0x84] sm:$0xf]  ;;  %v5532_v31 = vld [vmem:[%s5607_s17 + $0x88] sm:$0xf] }
 0x105   : > { %8567 = vst [vmem:[#allocation20_spill] sm:$0xff] %v6640_v37  ;;  %v6643_v4 = vsel %vm3521_vm6, %v233_v45, %v4900_v57  ;;  %v2028_v63 = vrot.slane %v2026_v12, 4  ;;  %v2031_v20 = vrot.slane %v2029_v27, 5  ;;  %v239_v35 = vunpack.c.l.bf16 %v5531_v3  ;;  %v6655_v57 = vld [vmem:[%s5607_s17 + $0x8c] sm:$0x1] }
 0x106   : > { %v240_v25 = vunpack.c.l.bf16 %v5532_v31  ;;  %v4916_v43 = vunpack.i.h.bf16 %v6394_v11  ;;  %v1851_v40 = vrot.slane %v1850_v47, 4  ;;  %v2227_v34 = vunpack.c.l.bf16 %v1846_v48  ;;  %v6659_v27 = vld [vmem:[%s5607_s17 + $0x78] sm:$0xf] }
 0x107   : > { %v4783_v15 = vrot.slane %v4767_v46, 9  ;;  %v2330_v23 = vrot.slane %v6574_v19, 5  ;;  %v2333_v45 = vrot.slane %v6609_v1, 5  ;;  %v4915_v12 = vunpack.i.l.bf16 %v6394_v11 }
 0x108   : > { %v237_v33 = vunpack.c.l.bf16 %v6659_v27  ;;  %v1856_v3 = vsel %vm5635_vm2, %v1851_v40, %v1855_v2  ;;  %5218 = vrot.lane.b32.xlu0 %v5217_v49, %s5569_s23  ;;  %v2032_v47 = vor.u32 %v2031_v20, %v2028_v63  ;;  %v2035_v46 = vshll.u32 %v6626_v6, 16  ;;  %v6675_v40 = vpop.permute.xlu1 %5003 }
 0x109   : > { %v2228_v48 = vunpack.c.l.bf16 %v1856_v3  ;;  %v2331_v19 = vsel %vm5847_vm5, %v4783_v15, %v2330_v23  ;;  %v2332_v1 = vrot.slane %v2330_v23, 4  ;;  %v2039_v7 = vshrl.u32 %v6626_v6, 16  ;;  %8569 = vst [vmem:[#allocation22_spill] sm:$0xff] %v6675_v40  ;;  %v6677_v15 = vpop.permute.xlu0 %4998  ;;  %v5534_v3 = vld [vmem:[%s5607_s17 + $0x7c] sm:$0xf] }
 0x10a   : > { %v2467_v11 = vunpack.c.l.bf16 %v2331_v19  ;;  %v2033_v31 = vrot.slane %v2032_v47, 4  ;;  %v2045_v27 = vshll.u32 %v6655_v57, 16  ;;  %v6671_v2 = vsel %vm3521_vm6, %v240_v25, %v4916_v43  ;;  %8570 = vst [vmem:[#allocation23_spill] sm:$0xff] %v6677_v15  ;;  %v4688_v25 = vld [vmem:[%s5607_s17 + $0x24] sm:$0xe] }
 0x10b   : > { %8568 = vst [vmem:[#allocation21_spill] sm:$0xff] %v6671_v2  ;;  %v5222_v49 = vpack.i.bf16 %v2228_v48, %v2227_v34  ;;  %v2334_v63 = vsel %vm5847_vm5, %v2332_v1, %v2333_v45  ;;  %v2037_v20 = vrot.slane %v2035_v46, 5  ;;  %v6680_v23 = vsel %vm3521_vm6, %v239_v35, %v4915_v12  ;;  %v5535_v45 = vld [vmem:[%s5607_s17 + $0x90] sm:$0xf]  ;;  %v5536_v1 = vld [vmem:[%s5607_s17 + $0x94] sm:$0xf] }
 0x10c   : > { %8571 = vst [vmem:[#allocation24_spill] sm:$0xff] %v6680_v23  ;;  %v238_v47 = vunpack.c.l.bf16 %v5534_v3  ;;  %v2468_v19 = vunpack.c.l.bf16 %v2334_v63  ;;  %v2041_v52 = vrot.slane %v2039_v7, 4  ;;  %v4911_v43 = vunpack.i.h.bf16 %v6396_v29  ;;  %v4775_v40 = vld [vmem:[%s5607_s17 + $0x84] sm:$0xe] }
 0x10d   : > { %v4910_v34 = vunpack.i.l.bf16 %v6396_v29  ;;  %v241_v48 = vunpack.c.l.bf16 %v5535_v45  ;;  %v242_v46 = vunpack.c.l.bf16 %v5536_v1  ;;  %5223 = vrot.lane.b32.xlu1 %v5222_v49, %s5570_s24  ;;  %v2038_v12 = vsel %vm5635_vm2, %v2033_v31, %v2037_v20  ;;  %v5537_v29 = vld [vmem:[%s5607_s17 + $0x28] sm:$0xf]  ;;  %v5538_v45 = vld [vmem:[%s5607_s17 + $0x2c] sm:$0x1] }
 0x10e   : > { %v5232_v35 = vpack.i.bf16 %v2468_v19, %v2467_v11  ;;  %v2042_v63 = vor.u32 %v2041_v52, %v2037_v20  ;;  %v2047_v7 = vrot.slane %v2045_v27, 5  ;;  %v4921_v3 = vunpack.i.h.bf16 %v6422_v39  ;;  %v6703_v20 = vpop.permute.xlu0 %5008 }
 0x10f   : > { %v4920_v17 = vunpack.i.l.bf16 %v6422_v39  ;;  %v4704_v23 = vrot.slane %v4688_v25, 9  ;;  %v1568_v2 = vrot.slane %v5537_v29, 5  ;;  %v1571_v15 = vrot.slane %v5538_v45, 5  ;;  %v6701_v39 = vpop.permute.xlu1 %5013  ;;  %v4722_v29 = vld [vmem:[%s5607_s17 + $0x30] sm:$0xf] }
 0x110   : > { %v2043_v37 = vrot.slane %v2042_v63, 4  ;;  %v4791_v1 = vrot.slane %v4775_v40, 9  ;;  %v2386_v49 = vrot.slane %v6626_v6, 5  ;;  %v2243_v11 = vunpack.c.l.bf16 %v2038_v12 }
 0x111   : > { %5233 = vrot.lane.b32.xlu1 %v5232_v35, %s5571_s25  ;;  %v1569_v52 = vsel %vm5847_vm5, %v4704_v23, %v1568_v2  ;;  %v1570_v31 = vrot.slane %v1568_v2, 4  ;;  %v2389_v27 = vrot.slane %v6655_v57, 5  ;;  %v6710_v2 = vsel %vm3521_vm6, %v238_v47, %v4911_v43 }
 0x112   : > { %v2048_v19 = vsel %vm5635_vm2, %v2043_v37, %v2047_v7  ;;  %v1700_v40 = vunpack.c.l.bf16 %v1569_v52  ;;  %v2387_v6 = vsel %vm5847_vm5, %v4791_v1, %v2386_v49  ;;  %v2388_v25 = vrot.slane %v2386_v49, 4  ;;  %v6727_v1 = vld [vmem:[%s5607_s17 + $0x34] sm:$0xf]  ;;  %v4696_v49 = vld [vmem:[%s5607_s17 + $0x84] sm:$0xe] }
 0x113   : > { %v2244_v23 = vunpack.c.l.bf16 %v2048_v19  ;;  %v1572_v57 = vsel %vm5847_vm5, %v1570_v31, %v1571_v15  ;;  %v2483_v35 = vunpack.c.l.bf16 %v2387_v6  ;;  %v6715_v12 = vsel %vm3521_vm6, %v237_v33, %v4910_v34  ;;  %v6731_v33 = vld [vmem:[%s5607_s17 + $0xb8] sm:$0xf]  ;;  %v6737_v31 = vpop.permute.xlu1 %5023  ;;  %v5542_v34 = vld [vmem:[%s5607_s17 + $0xa8] sm:$0xf] }
 0x114   : > { %v6718_v37 = vsel %vm3521_vm6, %v242_v46, %v4921_v3  ;;  %v1701_v63 = vunpack.c.l.bf16 %v1572_v57  ;;  %v2390_v7 = vsel %vm5847_vm5, %v2388_v25, %v2389_v27  ;;  %v6724_v45 = vsel %vm3521_vm6, %v241_v48, %v4920_v17  ;;  %8573 = vst [vmem:[#allocation26_spill] sm:$0xff] %v6737_v31  ;;  %v6739_v27 = vpop.permute.xlu0 %5018  ;;  %v5540_v25 = vld [vmem:[%s5607_s17 + $0x88] sm:$0xf] }
 0x115   : > { %8572 = vst [vmem:[#allocation25_spill] sm:$0xff] %v6724_v45  ;;  %v5227_v47 = vpack.i.bf16 %v2244_v23, %v2243_v11  ;;  %v2484_v43 = vunpack.c.l.bf16 %v2390_v7  ;;  %v1765_v15 = vunpack.c.l.bf16 %v4722_v29  ;;  %v1766_v52 = vunpack.c.l.bf16 %v6727_v1  ;;  %8574 = vst [vmem:[#allocation27_spill] sm:$0xff] %v6739_v27 }
 0x116   : > { %v5242_v3 = vpack.i.bf16 %v1701_v63, %v1700_v40  ;;  %v1858_v48 = vshrl.u32 %v4722_v29, 16  ;;  %v1861_v11 = vshll.u32 %v4722_v29, 16  ;;  %v4712_v6 = vrot.slane %v4696_v49, 9  ;;  %v6751_v49 = vld [vmem:[%s5607_s17 + $0x38] sm:$0x1] }
 0x117   : > { %5228 = vrot.lane.b32.xlu0 %v5227_v47, %s5570_s24  ;;  %v5237_v17 = vpack.i.bf16 %v2484_v43, %v2483_v35  ;;  %v5252_v19 = vpack.i.bf16 %v1766_v52, %v1765_v15  ;;  %v1624_v23 = vrot.slane %v5540_v25, 5  ;;  %v1627_v40 = vrot.slane %v6340_v13, 5 }
 0x118   : > { %5243 = vrot.lane.b32.xlu1 %v5242_v3, %s5568_s22  ;;  %v1860_v57 = vrot.slane %v1858_v48, 4  ;;  %v1863_v63 = vrot.slane %v1861_v11, 5  ;;  %v4976_v35 = vunpack.i.h.bf16 %v6578_v28  ;;  %v4975_v7 = vunpack.i.l.bf16 %v6578_v28  ;;  %v4738_v48 = vld [vmem:[%s5607_s17 + $0x90] sm:$0xf] }
 0x119   : > { %v1625_v29 = vsel %vm5847_vm5, %v4712_v6, %v1624_v23  ;;  %v1626_v47 = vrot.slane %v1624_v23, 4  ;;  %v4971_v43 = vunpack.i.h.bf16 %v6580_v22  ;;  %v4970_v15 = vunpack.i.l.bf16 %v6580_v22  ;;  %v6778_v23 = vld [vmem:[%s5607_s17 + $0x94] sm:$0xf] }
 0x11a   : > { %v1716_v13 = vunpack.c.l.bf16 %v1625_v29  ;;  %v6756_v3 = vsel %vm3554_vm7, %v6587_v8, %v4976_v35  ;;  %v6760_v28 = vsel %vm3554_vm7, %v6593_v24, %v4975_v7  ;;  %v1864_v52 = vor.u32 %v1863_v63, %v1860_v57  ;;  %v5541_v7 = vld [vmem:[%s5607_s17 + $0xb4] sm:$0xf] }
 0x11b   : > { %5238 = vrot.lane.b32.xlu0 %v5237_v17, %s5571_s25  ;;  %v1628_v22 = vsel %vm5847_vm5, %v1626_v47, %v1627_v40  ;;  %v6768_v17 = vsel %vm3554_vm7, %v6599_v60, %v4970_v15  ;;  %v6772_v8 = vsel %vm3554_vm7, %v6596_v9, %v4971_v43  ;;  %v1867_v11 = vshll.u32 %v6727_v1, 16  ;;  %v6780_v40 = vpop.permute.xlu1 %5033  ;;  %v6782_v60 = vpop.permute.xlu0 %5028 }
 0x11c   : > { %5253 = vrot.lane.b32.xlu1 %v5252_v19, %s5569_s23  ;;  %v1717_v24 = vunpack.c.l.bf16 %v1628_v22  ;;  %v1865_v6 = vrot.slane %v1864_v52, 4  ;;  %v1871_v25 = vshrl.u32 %v6727_v1, 16  ;;  %v1877_v19 = vshll.u32 %v6751_v49, 16  ;;  %8575 = vst [vmem:[#allocation28_spill] sm:$0xff] %v6780_v40  ;;  %8576 = vst [vmem:[#allocation29_spill] sm:$0xff] %v6782_v60 }
 0x11d   : > { %v1869_v57 = vrot.slane %v1867_v11, 5  ;;  %v1781_v63 = vunpack.c.l.bf16 %v4738_v48  ;;  %v1782_v9 = vunpack.c.l.bf16 %v6778_v23  ;;  %v2050_v35 = vshrl.u32 %v4738_v48, 16  ;;  %v4768_v52 = vld [vmem:[%s5607_s17 + $0x30] sm:$0xe]  ;;  %v5497_v11 = vld [vmem:[%s8506_s1 + $0x4] ss:$8 sps:$4 sm:$0xff]  }
 0x11e   : > { %v247_v29 = vunpack.c.l.bf16 %v5541_v7  ;;  %v5247_v47 = vpack.i.bf16 %v1717_v24, %v1716_v13  ;;  %v1873_v43 = vrot.slane %v1871_v25, 4  ;;  %v2053_v15 = vshll.u32 %v4738_v48, 16  ;;  %3911 = vmatprep.subr.bf16.mxu0 %v5497_v11  ;;  %4829 = vmatprep.subr.bf16.mxu1 %v5497_v11 }
 0x11f   : > { %v4935_v22 = vunpack.i.l.bf16 %v6456_v10  ;;  %v245_v46 = vunpack.c.l.bf16 %v5542_v34  ;;  %v1879_v27 = vrot.slane %v1877_v19, 5  ;;  %v2052_v40 = vrot.slane %v2050_v35, 4  ;;  %v5543_v19 = vld [vmem:[%s5607_s17 + $0xac] sm:$0xf] }
 0x120   : > { %5248 = vrot.lane.b32.xlu0 %v5247_v47, %s5568_s22  ;;  %v1870_v7 = vsel %vm5635_vm2, %v1865_v6, %v1869_v57  ;;  %v1874_v13 = vor.u32 %v1873_v43, %v1869_v57  ;;  %v2055_v24 = vrot.slane %v2053_v15, 5  ;;  %v5257_v25 = vpack.i.bf16 %v1782_v9, %v1781_v63  ;;  %v6807_v9 = vpop.permute.xlu1 %5043  ;;  %v6813_v43 = vld [vmem:[%s5607_s17 + $0x98] sm:$0x1] }
 0x121   : > { %v8577_v48 = vunpack.i.h.bf16 %v6456_v10  ;;  %v8578_v60 = vunpack.c.l.bf16 %v6731_v33  ;;  %v246_v35 = vunpack.c.l.bf16 %v5543_v19  ;;  %v4931_v31 = vunpack.i.h.bf16 %v6458_v53  ;;  %8579 = vst [vmem:[#allocation30_spill] sm:$0xff] %v6807_v9  ;;  %v6809_v33 = vpop.permute.xlu0 %5038 }
 0x122   : > { %v4784_v45 = vrot.slane %v4768_v52, 9  ;;  %v4930_v6 = vunpack.i.l.bf16 %v6458_v53  ;;  %v1875_v57 = vrot.slane %v1874_v13, 4  ;;  %v2337_v63 = vrot.slane %v6727_v1, 5 }
 0x123   : > { %v6800_v34 = vsel %vm3521_vm6, %v8578_v60, %v8577_v48  ;;  %v2340_v10 = vrot.slane %v6751_v49, 5  ;;  %v4946_v60 = vunpack.i.h.bf16 %v6475_v44  ;;  %v2229_v47 = vunpack.c.l.bf16 %v1870_v7 }
 0x124   : > { %v2056_v15 = vor.u32 %v2055_v24, %v2052_v40  ;;  %v2059_v52 = vshll.u32 %v6778_v23, 16  ;;  %v1880_v53 = vsel %vm5635_vm2, %v1875_v57, %v1879_v27  ;;  %5258 = vrot.lane.b32.xlu0 %v5257_v25, %s5569_s23  ;;  %v2338_v1 = vsel %vm5847_vm5, %v4784_v45, %v2337_v63  ;;  %v5499_v45 = vld [vmem:[%s8506_s1] ss:$8 sps:$4 sm:$0xff]  }
 0x125   : > { %v2339_v49 = vrot.slane %v2337_v63, 4  ;;  %v2063_v11 = vshrl.u32 %v6778_v23, 16  ;;  %v2230_v13 = vunpack.c.l.bf16 %v1880_v53  ;;  %v2469_v48 = vunpack.c.l.bf16 %v2338_v1  ;;  %v4689_v53 = vld [vmem:[%s5607_s17 + $0x30] sm:$0xe]  ;;  %3912 = vmatpush1.bf16.msra.mxu0 %v5499_v45  ;;  %4834 = vmatpush1.bf16.msra.mxu1 %v5499_v45 }
 0x126   : > { %v2057_v7 = vrot.slane %v2056_v15, 4  ;;  %v2061_v19 = vrot.slane %v2059_v52, 5  ;;  %v6823_v40 = vsel %vm3521_vm6, %v247_v29, %v4935_v22  ;;  %v2069_v25 = vshll.u32 %v6813_v43, 16  ;;  %v5500_v29 = vld [vmem:[%s8506_s1 + $0x14] ss:$8 sps:$4 sm:$0xff]  }
 0x127   : > { %v2341_v27 = vsel %vm5847_vm5, %v2339_v49, %v2340_v10  ;;  %v2065_v24 = vrot.slane %v2063_v11, 4  ;;  %v6832_v57 = vsel %vm3521_vm6, %v246_v35, %v4931_v31  ;;  %v4945_v63 = vunpack.i.l.bf16 %v6475_v44  ;;  %v4776_v31 = vld [vmem:[%s5607_s17 + $0x90] sm:$0xe]  ;;  %v6845_v35 = vpop.permute.xlu1 %5053  ;;  %v6847_v44 = vpop.permute.xlu0 %5048  ;;  %3913 = vmatprep.subr.bf16.mxu0 %v5500_v29  ;;  %4830 = vmatprep.subr.bf16.mxu1 %v5500_v29 }
 0x128   : > { %v5262_v15 = vpack.i.bf16 %v2230_v13, %v2229_v47  ;;  %v2470_v52 = vunpack.c.l.bf16 %v2341_v27  ;;  %v6840_v22 = vsel %vm3521_vm6, %v245_v46, %v4930_v6  ;;  %v2062_v10 = vsel %vm5635_vm2, %v2057_v7, %v2061_v19  ;;  %v5502_v45 = vld [vmem:[%s8506_s1 + $0x10] ss:$8 sps:$4 sm:$0xff]  }
 0x129   : > { %v2066_v1 = vor.u32 %v2065_v24, %v2061_v19  ;;  %v2071_v49 = vrot.slane %v2069_v25, 5  ;;  %v6851_v47 = vsel %vm3554_vm7, %v6532_v50, %v4946_v60  ;;  %v4941_v46 = vunpack.i.h.bf16 %v6477_v0  ;;  %v5544_v19 = vld [vmem:[%s5607_s17 + $0x34] sm:$0xf]  ;;  %v5545_v24 = vld [vmem:[%s5607_s17 + $0x38] sm:$0x1]  ;;  %3914 = vmatpush1.bf16.msra.mxu0 %v5502_v45  ;;  %4835 = vmatpush1.bf16.msra.mxu1 %v5502_v45 }
 0x12a   : > { %v4940_v6 = vunpack.i.l.bf16 %v6477_v0  ;;  %5263 = vrot.lane.b32.xlu1 %v5262_v15, %s5570_s24  ;;  %v5272_v11 = vpack.i.bf16 %v2470_v52, %v2469_v48  ;;  %v4705_v7 = vrot.slane %v4689_v53, 9  ;;  %v1575_v27 = vrot.slane %v5544_v19, 5  ;;  %v5503_v15 = vld [vmem:[%s8506_s1 + $0x24] ss:$8 sps:$4 sm:$0xff]  }
 0x12b   : > { %v2067_v13 = vrot.slane %v2066_v1, 4  ;;  %v1578_v25 = vrot.slane %v5545_v24, 5  ;;  %v6863_v50 = vsel %vm3554_vm7, %v6535_v55, %v4945_v63  ;;  %v2245_v0 = vunpack.c.l.bf16 %v2062_v10  ;;  %3915 = vmatprep.subr.bf16.mxu0 %v5503_v15  ;;  %4831 = vmatprep.subr.bf16.mxu1 %v5503_v15  ;;  %v4724_v24 = vld [vmem:[%s5607_s17 + $0x3c] sm:$0xf]  ;;  %v5505_v15 = vld [vmem:[%s8506_s1 + $0x20] ss:$8 sps:$4 sm:$0xff]  }
 0x12c   : > { %v4792_v60 = vrot.slane %v4776_v31, 9  ;;  %v2393_v48 = vrot.slane %v6778_v23, 5  ;;  %v1576_v53 = vsel %vm5847_vm5, %v4705_v7, %v1575_v27  ;;  %v1577_v1 = vrot.slane %v1575_v27, 4  ;;  %v6889_v7 = vpop.permute.xlu0 %5058 }
 0x12d   : > { %v2072_v52 = vsel %vm5635_vm2, %v2067_v13, %v2071_v49  ;;  %v2396_v29 = vrot.slane %v6813_v43, 5  ;;  %v1702_v23 = vunpack.c.l.bf16 %v1576_v53  ;;  %v6879_v49 = vsel %vm3554_vm7, %v6523_v32, %v4940_v6  ;;  %v6887_v13 = vpop.permute.xlu1 %5063  ;;  %3916 = vmatpush1.bf16.msra.mxu0 %v5505_v15  ;;  %4836 = vmatpush1.bf16.msra.mxu1 %v5505_v15 }
 0x12e   : > { %5273 = vrot.lane.b32.xlu1 %v5272_v11, %s5571_s25  ;;  %v2246_v55 = vunpack.c.l.bf16 %v2072_v52  ;;  %v2394_v63 = vsel %vm5847_vm5, %v4792_v60, %v2393_v48  ;;  %v2395_v10 = vrot.slane %v2393_v48, 4  ;;  %v6883_v43 = vsel %vm3554_vm7, %v6516_v56, %v4941_v46  ;;  %v6899_v60 = vld [vmem:[%s5607_s17 + $0x40] sm:$0xf]  ;;  %v4697_v48 = vld [vmem:[%s5607_s17 + $0x90] sm:$0xe] }
 0x12f   : > { %v1579_v31 = vsel %vm5847_vm5, %v1577_v1, %v1578_v25  ;;  %v2485_v11 = vunpack.c.l.bf16 %v2394_v63  ;;  %v1767_v53 = vunpack.c.l.bf16 %v4724_v24  ;;  %v1768_v1 = vunpack.c.l.bf16 %v6899_v60 }
 0x130   : > { %v5267_v27 = vpack.i.bf16 %v2246_v55, %v2245_v0  ;;  %v1703_v32 = vunpack.c.l.bf16 %v1579_v31  ;;  %v2397_v6 = vsel %vm5847_vm5, %v2395_v10, %v2396_v29  ;;  %v5506_v29 = vld [vmem:[%s8506_s1 + $0x34] ss:$8 sps:$4 sm:$0xff]   ;;  %v1882_v10 = vshrl.u32 %v4724_v24, 16 }
 0x131   : > { %v2486_v45 = vunpack.c.l.bf16 %v2397_v6  ;;  %v1885_v31 = vshll.u32 %v4724_v24, 16  ;;  %v5292_v6 = vpack.i.bf16 %v1768_v1, %v1767_v53  ;;  %v5546_v0 = vld [vmem:[%s5607_s17 + $0x94] sm:$0xf]  ;;  %3917 = vmatprep.subr.bf16.mxu0 %v5506_v29  ;;  %v5016_v19 = vunpack.i.h.bf16 %v6701_v39  ;;  %v6917_v24 = vpop.permute.xlu1 %5073  ;;  %4832 = vmatprep.subr.bf16.mxu1 %v5506_v29  ;;  %v6927_v53 = vld [vmem:[%s5607_s17 + $0x44] sm:$0x1] }
 0x132   : > { %5268 = vrot.lane.b32.xlu0 %v5267_v27, %s5570_s24  ;;  %v5282_v52 = vpack.i.bf16 %v1703_v32, %v1702_v23  ;;  %v4713_v27 = vrot.slane %v4697_v48, 9  ;;  %v1631_v23 = vrot.slane %v5546_v0, 5  ;;  %v5547_v32 = vld [vmem:[%s5607_s17 + $0x98] sm:$0x1]  ;;  %v1884_v46 = vrot.slane %v1882_v10, 4 }
 0x133   : > { %v5277_v63 = vpack.i.bf16 %v2486_v45, %v2485_v11  ;;  %v1634_v25 = vrot.slane %v5547_v32, 5  ;;  %v1887_v56 = vrot.slane %v1885_v31, 5  ;;  %v5015_v11 = vunpack.i.l.bf16 %v6701_v39  ;;  %v6919_v45 = vpop.permute.xlu0 %5068  ;;  %v5508_v39 = vld [vmem:[%s8506_s1 + $0x30] ss:$8 sps:$4 sm:$0xff]   ;;  %v4740_v31 = vld [vmem:[%s5607_s17 + $0x9c] sm:$0xf] }
 0x134   : > { %5283 = vrot.lane.b32.xlu1 %v5282_v52, %s5568_s22  ;;  %v1632_v48 = vsel %vm5847_vm5, %v4713_v27, %v1631_v23  ;;  %v1633_v15 = vrot.slane %v1631_v23, 4  ;;  %v5011_v0 = vunpack.i.h.bf16 %v6703_v20  ;;  %v5010_v52 = vunpack.i.l.bf16 %v6703_v20  ;;  %3918 = vmatpush1.bf16.msra.mxu0 %v5508_v39 }
 0x135   : > { %v1718_v1 = vunpack.c.l.bf16 %v1632_v48  ;;  %v6934_v29 = vsel %vm3554_vm7, %v6800_v34, %v5016_v19  ;;  %v1888_v10 = vor.u32 %v1887_v56, %v1884_v46  ;;  %v1891_v34 = vshll.u32 %v6899_v60, 16  ;;  %4837 = vmatpush1.bf16.msra.mxu1 %v5508_v39 }
 0x136   : > { %5278 = vrot.lane.b32.xlu0 %v5277_v63, %s5571_s25  ;;  %v6938_v63 = vsel %vm3554_vm7, %v6823_v40, %v5015_v11  ;;  %v1635_v20 = vsel %vm5847_vm5, %v1633_v15, %v1634_v25  ;;  %v6946_v27 = vsel %vm3554_vm7, %v6840_v22, %v5010_v52  ;;  %v6950_v23 = vsel %vm3554_vm7, %v6832_v57, %v5011_v0 }
 0x137   : > { %v1719_v40 = vunpack.c.l.bf16 %v1635_v20  ;;  %v1889_v19 = vrot.slane %v1888_v10, 4  ;;  %v1895_v56 = vshrl.u32 %v6899_v60, 16  ;;  %v1901_v46 = vshll.u32 %v6927_v53, 16  ;;  %v4769_v10 = vld [vmem:[%s5607_s17 + $0x3c] sm:$0xe]  ;;  %v6966_v20 = vpop.permute.xlu1 %5083  ;;  %v6968_v55 = vpop.permute.xlu0 %5078 }
 0x138   : > { %5293 = vrot.lane.b32.xlu1 %v5292_v6, %s5569_s23  ;;  %v6956_v6 = vld [vmem:[%s5607_s17 + $0xa0] sm:$0xf]  ;;  %v1893_v25 = vrot.slane %v1891_v34, 5  ;;  %v1783_v22 = vunpack.c.l.bf16 %v4740_v31  ;;  %v2074_v11 = vshrl.u32 %v4740_v31, 16  ;;  %v8580_v57 = vunpack.i.h.bf16 %v6511_v42  ;;  %8581 = vst [vmem:[#allocation31_spill] sm:$0xff] %v6966_v20 }
 0x139   : > { %v1784_v32 = vunpack.c.l.bf16 %v6956_v6  ;;  %v5287_v15 = vpack.i.bf16 %v1719_v40, %v1718_v1  ;;  %v1897_v0 = vrot.slane %v1895_v56, 4  ;;  %v2077_v52 = vshll.u32 %v4740_v31, 16  ;;  %v5549_v20 = vld [vmem:[%s5607_s17 + $0x44] sm:$0x1] }
 0x13a   : > { %v6963_v48 = vsel %vm3554_vm7, %v6526_v54, %v8580_v57  ;;  %v8582_v39 = vunpack.i.l.bf16 %v6511_v42  ;;  %v8583_v9 = vunpack.i.h.bf16 %v6513_v21  ;;  %v1903_v1 = vrot.slane %v1901_v46, 5 }
 0x13b   : > { %v2076_v40 = vrot.slane %v2074_v11, 4  ;;  %5288 = vrot.lane.b32.xlu0 %v5287_v15, %s5568_s22  ;;  %v1894_v31 = vsel %vm5635_vm2, %v1889_v19, %v1893_v25  ;;  %v1898_v56 = vor.u32 %v1897_v0, %v1893_v25  ;;  %v2079_v42 = vrot.slane %v2077_v52, 5  ;;  %v4761_v0 = vld [vmem:[%s5607_s17 + $0xa4] sm:$0x1] }
 0x13c   : > { %v6974_v34 = vsel %vm3554_vm7, %v6529_v16, %v8582_v39  ;;  %v6980_v54 = vsel %vm3554_vm7, %v6503_v41, %v8583_v9  ;;  %v5297_v57 = vpack.i.bf16 %v1784_v32, %v1783_v22  ;;  %v8584_v16 = vunpack.i.l.bf16 %v6513_v21 }
 0x13d   : > { %v8585_v41 = vunpack.i.l.bf16 %v6550_v38  ;;  %v8586_v46 = vunpack.i.h.bf16 %v6550_v38  ;;  %v4785_v25 = vrot.slane %v4769_v10, 9  ;;  %v4986_v22 = vunpack.i.h.bf16 %v6615_v58 }
 0x13e   : > { %v6989_v39 = vsel %vm3554_vm7, %v6508_v62, %v8584_v16  ;;  %v1899_v21 = vrot.slane %v1898_v56, 4  ;;  %v2344_v32 = vrot.slane %v6899_v60, 5  ;;  %v2347_v62 = vrot.slane %v6927_v53, 5  ;;  %v7015_v53 = vpop.permute.xlu1 %5093 }
 0x13f   : > { %v6995_v9 = vsel %vm3554_vm7, %v6583_v30, %v8585_v41  ;;  %v7001_v19 = vsel %vm3554_vm7, %v6559_v61, %v8586_v46  ;;  %v4985_v11 = vunpack.i.l.bf16 %v6615_v58  ;;  %v4980_v15 = vunpack.i.l.bf16 %v6617_v5  ;;  %5298 = vrot.lane.b32.xlu0 %v5297_v57, %s5569_s23  ;;  %v7017_v58 = vpop.permute.xlu0 %5088 }
 0x140   : > { %v2231_v30 = vunpack.c.l.bf16 %v1894_v31  ;;  %v2080_v52 = vor.u32 %v2079_v42, %v2076_v40  ;;  %v1904_v38 = vsel %vm5635_vm2, %v1899_v21, %v1903_v1  ;;  %v2345_v61 = vsel %vm5847_vm5, %v4785_v25, %v2344_v32 }
 0x141   : > { %v2346_v10 = vrot.slane %v2344_v32, 4  ;;  %v2083_v60 = vshll.u32 %v6956_v6, 16  ;;  %v2232_v56 = vunpack.c.l.bf16 %v1904_v38  ;;  %v2471_v31 = vunpack.c.l.bf16 %v2345_v61  ;;  %v4690_v38 = vld [vmem:[%s5607_s17 + $0x3c] sm:$0xe] }
 0x142   : > { %v2081_v40 = vrot.slane %v2080_v52, 4  ;;  %v2087_v42 = vshrl.u32 %v6956_v6, 16  ;;  %v7022_v1 = vsel %vm3554_vm7, %v6630_v59, %v4986_v22  ;;  %v2093_v41 = vshll.u32 %v4761_v0, 16  ;;  %v4777_v61 = vld [vmem:[%s5607_s17 + $0x9c] sm:$0xe] }
 0x143   : > { %v2348_v57 = vsel %vm5847_vm5, %v2346_v10, %v2347_v62  ;;  %v2085_v16 = vrot.slane %v2083_v60, 5  ;;  %v4981_v46 = vunpack.i.h.bf16 %v6617_v5  ;;  %v5302_v25 = vpack.i.bf16 %v2232_v56, %v2231_v30 }
 0x144   : > { %v2472_v21 = vunpack.c.l.bf16 %v2348_v57  ;;  %v2089_v32 = vrot.slane %v2087_v42, 4  ;;  %v7030_v52 = vsel %vm3554_vm7, %v6633_v51, %v4985_v11  ;;  %v7034_v59 = vsel %vm3554_vm7, %v6643_v4, %v4980_v15  ;;  %v5548_v15 = vld [vmem:[%s5607_s17 + $0x40] sm:$0xf]  ;;  %v7045_v42 = vpop.permute.xlu1 %5103  ;;  %v7047_v57 = vpop.permute.xlu0 %5098 }
 0x145   : > { %v4996_v22 = vunpack.i.h.bf16 %v6645_v36  ;;  %v4995_v62 = vunpack.i.l.bf16 %v6645_v36  ;;  %5303 = vrot.lane.b32.xlu1 %v5302_v25, %s5570_s24  ;;  %v2086_v30 = vsel %vm5635_vm2, %v2081_v40, %v2085_v16  ;;  %v2095_v60 = vrot.slane %v2093_v41, 5  ;;  %8587 = vst [vmem:[#allocation32_spill] sm:$0xff] %v7047_v57 }
 0x146   : > { %v5312_v5 = vpack.i.bf16 %v2472_v21, %v2471_v31  ;;  %v2090_v10 = vor.u32 %v2089_v32, %v2085_v16  ;;  %v4991_v51 = vunpack.i.h.bf16 %v6647_v18  ;;  %v4990_v11 = vunpack.i.l.bf16 %v6647_v18 }
 0x147   : > { %v4706_v4 = vrot.slane %v4690_v38, 9  ;;  %v1582_v56 = vrot.slane %v5548_v15, 5  ;;  %v1585_v25 = vrot.slane %v5549_v20, 5  ;;  %v4793_v31 = vrot.slane %v4777_v61, 9 }
 0x148   : > { %v2091_v36 = vrot.slane %v2090_v10, 4  ;;  %v2400_v21 = vrot.slane %v6956_v6, 5  ;;  %v2247_v40 = vunpack.c.l.bf16 %v2086_v30  ;;  %v2403_v18 = vrot.slane %v4761_v0, 5  ;;  %v8588_v10 = vld [vmem:[#allocation23_spill] sm:$0xff] }
 0x149   : > { %v1583_v16 = vsel %vm5847_vm5, %v4706_v4, %v1582_v56  ;;  %v1584_v41 = vrot.slane %v1582_v56, 4  ;;  %5313 = vrot.lane.b32.xlu1 %v5312_v5, %s5571_s25  ;;  %v5001_v6 = vunpack.i.h.bf16 %v8588_v10  ;;  %v8589_v56 = vld [vmem:[#allocation20_spill] sm:$0xff]  ;;  %v8590_v5 = vld [vmem:[#allocation21_spill] sm:$0xff] }
 0x14a   : > { %v2096_v32 = vsel %vm5635_vm2, %v2091_v36, %v2095_v60  ;;  %v1704_v38 = vunpack.c.l.bf16 %v1583_v16  ;;  %v2401_v20 = vsel %vm5847_vm5, %v4793_v31, %v2400_v21  ;;  %v2402_v61 = vrot.slane %v2400_v21, 4  ;;  %v4726_v21 = vld [vmem:[%s5607_s17 + $0x48] sm:$0xf]  ;;  %v8591_v16 = vld [vmem:[#allocation24_spill] sm:$0xff] }
 0x14b   : > { %v2248_v30 = vunpack.c.l.bf16 %v2096_v32  ;;  %v1586_v4 = vsel %vm5847_vm5, %v1584_v41, %v1585_v25  ;;  %v2487_v15 = vunpack.c.l.bf16 %v2401_v20  ;;  %v7063_v0 = vsel %vm3554_vm7, %v8589_v56, %v4981_v46  ;;  %v4698_v20 = vld [vmem:[%s5607_s17 + $0x9c] sm:$0xe]  ;;  %v7081_v56 = vpop.permute.xlu1 %5113 }
 0x14c   : > { %v7067_v60 = vsel %vm3554_vm7, %v8590_v5, %v4996_v22  ;;  %v1705_v36 = vunpack.c.l.bf16 %v1586_v4  ;;  %v2404_v31 = vsel %vm5847_vm5, %v2402_v61, %v2403_v18  ;;  %v7074_v32 = vsel %vm3554_vm7, %v8591_v16, %v4995_v62  ;;  %8592 = vst [vmem:[#allocation23_spill] sm:$0xff] %v7081_v56  ;;  %v7083_v22 = vpop.permute.xlu0 %5108  ;;  %v7091_v4 = vld [vmem:[%s5607_s17 + $0x4c] sm:$0xf]  ;;  %v5551_v16 = vld [vmem:[%s5607_s17 + $0xa4] sm:$0x1] }
 0x14d   : > { %v7078_v25 = vsel %vm3554_vm7, %v6715_v12, %v4990_v11  ;;  %v5307_v41 = vpack.i.bf16 %v2248_v30, %v2247_v40  ;;  %v2488_v46 = vunpack.c.l.bf16 %v2404_v31  ;;  %8593 = vst [vmem:[#allocation20_spill] sm:$0xff] %v7083_v22  ;;  %v7087_v18 = vsel %vm3554_vm7, %v6710_v2, %v4991_v51 }
 0x14e   : > { %v5000_v61 = vunpack.i.l.bf16 %v8588_v10  ;;  %v5322_v62 = vpack.i.bf16 %v1705_v36, %v1704_v38  ;;  %v1769_v12 = vunpack.c.l.bf16 %v4726_v21  ;;  %v7095_v11 = vsel %vm3554_vm7, %v6718_v37, %v5001_v6  ;;  %v5550_v38 = vld [vmem:[%s5607_s17 + $0xa0] sm:$0xf] }
 0x14f   : > { %8594 = vst [vmem:[#allocation21_spill] sm:$0xff] %v7095_v11  ;;  %5308 = vrot.lane.b32.xlu0 %v5307_v41, %s5570_s24  ;;  %v5317_v40 = vpack.i.bf16 %v2488_v46, %v2487_v15  ;;  %v1770_v30 = vunpack.c.l.bf16 %v7091_v4  ;;  %v1906_v5 = vshrl.u32 %v4726_v21, 16  ;;  %v1909_v2 = vshll.u32 %v4726_v21, 16  ;;  %v7160_v11 = vld [vmem:[%s5607_s17 + $0xb0] sm:$0x1] }
 0x150   : > { %5323 = vrot.lane.b32.xlu1 %v5322_v62, %s5568_s22  ;;  %v4714_v51 = vrot.slane %v4698_v20, 9  ;;  %v1638_v10 = vrot.slane %v5550_v38, 5  ;;  %v1641_v22 = vrot.slane %v5551_v16, 5  ;;  %v5056_v37 = vunpack.i.h.bf16 %v6845_v35  ;;  %v4742_v16 = vld [vmem:[%s5607_s17 + $0xa8] sm:$0xf] }
 0x151   : > { %v1908_v36 = vrot.slane %v1906_v5, 4  ;;  %v5332_v31 = vpack.i.bf16 %v1770_v30, %v1769_v12  ;;  %v1911_v6 = vrot.slane %v1909_v2, 5  ;;  %v5055_v46 = vunpack.i.l.bf16 %v6845_v35  ;;  %v4754_v30 = vld [vmem:[%s5607_s17 + $0x50] sm:$0x1]  ;;  %v7114_v5 = vpop.permute.xlu1 %5123  ;;  %v7116_v2 = vpop.permute.xlu0 %5118 }
 0x152   : > { %v1639_v15 = vsel %vm5847_vm5, %v4714_v51, %v1638_v10  ;;  %v1640_v41 = vrot.slane %v1638_v10, 4  ;;  %v7109_v20 = vsel %vm3587_vm8, %v6756_v3, %v5056_v37  ;;  %v5051_v62 = vunpack.i.h.bf16 %v6847_v44  ;;  %8596 = vst [vmem:[#allocation33_spill] sm:$0xff] %v7114_v5  ;;  %8597 = vst [vmem:[#allocation34_spill] sm:$0xff] %v7116_v2  ;;  %v8605_v5 = vld [vmem:[#allocation27_spill] sm:$0xff] }
 0x153   : > { %5318 = vrot.lane.b32.xlu0 %v5317_v40, %s5571_s25  ;;  %v1720_v21 = vunpack.c.l.bf16 %v1639_v15  ;;  %8595 = vst [vmem:[#allocation24_spill] sm:$0xff] %v7109_v20  ;;  %v5050_v12 = vunpack.i.l.bf16 %v6847_v44  ;;  %v7123_v40 = vsel %vm3587_vm8, %v6760_v28, %v5055_v46  ;;  %v1912_v3 = vor.u32 %v1911_v6, %v1908_v36  ;;  %v7141_v15 = vld [vmem:[%s5607_s17 + $0xac] sm:$0xf] }
 0x154   : > { %5333 = vrot.lane.b32.xlu1 %v5332_v31, %s5569_s23  ;;  %v1642_v35 = vsel %vm5847_vm5, %v1640_v41, %v1641_v22  ;;  %8598 = vst [vmem:[#allocation35_spill] sm:$0xff] %v7123_v40  ;;  %v1915_v51 = vshll.u32 %v7091_v4, 16  ;;  %v7132_v10 = vsel %vm3587_vm8, %v6772_v8, %v5051_v62  ;;  %v1919_v31 = vshrl.u32 %v7091_v4, 16  ;;  %v8601_v22 = vld [vmem:[#allocation25_spill] sm:$0xff]  ;;  %v8602_v8 = vld [vmem:[#allocation26_spill] sm:$0xff] }
 0x155   : > { %v1721_v38 = vunpack.c.l.bf16 %v1642_v35  ;;  %v7128_v44 = vsel %vm3587_vm8, %v6768_v17, %v5050_v12  ;;  %8600 = vst [vmem:[#allocation37_spill] sm:$0xff] %v7132_v10  ;;  %v7138_v37 = vsel %vm3554_vm7, %v8601_v22, %v5000_v61  ;;  %v1913_v28 = vrot.slane %v1912_v3, 4 }
 0x156   : > { %8599 = vst [vmem:[#allocation36_spill] sm:$0xff] %v7128_v44  ;;  %v1917_v36 = vrot.slane %v1915_v51, 5  ;;  %v1925_v6 = vshll.u32 %v4754_v30, 16  ;;  %v1921_v17 = vrot.slane %v1919_v31, 4  ;;  %v1785_v46 = vunpack.c.l.bf16 %v4742_v16  ;;  %v7153_v31 = vpop.permute.xlu0 %5128 }
 0x157   : > { %v5327_v41 = vpack.i.bf16 %v1721_v38, %v1720_v21  ;;  %v1786_v12 = vunpack.c.l.bf16 %v7141_v15  ;;  %v5026_v62 = vunpack.i.h.bf16 %v8602_v8  ;;  %v2351_v35 = vrot.slane %v7091_v4, 5  ;;  %v4770_v21 = vld [vmem:[%s5607_s17 + $0x48] sm:$0xe]  ;;  %v7151_v38 = vpop.permute.xlu1 %5133  ;;  %8604 = vst [vmem:[#allocation26_spill] sm:$0xff] %v7153_v31 }
 0x158   : > { %v2098_v20 = vshrl.u32 %v4742_v16, 16  ;;  %v2101_v40 = vshll.u32 %v4742_v16, 16  ;;  %v1918_v61 = vsel %vm5635_vm2, %v1913_v28, %v1917_v36  ;;  %v1922_v3 = vor.u32 %v1921_v17, %v1917_v36  ;;  %8603 = vst [vmem:[#allocation25_spill] sm:$0xff] %v7151_v38 }
 0x159   : > { %5328 = vrot.lane.b32.xlu0 %v5327_v41, %s5568_s22  ;;  %v1927_v51 = vrot.slane %v1925_v6, 5  ;;  %v2111_v22 = vshrl.u32 %v7141_v15, 16  ;;  %v5025_v10 = vunpack.i.l.bf16 %v8602_v8  ;;  %v5337_v16 = vpack.i.bf16 %v1786_v12, %v1785_v46 }
 0x15a   : > { %v2100_v4 = vrot.slane %v2098_v20, 4  ;;  %v2103_v44 = vrot.slane %v2101_v40, 5  ;;  %v5021_v41 = vunpack.i.h.bf16 %v8605_v5  ;;  %v1923_v2 = vrot.slane %v1922_v3, 4 }
 0x15b   : > { %v2354_v56 = vrot.slane %v4754_v30, 5  ;;  %v2107_v28 = vshll.u32 %v7141_v15, 16  ;;  %v5020_v36 = vunpack.i.l.bf16 %v8605_v5  ;;  %v2233_v6 = vunpack.c.l.bf16 %v1918_v61  ;;  %v8606_v5 = vld [vmem:[#allocation28_spill] sm:$0xff]  ;;  %v7179_v3 = vpop.permute.xlu1 %5143 }
 0x15c   : > { %v2104_v17 = vor.u32 %v2103_v44, %v2100_v4  ;;  %v4786_v57 = vrot.slane %v4770_v21, 9  ;;  %v7164_v38 = vsel %vm3587_vm8, %v6851_v47, %v5026_v62  ;;  %v1928_v20 = vsel %vm5635_vm2, %v1923_v2, %v1927_v51  ;;  %v7181_v51 = vpop.permute.xlu0 %5138 }
 0x15d   : > { %v2113_v40 = vrot.slane %v2111_v22, 4  ;;  %5338 = vrot.lane.b32.xlu0 %v5337_v16, %s5569_s23  ;;  %v2353_v30 = vrot.slane %v2351_v35, 4  ;;  %v7171_v46 = vsel %vm3587_vm8, %v6863_v50, %v5025_v10  ;;  %v5036_v44 = vunpack.i.h.bf16 %v8606_v5  ;;  %v4683_v16 = vld [vmem:[%s5607_s17 + $0xb0] sm:$0x1] }
 0x15e   : > { %v2234_v12 = vunpack.c.l.bf16 %v1928_v20  ;;  %v2105_v8 = vrot.slane %v2104_v17, 4  ;;  %v2352_v47 = vsel %vm5847_vm5, %v4786_v57, %v2351_v35  ;;  %v2109_v62 = vrot.slane %v2107_v28, 5  ;;  %v4778_v28 = vld [vmem:[%s5607_s17 + $0xa8] sm:$0xe] }
 0x15f   : > { %v2355_v2 = vsel %vm5847_vm5, %v2353_v30, %v2354_v56  ;;  %v2117_v61 = vshll.u32 %v7160_v11, 16  ;;  %v7185_v50 = vsel %vm3587_vm8, %v6879_v49, %v5020_v36  ;;  %v2473_v22 = vunpack.c.l.bf16 %v2352_v47  ;;  %v8607_v36 = vld [vmem:[#allocation29_spill] sm:$0xff] }
 0x160   : > { %v5342_v10 = vpack.i.bf16 %v2234_v12, %v2233_v6  ;;  %v2474_v21 = vunpack.c.l.bf16 %v2355_v2  ;;  %v2407_v4 = vrot.slane %v7141_v15, 5  ;;  %v2110_v57 = vsel %vm5635_vm2, %v2105_v8, %v2109_v62  ;;  %v8608_v12 = vld [vmem:[#allocation5_spill] sm:$0xff] }
 0x161   : > { %v2114_v56 = vor.u32 %v2113_v40, %v2109_v62  ;;  %v2119_v35 = vrot.slane %v2117_v61, 5  ;;  %v7194_v17 = vsel %vm3587_vm8, %v6883_v43, %v5021_v41  ;;  %v5035_v20 = vunpack.i.l.bf16 %v8606_v5  ;;  %v8611_v61 = vld [vmem:[#allocation12_spill] sm:$0xff] }
 0x162   : > { %v7199_v49 = vsel %vm3587_vm8, %v6963_v48, %v5036_v44  ;;  %5343 = vrot.lane.b32.xlu1 %v5342_v10, %s5570_s24  ;;  %v5352_v15 = vpack.i.bf16 %v2474_v21, %v2473_v22  ;;  %v5031_v6 = vunpack.i.h.bf16 %v8607_v36  ;;  %v5030_v40 = vunpack.i.l.bf16 %v8607_v36  ;;  %v8610_v44 = vld [vmem:[#allocation13_spill] sm:$0xff]  ;;  %v7213_v21 = vpop.permute.xlu1 %5153 }
 0x163   : > { %v2115_v30 = vrot.slane %v2114_v56, 4  ;;  %v8609_v8 = vshll.u32 %v8608_v12, 16  ;;  %v5041_v43 = vunpack.i.h.bf16 %v6809_v33  ;;  %v2249_v41 = vunpack.c.l.bf16 %v2110_v57  ;;  %v7215_v56 = vpop.permute.xlu0 %5148 }
 0x164   : > { %v1372_v5 = vshll.u32 %v4683_v16, 16  ;;  %v4794_v2 = vrot.slane %v4778_v28, 9  ;;  %v2409_v22 = vrot.slane %v2407_v4, 4  ;;  %v7219_v36 = vsel %vm3587_vm8, %v6974_v34, %v5035_v20 }
 0x165   : > { %v1364_v47 = vrot.slane %v8609_v8, 5  ;;  %v2120_v48 = vsel %vm5635_vm2, %v2115_v30, %v2119_v35  ;;  %v4699_v30 = vld [vmem:[%s5607_s17 + $0xa8] sm:$0xe]  ;;  %v7227_v8 = vsel %vm3587_vm8, %v6989_v39, %v5030_v40  ;;  %v2410_v34 = vrot.slane %v7160_v11, 5 }
 0x166   : > { %5353 = vrot.lane.b32.xlu1 %v5352_v15, %s5571_s25  ;;  %v2250_v57 = vunpack.c.l.bf16 %v2120_v48  ;;  %v1374_v35 = vrot.slane %v1372_v5, 5  ;;  %v2408_v28 = vsel %vm5847_vm5, %v4794_v2, %v2407_v4  ;;  %v5040_v20 = vunpack.i.l.bf16 %v6809_v33 }
 0x167   : > { %v1365_v62 = vsel %vm5635_vm2, %v8610_v44, %v1364_v47  ;;  %v1369_v10 = vor.u32 %v8611_v61, %v1364_v47  ;;  %v7231_v47 = vsel %vm3587_vm8, %v6980_v54, %v5031_v6  ;;  %v2489_v5 = vunpack.c.l.bf16 %v2408_v28  ;;  %v4691_v6 = vld [vmem:[%s5607_s17 + $0x48] sm:$0xe] }
 0x168   : > { %v5347_v15 = vpack.i.bf16 %v2250_v57, %v2249_v41  ;;  %v1482_v48 = vunpack.c.l.bf16 %v1365_v62  ;;  %v7237_v4 = vsel %vm3587_vm8, %v7001_v19, %v5041_v43  ;;  %v2411_v40 = vsel %vm5847_vm5, %v2409_v22, %v2410_v34  ;;  %v7254_v57 = vpop.permute.xlu1 %5163 }
 0x169   : > { %v1370_v44 = vrot.slane %v1369_v10, 4  ;;  %v4715_v54 = vrot.slane %v4699_v30, 9  ;;  %v5066_v2 = vunpack.i.h.bf16 %v6887_v13  ;;  %v5065_v11 = vunpack.i.l.bf16 %v6887_v13 }
 0x16a   : > { %5348 = vrot.lane.b32.xlu0 %v5347_v15, %s5570_s24  ;;  %v2490_v41 = vunpack.c.l.bf16 %v2411_v40  ;;  %v5060_v62 = vunpack.i.l.bf16 %v6889_v7  ;;  %v8612_v19 = vrot.slane %v8608_v12, 5  ;;  %v1648_v22 = vrot.slane %v4683_v16, 5  ;;  %v8614_v15 = vld [vmem:[#allocation2_spill] sm:$0xff] }
 0x16b   : > { %v1375_v39 = vsel %vm5635_vm2, %v1370_v44, %v1374_v35  ;;  %v7256_v35 = vpop.permute.xlu0 %5158  ;;  %v4707_v44 = vrot.slane %v4691_v6, 9  ;;  %v5096_v12 = vunpack.i.h.bf16 %v7015_v53  ;;  %v5095_v16 = vunpack.i.l.bf16 %v7015_v53 }
 0x16c   : > { %v1483_v33 = vunpack.c.l.bf16 %v1375_v39  ;;  %v1646_v43 = vsel %vm5847_vm5, %v4715_v54, %v8612_v19  ;;  %v8613_v61 = vmov %v8612_v19  ;;  %v5357_v28 = vpack.i.bf16 %v2490_v41, %v2489_v5  ;;  %v4744_v41 = vld [vmem:[%s5607_s17 + $0xb4] sm:$0xf] }
 0x16d   : > { %v1647_v10 = vrot.slane %v8613_v61, 4  ;;  %v1722_v30 = vunpack.c.l.bf16 %v1646_v43  ;;  %v8615_v39 = vrot.slane %v8614_v15, 5  ;;  %v5091_v6 = vunpack.i.h.bf16 %v7017_v58  ;;  %v8617_v19 = vld [vmem:[#allocation8_spill] sm:$0xff]  ;;  %v7295_v15 = vld [vmem:[%s5607_s17 + $0xb8] sm:$0xf] }
 0x16e   : > { %v5362_v13 = vpack.i.bf16 %v1483_v33, %v1482_v48  ;;  %5358 = vrot.lane.b32.xlu0 %v5357_v28, %s5571_s25  ;;  %v5090_v33 = vunpack.i.l.bf16 %v7017_v58  ;;  %v8618_v43 = vrot.slane %v8617_v19, 5 }
 0x16f   : > { %v1649_v34 = vsel %vm5847_vm5, %v1647_v10, %v1648_v22  ;;  %v1591_v40 = vrot.slane %v8615_v39, 4  ;;  %v8616_v5 = vmov %v8615_v39  ;;  %v7279_v10 = vsel %vm3587_vm8, %v6938_v63, %v5095_v16 }
 0x170   : > { %5363 = vrot.lane.b32.xlu1 %v5362_v13, %s5567_s21  ;;  %v1723_v48 = vunpack.c.l.bf16 %v1649_v34  ;;  %v1590_v54 = vsel %vm5847_vm5, %v4707_v44, %v8616_v5  ;;  %8619 = vst [vmem:[#allocation27_spill] sm:$0xff] %v7279_v10  ;;  %v7283_v22 = vsel %vm3587_vm8, %v6934_v29, %v5096_v12  ;;  %v4728_v13 = vld [vmem:[%s5607_s17 + $0x54] sm:$0xf]  ;;  %v7288_v58 = vsel %vm3587_vm8, %v6946_v27, %v5090_v33  ;;  %v7299_v29 = vld [vmem:[%s5607_s17 + $0x58] sm:$0xf]  ;;  %v7301_v12 = vpop.permute.xlu1 %5173 }
 0x171   : > { %v1593_v53 = vsel %vm5847_vm5, %v1591_v40, %v8618_v43  ;;  %v1706_v61 = vunpack.c.l.bf16 %v1590_v54  ;;  %8620 = vst [vmem:[#allocation28_spill] sm:$0xff] %v7283_v22  ;;  %8621 = vst [vmem:[#allocation29_spill] sm:$0xff] %v7288_v58  ;;  %v7292_v34 = vsel %vm3587_vm8, %v6950_v23, %v5091_v6  ;;  %v1787_v39 = vunpack.c.l.bf16 %v4744_v41 }
 0x172   : > { %v5372_v28 = vpack.i.bf16 %v1723_v48, %v1722_v30  ;;  %v1707_v44 = vunpack.c.l.bf16 %v1593_v53  ;;  %8622 = vst [vmem:[#allocation5_spill] sm:$0xff] %v7292_v34  ;;  %v1788_v63 = vunpack.c.l.bf16 %v7295_v15  ;;  %v2122_v40 = vshrl.u32 %v4744_v41, 16  ;;  %v7303_v30 = vpop.permute.xlu0 %5168  ;;  %v7463_v34 = vld [vmem:[%s5607_s17 + $0x64] sm:$0xf] }
 0x173   : > { %v2125_v16 = vshll.u32 %v4744_v41, 16  ;;  %v1771_v48 = vunpack.c.l.bf16 %v4728_v13  ;;  %v1772_v23 = vunpack.c.l.bf16 %v7299_v29  ;;  %v1930_v5 = vshrl.u32 %v4728_v13, 16 }
 0x174   : > { %5373 = vrot.lane.b32.xlu1 %v5372_v28, %s5568_s22  ;;  %v5367_v27 = vpack.i.bf16 %v1707_v44, %v1706_v61  ;;  %v2124_v54 = vrot.slane %v2122_v40, 4  ;;  %v5382_v33 = vpack.i.bf16 %v1788_v63, %v1787_v39  ;;  %v1933_v19 = vshll.u32 %v4728_v13, 16  ;;  %v7314_v61 = vld [vmem:[%s5607_s17 + $0xbc] sm:$0x1] }
 0x175   : > { %v2127_v6 = vrot.slane %v2125_v16, 5  ;;  %v7309_v41 = vsel %vm3587_vm8, %v6995_v9, %v5040_v20  ;;  %v5061_v43 = vunpack.i.h.bf16 %v6889_v7  ;;  %v1932_v53 = vrot.slane %v1930_v5, 4 }
 0x176   : > { %5368 = vrot.lane.b32.xlu0 %v5367_v27, %s5568_s22  ;;  %v5377_v28 = vpack.i.bf16 %v1772_v23, %v1771_v48  ;;  %v7318_v44 = vsel %vm3587_vm8, %v7030_v52, %v5065_v11  ;;  %v7322_v13 = vsel %vm3587_vm8, %v7022_v1, %v5066_v2  ;;  %v7326_v9 = vsel %vm3587_vm8, %v7034_v59, %v5060_v62  ;;  %v7333_v52 = vld [vmem:[%s5607_s17 + $0x5c] sm:$0x1]  ;;  %v7339_v62 = vpop.permute.xlu1 %5183  ;;  %v7341_v16 = vpop.permute.xlu0 %5178 }
 0x177   : > { %v1935_v20 = vrot.slane %v1933_v19, 5  ;;  %v5076_v7 = vunpack.i.h.bf16 %v6917_v24  ;;  %v2128_v39 = vor.u32 %v2127_v6, %v2124_v54  ;;  %v2131_v63 = vshll.u32 %v7295_v15, 16 }
 0x178   : > { %5383 = vrot.lane.b32.xlu1 %v5382_v33, %s5569_s23  ;;  %v2135_v40 = vshrl.u32 %v7295_v15, 16  ;;  %v5075_v11 = vunpack.i.l.bf16 %v6917_v24  ;;  %v5071_v1 = vunpack.i.h.bf16 %v6919_v45  ;;  %v5070_v2 = vunpack.i.l.bf16 %v6919_v45 }
 0x179   : > { %v2141_v59 = vshll.u32 %v7314_v61, 16  ;;  %v2129_v27 = vrot.slane %v2128_v39, 4  ;;  %v2133_v48 = vrot.slane %v2131_v63, 5  ;;  %v1936_v5 = vor.u32 %v1935_v20, %v1932_v53  ;;  %v4779_v63 = vld [vmem:[%s5607_s17 + $0xb4] sm:$0xe] }
 0x17a   : > { %5378 = vrot.lane.b32.xlu0 %v5377_v28, %s5569_s23  ;;  %v2137_v23 = vrot.slane %v2135_v40, 4  ;;  %v7346_v24 = vsel %vm3587_vm8, %v7063_v0, %v5061_v43  ;;  %v1939_v54 = vshll.u32 %v7299_v29, 16  ;;  %v1943_v45 = vshrl.u32 %v7299_v29, 16 }
 0x17b   : > { %v1949_v6 = vshll.u32 %v7333_v52, 16  ;;  %v2134_v33 = vsel %vm5635_vm2, %v2129_v27, %v2133_v48  ;;  %v2143_v28 = vrot.slane %v2141_v59, 5  ;;  %v1937_v39 = vrot.slane %v1936_v5, 4 }
 0x17c   : > { %v2138_v19 = vor.u32 %v2137_v23, %v2133_v48  ;;  %v7356_v53 = vsel %vm3587_vm8, %v7074_v32, %v5075_v11  ;;  %v7360_v0 = vsel %vm3587_vm8, %v7067_v60, %v5076_v7  ;;  %v1941_v43 = vrot.slane %v1939_v54, 5  ;;  %v4771_v60 = vld [vmem:[%s5607_s17 + $0x54] sm:$0xe]  ;;  %v7373_v7 = vpop.permute.xlu1 %5193  ;;  %v7375_v54 = vpop.permute.xlu0 %5188 }
 0x17d   : > { %v1945_v20 = vrot.slane %v1943_v45, 4  ;;  %v7364_v40 = vsel %vm3587_vm8, %v7078_v25, %v5070_v2  ;;  %v7368_v27 = vsel %vm3587_vm8, %v7087_v18, %v5071_v1  ;;  %v2251_v48 = vunpack.c.l.bf16 %v2134_v33 }
 0x17e   : > { %v2139_v59 = vrot.slane %v2138_v19, 4  ;;  %v1942_v32 = vsel %vm5635_vm2, %v1937_v39, %v1941_v43  ;;  %v1951_v23 = vrot.slane %v1949_v6, 5  ;;  %v4795_v5 = vrot.slane %v4779_v63, 9 }
 0x17f   : > { %v1946_v11 = vor.u32 %v1945_v20, %v1941_v43  ;;  %v5081_v25 = vunpack.i.h.bf16 %v6968_v55  ;;  %v5080_v2 = vunpack.i.l.bf16 %v6968_v55  ;;  %v5106_v18 = vunpack.i.h.bf16 %v7045_v42 }
 0x180   : > { %v2144_v1 = vsel %vm5635_vm2, %v2139_v59, %v2143_v28  ;;  %v2235_v19 = vunpack.c.l.bf16 %v1942_v32  ;;  %v2414_v6 = vrot.slane %v7295_v15, 5  ;;  %v2417_v39 = vrot.slane %v7314_v61, 5 }
 0x181   : > { %v2252_v45 = vunpack.c.l.bf16 %v2144_v1  ;;  %v1947_v33 = vrot.slane %v1946_v11, 4  ;;  %v4787_v63 = vrot.slane %v4771_v60, 9  ;;  %v2358_v43 = vrot.slane %v7299_v29, 5  ;;  %v7397_v60 = vpop.permute.xlu1 %5203 }
 0x182   : > { %v2361_v20 = vrot.slane %v7333_v52, 5  ;;  %v2415_v28 = vsel %vm5847_vm5, %v4795_v5, %v2414_v6  ;;  %v2416_v59 = vrot.slane %v2414_v6, 4  ;;  %v5105_v29 = vunpack.i.l.bf16 %v7045_v42  ;;  %v7399_v5 = vpop.permute.xlu0 %5198  ;;  %v7408_v6 = vld [vmem:[%s5607_s17 + $0xbc] sm:$0x1] }
 0x183   : > { %v5392_v22 = vpack.i.bf16 %v2252_v45, %v2251_v48  ;;  %v1952_v55 = vsel %vm5635_vm2, %v1947_v33, %v1951_v23  ;;  %v2491_v32 = vunpack.c.l.bf16 %v2415_v28  ;;  %v2359_v15 = vsel %vm5847_vm5, %v4787_v63, %v2358_v43  ;;  %v4692_v23 = vld [vmem:[%s5607_s17 + $0x54] sm:$0xe] }
 0x184   : > { %v2236_v11 = vunpack.c.l.bf16 %v1952_v55  ;;  %v2360_v61 = vrot.slane %v2358_v43, 4  ;;  %v2418_v52 = vsel %vm5847_vm5, %v2416_v59, %v2417_v39  ;;  %v2475_v48 = vunpack.c.l.bf16 %v2359_v15  ;;  %v8626_v63 = vld [vmem:[#allocation32_spill] sm:$0xff] }
 0x185   : > { %5393 = vrot.lane.b32.xlu1 %v5392_v22, %s5570_s24  ;;  %v7403_v1 = vsel %vm3587_vm8, %v7138_v37, %v5080_v2  ;;  %v2492_v33 = vunpack.c.l.bf16 %v2418_v52  ;;  %v8624_v22 = vld [vmem:[#allocation21_spill] sm:$0xff]  ;;  %v5101_v43 = vunpack.i.h.bf16 %v8626_v63  ;;  %v5100_v55 = vunpack.i.l.bf16 %v8626_v63  ;;  %v7446_v10 = vpop.permute.xlu1 %5213 }
 0x186   : > { %8623 = vst [vmem:[#allocation13_spill] sm:$0xff] %v7403_v1  ;;  %v5387_v45 = vpack.i.bf16 %v2236_v11, %v2235_v19  ;;  %v2362_v42 = vsel %vm5847_vm5, %v2360_v61, %v2361_v20  ;;  %v7412_v39 = vsel %vm3587_vm8, %v8624_v22, %v5081_v25  ;;  %v7418_v37 = vsel %vm3620_vm9, %v7164_v38, %v5106_v18  ;;  %v8627_v20 = vld [vmem:[#allocation4_spill] sm:$0xff]  ;;  %v8629_v61 = vld [vmem:[#allocation7_spill] sm:$0xff] }
 0x187   : > { %8625 = vst [vmem:[#allocation12_spill] sm:$0xff] %v7412_v39  ;;  %v2476_v28 = vunpack.c.l.bf16 %v2362_v42  ;;  %v5402_v2 = vpack.i.bf16 %v2492_v33, %v2491_v32  ;;  %v4708_v19 = vrot.slane %v4692_v23, 9  ;;  %v8628_v59 = vrot.slane %v8627_v20, 5  ;;  %v8631_v38 = vld [vmem:[#allocation23_spill] sm:$0xff]  ;;  %v7448_v20 = vpop.permute.xlu0 %5208 }
 0x188   : > { %5388 = vrot.lane.b32.xlu0 %v5387_v45, %s5570_s24  ;;  %v7425_v25 = vsel %vm3620_vm9, %v7171_v46, %v5105_v29  ;;  %v8630_v52 = vshll.u32 %v8629_v61, 16  ;;  %v1396_v22 = vshll.u32 %v7408_v6, 16  ;;  %v5116_v18 = vunpack.i.h.bf16 %v8631_v38  ;;  %v8633_v46 = vld [vmem:[#allocation10_spill] sm:$0xff] }
 0x189   : > { %v1598_v11 = vrot.slane %v8628_v59, 4  ;;  %v5397_v15 = vpack.i.bf16 %v2476_v28, %v2475_v48  ;;  %v5115_v45 = vunpack.i.l.bf16 %v8631_v38  ;;  %5403 = vrot.lane.b32.xlu1 %v5402_v2, %s5571_s25  ;;  %v8632_v32 = vmov %v8628_v59  ;;  %v8635_v28 = vld [vmem:[#allocation17_spill] sm:$0xff]  ;;  %v4730_v2 = vld [vmem:[%s5607_s17 + $0x60] sm:$0xf] }
 0x18a   : > { %v1388_v42 = vrot.slane %v8630_v52, 5  ;;  %v1597_v23 = vsel %vm5847_vm5, %v4708_v19, %v8632_v32  ;;  %v8634_v29 = vrot.slane %v8633_v46, 5  ;;  %v8636_v52 = vld [vmem:[#allocation18_spill] sm:$0xff]  ;;  %v7452_v19 = vsel %vm3620_vm9, %v7185_v50, %v5100_v55  ;;  %v8637_v32 = vld [vmem:[#allocation20_spill] sm:$0xff] }
 0x18b   : > { %v1708_v33 = vunpack.c.l.bf16 %v1597_v23  ;;  %v5111_v23 = vunpack.i.h.bf16 %v8637_v32  ;;  %v1398_v46 = vrot.slane %v1396_v22, 5  ;;  %v1773_v58 = vunpack.c.l.bf16 %v4730_v2 }
 0x18c   : > { %v1600_v48 = vsel %vm5847_vm5, %v1598_v11, %v8634_v29  ;;  %v1389_v59 = vsel %vm5635_vm2, %v8635_v28, %v1388_v42  ;;  %v1393_v38 = vor.u32 %v8636_v52, %v1388_v42  ;;  %v7456_v11 = vsel %vm3620_vm9, %v7194_v17, %v5101_v43  ;;  %5398 = vrot.lane.b32.xlu0 %v5397_v15, %s5571_s25  ;;  %v4700_v29 = vld [vmem:[%s5607_s17 + $0xb4] sm:$0xe] }
 0x18d   : > { %v1709_v63 = vunpack.c.l.bf16 %v1600_v48  ;;  %v5110_v42 = vunpack.i.l.bf16 %v8637_v32  ;;  %v1484_v52 = vunpack.c.l.bf16 %v1389_v59  ;;  %v1774_v50 = vunpack.c.l.bf16 %v7463_v34 }
 0x18e   : > { %v1394_v28 = vrot.slane %v1393_v38, 4  ;;  %v1954_v55 = vshrl.u32 %v4730_v2, 16  ;;  %v1957_v31 = vshll.u32 %v4730_v2, 16  ;;  %v7468_v17 = vsel %vm3620_vm9, %v7219_v36, %v5115_v45 }
 0x18f   : > { %v5412_v48 = vpack.i.bf16 %v1709_v63, %v1708_v33  ;;  %v7472_v43 = vsel %vm3620_vm9, %v7199_v49, %v5116_v18  ;;  %v4716_v22 = vrot.slane %v4700_v29, 9  ;;  %v5422_v38 = vpack.i.bf16 %v1774_v50, %v1773_v58  ;;  %v7490_v29 = vpop.permute.xlu0 %5218 }
 0x190   : > { %v1399_v15 = vsel %vm5635_vm2, %v1394_v28, %v1398_v46  ;;  %v1956_v63 = vrot.slane %v1954_v55, 4  ;;  %v1959_v59 = vrot.slane %v1957_v31, 5  ;;  %v7479_v2 = vsel %vm3620_vm9, %v7231_v47, %v5111_v23  ;;  %v7488_v46 = vpop.permute.xlu1 %5223  ;;  %v8640_v47 = vld [vmem:[#allocation34_spill] sm:$0xff]  ;;  %v7498_v28 = vld [vmem:[%s5607_s17 + $0x68] sm:$0x1] }
 0x191   : > { %5413 = vrot.lane.b32.xlu1 %v5412_v48, %s5568_s22  ;;  %v1485_v33 = vunpack.c.l.bf16 %v1399_v15  ;;  %v8638_v36 = vrot.slane %v8629_v61, 5  ;;  %v1655_v32 = vrot.slane %v7408_v6, 5  ;;  %v7494_v31 = vsel %vm3620_vm9, %v7227_v8, %v5110_v42 }
 0x192   : > { %v5121_v58 = vunpack.i.h.bf16 %v8640_v47  ;;  %v5120_v61 = vunpack.i.l.bf16 %v8640_v47  ;;  %v5146_v50 = vunpack.i.h.bf16 %v7179_v3  ;;  %v1960_v55 = vor.u32 %v1959_v59, %v1956_v63 }
 0x193   : > { %v1653_v49 = vsel %vm5847_vm5, %v4716_v22, %v8638_v36  ;;  %v8639_v18 = vmov %v8638_v36  ;;  %v5407_v23 = vpack.i.bf16 %v1485_v33, %v1484_v52  ;;  %v5145_v42 = vunpack.i.l.bf16 %v7179_v3  ;;  %v4746_v22 = vld [vmem:[%s5607_s17 + $0xc0] sm:$0xf] }
 0x194   : > { %v1654_v45 = vrot.slane %v8639_v18, 4  ;;  %v1724_v48 = vunpack.c.l.bf16 %v1653_v49  ;;  %v5141_v52 = vunpack.i.h.bf16 %v7181_v51  ;;  %v1963_v15 = vshll.u32 %v7463_v34, 16  ;;  %v7514_v18 = vld [vmem:[%s5607_s17 + $0xc4] sm:$0xf] }
 0x195   : > { %5423 = vrot.lane.b32.xlu1 %v5422_v38, %s5569_s23  ;;  %5408 = vrot.lane.b32.xlu0 %v5407_v23, %s5567_s21  ;;  %v5140_v33 = vunpack.i.l.bf16 %v7181_v51  ;;  %v1961_v36 = vrot.slane %v1960_v55, 4  ;;  %v1967_v38 = vshrl.u32 %v7463_v34, 16  ;;  %v1973_v49 = vshll.u32 %v7498_v28, 16  ;;  %v7523_v55 = vpop.permute.xlu0 %5228 }
 0x196   : > { %v1656_v6 = vsel %vm5847_vm5, %v1654_v45, %v1655_v32  ;;  %v1965_v59 = vrot.slane %v1963_v15, 5  ;;  %v1789_v45 = vunpack.c.l.bf16 %v4746_v22  ;;  %v1790_v3 = vunpack.c.l.bf16 %v7514_v18 }
 0x197   : > { %v1725_v8 = vunpack.c.l.bf16 %v1656_v6  ;;  %v7519_v32 = vsel %vm3620_vm9, %v7237_v4, %v5121_v58  ;;  %v1969_v47 = vrot.slane %v1967_v38, 4  ;;  %v2146_v23 = vshrl.u32 %v4746_v22, 16  ;;  %v7521_v6 = vpop.permute.xlu1 %5233  ;;  %v4772_v58 = vld [vmem:[%s5607_s17 + $0x60] sm:$0xe] }
 0x198   : > { %8641 = vst [vmem:[#allocation2_spill] sm:$0xff] %v7519_v32  ;;  %v2149_v51 = vshll.u32 %v4746_v22, 16  ;;  %v7527_v39 = vsel %vm3620_vm9, %v7309_v41, %v5120_v61  ;;  %v5427_v4 = vpack.i.bf16 %v1790_v3, %v1789_v45  ;;  %v1966_v15 = vsel %vm5635_vm2, %v1961_v36, %v1965_v59 }
 0x199   : > { %v5417_v63 = vpack.i.bf16 %v1725_v8, %v1724_v48  ;;  %8642 = vst [vmem:[#allocation8_spill] sm:$0xff] %v7527_v39  ;;  %v7532_v48 = vsel %vm3620_vm9, %v7322_v13, %v5146_v50  ;;  %v1975_v8 = vrot.slane %v1973_v49, 5  ;;  %v1970_v22 = vor.u32 %v1969_v47, %v1965_v59  ;;  %v7565_v47 = vpop.permute.xlu0 %5238 }
 0x19a   : > { %v2148_v38 = vrot.slane %v2146_v23, 4  ;;  %v2151_v1 = vrot.slane %v2149_v51, 5  ;;  %v7539_v41 = vsel %vm3620_vm9, %v7318_v44, %v5145_v42  ;;  %v7543_v61 = vsel %vm3620_vm9, %v7326_v9, %v5140_v33  ;;  %v7555_v42 = vld [vmem:[%s5607_s17 + $0xc8] sm:$0x1] }
 0x19b   : > { %5418 = vrot.lane.b32.xlu0 %v5417_v63, %s5568_s22  ;;  %v7547_v13 = vsel %vm3620_vm9, %v7346_v24, %v5141_v52  ;;  %v5156_v50 = vunpack.i.h.bf16 %v7213_v21  ;;  %v1971_v49 = vrot.slane %v1970_v22, 4  ;;  %v4788_v63 = vrot.slane %v4772_v58, 9 }
 0x19c   : > { %v2365_v36 = vrot.slane %v7463_v34, 5  ;;  %v2368_v59 = vrot.slane %v7498_v28, 5  ;;  %v2237_v45 = vunpack.c.l.bf16 %v1966_v15  ;;  %v5155_v44 = vunpack.i.l.bf16 %v7213_v21  ;;  %v7563_v28 = vpop.permute.xlu1 %5243 }
 0x19d   : > { %v2152_v9 = vor.u32 %v2151_v1, %v2148_v38  ;;  %v2155_v33 = vshll.u32 %v7514_v18, 16  ;;  %v1976_v24 = vsel %vm5635_vm2, %v1971_v49, %v1975_v8  ;;  %v2159_v34 = vshrl.u32 %v7514_v18, 16 }
 0x19e   : > { %v2366_v52 = vsel %vm5847_vm5, %v4788_v63, %v2365_v36  ;;  %v2367_v3 = vrot.slane %v2365_v36, 4  ;;  %v2238_v21 = vunpack.c.l.bf16 %v1976_v24  ;;  %v2165_v15 = vshll.u32 %v7555_v42, 16  ;;  %v7577_v36 = vld [vmem:[%s5607_s17 + $0xc8] sm:$0x1] }
 0x19f   : > { %5428 = vrot.lane.b32.xlu0 %v5427_v4, %s5569_s23  ;;  %v2477_v23 = vunpack.c.l.bf16 %v2366_v52  ;;  %v2153_v1 = vrot.slane %v2152_v9, 4  ;;  %v2157_v51 = vrot.slane %v2155_v33, 5  ;;  %v5150_v4 = vunpack.i.l.bf16 %v7215_v56 }
 0x1a0   : > { %v2369_v8 = vsel %vm5847_vm5, %v2367_v3, %v2368_v59  ;;  %v2161_v58 = vrot.slane %v2159_v34, 4  ;;  %v5432_v22 = vpack.i.bf16 %v2238_v21, %v2237_v45  ;;  %v7573_v38 = vsel %vm3620_vm9, %v7356_v53, %v5155_v44  ;;  %v4780_v59 = vld [vmem:[%s5607_s17 + $0xc0] sm:$0xe] }
 0x1a1   : > { %8643 = vst [vmem:[#allocation21_spill] sm:$0xff] %v7573_v38  ;;  %v2478_v49 = vunpack.c.l.bf16 %v2369_v8  ;;  %v5166_v63 = vunpack.i.h.bf16 %v7254_v57  ;;  %v2158_v9 = vsel %vm5635_vm2, %v2153_v1, %v2157_v51  ;;  %v2167_v24 = vrot.slane %v2165_v15, 5  ;;  %v8644_v21 = vld [vmem:[#allocation6_spill] sm:$0xff] }
 0x1a2   : > { %v2162_v33 = vor.u32 %v2161_v58, %v2157_v51  ;;  %5433 = vrot.lane.b32.xlu1 %v5432_v22, %s5570_s24  ;;  %v7585_v45 = vsel %vm3620_vm9, %v7360_v0, %v5156_v50  ;;  %v5165_v52 = vunpack.i.l.bf16 %v7254_v57  ;;  %v7591_v3 = vsel %vm3620_vm9, %v7364_v40, %v5150_v4  ;;  %v7596_v58 = vpop.permute.xlu1 %5253  ;;  %v7598_v0 = vpop.permute.xlu0 %5248  ;;  %v8646_v4 = vld [vmem:[#allocation16_spill] sm:$0xff] }
 0x1a3   : > { %v5442_v44 = vpack.i.bf16 %v2478_v49, %v2477_v23  ;;  %v8645_v1 = vshll.u32 %v8644_v21, 16  ;;  %v1420_v8 = vshll.u32 %v7577_v36, 16  ;;  %v2253_v50 = vunpack.c.l.bf16 %v2158_v9  ;;  %v8647_v49 = vld [vmem:[#allocation14_spill] sm:$0xff] }
 0x1a4   : > { %v2163_v34 = vrot.slane %v2162_v33, 4  ;;  %v3655_v23 = vsel %vm3653_vm10, %v7456_v11, %v5166_v63  ;;  %v4796_v57 = vrot.slane %v4780_v59, 9  ;;  %v2421_v15 = vrot.slane %v7514_v18, 5  ;;  %v4701_v63 = vld [vmem:[%s5607_s17 + $0xc0] sm:$0xe] }
 0x1a5   : > { %v1412_v51 = vrot.slane %v8645_v1, 5  ;;  %v1422_v1 = vrot.slane %v1420_v8, 5  ;;  %v3654_v9 = vsel %vm3653_vm10, %v7452_v19, %v5165_v52  ;;  %v5176_v8 = vunpack.i.h.bf16 %v7301_v12 }
 0x1a6   : > { %v2168_v40 = vsel %vm5635_vm2, %v2163_v34, %v2167_v24  ;;  %5443 = vrot.lane.b32.xlu1 %v5442_v44, %s5571_s25  ;;  %v2422_v11 = vsel %vm5847_vm5, %v4796_v57, %v2421_v15  ;;  %v2423_v18 = vrot.slane %v2421_v15, 4  ;;  %v2424_v34 = vrot.slane %v7555_v42, 5  ;;  %v7625_v42 = vpop.permute.xlu0 %5258 }
 0x1a7   : > { %v1413_v22 = vsel %vm5635_vm2, %v8646_v4, %v1412_v51  ;;  %v1417_v33 = vor.u32 %v8647_v49, %v1412_v51  ;;  %v2254_v53 = vunpack.c.l.bf16 %v2168_v40  ;;  %v2493_v51 = vunpack.c.l.bf16 %v2422_v11  ;;  %v7623_v40 = vpop.permute.xlu1 %5263  ;;  %v4693_v49 = vld [vmem:[%s5607_s17 + $0x60] sm:$0xe] }
 0x1a8   : > { %v1486_v24 = vunpack.c.l.bf16 %v1413_v22  ;;  %v5175_v44 = vunpack.i.l.bf16 %v7301_v12  ;;  %v2425_v52 = vsel %vm5847_vm5, %v2423_v18, %v2424_v34  ;;  %v5170_v57 = vunpack.i.l.bf16 %v7303_v30 }
 0x1a9   : > { %v1418_v59 = vrot.slane %v1417_v33, 4  ;;  %v5437_v4 = vpack.i.bf16 %v2254_v53, %v2253_v50  ;;  %v4717_v15 = vrot.slane %v4701_v63, 9  ;;  %v2494_v50 = vunpack.c.l.bf16 %v2425_v52 }
 0x1aa   : > { %v3687_v22 = vsel %vm3686_vm11, %v3654_v9, %v5175_v44  ;;  %v5171_v12 = vunpack.i.h.bf16 %v7303_v30  ;;  %v3688_v33 = vsel %vm3686_vm11, %v3655_v23, %v5176_v8  ;;  %v8648_v11 = vrot.slane %v8644_v21, 5 }
 0x1ab   : > { %v1423_v19 = vsel %vm5635_vm2, %v1418_v59, %v1422_v1  ;;  %5438 = vrot.lane.b32.xlu0 %v5437_v4, %s5570_s24  ;;  %v3670_v1 = vsel %vm3653_vm10, %v7543_v61, %v5170_v57  ;;  %v5447_v4 = vpack.i.bf16 %v2494_v50, %v2493_v51  ;;  %v1662_v9 = vrot.slane %v7577_v36, 5 }
 0x1ac   : > { %v1487_v53 = vunpack.c.l.bf16 %v1423_v19  ;;  %v1660_v18 = vsel %vm5847_vm5, %v4717_v15, %v8648_v11  ;;  %v8649_v63 = vmov %v8648_v11  ;;  %v4709_v44 = vrot.slane %v4693_v49, 9  ;;  %v8650_v19 = vld [vmem:[#allocation3_spill] sm:$0xff]  ;;  %v7662_v11 = vpop.permute.xlu1 %5273 }
 0x1ad   : > { %v1661_v59 = vrot.slane %v8649_v63, 4  ;;  %v1726_v30 = vunpack.c.l.bf16 %v1660_v18  ;;  %v8651_v23 = vrot.slane %v8650_v19, 5  ;;  %v5186_v61 = vunpack.i.h.bf16 %v7339_v62 }
 0x1ae   : > { %v5452_v34 = vpack.i.bf16 %v1487_v53, %v1486_v24  ;;  %v3671_v21 = vsel %vm3653_vm10, %v7547_v13, %v5171_v12  ;;  %v5185_v24 = vunpack.i.l.bf16 %v7339_v62  ;;  %v5180_v51 = vunpack.i.l.bf16 %v7341_v16  ;;  %v8653_v53 = vld [vmem:[#allocation9_spill] sm:$0xff]  ;;  %v4748_v12 = vld [vmem:[%s5607_s17 + $0xcc] sm:$0xf]  ;;  %v7664_v62 = vpop.permute.xlu0 %5268 }
 0x1af   : > { %v1605_v8 = vrot.slane %v8651_v23, 4  ;;  %5448 = vrot.lane.b32.xlu0 %v5447_v4, %s5571_s25  ;;  %v1663_v36 = vsel %vm5847_vm5, %v1661_v59, %v1662_v9  ;;  %v8652_v57 = vmov %v8651_v23  ;;  %v8654_v50 = vrot.slane %v8653_v53, 5  ;;  %v7669_v4 = vld [vmem:[%s5607_s17 + $0xd0] sm:$0xf]  ;;  %v4732_v9 = vld [vmem:[%s5607_s17 + $0x6c] sm:$0xf] }
 0x1b0   : > { %5453 = vrot.lane.b32.xlu1 %v5452_v34, %s5567_s21  ;;  %v1727_v52 = vunpack.c.l.bf16 %v1663_v36  ;;  %v1604_v15 = vsel %vm5847_vm5, %v4709_v44, %v8652_v57  ;;  %v5181_v13 = vunpack.i.h.bf16 %v7341_v16  ;;  %v3720_v59 = vsel %vm3719_vm12, %v3687_v22, %v5185_v24  ;;  %v7675_v53 = vld [vmem:[%s5607_s17 + $0x70] sm:$0xf] }
 0x1b1   : > { %v1607_v49 = vsel %vm5847_vm5, %v1605_v8, %v8654_v50  ;;  %v1710_v18 = vunpack.c.l.bf16 %v1604_v15  ;;  %v3721_v34 = vsel %vm3719_vm12, %v3688_v33, %v5186_v61  ;;  %v3703_v19 = vsel %vm3686_vm11, %v3670_v1, %v5180_v51  ;;  %v3809_v1 = vld [vmem:[%s8506_s1 + $0x40] sm:$0xff] }
 0x1b2   : > { %v1711_v63 = vunpack.c.l.bf16 %v1607_v49  ;;  %v5462_v44 = vpack.i.bf16 %v1727_v52, %v1726_v30  ;;  %v1791_v23 = vunpack.c.l.bf16 %v4748_v12  ;;  %v1792_v16 = vunpack.c.l.bf16 %v7669_v4 }
 0x1b3   : > { %v2170_v36 = vshrl.u32 %v4748_v12, 16  ;;  %v2173_v57 = vshll.u32 %v4748_v12, 16  ;;  %v1775_v15 = vunpack.c.l.bf16 %v4732_v9  ;;  %v1776_v33 = vunpack.c.l.bf16 %v7675_v53 }
 0x1b4   : > { %v5457_v8 = vpack.i.bf16 %v1711_v63, %v1710_v18  ;;  %5463 = vrot.lane.b32.xlu1 %v5462_v44, %s5568_s22  ;;  %v5472_v22 = vpack.i.bf16 %v1792_v16, %v1791_v23  ;;  %v1978_v61 = vshrl.u32 %v4732_v9, 16  ;;  %v1981_v24 = vshll.u32 %v4732_v9, 16  ;;  %v7686_v63 = vld [vmem:[%s5607_s17 + $0xd4] sm:$0x1]  ;;  %v7688_v9 = vpop.permute.xlu1 %5283  ;;  %v7690_v44 = vpop.permute.xlu0 %5278 }
 0x1b5   : > { %v2172_v30 = vrot.slane %v2170_v36, 4  ;;  %v2175_v51 = vrot.slane %v2173_v57, 5  ;;  %v5196_v52 = vunpack.i.h.bf16 %v7373_v7  ;;  %v5467_v12 = vpack.i.bf16 %v1776_v33, %v1775_v15  ;;  %v7701_v33 = vld [vmem:[%s5607_s17 + $0x74] sm:$0x1] }
 0x1b6   : > { %5458 = vrot.lane.b32.xlu0 %v5457_v8, %s5568_s22  ;;  %v1980_v50 = vrot.slane %v1978_v61, 4  ;;  %v1983_v49 = vrot.slane %v1981_v24, 5  ;;  %v5195_v18 = vunpack.i.l.bf16 %v7373_v7  ;;  %v3704_v23 = vsel %vm3686_vm11, %v3671_v21, %v5181_v13 }
 0x1b7   : > { %v5191_v16 = vunpack.i.h.bf16 %v7375_v54  ;;  %v5190_v8 = vunpack.i.l.bf16 %v7375_v54  ;;  %v4807_v36 = vcombine.high %v3809_v1, %v3809_v1  ;;  %v7697_v57 = vsel %vm3752_vm13, %v3721_v34, %v5196_v52 }
 0x1b8   : > { %5473 = vrot.lane.b32.xlu1 %v5472_v22, %s5569_s23  ;;  %v2176_v7 = vor.u32 %v2175_v51, %v2172_v30  ;;  %v2179_v15 = vshll.u32 %v7669_v4, 16  ;;  %v7705_v21 = vsel %vm3752_vm13, %v3720_v59, %v5195_v18  ;;  %v2183_v54 = vshrl.u32 %v7669_v4, 16 }
 0x1b9   : > { %v3736_v13 = vsel %vm3719_vm12, %v3703_v19, %v5190_v8  ;;  %4808 = vmatprep.subr.msk.bf16.mxu0 %vm3904_vm14, %v4807_v36  ;;  %v2189_v34 = vshll.u32 %v7686_v63, 16  ;;  %v1984_v24 = vor.u32 %v1983_v49, %v1980_v50  ;;  %v1987_v30 = vshll.u32 %v7675_v53, 16  ;;  %4833 = vmatprep.subr.msk.bf16.mxu1 %vm3904_vm14, %v4807_v36  ;;  %v7720_v50 = vpop.permute.xlu0 %5288 }
 0x1ba   : > { %5468 = vrot.lane.b32.xlu0 %v5467_v12, %s5569_s23  ;;  %v2177_v22 = vrot.slane %v2176_v7, 4  ;;  %v2181_v61 = vrot.slane %v2179_v15, 5  ;;  %v3737_v51 = vsel %vm3719_vm12, %v3704_v23, %v5191_v16  ;;  %v2185_v52 = vrot.slane %v2183_v54, 4  ;;  %v7718_v15 = vpop.permute.xlu1 %5293  ;;  %s4828_s23 = sshll.u32 %s8679_s13, 8 }
 0x1bb   : > { %v1991_v59 = vshrl.u32 %v7675_v53, 16  ;;  %v1997_v19 = vshll.u32 %v7701_v33, 16  ;;  %v1985_v18 = vrot.slane %v1984_v24, 4  ;;  %v1989_v8 = vrot.slane %v1987_v30, 5  ;;  %v4781_v24 = vld [vmem:[%s5607_s17 + $0xcc] sm:$0xe]  ;;  %s8404_s26 = scalar_lea.vmem %s8508_s3, %s4828_s23 }
 0x1bc   : > { %v2182_v12 = vsel %vm5635_vm2, %v2177_v22, %v2181_v61  ;;  %v4806_v7 = vcombine.low %v3809_v1, %v3809_v1  ;;  %v2186_v49 = vor.u32 %v2185_v52, %v2181_v61  ;;  %v2191_v36 = vrot.slane %v2189_v34, 5 }
 0x1bd   : > { %v2255_v32 = vunpack.c.l.bf16 %v2182_v12  ;;  %v1993_v23 = vrot.slane %v1991_v59, 4  ;;  %v1990_v16 = vsel %vm5635_vm2, %v1985_v18, %v1989_v8  ;;  %v1999_v54 = vrot.slane %v1997_v19, 5  ;;  %v4773_v19 = vld [vmem:[%s5607_s17 + $0x6c] sm:$0xe] }
 0x1be   : > { %v3906_v39 = vsel %vm3904_vm14, %v4806_v7, 0  ;;  %v5205_v22 = vunpack.i.l.bf16 %v7397_v60  ;;  %v2187_v30 = vrot.slane %v2186_v49, 4  ;;  %v5206_v38 = vunpack.i.h.bf16 %v7397_v60 }
 0x1bf   : > { %v1994_v1 = vor.u32 %v1993_v23, %v1989_v8  ;;  %3920 = vmatpush1.bf16.msra.mxu0 %v3906_v39  ;;  %v5201_v61 = vunpack.i.h.bf16 %v7399_v5  ;;  %4838 = vmatpush1.bf16.msra.mxu1 %v3906_v39  ;;  %v2239_v34 = vunpack.c.l.bf16 %v1990_v16  ;;  %v5200_v59 = vunpack.i.l.bf16 %v7399_v5  ;;  %v7741_v23 = vpop.permute.xlu1 %5303  ;;  %v7743_v16 = vpop.permute.xlu0 %5298 }
 0x1c0   : > { %v3656_v52 = vsel %vm3653_vm10, %v7425_v25, %v5205_v22  ;;  %v2192_v12 = vsel %vm5635_vm2, %v2187_v30, %v2191_v36  ;;  %v5572_v8 = vmov 0   ;;  %v4797_v60 = vrot.slane %v4781_v24, 9 }
 0x1c1   : > { %v1995_v18 = vrot.slane %v1994_v1, 4  ;;  %v3770_v7 = vsel %vm3752_vm13, %v3737_v51, %v5201_v61  ;;  %3943 = vmatprep.mubr.bf16.mxu0 %v5572_v8  ;;  %4023 = vmatprep.mubr.bf16.mxu1 %v5572_v8  ;;  %v2256_v39 = vunpack.c.l.bf16 %v2192_v12  ;;  %v3769_v49 = vsel %vm3752_vm13, %v3736_v13, %v5200_v59 }
 0x1c2   : > { %v2428_v25 = vrot.slane %v7669_v4, 5  ;;  %v2431_v5 = vrot.slane %v7686_v63, 5  ;;  %v4789_v36 = vrot.slane %v4773_v19, 9  ;;  %v2372_v22 = vrot.slane %v7675_v53, 5 }
 0x1c3   : > { %v2000_v51 = vsel %vm5635_vm2, %v1995_v18, %v1999_v54  ;;  %v2375_v24 = vrot.slane %v7701_v33, 5  ;;  %v5482_v30 = vpack.i.bf16 %v2256_v39, %v2255_v32  ;;  %v3785_v26 = vpack.c.bf16 %v7697_v57, %v7705_v21  ;;  %v7767_v39 = vpop.permute.xlu1 %5313  ;;  %v7769_v14 = vpop.permute.xlu0 %5308 }
 0x1c4   : > { %v2240_v1 = vunpack.c.l.bf16 %v2000_v51  ;;  %v2429_v13 = vsel %vm5847_vm5, %v4797_v60, %v2428_v25  ;;  %v2430_v4 = vrot.slane %v2428_v25, 4  ;;  %v2373_v63 = vsel %vm5847_vm5, %v4789_v36, %v2372_v22 }
 0x1c5   : > { %v2495_v61 = vunpack.c.l.bf16 %v2429_v13  ;;  %v2374_v59 = vrot.slane %v2372_v22, 4  ;;  %5483 = vrot.lane.b32.xlu1 %v5482_v30, %s5570_s24  ;;  %v2479_v32 = vunpack.c.l.bf16 %v2373_v63  ;;  %4809 = vmatmul.mubr.msk.bf16.vlgmr.msra.gmra.mrb[0].mxu0 %vm3855_vm15, %v3785_v26  ;;  %v5216_v12 = vunpack.i.h.bf16 %v7446_v10 }
 0x1c6   : > { %v5477_v54 = vpack.i.bf16 %v2240_v1, %v2239_v34  ;;  %v2432_v53 = vsel %vm5847_vm5, %v2430_v4, %v2431_v5  ;;  %v5215_v18 = vunpack.i.l.bf16 %v7446_v10  ;;  %v5211_v21 = vunpack.i.h.bf16 %v7448_v20  ;;  %3953 = vmatprep.mubr.bf16.mxu0 %v5572_v8 }
 0x1c7   : > { %v2496_v33 = vunpack.c.l.bf16 %v2432_v53  ;;  %v2376_v19 = vsel %vm5847_vm5, %v2374_v59, %v2375_v24  ;;  %v5210_v34 = vunpack.i.l.bf16 %v7448_v20  ;;  %v3793_v60 = vpack.c.bf16 %v3770_v7, %v3769_v49  ;;  %v7800_v59 = vpop.permute.xlu1 %5323  ;;  %v7802_v26 = vpop.permute.xlu0 %5318 }
 0x1c8   : > { %5478 = vrot.lane.b32.xlu0 %v5477_v54, %s5570_s24  ;;  %v2480_v57 = vunpack.c.l.bf16 %v2376_v19  ;;  %v3657_v25 = vsel %vm3653_vm10, %v7418_v37, %v5206_v38  ;;  %v3689_v10 = vsel %vm3686_vm11, %v3656_v52, %v5215_v18  ;;  %v5226_v51 = vunpack.i.h.bf16 %v7488_v46 }
 0x1c9   : > { %v5492_v5 = vpack.i.bf16 %v2496_v33, %v2495_v61  ;;  %v3690_v22 = vsel %vm3686_vm11, %v3657_v25, %v5216_v12  ;;  %v3673_v20 = vsel %vm3653_vm10, %v7532_v48, %v5211_v21  ;;  %4817 = vmatmul.mubr.msk.bf16.vlgmr.msra.gmra.mrb[0].mxu1 %vm3855_vm15, %v3793_v60  ;;  %v5225_v7 = vunpack.i.l.bf16 %v7488_v46 }
 0x1ca   : > { %v5487_v36 = vpack.i.bf16 %v2480_v57, %v2479_v32  ;;  %v3672_v37 = vsel %vm3653_vm10, %v7539_v41, %v5210_v34  ;;  %v5221_v38 = vunpack.i.h.bf16 %v7490_v29  ;;  %v5220_v52 = vunpack.i.l.bf16 %v7490_v29  ;;  %4033 = vmatprep.mubr.bf16.mxu1 %v5572_v8 }
 0x1cb   : > { %5493 = vrot.lane.b32.xlu1 %v5492_v5, %s5571_s25  ;;  %v5236_v49 = vunpack.i.h.bf16 %v7521_v6  ;;  %v3723_v48 = vsel %vm3719_vm12, %v3690_v22, %v5226_v51  ;;  %v5235_v24 = vunpack.i.l.bf16 %v7521_v6  ;;  %v5231_v46 = vunpack.i.h.bf16 %v7523_v55  ;;  %v7834_v22 = vpop.permute.xlu1 %5333 }
 0x1cc   : > { %5488 = vrot.lane.b32.xlu0 %v5487_v36, %s5571_s25  ;;  %v5230_v30 = vunpack.i.l.bf16 %v7523_v55  ;;  %v3722_v41 = vsel %vm3719_vm12, %v3689_v10, %v5225_v7  ;;  %v3705_v1 = vsel %vm3686_vm11, %v3672_v37, %v5220_v52  ;;  %v3706_v29 = vsel %vm3686_vm11, %v3673_v20, %v5221_v38  ;;  %v7836_v20 = vpop.permute.xlu0 %5328 }
 0x1cd   : > { %v3756_v13 = vsel %vm3752_vm13, %v3723_v48, %v5236_v49  ;;  %v3755_v4 = vsel %vm3752_vm13, %v3722_v41, %v5235_v24  ;;  %v5246_v63 = vunpack.i.h.bf16 %v7563_v28  ;;  %v5245_v6 = vunpack.i.l.bf16 %v7563_v28 }
 0x1ce   : > { %v3738_v61 = vsel %vm3719_vm12, %v3705_v1, %v5230_v30  ;;  %v3739_v55 = vsel %vm3719_vm12, %v3706_v29, %v5231_v46  ;;  %v5241_v54 = vunpack.i.h.bf16 %v7565_v47  ;;  %v5240_v53 = vunpack.i.l.bf16 %v7565_v47 }
 0x1cf   : > { %v3786_v32 = vpack.c.bf16 %v3756_v13, %v3755_v4  ;;  %v3658_v33 = vsel %vm3653_vm10, %v7494_v31, %v5245_v6  ;;  %v5256_v19 = vunpack.i.h.bf16 %v7596_v58  ;;  %v5255_v12 = vunpack.i.l.bf16 %v7596_v58 }
 0x1d0   : > { %v5251_v28 = vunpack.i.h.bf16 %v7598_v0  ;;  %v3771_v18 = vsel %vm3752_vm13, %v3738_v61, %v5240_v53  ;;  %v3772_v57 = vsel %vm3752_vm13, %v3739_v55, %v5241_v54  ;;  %v5250_v21 = vunpack.i.l.bf16 %v7598_v0  ;;  %v7865_v55 = vpop.permute.xlu0 %5338 }
 0x1d1   : > { %4810 = vmatmul.mubr.msk.bf16.gmra.mrb[4].mxu0 %vm3855_vm15, %v3786_v32  ;;  %v5266_v47 = vunpack.i.h.bf16 %v7623_v40  ;;  %v8655_v34 = vunpack.i.h.bf16 %v7215_v56  ;;  %v3659_v58 = vsel %vm3653_vm10, %v7479_v2, %v5246_v63  ;;  %v3691_v60 = vsel %vm3686_vm11, %v3658_v33, %v5255_v12 }
 0x1d2   : > { %v3794_v25 = vpack.c.bf16 %v3772_v57, %v3771_v18  ;;  %3963 = vmatprep.mubr.bf16.mxu0 %v5572_v8  ;;  %v3692_v5 = vsel %vm3686_vm11, %v3659_v58, %v5256_v19  ;;  %v5265_v0 = vunpack.i.l.bf16 %v7623_v40  ;;  %v5261_v51 = vunpack.i.h.bf16 %v7625_v42 }
 0x1d3   : > { %v3642_v31 = vsel %vm3620_vm9, %v7368_v27, %v8655_v34  ;;  %v5260_v56 = vunpack.i.l.bf16 %v7625_v42  ;;  %v5276_v27 = vunpack.i.h.bf16 %v7662_v11  ;;  %v5275_v2 = vunpack.i.l.bf16 %v7662_v11 }
 0x1d4   : > { %v3675_v10 = vsel %vm3653_vm10, %v3642_v31, %v5251_v28  ;;  %4818 = vmatmul.mubr.msk.bf16.gmra.mrb[4].mxu1 %vm3855_vm15, %v3794_v25  ;;  %v5271_v36 = vunpack.i.h.bf16 %v7664_v62  ;;  %v3674_v7 = vsel %vm3653_vm10, %v7591_v3, %v5250_v21  ;;  %v3724_v40 = vsel %vm3719_vm12, %v3691_v60, %v5265_v0  ;;  %v8656_v21 = vld [vmem:[#allocation21_spill] sm:$0xff] }
 0x1d5   : > { %v3725_v37 = vsel %vm3719_vm12, %v3692_v5, %v5266_v47  ;;  %v5270_v38 = vunpack.i.l.bf16 %v7664_v62  ;;  %4043 = vmatprep.mubr.bf16.mxu1 %v5572_v8  ;;  %v3708_v42 = vsel %vm3686_vm11, %v3675_v10, %v5261_v51  ;;  %v3757_v11 = vsel %vm3752_vm13, %v3724_v40, %v5275_v2  ;;  %v8657_v40 = vld [vmem:[#allocation8_spill] sm:$0xff] }
 0x1d6   : > { %v3758_v52 = vsel %vm3752_vm13, %v3725_v37, %v5276_v27  ;;  %v5286_v49 = vunpack.i.h.bf16 %v7688_v9  ;;  %v3707_v48 = vsel %vm3686_vm11, %v3674_v7, %v5260_v56  ;;  %v3741_v3 = vsel %vm3719_vm12, %v3708_v42, %v5271_v36 }
 0x1d7   : > { %v5285_v24 = vunpack.i.l.bf16 %v7688_v9  ;;  %v5281_v46 = vunpack.i.h.bf16 %v7690_v44  ;;  %v5280_v62 = vunpack.i.l.bf16 %v7690_v44  ;;  %v3787_v30 = vpack.c.bf16 %v3758_v52, %v3757_v11 }
 0x1d8   : > { %v5296_v41 = vunpack.i.h.bf16 %v7718_v15  ;;  %v5295_v1 = vunpack.i.l.bf16 %v7718_v15  ;;  %v5161_v29 = vunpack.i.h.bf16 %v7256_v35  ;;  %v3740_v13 = vsel %vm3719_vm12, %v3707_v48, %v5270_v38  ;;  %v5344_v15 = vpop.permute.xlu1 %5343  ;;  %v8658_v38 = vld [vmem:[#allocation2_spill] sm:$0xff] }
 0x1d9   : > { %v3660_v4 = vsel %vm3653_vm10, %v7468_v17, %v5285_v24  ;;  %v3774_v61 = vsel %vm3752_vm13, %v3741_v3, %v5281_v46  ;;  %v3773_v9 = vsel %vm3752_vm13, %v3740_v13, %v5280_v62  ;;  %4811 = vmatmul.mubr.msk.bf16.gmra.mrb[8].mxu0 %vm3855_vm15, %v3787_v30  ;;  %v5291_v44 = vunpack.i.h.bf16 %v7720_v50 }
 0x1da   : > { %v5290_v63 = vunpack.i.l.bf16 %v7720_v50  ;;  %v5306_v6 = vunpack.i.h.bf16 %v7741_v23  ;;  %v3661_v54 = vsel %vm3653_vm10, %v7472_v43, %v5286_v49  ;;  %v3693_v17 = vsel %vm3686_vm11, %v3660_v4, %v5295_v1  ;;  %3973 = vmatprep.mubr.bf16.mxu0 %v5572_v8 }
 0x1db   : > { %v3795_v53 = vpack.c.bf16 %v3774_v61, %v3773_v9  ;;  %v5305_v32 = vunpack.i.l.bf16 %v7741_v23  ;;  %v3694_v33 = vsel %vm3686_vm11, %v3661_v54, %v5296_v41  ;;  %v5301_v19 = vunpack.i.h.bf16 %v7743_v16 }
 0x1dc   : > { %v5300_v50 = vunpack.i.l.bf16 %v7743_v16  ;;  %v5316_v12 = vunpack.i.h.bf16 %v7767_v39  ;;  %v3727_v28 = vsel %vm3719_vm12, %v3694_v33, %v5306_v6  ;;  %v5315_v43 = vunpack.i.l.bf16 %v7767_v39  ;;  %v5354_v10 = vpop.permute.xlu1 %5353  ;;  %v5349_v0 = vpop.permute.xlu0 %5348 }
 0x1dd   : > { %4819 = vmatmul.mubr.msk.bf16.gmra.mrb[8].mxu1 %vm3855_vm15, %v3795_v53  ;;  %v5311_v18 = vunpack.i.h.bf16 %v7769_v14  ;;  %v5310_v23 = vunpack.i.l.bf16 %v7769_v14  ;;  %v3677_v57 = vsel %vm3653_vm10, %v7585_v45, %v5291_v44  ;;  %v3676_v47 = vsel %vm3653_vm10, %v8656_v21, %v5290_v63  ;;  %v8660_v63 = vld [vmem:[#allocation12_spill] sm:$0xff] }
 0x1de   : > { %v3726_v16 = vsel %vm3719_vm12, %v3693_v17, %v5305_v32  ;;  %v3760_v34 = vsel %vm3752_vm13, %v3727_v28, %v5316_v12  ;;  %4053 = vmatprep.mubr.bf16.mxu1 %v5572_v8  ;;  %v3709_v31 = vsel %vm3686_vm11, %v3676_v47, %v5300_v50  ;;  %v5326_v58 = vunpack.i.h.bf16 %v7800_v59  ;;  %v5553_v47 = vld [vmem:[%s5607_s17 + $0x40] sm:$0xf] }
 0x1df   : > { %v3759_v39 = vsel %vm3752_vm13, %v3726_v16, %v5315_v43  ;;  %v5325_v14 = vunpack.i.l.bf16 %v7800_v59  ;;  %v3710_v60 = vsel %vm3686_vm11, %v3677_v57, %v5301_v19  ;;  %v5321_v45 = vunpack.i.h.bf16 %v7802_v26  ;;  %v5552_v57 = vld [vmem:[%s5607_s17 + $0x3c] sm:$0xf] }
 0x1e0   : > { %v5320_v25 = vunpack.i.l.bf16 %v7802_v26  ;;  %v3788_v5 = vpack.c.bf16 %v3760_v34, %v3759_v39  ;;  %v3742_v51 = vsel %vm3719_vm12, %v3709_v31, %v5310_v23  ;;  %v3743_v56 = vsel %vm3719_vm12, %v3710_v60, %v5311_v18  ;;  %v5359_v9 = vpop.permute.xlu0 %5358  ;;  %v8661_v34 = vld [vmem:[#allocation11_spill] sm:$0xff]  ;;  %v5555_v60 = vld [vmem:[%s5607_s17 + $0xa0] sm:$0xf] }
 0x1e1   : > { %v5336_v27 = vunpack.i.h.bf16 %v7834_v22  ;;  %v5335_v2 = vunpack.i.l.bf16 %v7834_v22  ;;  %v5160_v36 = vunpack.i.l.bf16 %v7256_v35  ;;  %v3776_v7 = vsel %vm3752_vm13, %v3743_v56, %v5321_v45 }
 0x1e2   : > { %v3775_v59 = vsel %vm3752_vm13, %v3742_v51, %v5320_v25  ;;  %4812 = vmatmul.mubr.msk.bf16.gmra.mrb[12].mxu0 %vm3855_vm15, %v3788_v5  ;;  %v5346_v26 = vunpack.i.h.bf16 %v5344_v15  ;;  %v3662_v37 = vsel %vm3653_vm10, %v8657_v40, %v5325_v14  ;;  %v3663_v42 = vsel %vm3653_vm10, %v8658_v38, %v5326_v58  ;;  %v7917_v61 = vpop.permute.xlu1 %5363  ;;  %v5554_v58 = vld [vmem:[%s5607_s17 + $0x9c] sm:$0xf]  ;;  %v8662_v25 = vld [vmem:[#allocation15_spill] sm:$0xff]  ;;  %s4827_s17 = sshll.u32 %s8679_s13, 9 }
 0x1e3   : > { %v5331_v11 = vunpack.i.h.bf16 %v7836_v20  ;;  %v3796_v52 = vpack.c.bf16 %v3776_v7, %v3775_v59  ;;  %3983 = vmatprep.mubr.bf16.mxu0 %v5572_v8  ;;  %v3695_v22 = vsel %vm3686_vm11, %v3662_v37, %v5335_v2  ;;  %v3696_v49 = vsel %vm3686_vm11, %v3663_v42, %v5336_v27  ;;  %v8664_v2 = vld [vmem:[#allocation22_spill] sm:$0xff]  ;;  %s8058_s22 = scalar_lea.vmem %s8507_s2, %s4827_s17 }
 0x1e4   : > { %v5330_v48 = vunpack.i.l.bf16 %v7836_v20  ;;  %v5345_v3 = vunpack.i.l.bf16 %v5344_v15  ;;  %v5341_v24 = vunpack.i.h.bf16 %v7865_v55  ;;  %v5340_v46 = vunpack.i.l.bf16 %v7865_v55  ;;  %v8659_v20 = vld [vmem:[#allocation13_spill] sm:$0xff]  ;;  %v8665_v7 = vld [vmem:[#allocation30_spill] sm:$0xff] }
 0x1e5   : > { %4820 = vmatmul.mubr.msk.bf16.gmra.mrb[12].mxu1 %vm3855_vm15, %v3796_v52  ;;  %v5356_v62 = vunpack.i.h.bf16 %v5354_v10  ;;  %v5355_v30 = vunpack.i.l.bf16 %v5354_v10  ;;  %v3729_v1 = vsel %vm3719_vm12, %v3696_v49, %v5346_v26  ;;  %v5351_v13 = vunpack.i.h.bf16 %v5349_v0  ;;  %v8666_v52 = vld [vmem:[#allocation31_spill] sm:$0xff] }
 0x1e6   : > { %v3728_v41 = vsel %vm3719_vm12, %v3695_v22, %v5345_v3  ;;  %v5350_v4 = vunpack.i.l.bf16 %v5349_v0  ;;  %4063 = vmatprep.mubr.bf16.mxu1 %v5572_v8  ;;  %v3645_v44 = vsel %vm3620_vm9, %v8659_v20, %v5160_v36  ;;  %v3646_v6 = vsel %vm3620_vm9, %v8660_v63, %v5161_v29  ;;  %v5374_v18 = vpop.permute.xlu1 %5373  ;;  %v8663_v0 = vld [vmem:[#allocation19_spill] sm:$0xff] }
 0x1e7   : > { %v3761_v15 = vsel %vm3752_vm13, %v3728_v41, %v5355_v30  ;;  %v3762_v55 = vsel %vm3752_vm13, %v3729_v1, %v5356_v62  ;;  %v3678_v54 = vsel %vm3653_vm10, %v3645_v44, %v5330_v48  ;;  %v3679_v17 = vsel %vm3653_vm10, %v3646_v6, %v5331_v11 }
 0x1e8   : > { %v3789_v53 = vpack.c.bf16 %v3762_v55, %v3761_v15  ;;  %v3711_v32 = vsel %vm3686_vm11, %v3678_v54, %v5340_v46  ;;  %v3712_v33 = vsel %vm3686_vm11, %v3679_v17, %v5341_v24  ;;  %v5361_v19 = vunpack.i.h.bf16 %v5359_v9  ;;  %v5369_v23 = vpop.permute.xlu0 %5368 }
 0x1e9   : > { %v5360_v35 = vunpack.i.l.bf16 %v5359_v9  ;;  %v3744_v50 = vsel %vm3719_vm12, %v3711_v32, %v5350_v4  ;;  %v3745_v29 = vsel %vm3719_vm12, %v3712_v33, %v5351_v13  ;;  %v227_v21 = vunpack.c.l.bf16 %v5552_v57  ;;  %v8667_v4 = vld [vmem:[#allocation33_spill] sm:$0xff] }
 0x1ea   : > { %4813 = vmatmul.mubr.msk.bf16.gmra.mrb[16].mxu0 %vm3855_vm15, %v3789_v53  ;;  %v3778_v28 = vsel %vm3752_vm13, %v3745_v29, %v5361_v19  ;;  %v228_v16 = vunpack.c.l.bf16 %v5553_v47  ;;  %v4886_v31 = vunpack.i.h.bf16 %v8661_v34  ;;  %v4885_v39 = vunpack.i.l.bf16 %v8661_v34  ;;  %v5384_v27 = vpop.permute.xlu1 %5383 }
 0x1eb   : > { %v3777_v12 = vsel %vm3752_vm13, %v3744_v50, %v5360_v35  ;;  %3993 = vmatprep.mubr.bf16.mxu0 %v5572_v8  ;;  %v243_v14 = vunpack.c.l.bf16 %v5554_v58  ;;  %v244_v45 = vunpack.c.l.bf16 %v5555_v60  ;;  %v4926_v5 = vunpack.i.h.bf16 %v8662_v25 }
 0x1ec   : > { %v3797_v43 = vpack.c.bf16 %v3778_v28, %v3777_v12  ;;  %v4925_v10 = vunpack.i.l.bf16 %v8662_v25  ;;  %v4966_v51 = vunpack.i.h.bf16 %v8663_v0  ;;  %v4965_v56 = vunpack.i.l.bf16 %v8663_v0  ;;  %v5379_v48 = vpop.permute.xlu0 %5378 }
 0x1ed   : > { %v5006_v36 = vunpack.i.h.bf16 %v8664_v2  ;;  %v5005_v59 = vunpack.i.l.bf16 %v8664_v2  ;;  %v5046_v26 = vunpack.i.h.bf16 %v8665_v7  ;;  %v5045_v40 = vunpack.i.l.bf16 %v8665_v7 }
 0x1ee   : > { %4821 = vmatmul.mubr.msk.bf16.gmra.mrb[16].mxu1 %vm3855_vm15, %v3797_v43  ;;  %v3533_v37 = vsel %vm3521_vm6, %v228_v16, %v4886_v31  ;;  %v3532_v38 = vsel %vm3521_vm6, %v227_v21, %v4885_v39  ;;  %v3549_v42 = vsel %vm3521_vm6, %v244_v45, %v4926_v5  ;;  %v3548_v11 = vsel %vm3521_vm6, %v243_v14, %v4925_v10 }
 0x1ef   : > { %4073 = vmatprep.mubr.bf16.mxu1 %v5572_v8  ;;  %v5086_v22 = vunpack.i.h.bf16 %v8666_v52  ;;  %v5085_v49 = vunpack.i.l.bf16 %v8666_v52  ;;  %v3566_v3 = vsel %vm3554_vm7, %v3533_v37, %v4966_v51  ;;  %v3565_v24 = vsel %vm3554_vm7, %v3532_v38, %v4965_v56  ;;  %v8668_v52 = vld [vmem:[#allocation26_spill] sm:$0xff] }
 0x1f0   : > { %v5366_v46 = vunpack.i.h.bf16 %v7917_v61  ;;  %v5365_v62 = vunpack.i.l.bf16 %v7917_v61  ;;  %v3582_v30 = vsel %vm3554_vm7, %v3549_v42, %v5006_v36  ;;  %v3581_v41 = vsel %vm3554_vm7, %v3548_v11, %v5005_v59 }
 0x1f1   : > { %v3598_v1 = vsel %vm3587_vm8, %v3565_v24, %v5045_v40  ;;  %v3599_v13 = vsel %vm3587_vm8, %v3566_v3, %v5046_v26  ;;  %v5126_v9 = vunpack.i.h.bf16 %v8667_v4  ;;  %v5125_v20 = vunpack.i.l.bf16 %v8667_v4 }
 0x1f2   : > { %v5376_v44 = vunpack.i.h.bf16 %v5374_v18  ;;  %v5375_v63 = vunpack.i.l.bf16 %v5374_v18  ;;  %v3614_v15 = vsel %vm3587_vm8, %v3581_v41, %v5085_v49  ;;  %v3615_v55 = vsel %vm3587_vm8, %v3582_v30, %v5086_v22 }
 0x1f3   : > { %v5371_v61 = vunpack.i.h.bf16 %v5369_v23  ;;  %v5370_v54 = vunpack.i.l.bf16 %v5369_v23  ;;  %v3647_v17 = vsel %vm3620_vm9, %v3614_v15, %v5365_v62  ;;  %v3648_v53 = vsel %vm3620_vm9, %v3615_v55, %v5366_v46 }
 0x1f4   : > { %v5386_v32 = vunpack.i.h.bf16 %v5384_v27  ;;  %v5385_v33 = vunpack.i.l.bf16 %v5384_v27  ;;  %v5381_v19 = vunpack.i.h.bf16 %v5379_v48  ;;  %v5380_v35 = vunpack.i.l.bf16 %v5379_v48 }
 0x1f5   : > { %v3631_v28 = vsel %vm3620_vm9, %v3598_v1, %v5125_v20  ;;  %v3632_v43 = vsel %vm3620_vm9, %v3599_v13, %v5126_v9  ;;  %v3680_v18 = vsel %vm3653_vm10, %v3647_v17, %v5375_v63  ;;  %v3681_v57 = vsel %vm3653_vm10, %v3648_v53, %v5376_v44  ;;  %v8669_v13 = vld [vmem:[#allocation36_spill] sm:$0xff]  ;;  %v8670_v9 = vld [vmem:[#allocation37_spill] sm:$0xff] }
 0x1f6   : > { %v3665_v23 = vsel %vm3653_vm10, %v3632_v43, %v5371_v61  ;;  %v3664_v21 = vsel %vm3653_vm10, %v3631_v28, %v5370_v54  ;;  %v3713_v31 = vsel %vm3686_vm11, %v3680_v18, %v5385_v33  ;;  %v3714_v39 = vsel %vm3686_vm11, %v3681_v57, %v5386_v32 }
 0x1f7   : > { %v5394_v6 = vpop.permute.xlu1 %5393  ;;  %v3697_v60 = vsel %vm3686_vm11, %v3664_v21, %v5380_v35  ;;  %v3698_v45 = vsel %vm3686_vm11, %v3665_v23, %v5381_v19  ;;  %v5131_v22 = vunpack.i.h.bf16 %v8668_v52  ;;  %v5130_v49 = vunpack.i.l.bf16 %v8668_v52  ;;  %v8671_v21 = vld [vmem:[#allocation29_spill] sm:$0xff] }
 0x1f8   : > { %v5396_v50 = vunpack.i.h.bf16 %v5394_v6  ;;  %v5395_v29 = vunpack.i.l.bf16 %v5394_v6  ;;  %vm4491_vm2 = vcmask 15360  }
 0x1f9   : > { %v3633_v4 = vsel %vm3620_vm9, %v8669_v13, %v5130_v49  ;;  %v3634_v20 = vsel %vm3620_vm9, %v8670_v9, %v5131_v22 }
 0x1fa   : > { %v5389_v12 = vpop.permute.xlu0 %5388  ;;  %v3746_v25 = vsel %vm3719_vm12, %v3713_v31, %v5395_v29  ;;  %v3747_v5 = vsel %vm3719_vm12, %v3714_v39, %v5396_v50 }
 0x1fb   : > { %v5391_v47 = vunpack.i.h.bf16 %v5389_v12  ;;  %v5390_v16 = vunpack.i.l.bf16 %v5389_v12  ;;  %v5404_v34 = vpop.permute.xlu1 %5403 }
 0x1fc   : > { %v5406_v58 = vunpack.i.h.bf16 %v5404_v34  ;;  %v5405_v14 = vunpack.i.l.bf16 %v5404_v34 }
 0x1fd   : > { %v3730_v2 = vsel %vm3719_vm12, %v3697_v60, %v5390_v16  ;;  %v3731_v36 = vsel %vm3719_vm12, %v3698_v45, %v5391_v47  ;;  %v8672_v16 = vld [vmem:[#allocation5_spill] sm:$0xff] }
 0x1fe   : > { %v5399_v10 = vpop.permute.xlu0 %5398  ;;  %v3779_v0 = vsel %vm3752_vm13, %v3746_v25, %v5405_v14  ;;  %v3780_v51 = vsel %vm3752_vm13, %v3747_v5, %v5406_v58 }
 0x1ff   : > { %v5401_v56 = vunpack.i.h.bf16 %v5399_v10  ;;  %v5400_v27 = vunpack.i.l.bf16 %v5399_v10  ;;  %v3798_v59 = vpack.c.bf16 %v3780_v51, %v3779_v0 }
 0x201   : > { %v3763_v7 = vsel %vm3752_vm13, %v3730_v2, %v5400_v27  ;;  %v3764_v26 = vsel %vm3752_vm13, %v3731_v36, %v5401_v56  ;;  %4822 = vmatmul.mubr.msk.bf16.gmra.mrb[20].mxu1 %vm3855_vm15, %v3798_v59 }
 0x202   : > { %v3790_v40 = vpack.c.bf16 %v3764_v26, %v3763_v7  ;;  %4083 = vmatprep.mubr.bf16.mxu1 %v5572_v8  ;;  %v8673_v26 = vld [vmem:[#allocation25_spill] sm:$0xff] }
 0x203   : > { %v5414_v37 = vpop.permute.xlu1 %5413 }
 0x204   : > { %4814 = vmatmul.mubr.msk.bf16.gmra.mrb[20].mxu0 %vm3855_vm15, %v3790_v40  ;;  %v5416_v48 = vunpack.i.h.bf16 %v5414_v37  ;;  %v5415_v3 = vunpack.i.l.bf16 %v5414_v37  ;;  %v5136_v40 = vunpack.i.h.bf16 %v8673_v26  ;;  %v5135_v37 = vunpack.i.l.bf16 %v8673_v26 }
 0x205   : > { %4003 = vmatprep.mubr.bf16.mxu0 %v5572_v8 }
 0x206   : > { %v3666_v44 = vsel %vm3653_vm10, %v3633_v4, %v5415_v3  ;;  %v3667_v63 = vsel %vm3653_vm10, %v3634_v20, %v5416_v48  ;;  %v8676_v4 = vld [vmem:[#allocation27_spill] sm:$0xff]  ;;  %v8677_v20 = vld [vmem:[#allocation28_spill] sm:$0xff] }
 0x207   : > { %v5409_v38 = vpop.permute.xlu0 %5408  ;;  %v5424_v42 = vpop.permute.xlu1 %5423 }
 0x208   : > { %v5426_v46 = vunpack.i.h.bf16 %v5424_v42  ;;  %v5425_v62 = vunpack.i.l.bf16 %v5424_v42  ;;  %v5411_v32 = vunpack.i.h.bf16 %v5409_v38  ;;  %v5410_v33 = vunpack.i.l.bf16 %v5409_v38 }
 0x20a   : > { %v3699_v15 = vsel %vm3686_vm11, %v3666_v44, %v5425_v62  ;;  %v3700_v55 = vsel %vm3686_vm11, %v3667_v63, %v5426_v46  ;;  %v3649_v47 = vsel %vm3620_vm9, %v8671_v21, %v5410_v33  ;;  %v3650_v34 = vsel %vm3620_vm9, %v8672_v16, %v5411_v32  ;;  %v8674_v46 = vld [vmem:[#allocation35_spill] sm:$0xff]  ;;  %v8675_v62 = vld [vmem:[#allocation24_spill] sm:$0xff] }
 0x20d   : > { %v5419_v11 = vpop.permute.xlu0 %5418 }
 0x20e   : > { %v5421_v50 = vunpack.i.h.bf16 %v5419_v11  ;;  %v5420_v29 = vunpack.i.l.bf16 %v5419_v11 }
 0x210   : > { %v3682_v31 = vsel %vm3653_vm10, %v3649_v47, %v5420_v29  ;;  %v3683_v39 = vsel %vm3653_vm10, %v3650_v34, %v5421_v50 }
 0x211   : > { %v5429_v1 = vpop.permute.xlu0 %5428 }
 0x212   : > { %v5431_v43 = vunpack.i.h.bf16 %v5429_v1  ;;  %v5430_v18 = vunpack.i.l.bf16 %v5429_v1 }
 0x214   : > { %v5434_v24 = vpop.permute.xlu1 %5433  ;;  %v3715_v14 = vsel %vm3686_vm11, %v3682_v31, %v5430_v18  ;;  %v3716_v60 = vsel %vm3686_vm11, %v3683_v39, %v5431_v43 }
 0x215   : > { %v5436_v30 = vunpack.i.h.bf16 %v5434_v24  ;;  %v5435_v41 = vunpack.i.l.bf16 %v5434_v24 }
 0x217   : > { %v3732_v17 = vsel %vm3719_vm12, %v3699_v15, %v5435_v41  ;;  %v3733_v53 = vsel %vm3719_vm12, %v3700_v55, %v5436_v30  ;;  %v3636_v30 = vsel %vm3620_vm9, %v8675_v62, %v5136_v40 }
 0x218   : > { %v5444_v6 = vpop.permute.xlu1 %5443 }
 0x219   : > { %v5446_v61 = vunpack.i.h.bf16 %v5444_v6  ;;  %v5445_v54 = vunpack.i.l.bf16 %v5444_v6 }
 0x21b   : > { %v3765_v19 = vsel %vm3752_vm13, %v3732_v17, %v5445_v54  ;;  %v3766_v35 = vsel %vm3752_vm13, %v3733_v53, %v5446_v61 }
 0x21c   : > { %v3791_v12 = vpack.c.bf16 %v3766_v35, %v3765_v19 }
 0x21d   : > { %v5439_v28 = vpop.permute.xlu0 %5438 }
 0x21e   : > { %v5441_v57 = vunpack.i.h.bf16 %v5439_v28  ;;  %v5440_v23 = vunpack.i.l.bf16 %v5439_v28  ;;  %4815 = vmatmul.mubr.msk.bf16.gmra.mrb[24].mxu0 %vm3855_vm15, %v3791_v12 }
 0x21f   : > { %4013 = vmatprep.mubr.bf16.mxu0 %v5572_v8 }
 0x220   : > { %v3748_v5 = vsel %vm3719_vm12, %v3715_v14, %v5440_v23  ;;  %v3749_v10 = vsel %vm3719_vm12, %v3716_v60, %v5441_v57 }
 0x221   : > { %v5449_v58 = vpop.permute.xlu0 %5448 }
 0x222   : > { %v5451_v45 = vunpack.i.h.bf16 %v5449_v58  ;;  %v5450_v25 = vunpack.i.l.bf16 %v5449_v58  ;;  %v5454_v27 = vpop.permute.xlu1 %5453 }
 0x223   : > { %v5456_v38 = vunpack.i.h.bf16 %v5454_v27  ;;  %v5455_v42 = vunpack.i.l.bf16 %v5454_v27 }
 0x224   : > { %v3781_v0 = vsel %vm3752_vm13, %v3748_v5, %v5450_v25  ;;  %v3782_v51 = vsel %vm3752_vm13, %v3749_v10, %v5451_v45 }
 0x225   : > { %v3799_v56 = vpack.c.bf16 %v3782_v51, %v3781_v0  ;;  %v3651_v9 = vsel %vm3620_vm9, %v8676_v4, %v5455_v42  ;;  %v3652_v44 = vsel %vm3620_vm9, %v8677_v20, %v5456_v38 }
 0x226   : > { %v5464_v2 = vpop.permute.xlu1 %5463 }
 0x227   : > { %4823 = vmatmul.mubr.msk.bf16.gmra.mrb[24].mxu1 %vm3855_vm15, %v3799_v56  ;;  %v5466_v11 = vunpack.i.h.bf16 %v5464_v2  ;;  %v5465_v52 = vunpack.i.l.bf16 %v5464_v2 }
 0x228   : > { %4093 = vmatprep.mubr.bf16.mxu1 %v5572_v8  ;;  %v5459_v36 = vpop.permute.xlu0 %5458  ;;  %v3635_v8 = vsel %vm3620_vm9, %v8674_v46, %v5135_v37 }
 0x229   : > { %v5461_v49 = vunpack.i.h.bf16 %v5459_v36  ;;  %v5460_v48 = vunpack.i.l.bf16 %v5459_v36  ;;  %v3684_v15 = vsel %vm3653_vm10, %v3651_v9, %v5465_v52  ;;  %v3685_v55 = vsel %vm3653_vm10, %v3652_v44, %v5466_v11 }
 0x22a   : > { %v5474_v59 = vpop.permute.xlu1 %5473 }
 0x22b   : > { %v5476_v3 = vunpack.i.h.bf16 %v5474_v59  ;;  %v5475_v24 = vunpack.i.l.bf16 %v5474_v59  ;;  %v3669_v17 = vsel %vm3653_vm10, %v3636_v30, %v5461_v49  ;;  %v3668_v53 = vsel %vm3653_vm10, %v3635_v8, %v5460_v48 }
 0x22c   : > { %v5469_v7 = vpop.permute.xlu0 %5468 }
 0x22d   : > { %v5471_v41 = vunpack.i.h.bf16 %v5469_v7  ;;  %v5470_v1 = vunpack.i.l.bf16 %v5469_v7  ;;  %v3717_v32 = vsel %vm3686_vm11, %v3684_v15, %v5475_v24  ;;  %v3718_v33 = vsel %vm3686_vm11, %v3685_v55, %v5476_v3 }
 0x22f   : > { %v3701_v35 = vsel %vm3686_vm11, %v3668_v53, %v5470_v1  ;;  %v3702_v50 = vsel %vm3686_vm11, %v3669_v17, %v5471_v41 }
 0x237   : > { %v5484_v22 = vpop.permute.xlu1 %5483 }
 0x238   : > { %v5486_v63 = vunpack.i.h.bf16 %v5484_v22  ;;  %v5485_v6 = vunpack.i.l.bf16 %v5484_v22 }
 0x23a   : > { %v5479_v13 = vpop.permute.xlu0 %5478  ;;  %v3750_v43 = vsel %vm3719_vm12, %v3717_v32, %v5485_v6  ;;  %v3751_v18 = vsel %vm3719_vm12, %v3718_v33, %v5486_v63 }
 0x23b   : > { %v5481_v61 = vunpack.i.h.bf16 %v5479_v13  ;;  %v5480_v54 = vunpack.i.l.bf16 %v5479_v13 }
 0x23d   : > { %v5494_v19 = vpop.permute.xlu1 %5493  ;;  %v3734_v21 = vsel %vm3719_vm12, %v3701_v35, %v5480_v54  ;;  %v3735_v47 = vsel %vm3719_vm12, %v3702_v50, %v5481_v61 }
 0x23e   : > { %v5496_v29 = vunpack.i.h.bf16 %v5494_v19  ;;  %v5495_v12 = vunpack.i.l.bf16 %v5494_v19  ;;  %v5489_v28 = vpop.permute.xlu0 %5488 }
 0x23f   : > { %v5491_v57 = vunpack.i.h.bf16 %v5489_v28  ;;  %v5490_v23 = vunpack.i.l.bf16 %v5489_v28 }
 0x240   : > { %v3783_v16 = vsel %vm3752_vm13, %v3750_v43, %v5495_v12  ;;  %v3784_v34 = vsel %vm3752_vm13, %v3751_v18, %v5496_v29 }
 0x241   : > { %v3800_v31 = vpack.c.bf16 %v3784_v34, %v3783_v16  ;;  %v3767_v39 = vsel %vm3752_vm13, %v3734_v21, %v5490_v23  ;;  %v3768_v58 = vsel %vm3752_vm13, %v3735_v47, %v5491_v57 }
 0x242   : > { %v3792_v14 = vpack.c.bf16 %v3768_v58, %v3767_v39 }
 0x243   : > { %4824 = vmatmul.mubr.msk.bf16.gmra.mrb[28].mxu1 %vm3855_vm15, %v3800_v31 }
 0x244   : > { %4816 = vmatmul.mubr.msk.bf16.gmra.mrb[28].mxu0 %vm3855_vm15, %v3792_v14 }
 0x298   : > { %v3945_v60 = vpop.f32.mrb[0].mxu0 }
 0x299   : > { %4104 = vst [vmem:[%s8058_s22] sm:$0xff] %v3945_v60  ;;  %v3947_v45 = vpop.f32.mrb[1].mxu0 }
 0x29a   : > { %4106 = vst.msk [vmem:[%s8058_s22 + $0x8] sm:$0xff] %vm4105_vm0, %v3947_v45  ;;  %v4169_v25 = vsel %vm4105_vm0, %v3947_v45, 0.0  ;;  %v4330_v5 = vsel %vm4105_vm0, %v3947_v45, -inf  ;;  %v3949_v10 = vpop.f32.mrb[2].mxu0 }
 0x29b   : > { %4107 = vst [vmem:[%s8058_s22 + $0x10] sm:$0xff] %v3949_v10  ;;  %v3951_v0 = vpop.f32.mrb[3].mxu0  ;;  %v4170_v56 = vadd.f32 %v4169_v25, %v3945_v60  ;;  %v4331_v27 = vmax.f32 %v3945_v60, %v4330_v5 }
 0x29c   : > { %v4025_v51 = vpop.f32.mrb[0].mxu1  ;;  %4108 = vst.msk [vmem:[%s8058_s22 + $0x18] sm:$0xff] %vm4105_vm0, %v3951_v0  ;;  %v4173_v2 = vsel %vm4105_vm0, %v3951_v0, 0.0  ;;  %v4334_v36 = vsel %vm4105_vm0, %v3951_v0, -inf }
 0x29d   : > { %4137 = vst [vmem:[%s8058_s22 + $0x100] sm:$0xff] %v4025_v51  ;;  %v4027_v59 = vpop.f32.mrb[1].mxu1  ;;  %4171 = vadd.xlane.f32.xlu0 %v4170_v56  ;;  %v4335_v37 = vmax.f32 %v3949_v10, %v4334_v36  ;;  %v4174_v38 = vadd.f32 %v4173_v2, %v3949_v10 }
 0x29e   : > { %4138 = vst.msk [vmem:[%s8058_s22 + $0x108] sm:$0xff] %vm4105_vm0, %v4027_v59  ;;  %v4233_v7 = vsel %vm4105_vm0, %v4027_v59, 0.0  ;;  %v4394_v26 = vsel %vm4105_vm0, %v4027_v59, -inf  ;;  %v4029_v40 = vpop.f32.mrb[2].mxu1 }
 0x29f   : > { %4139 = vst [vmem:[%s8058_s22 + $0x110] sm:$0xff] %v4029_v40  ;;  %v4031_v42 = vpop.f32.mrb[3].mxu1  ;;  %v4234_v11 = vadd.f32 %v4233_v7, %v4025_v51  ;;  %v4395_v52 = vmax.f32 %v4025_v51, %v4394_v26 }
 0x2a0   : > { %4140 = vst.msk [vmem:[%s8058_s22 + $0x118] sm:$0xff] %vm4105_vm0, %v4031_v42  ;;  %v4237_v22 = vsel %vm4105_vm0, %v4031_v42, 0.0  ;;  %v4398_v49 = vsel %vm4105_vm0, %v4031_v42, -inf }
 0x2a1   : > { %4235 = vadd.xlane.f32.xlu1 %v4234_v11  ;;  %v4238_v48 = vadd.f32 %v4237_v22, %v4029_v40  ;;  %v4399_v3 = vmax.f32 %v4029_v40, %v4398_v49 }
 0x2a3   : > { %4239 = vadd.xlane.f32.xlu0 %v4238_v48 }
 0x2a4   : > { %v8080_v24 = vpop.f32.mrb[4].mxu0 }
 0x2a5   : > { %4109 = vst [vmem:[%s8058_s22 + $0x20] sm:$0xff] %v8080_v24  ;;  %v3957_v46 = vpop.f32.mrb[5].mxu0  ;;  %4332 = vmax.xlane.f32.xlu1 %v4331_v27 }
 0x2a6   : > { %4110 = vst.msk [vmem:[%s8058_s22 + $0x28] sm:$0xff] %vm4105_vm0, %v3957_v46  ;;  %v4177_v8 = vsel %vm4105_vm0, %v3957_v46, 0.0  ;;  %v8088_v62 = vsel %vm4105_vm0, %v3957_v46, -inf  ;;  %v8090_v30 = vpop.f32.mrb[6].mxu0 }
 0x2a7   : > { %4111 = vst [vmem:[%s8058_s22 + $0x30] sm:$0xff] %v8090_v30  ;;  %v3961_v41 = vpop.f32.mrb[7].mxu0  ;;  %v8094_v1 = vpop.f32.mrb[4].mxu1  ;;  %v4178_v13 = vadd.f32 %v4177_v8, %v8080_v24  ;;  %v4339_v4 = vmax.f32 %v8080_v24, %v8088_v62  ;;  %4336 = vmax.xlane.f32.xlu0 %v4335_v37 }
 0x2a8   : > { %4112 = vst.msk [vmem:[%s8058_s22 + $0x38] sm:$0xff] %vm4105_vm0, %v3961_v41  ;;  %v4181_v9 = vsel %vm4105_vm0, %v3961_v41, 0.0  ;;  %v8103_v20 = vsel %vm4105_vm0, %v3961_v41, -inf  ;;  %4141 = vst [vmem:[%s8058_s22 + $0x120] sm:$0xff] %v8094_v1  ;;  %v4037_v44 = vpop.f32.mrb[5].mxu1 }
 0x2a9   : > { %4142 = vst.msk [vmem:[%s8058_s22 + $0x128] sm:$0xff] %vm4105_vm0, %v4037_v44  ;;  %v4241_v63 = vsel %vm4105_vm0, %v4037_v44, 0.0  ;;  %v8111_v6 = vsel %vm4105_vm0, %v4037_v44, -inf  ;;  %v8113_v15 = vpop.f32.mrb[6].mxu1  ;;  %v4182_v55 = vadd.f32 %v4181_v9, %v8090_v30  ;;  %v4343_v61 = vmax.f32 %v8090_v30, %v8103_v20  ;;  %4396 = vmax.xlane.f32.xlu1 %v4395_v52 }
 0x2aa   : > { %4143 = vst [vmem:[%s8058_s22 + $0x130] sm:$0xff] %v8113_v15  ;;  %v4041_v54 = vpop.f32.mrb[7].mxu1  ;;  %v4242_v17 = vadd.f32 %v4241_v63, %v8094_v1  ;;  %v4403_v53 = vmax.f32 %v8094_v1, %v8111_v6 }
 0x2ab   : > { %4144 = vst.msk [vmem:[%s8058_s22 + $0x138] sm:$0xff] %vm4105_vm0, %v4041_v54  ;;  %v4245_v32 = vsel %vm4105_vm0, %v4041_v54, 0.0  ;;  %v8127_v33 = vsel %vm4105_vm0, %v4041_v54, -inf  ;;  %4400 = vmax.xlane.f32.xlu0 %v4399_v3 }
 0x2ac   : > { %v4246_v19 = vadd.f32 %v4245_v32, %v8113_v15  ;;  %v4407_v35 = vmax.f32 %v8113_v15, %v8127_v33  ;;  %v8132_v50 = vpop.f32.mrb[8].mxu0 }
 0x2ad   : > { %4175 = vadd.xlane.f32.xlu1 %v4174_v38  ;;  %4113 = vst [vmem:[%s8058_s22 + $0x40] sm:$0xff] %v8132_v50  ;;  %v3967_v29 = vpop.f32.mrb[9].mxu0 }
 0x2ae   : > { %4114 = vst.msk [vmem:[%s8058_s22 + $0x48] sm:$0xff] %vm4105_vm0, %v3967_v29  ;;  %v4185_v12 = vsel %vm4105_vm0, %v3967_v29, 0.0  ;;  %v8140_v28 = vsel %vm4105_vm0, %v3967_v29, -inf  ;;  %v8142_v43 = vpop.f32.mrb[10].mxu0 }
 0x2af   : > { %4179 = vadd.xlane.f32.xlu0 %v4178_v13  ;;  %4115 = vst [vmem:[%s8058_s22 + $0x50] sm:$0xff] %v8142_v43  ;;  %v3971_v18 = vpop.f32.mrb[11].mxu0  ;;  %v4186_v23 = vadd.f32 %v4185_v12, %v8132_v50  ;;  %v4347_v21 = vmax.f32 %v8132_v50, %v8140_v28 }
 0x2b0   : > { %v8146_v57 = vpop.f32.mrb[8].mxu1  ;;  %4116 = vst.msk [vmem:[%s8058_s22 + $0x58] sm:$0xff] %vm4105_vm0, %v3971_v18  ;;  %v4189_v47 = vsel %vm4105_vm0, %v3971_v18, 0.0  ;;  %v8155_v16 = vsel %vm4105_vm0, %v3971_v18, -inf }
 0x2b1   : > { %4145 = vst [vmem:[%s8058_s22 + $0x140] sm:$0xff] %v8146_v57  ;;  %v4047_v34 = vpop.f32.mrb[9].mxu1  ;;  %4243 = vadd.xlane.f32.xlu1 %v4242_v17  ;;  %v8168_v14 = vadd.f32 %v4189_v47, %v8142_v43  ;;  %v4351_v60 = vmax.f32 %v8142_v43, %v8155_v16 }
 0x2b2   : > { %4146 = vst.msk [vmem:[%s8058_s22 + $0x148] sm:$0xff] %vm4105_vm0, %v4047_v34  ;;  %v4249_v31 = vsel %vm4105_vm0, %v4047_v34, 0.0  ;;  %v8163_v39 = vsel %vm4105_vm0, %v4047_v34, -inf  ;;  %v8165_v58 = vpop.f32.mrb[10].mxu1 }
 0x2b3   : > { %4147 = vst [vmem:[%s8058_s22 + $0x150] sm:$0xff] %v8165_v58  ;;  %v4051_v45 = vpop.f32.mrb[11].mxu1  ;;  %v4250_v25 = vadd.f32 %v4249_v31, %v8146_v57  ;;  %v4411_v5 = vmax.f32 %v8146_v57, %v8163_v39  ;;  %4183 = vadd.xlane.f32.xlu0 %v4182_v55 }
 0x2b4   : > { %4148 = vst.msk [vmem:[%s8058_s22 + $0x158] sm:$0xff] %vm4105_vm0, %v4051_v45  ;;  %v4253_v10 = vsel %vm4105_vm0, %v4051_v45, 0.0  ;;  %v8181_v0 = vsel %vm4105_vm0, %v4051_v45, -inf }
 0x2b5   : > { %v8184_v51 = vadd.f32 %v4253_v10, %v8165_v58  ;;  %v8186_v56 = vpop.f32.mrb[12].mxu0  ;;  %v4415_v27 = vmax.f32 %v8165_v58, %v8181_v0  ;;  %4340 = vmax.xlane.f32.xlu1 %v4339_v4 }
 0x2b6   : > { %4117 = vst [vmem:[%s8058_s22 + $0x60] sm:$0xff] %v8186_v56  ;;  %v3977_v2 = vpop.f32.mrb[13].mxu0 }
 0x2b7   : > { %4118 = vst.msk [vmem:[%s8058_s22 + $0x68] sm:$0xff] %vm4105_vm0, %v3977_v2  ;;  %v4193_v36 = vsel %vm4105_vm0, %v3977_v2, 0.0  ;;  %v8196_v59 = vsel %vm4105_vm0, %v3977_v2, -inf  ;;  %v8198_v7 = vpop.f32.mrb[14].mxu0  ;;  %4247 = vadd.xlane.f32.xlu0 %v4246_v19 }
 0x2b8   : > { %4119 = vst [vmem:[%s8058_s22 + $0x70] sm:$0xff] %v8198_v7  ;;  %v3981_v26 = vpop.f32.mrb[15].mxu0  ;;  %v8202_v40 = vpop.f32.mrb[12].mxu1  ;;  %v8205_v37 = vadd.f32 %v4193_v36, %v8186_v56  ;;  %v4355_v38 = vmax.f32 %v8186_v56, %v8196_v59 }
 0x2b9   : > { %4120 = vst.msk [vmem:[%s8058_s22 + $0x78] sm:$0xff] %vm4105_vm0, %v3981_v26  ;;  %v4197_v42 = vsel %vm4105_vm0, %v3981_v26, 0.0  ;;  %v8213_v11 = vsel %vm4105_vm0, %v3981_v26, -inf  ;;  %4149 = vst [vmem:[%s8058_s22 + $0x160] sm:$0xff] %v8202_v40  ;;  %v4057_v52 = vpop.f32.mrb[13].mxu1  ;;  %4404 = vmax.xlane.f32.xlu1 %v4403_v53 }
 0x2ba   : > { %4150 = vst.msk [vmem:[%s8058_s22 + $0x168] sm:$0xff] %vm4105_vm0, %v4057_v52  ;;  %v4257_v22 = vsel %vm4105_vm0, %v4057_v52, 0.0  ;;  %v8221_v49 = vsel %vm4105_vm0, %v4057_v52, -inf  ;;  %v8223_v48 = vpop.f32.mrb[14].mxu1  ;;  %v4198_v3 = vadd.f32 %v4197_v42, %v8198_v7  ;;  %v4359_v24 = vmax.f32 %v8198_v7, %v8213_v11 }
 0x2bb   : > { %4151 = vst [vmem:[%s8058_s22 + $0x170] sm:$0xff] %v8223_v48  ;;  %v4061_v46 = vpop.f32.mrb[15].mxu1  ;;  %v4258_v8 = vadd.f32 %v4257_v22, %v8202_v40  ;;  %v4419_v62 = vmax.f32 %v8202_v40, %v8221_v49  ;;  %4344 = vmax.xlane.f32.xlu0 %v4343_v61 }
 0x2bc   : > { %4152 = vst.msk [vmem:[%s8058_s22 + $0x178] sm:$0xff] %vm4105_vm0, %v4061_v46  ;;  %v4261_v41 = vsel %vm4105_vm0, %v4061_v46, 0.0  ;;  %v8240_v1 = vsel %vm4105_vm0, %v4061_v46, -inf }
 0x2bd   : > { %v4262_v13 = vadd.f32 %v4261_v41, %v8223_v48  ;;  %v8243_v4 = vpop.f32.mrb[16].mxu0  ;;  %v4423_v9 = vmax.f32 %v8223_v48, %v8240_v1  ;;  %4187 = vadd.xlane.f32.xlu1 %v4186_v23 }
 0x2be   : > { %4121 = vst [vmem:[%s8058_s22 + $0x80] sm:$0xff] %v8243_v4  ;;  %v3987_v30 = vpop.f32.mrb[17].mxu0 }
 0x2bf   : > { %4122 = vst.msk [vmem:[%s8058_s22 + $0x88] sm:$0xff] %vm4105_vm0, %v3987_v30  ;;  %v4201_v20 = vsel %vm4105_vm0, %v3987_v30, 0.0  ;;  %v8253_v44 = vsel %vm4105_vm0, %v3987_v30, -inf  ;;  %v8255_v63 = vpop.f32.mrb[18].mxu0  ;;  %4408 = vmax.xlane.f32.xlu0 %v4407_v35 }
 0x2c0   : > { %4123 = vst [vmem:[%s8058_s22 + $0x90] sm:$0xff] %v8255_v63  ;;  %v3991_v6 = vpop.f32.mrb[19].mxu0  ;;  %v8263_v55 = vadd.f32 %v4201_v20, %v8243_v4  ;;  %v4363_v61 = vmax.f32 %v8243_v4, %v8253_v44 }
 0x2c1   : > { %4124 = vst.msk [vmem:[%s8058_s22 + $0x98] sm:$0xff] %vm4105_vm0, %v3991_v6  ;;  %v4205_v54 = vsel %vm4105_vm0, %v3991_v6, 0.0  ;;  %v8271_v17 = vsel %vm4105_vm0, %v3991_v6, -inf  ;;  %v8273_v15 = vpop.f32.mrb[16].mxu1  ;;  %4251 = vadd.xlane.f32.xlu1 %v4250_v25 }
 0x2c2   : > { %4153 = vst [vmem:[%s8058_s22 + $0x180] sm:$0xff] %v8273_v15  ;;  %v4067_v53 = vpop.f32.mrb[17].mxu1  ;;  %v4206_v32 = vadd.f32 %v4205_v54, %v8255_v63  ;;  %v4367_v33 = vmax.f32 %v8255_v63, %v8271_v17 }
 0x2c3   : > { %4154 = vst.msk [vmem:[%s8058_s22 + $0x188] sm:$0xff] %vm4105_vm0, %v4067_v53  ;;  %v4265_v19 = vsel %vm4105_vm0, %v4067_v53, 0.0  ;;  %v4426_v35 = vsel %vm4105_vm0, %v4067_v53, -inf  ;;  %v8284_v29 = vpop.f32.mrb[18].mxu1  ;;  %4191 = vadd.xlane.f32.xlu0 %v8168_v14 }
 0x2c4   : > { %4155 = vst [vmem:[%s8058_s22 + $0x190] sm:$0xff] %v8284_v29  ;;  %v4071_v12 = vpop.f32.mrb[19].mxu1  ;;  %v4266_v18 = vadd.f32 %v4265_v19, %v8273_v15  ;;  %v4427_v23 = vmax.f32 %v8273_v15, %v4426_v35 }
 0x2c5   : > { %4156 = vst.msk [vmem:[%s8058_s22 + $0x198] sm:$0xff] %vm4105_vm0, %v4071_v12  ;;  %v4269_v47 = vsel %vm4105_vm0, %v4071_v12, 0.0  ;;  %v4430_v34 = vsel %vm4105_vm0, %v4071_v12, -inf  ;;  %4348 = vmax.xlane.f32.xlu1 %v4347_v21 }
 0x2c6   : > { %v4270_v31 = vadd.f32 %v4269_v47, %v8284_v29  ;;  %v4431_v14 = vmax.f32 %v8284_v29, %v4430_v34 }
 0x2c7   : > { %4255 = vadd.xlane.f32.xlu0 %v8184_v51 }
 0x2c9   : > { %4412 = vmax.xlane.f32.xlu1 %v4411_v5 }
 0x2cb   : > { %4352 = vmax.xlane.f32.xlu0 %v4351_v60 }
 0x2cd   : > { %4195 = vadd.xlane.f32.xlu1 %v8205_v37 }
 0x2cf   : > { %4416 = vmax.xlane.f32.xlu0 %v4415_v27 }
 0x2d1   : > { %4259 = vadd.xlane.f32.xlu1 %v4258_v8 }
 0x2d3   : > { %4199 = vadd.xlane.f32.xlu0 %v4198_v3 }
 0x2d4   : > { %v8314_v50 = vpop.f32.mrb[20].mxu1 }
 0x2d5   : > { %4356 = vmax.xlane.f32.xlu1 %v4355_v38  ;;  %4157 = vst [vmem:[%s8058_s22 + $0x1a0] sm:$0xff] %v8314_v50  ;;  %v4077_v28 = vpop.f32.mrb[21].mxu1 }
 0x2d6   : > { %4158 = vst.msk [vmem:[%s8058_s22 + $0x1a8] sm:$0xff] %vm4105_vm0, %v4077_v28  ;;  %v4273_v57 = vsel %vm4105_vm0, %v4077_v28, 0.0  ;;  %v4434_v21 = vsel %vm4105_vm0, %v4077_v28, -inf  ;;  %v8322_v16 = vpop.f32.mrb[22].mxu1 }
 0x2d7   : > { %4263 = vadd.xlane.f32.xlu0 %v4262_v13  ;;  %v3995_v43 = vpop.f32.mrb[20].mxu0  ;;  %4159 = vst [vmem:[%s8058_s22 + $0x1b0] sm:$0xff] %v8322_v16  ;;  %v4081_v58 = vpop.f32.mrb[23].mxu1  ;;  %v4274_v60 = vadd.f32 %v4273_v57, %v8314_v50  ;;  %v4435_v45 = vmax.f32 %v8314_v50, %v4434_v21 }
 0x2d8   : > { %4125 = vst [vmem:[%s8058_s22 + $0xa0] sm:$0xff] %v3995_v43  ;;  %v3997_v39 = vpop.f32.mrb[21].mxu0  ;;  %4160 = vst.msk [vmem:[%s8058_s22 + $0x1b8] sm:$0xff] %vm4105_vm0, %v4081_v58  ;;  %v4277_v0 = vsel %vm4105_vm0, %v4081_v58, 0.0  ;;  %v4438_v51 = vsel %vm4105_vm0, %v4081_v58, -inf }
 0x2d9   : > { %4420 = vmax.xlane.f32.xlu1 %v4419_v62  ;;  %4126 = vst.msk [vmem:[%s8058_s22 + $0xa8] sm:$0xff] %vm4105_vm0, %v3997_v39  ;;  %v4209_v25 = vsel %vm4105_vm0, %v3997_v39, 0.0  ;;  %v4370_v5 = vsel %vm4105_vm0, %v3997_v39, -inf  ;;  %v3999_v10 = vpop.f32.mrb[22].mxu0  ;;  %v4278_v2 = vadd.f32 %v4277_v0, %v8322_v16  ;;  %v4439_v59 = vmax.f32 %v8322_v16, %v4438_v51 }
 0x2da   : > { %4127 = vst [vmem:[%s8058_s22 + $0xb0] sm:$0xff] %v3999_v10  ;;  %v4001_v56 = vpop.f32.mrb[23].mxu0  ;;  %v4210_v27 = vadd.f32 %v4209_v25, %v3995_v43  ;;  %v4371_v36 = vmax.f32 %v3995_v43, %v4370_v5 }
 0x2db   : > { %4360 = vmax.xlane.f32.xlu0 %v4359_v24  ;;  %4128 = vst.msk [vmem:[%s8058_s22 + $0xb8] sm:$0xff] %vm4105_vm0, %v4001_v56  ;;  %v4213_v26 = vsel %vm4105_vm0, %v4001_v56, 0.0  ;;  %v4374_v40 = vsel %vm4105_vm0, %v4001_v56, -inf }
 0x2dc   : > { %v4214_v37 = vadd.f32 %v4213_v26, %v3999_v10  ;;  %v4375_v38 = vmax.f32 %v3999_v10, %v4374_v40 }
 0x2dd   : > { %4203 = vadd.xlane.f32.xlu1 %v8263_v55 }
 0x2df   : > { %4424 = vmax.xlane.f32.xlu0 %v4423_v9 }
 0x2e1   : > { %4267 = vadd.xlane.f32.xlu1 %v4266_v18 }
 0x2e3   : > { %4207 = vadd.xlane.f32.xlu0 %v4206_v32 }
 0x2e5   : > { %4364 = vmax.xlane.f32.xlu1 %v4363_v61 }
 0x2e7   : > { %4271 = vadd.xlane.f32.xlu0 %v4270_v31 }
 0x2e9   : > { %4428 = vmax.xlane.f32.xlu1 %v4427_v23 }
 0x2eb   : > { %4368 = vmax.xlane.f32.xlu0 %v4367_v33 }
 0x2ed   : > { %4211 = vadd.xlane.f32.xlu1 %v4210_v27 }
 0x2ef   : > { %4432 = vmax.xlane.f32.xlu0 %v4431_v14 }
 0x2f1   : > { %4275 = vadd.xlane.f32.xlu1 %v4274_v60  ;;  %v4005_v7 = vpop.f32.mrb[24].mxu0 }
 0x2f2   : > { %4129 = vst [vmem:[%s8058_s22 + $0xc0] sm:$0xff] %v4005_v7  ;;  %v4007_v42 = vpop.f32.mrb[25].mxu0 }
 0x2f3   : > { %4215 = vadd.xlane.f32.xlu0 %v4214_v37  ;;  %4130 = vst.msk [vmem:[%s8058_s22 + $0xc8] sm:$0xff] %vm4105_vm0, %v4007_v42  ;;  %v4217_v11 = vsel %vm4105_vm0, %v4007_v42, 0.0  ;;  %v4378_v52 = vsel %vm4105_vm0, %v4007_v42, -inf  ;;  %v4009_v22 = vpop.f32.mrb[26].mxu0 }
 0x2f4   : > { %4131 = vst [vmem:[%s8058_s22 + $0xd0] sm:$0xff] %v4009_v22  ;;  %v4011_v49 = vpop.f32.mrb[27].mxu0  ;;  %v4218_v48 = vadd.f32 %v4217_v11, %v4005_v7  ;;  %v4379_v3 = vmax.f32 %v4005_v7, %v4378_v52 }
 0x2f5   : > { %4372 = vmax.xlane.f32.xlu1 %v4371_v36  ;;  %4132 = vst.msk [vmem:[%s8058_s22 + $0xd8] sm:$0xff] %vm4105_vm0, %v4011_v49  ;;  %v4221_v24 = vsel %vm4105_vm0, %v4011_v49, 0.0  ;;  %v4382_v46 = vsel %vm4105_vm0, %v4011_v49, -inf }
 0x2f6   : > { %v4222_v8 = vadd.f32 %v4221_v24, %v4009_v22  ;;  %v4383_v62 = vmax.f32 %v4009_v22, %v4382_v46 }
 0x2f7   : > { %4279 = vadd.xlane.f32.xlu0 %v4278_v2 }
 0x2f9   : > { %4436 = vmax.xlane.f32.xlu1 %v4435_v45 }
 0x2fa   : > { %v4085_v41 = vpop.f32.mrb[24].mxu1 }
 0x2fb   : > { %4161 = vst [vmem:[%s8058_s22 + $0x1c0] sm:$0xff] %v4085_v41  ;;  %v4087_v1 = vpop.f32.mrb[25].mxu1  ;;  %4376 = vmax.xlane.f32.xlu0 %v4375_v38 }
 0x2fc   : > { %4162 = vst.msk [vmem:[%s8058_s22 + $0x1c8] sm:$0xff] %vm4105_vm0, %v4087_v1  ;;  %v4281_v13 = vsel %vm4105_vm0, %v4087_v1, 0.0  ;;  %v4442_v4 = vsel %vm4105_vm0, %v4087_v1, -inf  ;;  %v4089_v9 = vpop.f32.mrb[26].mxu1 }
 0x2fd   : > { %4163 = vst [vmem:[%s8058_s22 + $0x1d0] sm:$0xff] %v4089_v9  ;;  %v4091_v30 = vpop.f32.mrb[27].mxu1  ;;  %v4282_v20 = vadd.f32 %v4281_v13, %v4085_v41  ;;  %v4443_v44 = vmax.f32 %v4085_v41, %v4442_v4  ;;  %4219 = vadd.xlane.f32.xlu1 %v4218_v48 }
 0x2fe   : > { %4164 = vst.msk [vmem:[%s8058_s22 + $0x1d8] sm:$0xff] %vm4105_vm0, %v4091_v30  ;;  %v4285_v63 = vsel %vm4105_vm0, %v4091_v30, 0.0  ;;  %v4446_v6 = vsel %vm4105_vm0, %v4091_v30, -inf }
 0x2ff   : > { %v4286_v55 = vadd.f32 %v4285_v63, %v4089_v9  ;;  %v4447_v61 = vmax.f32 %v4089_v9, %v4446_v6  ;;  %4440 = vmax.xlane.f32.xlu0 %v4439_v59 }
 0x301   : > { %4283 = vadd.xlane.f32.xlu1 %v4282_v20 }
 0x303   : > { %4223 = vadd.xlane.f32.xlu0 %v4222_v8 }
 0x305   : > { %4380 = vmax.xlane.f32.xlu1 %v4379_v3 }
 0x307   : > { %4287 = vadd.xlane.f32.xlu0 %v4286_v55 }
 0x309   : > { %4444 = vmax.xlane.f32.xlu1 %v4443_v44 }
 0x30b   : > { %4384 = vmax.xlane.f32.xlu0 %v4383_v62 }
 0x30f   : > { %4448 = vmax.xlane.f32.xlu0 %v4447_v61 }
 0x316   : > { %v4095_v54 = vpop.f32.mrb[28].mxu1 }
 0x317   : > { %v4015_v17 = vpop.f32.mrb[28].mxu0  ;;  %4165 = vst [vmem:[%s8058_s22 + $0x1e0] sm:$0xff] %v4095_v54  ;;  %v4097_v15 = vpop.f32.mrb[29].mxu1 }
 0x318   : > { %4133 = vst [vmem:[%s8058_s22 + $0xe0] sm:$0xff] %v4015_v17  ;;  %v4017_v53 = vpop.f32.mrb[29].mxu0  ;;  %4166 = vst.msk [vmem:[%s8058_s22 + $0x1e8] sm:$0xff] %vm4105_vm0, %v4097_v15  ;;  %v4289_v32 = vsel %vm4105_vm0, %v4097_v15, 0.0  ;;  %v4450_v33 = vsel %vm4105_vm0, %v4097_v15, -inf  ;;  %v4099_v19 = vpop.f32.mrb[30].mxu1 }
 0x319   : > { %4134 = vst.msk [vmem:[%s8058_s22 + $0xe8] sm:$0xff] %vm4105_vm0, %v4017_v53  ;;  %v4225_v35 = vsel %vm4105_vm0, %v4017_v53, 0.0  ;;  %v4386_v29 = vsel %vm4105_vm0, %v4017_v53, -inf  ;;  %v4019_v12 = vpop.f32.mrb[30].mxu0  ;;  %4167 = vst [vmem:[%s8058_s22 + $0x1f0] sm:$0xff] %v4099_v19  ;;  %v4101_v18 = vpop.f32.mrb[31].mxu1  ;;  %v4290_v23 = vadd.f32 %v4289_v32, %v4095_v54  ;;  %v4451_v47 = vmax.f32 %v4095_v54, %v4450_v33 }
 0x31a   : > { %4135 = vst [vmem:[%s8058_s22 + $0xf0] sm:$0xff] %v4019_v12  ;;  %v4021_v34 = vpop.f32.mrb[31].mxu0  ;;  %4168 = vst.msk [vmem:[%s8058_s22 + $0x1f8] sm:$0xff] %vm4105_vm0, %v4101_v18  ;;  %v4293_v31 = vsel %vm4105_vm0, %v4101_v18, 0.0  ;;  %v4454_v14 = vsel %vm4105_vm0, %v4101_v18, -inf  ;;  %v4226_v50 = vadd.f32 %v4225_v35, %v4015_v17  ;;  %v4387_v28 = vmax.f32 %v4015_v17, %v4386_v29 }
 0x31b   : > { %4136 = vst.msk [vmem:[%s8058_s22 + $0xf8] sm:$0xff] %vm4105_vm0, %v4021_v34  ;;  %v4229_v43 = vsel %vm4105_vm0, %v4021_v34, 0.0  ;;  %v4390_v57 = vsel %vm4105_vm0, %v4021_v34, -inf  ;;  %v4294_v21 = vadd.f32 %v4293_v31, %v4099_v19  ;;  %v4455_v16 = vmax.f32 %v4099_v19, %v4454_v14 }
 0x31c   : > { %v4230_v39 = vadd.f32 %v4229_v43, %v4019_v12  ;;  %v4391_v58 = vmax.f32 %v4019_v12, %v4390_v57  ;;  %4227 = vadd.xlane.f32.xlu1 %v4226_v50 }
 0x31e   : > { %4231 = vadd.xlane.f32.xlu0 %v4230_v39 }
 0x320   : > { %4291 = vadd.xlane.f32.xlu1 %v4290_v23 }
 0x322   : > { %4295 = vadd.xlane.f32.xlu0 %v4294_v21 }
 0x324   : > { %4388 = vmax.xlane.f32.xlu1 %v4387_v28 }
 0x326   : > { %4392 = vmax.xlane.f32.xlu0 %v4391_v58 }
 0x328   : > { %4452 = vmax.xlane.f32.xlu1 %v4451_v47 }
 0x32a   : > { %4456 = vmax.xlane.f32.xlu0 %v4455_v16  ;;  %v4172_v60 = vpop.xlane.xlu0 %4171 }
 0x32b   : > { %v4298_v5 = vmul.f32 0.0046296297, %v4172_v60 }
 0x32e   : > { %v4236_v45 = vpop.xlane.xlu1 %4235 }
 0x32f   : > { %v4314_v56 = vmul.f32 0.0046296297, %v4236_v45 }
 0x330   : > { %v4240_v25 = vpop.xlane.xlu0 %4239 }
 0x331   : > { %v4315_v2 = vmul.f32 0.0046296297, %v4240_v25 }
 0x332   : > { %v4333_v10 = vpop.xlane.xlu1 %4332 }
 0x333   : > { %v4459_v0 = vsel %vm4458_vm1, %v4298_v5, %v4333_v10 }
 0x334   : > { %4492 = vst.msk [vmem:[%s8404_s26] sm:$0xff] %vm4491_vm2, %v4459_v0  ;;  %v4337_v51 = vpop.xlane.xlu0 %4336 }
 0x336   : > { %v4397_v27 = vpop.xlane.xlu1 %4396 }
 0x337   : > { %v4475_v36 = vsel %vm4458_vm1, %v4314_v56, %v4397_v27 }
 0x338   : > { %4508 = vst.msk [vmem:[%s8404_s26 + $0x80] sm:$0xff] %vm4491_vm2, %v4475_v36  ;;  %v4401_v59 = vpop.xlane.xlu0 %4400 }
 0x339   : > { %v4476_v26 = vsel %vm4458_vm1, %v4315_v2, %v4401_v59 }
 0x33a   : > { %4509 = vst.msk [vmem:[%s8404_s26 + $0x88] sm:$0xff] %vm4491_vm2, %v4476_v26  ;;  %v4176_v40 = vpop.xlane.xlu1 %4175 }
 0x33b   : > { %v4299_v37 = vmul.f32 0.0046296297, %v4176_v40 }
 0x33c   : > { %v4180_v38 = vpop.xlane.xlu0 %4179 }
 0x33d   : > { %v4460_v7 = vsel %vm4458_vm1, %v4299_v37, %v4337_v51  ;;  %v4300_v52 = vmul.f32 0.0046296297, %v4180_v38 }
 0x33e   : > { %4493 = vst.msk [vmem:[%s8404_s26 + $0x8] sm:$0xff] %vm4491_vm2, %v4460_v7  ;;  %v4244_v42 = vpop.xlane.xlu1 %4243 }
 0x33f   : > { %v4316_v3 = vmul.f32 0.0046296297, %v4244_v42 }
 0x340   : > { %v4184_v11 = vpop.xlane.xlu0 %4183 }
 0x341   : > { %v4301_v46 = vmul.f32 0.0046296297, %v4184_v11 }
 0x342   : > { %v4341_v22 = vpop.xlane.xlu1 %4340 }
 0x343   : > { %v4461_v49 = vsel %vm4458_vm1, %v4300_v52, %v4341_v22 }
 0x344   : > { %4494 = vst.msk [vmem:[%s8404_s26 + $0x10] sm:$0xff] %vm4491_vm2, %v4461_v49  ;;  %v4248_v48 = vpop.xlane.xlu0 %4247 }
 0x345   : > { %v4317_v13 = vmul.f32 0.0046296297, %v4248_v48 }
 0x346   : > { %v4405_v24 = vpop.xlane.xlu1 %4404 }
 0x347   : > { %v4477_v8 = vsel %vm4458_vm1, %v4316_v3, %v4405_v24 }
 0x348   : > { %4510 = vst.msk [vmem:[%s8404_s26 + $0x90] sm:$0xff] %vm4491_vm2, %v4477_v8  ;;  %v4345_v62 = vpop.xlane.xlu0 %4344 }
 0x349   : > { %v4462_v41 = vsel %vm4458_vm1, %v4301_v46, %v4345_v62 }
 0x34a   : > { %4495 = vst.msk [vmem:[%s8404_s26 + $0x18] sm:$0xff] %vm4491_vm2, %v4462_v41  ;;  %v4188_v1 = vpop.xlane.xlu1 %4187 }
 0x34b   : > { %v4302_v44 = vmul.f32 0.0046296297, %v4188_v1 }
 0x34c   : > { %v4409_v4 = vpop.xlane.xlu0 %4408 }
 0x34d   : > { %v4478_v9 = vsel %vm4458_vm1, %v4317_v13, %v4409_v4 }
 0x34e   : > { %4511 = vst.msk [vmem:[%s8404_s26 + $0x98] sm:$0xff] %vm4491_vm2, %v4478_v9  ;;  %v4252_v30 = vpop.xlane.xlu1 %4251 }
 0x34f   : > { %v4318_v61 = vmul.f32 0.0046296297, %v4252_v30 }
 0x350   : > { %v4192_v20 = vpop.xlane.xlu0 %4191 }
 0x351   : > { %v4303_v17 = vmul.f32 0.0046296297, %v4192_v20 }
 0x352   : > { %v4349_v63 = vpop.xlane.xlu1 %4348 }
 0x353   : > { %v4463_v6 = vsel %vm4458_vm1, %v4302_v44, %v4349_v63 }
 0x354   : > { %4496 = vst.msk [vmem:[%s8404_s26 + $0x20] sm:$0xff] %vm4491_vm2, %v4463_v6  ;;  %v4256_v55 = vpop.xlane.xlu0 %4255 }
 0x355   : > { %v4319_v19 = vmul.f32 0.0046296297, %v4256_v55 }
 0x356   : > { %v4413_v54 = vpop.xlane.xlu1 %4412 }
 0x357   : > { %v4479_v15 = vsel %vm4458_vm1, %v4318_v61, %v4413_v54 }
 0x358   : > { %4512 = vst.msk [vmem:[%s8404_s26 + $0xa0] sm:$0xff] %vm4491_vm2, %v4479_v15  ;;  %v4353_v53 = vpop.xlane.xlu0 %4352 }
 0x359   : > { %v4464_v32 = vsel %vm4458_vm1, %v4303_v17, %v4353_v53 }
 0x35a   : > { %4497 = vst.msk [vmem:[%s8404_s26 + $0x28] sm:$0xff] %vm4491_vm2, %v4464_v32  ;;  %v4196_v33 = vpop.xlane.xlu1 %4195 }
 0x35b   : > { %v4304_v23 = vmul.f32 0.0046296297, %v4196_v33 }
 0x35c   : > { %v4417_v35 = vpop.xlane.xlu0 %4416 }
 0x35d   : > { %v4480_v29 = vsel %vm4458_vm1, %v4319_v19, %v4417_v35 }
 0x35e   : > { %4513 = vst.msk [vmem:[%s8404_s26 + $0xa8] sm:$0xff] %vm4491_vm2, %v4480_v29  ;;  %v4260_v12 = vpop.xlane.xlu1 %4259 }
 0x35f   : > { %v4320_v14 = vmul.f32 0.0046296297, %v4260_v12 }
 0x360   : > { %v4200_v18 = vpop.xlane.xlu0 %4199 }
 0x361   : > { %v4305_v28 = vmul.f32 0.0046296297, %v4200_v18 }
 0x362   : > { %v4357_v47 = vpop.xlane.xlu1 %4356 }
 0x363   : > { %v4465_v34 = vsel %vm4458_vm1, %v4304_v23, %v4357_v47 }
 0x364   : > { %4498 = vst.msk [vmem:[%s8404_s26 + $0x30] sm:$0xff] %vm4491_vm2, %v4465_v34  ;;  %v4264_v31 = vpop.xlane.xlu0 %4263 }
 0x365   : > { %v4321_v39 = vmul.f32 0.0046296297, %v4264_v31 }
 0x366   : > { %v4421_v50 = vpop.xlane.xlu1 %4420 }
 0x367   : > { %v4481_v43 = vsel %vm4458_vm1, %v4320_v14, %v4421_v50 }
 0x368   : > { %4514 = vst.msk [vmem:[%s8404_s26 + $0xb0] sm:$0xff] %vm4491_vm2, %v4481_v43  ;;  %v4361_v57 = vpop.xlane.xlu0 %4360 }
 0x369   : > { %v4466_v21 = vsel %vm4458_vm1, %v4305_v28, %v4361_v57 }
 0x36a   : > { %4499 = vst.msk [vmem:[%s8404_s26 + $0x38] sm:$0xff] %vm4491_vm2, %v4466_v21  ;;  %v4204_v16 = vpop.xlane.xlu1 %4203 }
 0x36b   : > { %v4306_v5 = vmul.f32 0.0046296297, %v4204_v16 }
 0x36c   : > { %v4425_v58 = vpop.xlane.xlu0 %4424 }
 0x36d   : > { %v4482_v60 = vsel %vm4458_vm1, %v4321_v39, %v4425_v58 }
 0x36e   : > { %4515 = vst.msk [vmem:[%s8404_s26 + $0xb8] sm:$0xff] %vm4491_vm2, %v4482_v60  ;;  %v4268_v45 = vpop.xlane.xlu1 %4267 }
 0x36f   : > { %v4322_v56 = vmul.f32 0.0046296297, %v4268_v45 }
 0x370   : > { %v4208_v25 = vpop.xlane.xlu0 %4207 }
 0x371   : > { %v4307_v2 = vmul.f32 0.0046296297, %v4208_v25 }
 0x372   : > { %v4365_v10 = vpop.xlane.xlu1 %4364 }
 0x373   : > { %v4467_v0 = vsel %vm4458_vm1, %v4306_v5, %v4365_v10 }
 0x374   : > { %4500 = vst.msk [vmem:[%s8404_s26 + $0x40] sm:$0xff] %vm4491_vm2, %v4467_v0  ;;  %v4272_v51 = vpop.xlane.xlu0 %4271 }
 0x375   : > { %v4323_v37 = vmul.f32 0.0046296297, %v4272_v51 }
 0x376   : > { %v4429_v27 = vpop.xlane.xlu1 %4428 }
 0x377   : > { %v4483_v36 = vsel %vm4458_vm1, %v4322_v56, %v4429_v27 }
 0x378   : > { %4516 = vst.msk [vmem:[%s8404_s26 + $0xc0] sm:$0xff] %vm4491_vm2, %v4483_v36  ;;  %v4369_v59 = vpop.xlane.xlu0 %4368 }
 0x379   : > { %v4468_v26 = vsel %vm4458_vm1, %v4307_v2, %v4369_v59 }
 0x37a   : > { %4501 = vst.msk [vmem:[%s8404_s26 + $0x48] sm:$0xff] %vm4491_vm2, %v4468_v26  ;;  %v4212_v40 = vpop.xlane.xlu1 %4211 }
 0x37b   : > { %v4308_v52 = vmul.f32 0.0046296297, %v4212_v40 }
 0x37c   : > { %v4433_v38 = vpop.xlane.xlu0 %4432 }
 0x37d   : > { %v4484_v7 = vsel %vm4458_vm1, %v4323_v37, %v4433_v38 }
 0x37e   : > { %4517 = vst.msk [vmem:[%s8404_s26 + $0xc8] sm:$0xff] %vm4491_vm2, %v4484_v7  ;;  %v4276_v42 = vpop.xlane.xlu1 %4275 }
 0x37f   : > { %v4324_v3 = vmul.f32 0.0046296297, %v4276_v42 }
 0x380   : > { %v4216_v11 = vpop.xlane.xlu0 %4215 }
 0x381   : > { %v4309_v46 = vmul.f32 0.0046296297, %v4216_v11 }
 0x382   : > { %v4373_v22 = vpop.xlane.xlu1 %4372 }
 0x383   : > { %v4469_v49 = vsel %vm4458_vm1, %v4308_v52, %v4373_v22 }
 0x384   : > { %v4280_v48 = vpop.xlane.xlu0 %4279  ;;  %4502 = vst.msk [vmem:[%s8404_s26 + $0x50] sm:$0xff] %vm4491_vm2, %v4469_v49 }
 0x385   : > { %v4325_v13 = vmul.f32 0.0046296297, %v4280_v48 }
 0x386   : > { %v4437_v24 = vpop.xlane.xlu1 %4436 }
 0x387   : > { %v4485_v8 = vsel %vm4458_vm1, %v4324_v3, %v4437_v24 }
 0x388   : > { %v4377_v62 = vpop.xlane.xlu0 %4376  ;;  %4518 = vst.msk [vmem:[%s8404_s26 + $0xd0] sm:$0xff] %vm4491_vm2, %v4485_v8 }
 0x389   : > { %v4470_v41 = vsel %vm4458_vm1, %v4309_v46, %v4377_v62 }
 0x38a   : > { %4503 = vst.msk [vmem:[%s8404_s26 + $0x58] sm:$0xff] %vm4491_vm2, %v4470_v41  ;;  %v4220_v1 = vpop.xlane.xlu1 %4219 }
 0x38b   : > { %v4310_v44 = vmul.f32 0.0046296297, %v4220_v1 }
 0x38c   : > { %v4441_v4 = vpop.xlane.xlu0 %4440 }
 0x38d   : > { %v4486_v9 = vsel %vm4458_vm1, %v4325_v13, %v4441_v4 }
 0x38e   : > { %4519 = vst.msk [vmem:[%s8404_s26 + $0xd8] sm:$0xff] %vm4491_vm2, %v4486_v9  ;;  %v4284_v30 = vpop.xlane.xlu1 %4283 }
 0x38f   : > { %v4326_v61 = vmul.f32 0.0046296297, %v4284_v30 }
 0x390   : > { %v4224_v20 = vpop.xlane.xlu0 %4223 }
 0x391   : > { %v4311_v17 = vmul.f32 0.0046296297, %v4224_v20 }
 0x392   : > { %v4381_v63 = vpop.xlane.xlu1 %4380 }
 0x393   : > { %v4471_v6 = vsel %vm4458_vm1, %v4310_v44, %v4381_v63 }
 0x394   : > { %v4288_v55 = vpop.xlane.xlu0 %4287  ;;  %4504 = vst.msk [vmem:[%s8404_s26 + $0x60] sm:$0xff] %vm4491_vm2, %v4471_v6 }
 0x395   : > { %v4327_v33 = vmul.f32 0.0046296297, %v4288_v55 }
 0x396   : > { %v4445_v54 = vpop.xlane.xlu1 %4444 }
 0x397   : > { %v4487_v15 = vsel %vm4458_vm1, %v4326_v61, %v4445_v54 }
 0x398   : > { %v4385_v53 = vpop.xlane.xlu0 %4384  ;;  %4520 = vst.msk [vmem:[%s8404_s26 + $0xe0] sm:$0xff] %vm4491_vm2, %v4487_v15 }
 0x399   : > { %v4472_v32 = vsel %vm4458_vm1, %v4311_v17, %v4385_v53 }
 0x39a   : > { %4505 = vst.msk [vmem:[%s8404_s26 + $0x68] sm:$0xff] %vm4491_vm2, %v4472_v32 }
 0x39c   : > { %v4449_v19 = vpop.xlane.xlu0 %4448 }
 0x39d   : > { %v4488_v35 = vsel %vm4458_vm1, %v4327_v33, %v4449_v19 }
 0x39e   : > { %4521 = vst.msk [vmem:[%s8404_s26 + $0xe8] sm:$0xff] %vm4491_vm2, %v4488_v35 }
 0x3a9   : > { %v4228_v29 = vpop.xlane.xlu1 %4227 }
 0x3aa   : > { %v4312_v47 = vmul.f32 0.0046296297, %v4228_v29 }
 0x3ab   : > { %v4232_v12 = vpop.xlane.xlu0 %4231 }
 0x3ac   : > { %v4313_v31 = vmul.f32 0.0046296297, %v4232_v12 }
 0x3ad   : > { %v4292_v18 = vpop.xlane.xlu1 %4291 }
 0x3ae   : > { %v4328_v28 = vmul.f32 0.0046296297, %v4292_v18 }
 0x3af   : > { %v4296_v23 = vpop.xlane.xlu0 %4295 }
 0x3b0   : > { %v4329_v21 = vmul.f32 0.0046296297, %v4296_v23 }
 0x3b1   : > { %v4389_v34 = vpop.xlane.xlu1 %4388 }
 0x3b2   : > { %v4473_v14 = vsel %vm4458_vm1, %v4312_v47, %v4389_v34 }
 0x3b3   : > { %4506 = vst.msk [vmem:[%s8404_s26 + $0x70] sm:$0xff] %vm4491_vm2, %v4473_v14  ;;  %v4393_v50 = vpop.xlane.xlu0 %4392 }
 0x3b4   : > { %v4474_v43 = vsel %vm4458_vm1, %v4313_v31, %v4393_v50 }
 0x3b5   : > { %4507 = vst.msk [vmem:[%s8404_s26 + $0x78] sm:$0xff] %vm4491_vm2, %v4474_v43  ;;  %v4453_v57 = vpop.xlane.xlu1 %4452 }
 0x3b6   : > { %v4489_v16 = vsel %vm4458_vm1, %v4328_v28, %v4453_v57 }
 0x3b7   : > { %4522 = vst.msk [vmem:[%s8404_s26 + $0xf0] sm:$0xff] %vm4491_vm2, %v4489_v16  ;;  %v4457_v39 = vpop.xlane.xlu0 %4456 }
 0x3b8   : > { %v4490_v58 = vsel %vm4458_vm1, %v4329_v21, %v4457_v39 }
 0x3b9   : > { %4523 = vst.msk [vmem:[%s8404_s26 + $0xf8] sm:$0xff] %vm4491_vm2, %v4490_v58 }
 0x3ba PF: > { %s14_s12 = sadd.s32 1, %s5562_s12  }
 0x3bb   : > { %p11_p4 = scmp.ge.s32.totalorder %s14_s12, 4  }
 0x3bd   :  { %13 = sbr.rel (!%p11_p4) target bundleno = 1 (0x1), region = 72 }

// kernel: sep_conv2d_forward.7
= control target key start
LH: loop header
LB: loop body
LE: loop exit
PB: predicated region body
PF: predicated region fallthrough
CT: control target
= control target key end

     0   :  { %s1204_s18 = smov 0   ;;  %s1437_s0 = inlined_call_operand.vmem [shape: bf16[512,72], index: 0, kind: input, shape index: {}]   ;;  %s1438_s1 = inlined_call_operand.vmem [shape: bf16[72,8], index: 1, kind: input, shape index: {}]   ;;  %s1439_s2 = inlined_call_operand.vmem [shape: f32[1,8], index: 2, kind: input, shape index: {}]   ;;  %s1440_s3 = inlined_call_operand.vmem [shape: bf16[8,8], index: 3, kind: input, shape index: {}]   ;;  %s1441_s4 = inlined_call_operand.vmem [shape: f32[1,8], index: 4, kind: input, shape index: {}]   ;;  %s1442_s5 = inlined_call_operand.vmem [shape: f32[512,8], index: 5, kind: output, shape index: {}]  }
   0x1 LB: > { %s955_s19 = sadd.s32 4294967295, %s1172_s18   ;;  %p959_p0 = scmp.ge.s32.totalorder %s1172_s18, 1  ;;  %s1172_s18 = sphi %s1204_s18, %s15_s18  }
   0x2   : > { %p188_p1 = scmp.lt.s32.totalorder %s1172_s18, 3 }
   0x4   : > { %p189_p2 = pnand %p959_p0, %p188_p1 }
   0x5   : > { %v1145_v0 = vld [vmem:[%s1438_s1] sm:$0xff] (!%p189_p2)   ;;  %v1146_v1 = vld [vmem:[%s1438_s1 + $0x8] sm:$0xff] (!%p189_p2)   ;;  %s960_s24 = sshll.u32 (!%p189_p2), %s955_s19, 5  ;;  %v1147_v2 = vld [vmem:[%s1438_s1 + $0x10] sm:$0xff] (!%p189_p2)   ;;  %vm384_vm0 = vcmask (!%p189_p2), 588800   ;;  %vm433_vm1 = vcmask (!%p189_p2), 1043456  }
   0x6   : > { %192 = sbr.rel (%p189_p2) target bundleno = 522 (0x20a), region = 40  ;;  %1059 = vmatprep.subr.bf16.mxu0 (!%p189_p2), %v1145_v0  ;;  %p217_p3 = scmp.lt.s32.totalorder (!%p189_p2), %s960_s24, 63  ;;  %v1148_v3 = vld [vmem:[%s1438_s1 + $0x18] sm:$0xff] (!%p189_p2)   ;;  %v1149_v5 = vld [vmem:[%s1438_s1 + $0x20] ss:$0 sps:$4 sm:$0xff] (!%p189_p2)   ;;  %vm654_vm2 = vcmask (!%p189_p2), 64512  }
   0x7   : > { %1060 = vmatpush3.bf16.msra.mxu0 (!%p189_p2), %v1145_v0  ;;  %v435_v6 = vsel (!%p189_p2), %vm433_vm1, %v1149_v5, 0  ;;  %v646_v22 = vld [vmem:[%s1440_s3] sm:$0xf] (!%p189_p2) }
   0x8   : > { %1061 = vmatprep.subr.bf16.mxu0 (!%p189_p2), %v1146_v1  ;;  %1136 = vmatprep.subr.msk.bf16.mxu1 (!%p189_p2), %vm433_vm1, %v646_v22  ;;  %v704_v23 = vsel (!%p189_p2), %vm433_vm1, %v646_v22, 0  ;;  %v1277_v24 = vld [vmem:[%s1439_s2] ss:$0 sm:$0xff] (!%p189_p2) }
   0x9   : > { %1102 = vmatpush3.bf16.msra.mxu1 (!%p189_p2), %v704_v23 }
   0xb   : > { %1062 = vmatpush3.bf16.msra.mxu0 (!%p189_p2), %v1146_v1 }
   0xc   : > { %1063 = vmatprep.subr.bf16.mxu0 (!%p189_p2), %v1147_v2 }
   0xd   : > { %s1444_s24 = smov (!%p217_p3, %s960_s24), 63 }
   0xe   : > { %s961_s27 = sshll.u32 %s1444_s24, 2  ;;  %s963_s14 = sshll.u32 %s1444_s24, 3 }
   0xf   : > { %s1230_s7 = scalar_lea.vmem %s1437_s0, %s961_s27  ;;  %1064 = vmatpush3.bf16.msra.mxu0 %v1147_v2  ;;  %s1336_s20 = scalar_lea.vmem %s1442_s5, %s963_s14 }
  0x10   : > { %v1150_v4 = vld [vmem:[%s1230_s7] sm:$0xff]   ;;  %1065 = vmatprep.subr.bf16.mxu0 %v1148_v3  ;;  %v1151_v7 = vld [vmem:[%s1230_s7 + $0x8] sm:$0xff]   ;;  %v1152_v8 = vld [vmem:[%s1230_s7 + $0x10] sm:$0xff]  }
  0x11   : > { %1069 = vmatprep.mubr.msk.bf16.mxu0 %vm384_vm0, %v1150_v4  ;;  %v1153_v9 = vld [vmem:[%s1230_s7 + $0x18] sm:$0xff]   ;;  %v1154_v10 = vld [vmem:[%s1230_s7 + $0x20] sm:$0xff]   ;;  %v1155_v11 = vld [vmem:[%s1230_s7 + $0x28] sm:$0xff]  }
  0x12   : > { %v1156_v12 = vld [vmem:[%s1230_s7 + $0x30] sm:$0xff]   ;;  %v1157_v13 = vld [vmem:[%s1230_s7 + $0x38] sm:$0xff]   ;;  %v1158_v14 = vld [vmem:[%s1230_s7 + $0x40] sm:$0xff]  }
  0x13   : > { %1066 = vmatpush3.bf16.msra.mxu0 %v1148_v3  ;;  %v1159_v15 = vld [vmem:[%s1230_s7 + $0x48] sm:$0xff]   ;;  %v1160_v16 = vld [vmem:[%s1230_s7 + $0x50] sm:$0xff]   ;;  %v1161_v17 = vld [vmem:[%s1230_s7 + $0x58] sm:$0xff]  }
  0x14   : > { %1135 = vmatprep.subr.msk.bf16.mxu0 %vm433_vm1, %v1149_v5  ;;  %v1162_v18 = vld [vmem:[%s1230_s7 + $0x60] sm:$0xff]   ;;  %v1163_v19 = vld [vmem:[%s1230_s7 + $0x68] sm:$0xff]   ;;  %v1164_v20 = vld [vmem:[%s1230_s7 + $0x70] sm:$0xff]  }
  0x15   : > { %v1165_v21 = vld [vmem:[%s1230_s7 + $0x78] sm:$0xff]  }
  0x17   : > { %1068 = vmatpush3.bf16.msra.mxu0 %v435_v6 }
  0x1a   : > { %1070 = vmatmul.mubr.msk.bf16.vlgmr.msra.gmra.mrb[0].mxu0 %vm384_vm0, %v1151_v7 }
  0x1b   : > { %1073 = vmatprep.mubr.msk.bf16.mxu0 %vm384_vm0, %v1152_v8 }
  0x22   : > { %1074 = vmatmul.mubr.msk.bf16.gmra.mrb[4].mxu0 %vm384_vm0, %v1153_v9 }
  0x23   : > { %1077 = vmatprep.mubr.msk.bf16.mxu0 %vm384_vm0, %v1154_v10 }
  0x2a   : > { %1078 = vmatmul.mubr.msk.bf16.gmra.mrb[8].mxu0 %vm384_vm0, %v1155_v11 }
  0x2b   : > { %1081 = vmatprep.mubr.msk.bf16.mxu0 %vm384_vm0, %v1156_v12 }
  0x32   : > { %1082 = vmatmul.mubr.msk.bf16.gmra.mrb[12].mxu0 %vm384_vm0, %v1157_v13 }
  0x33   : > { %1085 = vmatprep.mubr.msk.bf16.mxu0 %vm384_vm0, %v1158_v14 }
  0x3a   : > { %1086 = vmatmul.mubr.msk.bf16.gmra.mrb[16].mxu0 %vm384_vm0, %v1159_v15 }
  0x3b   : > { %1089 = vmatprep.mubr.msk.bf16.mxu0 %vm384_vm0, %v1160_v16 }
  0x42   : > { %1090 = vmatmul.mubr.msk.bf16.gmra.mrb[20].mxu0 %vm384_vm0, %v1161_v17 }
  0x43   : > { %1093 = vmatprep.mubr.msk.bf16.mxu0 %vm384_vm0, %v1162_v18 }
  0x4a   : > { %1094 = vmatmul.mubr.msk.bf16.gmra.mrb[24].mxu0 %vm384_vm0, %v1163_v19 }
  0x4b   : > { %1097 = vmatprep.mubr.msk.bf16.mxu0 %vm384_vm0, %v1164_v20 }
  0x52   : > { %1098 = vmatmul.mubr.msk.bf16.gmra.mrb[28].mxu0 %vm384_vm0, %v1165_v21 }
  0xed   : > { %v1071_v25 = vpop.f32.mrb[0].mxu0 }
  0xee   : > { %v480_v26 = vadd.f32 %v1071_v25, %v1277_v24  ;;  %v471_v27 = vpop.f32.mrb[1].mxu0 }
  0xef   : > { %v472_v28 = vadd.f32 %v1277_v24, %v471_v27  ;;  %v1072_v29 = vpop.f32.mrb[2].mxu0 }
  0xf0   : > { %v483_v30 = vadd.f32 %v1072_v29, %v1277_v24  ;;  %v474_v31 = vpop.f32.mrb[3].mxu0  ;;  %v600_v33 = vmax.f32 %v480_v26, 0.0 }
  0xf1   : > { %v475_v32 = vadd.f32 %v1277_v24, %v474_v31  ;;  %v598_v35 = vmax.f32 %v472_v28, 0.0 }
  0xf2   : > { %v601_v34 = vmax.f32 %v483_v30, 0.0 }
  0xf3   : > { %v599_v36 = vmax.f32 %v475_v32, 0.0 }
  0xf4   : > { %v631_v37 = vpack.c.bf16 %v601_v34, %v600_v33 }
  0xf5   : > { %v1075_v38 = vpop.f32.mrb[4].mxu0  ;;  %v630_v39 = vpack.c.bf16 %v599_v36, %v598_v35 }
  0xf6   : > { %v496_v40 = vadd.f32 %v1075_v38, %v1277_v24  ;;  %v487_v41 = vpop.f32.mrb[5].mxu0 }
  0xf7   : > { %v488_v42 = vadd.f32 %v1277_v24, %v487_v41  ;;  %v1076_v43 = vpop.f32.mrb[6].mxu0  ;;  %1103 = vmatprep.mubr.msk.bf16.mxu1 %vm654_vm2, %v630_v39 }
  0xf8   : > { %v499_v44 = vadd.f32 %v1076_v43, %v1277_v24  ;;  %v490_v45 = vpop.f32.mrb[7].mxu0  ;;  %1104 = vmatmul.mubr.msk.bf16.vlgmr.msra.gmra.mrb[0].mxu1 %vm654_vm2, %v631_v37  ;;  %v604_v47 = vmax.f32 %v496_v40, 0.0 }
  0xf9   : > { %v491_v46 = vadd.f32 %v1277_v24, %v490_v45  ;;  %v602_v49 = vmax.f32 %v488_v42, 0.0 }
  0xfa   : > { %v605_v48 = vmax.f32 %v499_v44, 0.0 }
  0xfb   : > { %v603_v50 = vmax.f32 %v491_v46, 0.0 }
  0xfc   : > { %v633_v51 = vpack.c.bf16 %v605_v48, %v604_v47 }
  0xfd   : > { %v632_v52 = vpack.c.bf16 %v603_v50, %v602_v49  ;;  %v1079_v53 = vpop.f32.mrb[8].mxu0 }
  0xfe   : > { %v512_v54 = vadd.f32 %v1079_v53, %v1277_v24  ;;  %v503_v55 = vpop.f32.mrb[9].mxu0 }
  0xff   : > { %v504_v56 = vadd.f32 %v1277_v24, %v503_v55  ;;  %v1080_v57 = vpop.f32.mrb[10].mxu0  ;;  %1107 = vmatprep.mubr.msk.bf16.mxu1 %vm654_vm2, %v632_v52 }
 0x100   : > { %v515_v58 = vadd.f32 %v1080_v57, %v1277_v24  ;;  %v506_v59 = vpop.f32.mrb[11].mxu0  ;;  %1108 = vmatmul.mubr.msk.bf16.gmra.mrb[4].mxu1 %vm654_vm2, %v633_v51  ;;  %v608_v61 = vmax.f32 %v512_v54, 0.0 }
 0x101   : > { %v507_v60 = vadd.f32 %v1277_v24, %v506_v59  ;;  %v606_v63 = vmax.f32 %v504_v56, 0.0 }
 0x102   : > { %v609_v62 = vmax.f32 %v515_v58, 0.0 }
 0x103   : > { %v607_v0 = vmax.f32 %v507_v60, 0.0 }
 0x104   : > { %v635_v1 = vpack.c.bf16 %v609_v62, %v608_v61 }
 0x105   : > { %v634_v2 = vpack.c.bf16 %v607_v0, %v606_v63  ;;  %v1083_v3 = vpop.f32.mrb[12].mxu0 }
 0x106   : > { %v528_v4 = vadd.f32 %v1083_v3, %v1277_v24  ;;  %v519_v5 = vpop.f32.mrb[13].mxu0 }
 0x107   : > { %v520_v6 = vadd.f32 %v1277_v24, %v519_v5  ;;  %v1084_v7 = vpop.f32.mrb[14].mxu0  ;;  %1111 = vmatprep.mubr.msk.bf16.mxu1 %vm654_vm2, %v634_v2 }
 0x108   : > { %v531_v8 = vadd.f32 %v1084_v7, %v1277_v24  ;;  %v522_v9 = vpop.f32.mrb[15].mxu0  ;;  %1112 = vmatmul.mubr.msk.bf16.gmra.mrb[8].mxu1 %vm654_vm2, %v635_v1  ;;  %v612_v11 = vmax.f32 %v528_v4, 0.0 }
 0x109   : > { %v523_v10 = vadd.f32 %v1277_v24, %v522_v9  ;;  %v610_v13 = vmax.f32 %v520_v6, 0.0 }
 0x10a   : > { %v613_v12 = vmax.f32 %v531_v8, 0.0 }
 0x10b   : > { %v611_v14 = vmax.f32 %v523_v10, 0.0  ;;  %v1331_v10 = vld [vmem:[%s1441_s4] ss:$0 sm:$0xff] }
 0x10c   : > { %v637_v15 = vpack.c.bf16 %v613_v12, %v612_v11 }
 0x10d   : > { %v636_v16 = vpack.c.bf16 %v611_v14, %v610_v13  ;;  %v1087_v17 = vpop.f32.mrb[16].mxu0 }
 0x10e   : > { %v544_v18 = vadd.f32 %v1087_v17, %v1277_v24  ;;  %v535_v19 = vpop.f32.mrb[17].mxu0 }
 0x10f   : > { %v536_v20 = vadd.f32 %v1277_v24, %v535_v19  ;;  %v1088_v21 = vpop.f32.mrb[18].mxu0  ;;  %1115 = vmatprep.mubr.msk.bf16.mxu1 %vm654_vm2, %v636_v16 }
 0x110   : > { %v547_v22 = vadd.f32 %v1088_v21, %v1277_v24  ;;  %v538_v23 = vpop.f32.mrb[19].mxu0  ;;  %1116 = vmatmul.mubr.msk.bf16.gmra.mrb[12].mxu1 %vm654_vm2, %v637_v15  ;;  %v616_v26 = vmax.f32 %v544_v18, 0.0 }
 0x111   : > { %v539_v25 = vadd.f32 %v1277_v24, %v538_v23  ;;  %v614_v28 = vmax.f32 %v536_v20, 0.0 }
 0x112   : > { %v617_v27 = vmax.f32 %v547_v22, 0.0 }
 0x113   : > { %v615_v29 = vmax.f32 %v539_v25, 0.0 }
 0x114   : > { %v639_v30 = vpack.c.bf16 %v617_v27, %v616_v26 }
 0x115   : > { %v638_v31 = vpack.c.bf16 %v615_v29, %v614_v28  ;;  %v1091_v32 = vpop.f32.mrb[20].mxu0 }
 0x116   : > { %v560_v33 = vadd.f32 %v1091_v32, %v1277_v24  ;;  %v551_v34 = vpop.f32.mrb[21].mxu0 }
 0x117   : > { %v552_v35 = vadd.f32 %v1277_v24, %v551_v34  ;;  %v1092_v36 = vpop.f32.mrb[22].mxu0  ;;  %1119 = vmatprep.mubr.msk.bf16.mxu1 %vm654_vm2, %v638_v31 }
 0x118   : > { %v563_v37 = vadd.f32 %v1092_v36, %v1277_v24  ;;  %v554_v38 = vpop.f32.mrb[23].mxu0  ;;  %1120 = vmatmul.mubr.msk.bf16.gmra.mrb[16].mxu1 %vm654_vm2, %v639_v30  ;;  %v620_v40 = vmax.f32 %v560_v33, 0.0 }
 0x119   : > { %v555_v39 = vadd.f32 %v1277_v24, %v554_v38  ;;  %v618_v42 = vmax.f32 %v552_v35, 0.0 }
 0x11a   : > { %v621_v41 = vmax.f32 %v563_v37, 0.0 }
 0x11b   : > { %v619_v43 = vmax.f32 %v555_v39, 0.0 }
 0x11c   : > { %v641_v44 = vpack.c.bf16 %v621_v41, %v620_v40 }
 0x11d   : > { %v640_v45 = vpack.c.bf16 %v619_v43, %v618_v42  ;;  %v1095_v46 = vpop.f32.mrb[24].mxu0 }
 0x11e   : > { %v576_v47 = vadd.f32 %v1095_v46, %v1277_v24  ;;  %v567_v48 = vpop.f32.mrb[25].mxu0 }
 0x11f   : > { %v568_v49 = vadd.f32 %v1277_v24, %v567_v48  ;;  %v1096_v50 = vpop.f32.mrb[26].mxu0  ;;  %1123 = vmatprep.mubr.msk.bf16.mxu1 %vm654_vm2, %v640_v45 }
 0x120   : > { %v579_v51 = vadd.f32 %v1096_v50, %v1277_v24  ;;  %v570_v52 = vpop.f32.mrb[27].mxu0  ;;  %1124 = vmatmul.mubr.msk.bf16.gmra.mrb[20].mxu1 %vm654_vm2, %v641_v44  ;;  %v624_v54 = vmax.f32 %v576_v47, 0.0 }
 0x121   : > { %v571_v53 = vadd.f32 %v1277_v24, %v570_v52  ;;  %v622_v56 = vmax.f32 %v568_v49, 0.0 }
 0x122   : > { %v625_v55 = vmax.f32 %v579_v51, 0.0 }
 0x123   : > { %v623_v57 = vmax.f32 %v571_v53, 0.0 }
 0x124   : > { %v643_v58 = vpack.c.bf16 %v625_v55, %v624_v54 }
 0x125   : > { %v642_v59 = vpack.c.bf16 %v623_v57, %v622_v56  ;;  %v1099_v60 = vpop.f32.mrb[28].mxu0 }
 0x126   : > { %v592_v61 = vadd.f32 %v1099_v60, %v1277_v24  ;;  %v583_v62 = vpop.f32.mrb[29].mxu0 }
 0x127   : > { %v584_v63 = vadd.f32 %v1277_v24, %v583_v62  ;;  %v1100_v0 = vpop.f32.mrb[30].mxu0  ;;  %1127 = vmatprep.mubr.msk.bf16.mxu1 %vm654_vm2, %v642_v59 }
 0x128   : > { %v595_v1 = vadd.f32 %v1100_v0, %v1277_v24  ;;  %v586_v2 = vpop.f32.mrb[31].mxu0  ;;  %1128 = vmatmul.mubr.msk.bf16.gmra.mrb[24].mxu1 %vm654_vm2, %v643_v58  ;;  %v628_v4 = vmax.f32 %v592_v61, 0.0 }
 0x129   : > { %v587_v3 = vadd.f32 %v1277_v24, %v586_v2  ;;  %v626_v6 = vmax.f32 %v584_v63, 0.0 }
 0x12a   : > { %v629_v5 = vmax.f32 %v595_v1, 0.0 }
 0x12b   : > { %v627_v7 = vmax.f32 %v587_v3, 0.0 }
 0x12c   : > { %v645_v8 = vpack.c.bf16 %v629_v5, %v628_v4 }
 0x12d   : > { %v644_v9 = vpack.c.bf16 %v627_v7, %v626_v6 }
 0x12f   : > { %1131 = vmatprep.mubr.msk.bf16.mxu1 %vm654_vm2, %v644_v9 }
 0x130   : > { %1132 = vmatmul.mubr.msk.bf16.gmra.mrb[28].mxu1 %vm654_vm2, %v645_v8 }
 0x1cb   : > { %v1105_v24 = vpop.f32.mrb[0].mxu1 }
 0x1cc   : > { %v749_v11 = vadd.f32 %v1105_v24, %v1331_v10  ;;  %v740_v12 = vpop.f32.mrb[1].mxu1 }
 0x1cd   : > { %v741_v13 = vadd.f32 %v1331_v10, %v740_v12  ;;  %v1106_v14 = vpop.f32.mrb[2].mxu1 }
 0x1ce   : > { %869 = vst.msk [vmem:[%s1336_s20 + $0x10] sm:$0xff] %vm654_vm2, %v749_v11  ;;  %v752_v15 = vadd.f32 %v1106_v14, %v1331_v10  ;;  %v743_v16 = vpop.f32.mrb[3].mxu1 }
 0x1cf   : > { %867 = vst.msk [vmem:[%s1336_s20] sm:$0xff] %vm654_vm2, %v741_v13  ;;  %v744_v17 = vadd.f32 %v1331_v10, %v743_v16 }
 0x1d0   : > { %870 = vst.msk [vmem:[%s1336_s20 + $0x18] sm:$0xff] %vm654_vm2, %v752_v15 }
 0x1d1   : > { %868 = vst.msk [vmem:[%s1336_s20 + $0x8] sm:$0xff] %vm654_vm2, %v744_v17 }
 0x1d3   : > { %v1109_v18 = vpop.f32.mrb[4].mxu1 }
 0x1d4   : > { %v765_v19 = vadd.f32 %v1109_v18, %v1331_v10  ;;  %v756_v20 = vpop.f32.mrb[5].mxu1 }
 0x1d5   : > { %v757_v21 = vadd.f32 %v1331_v10, %v756_v20  ;;  %v1110_v22 = vpop.f32.mrb[6].mxu1 }
 0x1d6   : > { %873 = vst.msk [vmem:[%s1336_s20 + $0x30] sm:$0xff] %vm654_vm2, %v765_v19  ;;  %v768_v23 = vadd.f32 %v1110_v22, %v1331_v10  ;;  %v759_v25 = vpop.f32.mrb[7].mxu1 }
 0x1d7   : > { %871 = vst.msk [vmem:[%s1336_s20 + $0x20] sm:$0xff] %vm654_vm2, %v757_v21  ;;  %v760_v26 = vadd.f32 %v1331_v10, %v759_v25 }
 0x1d8   : > { %874 = vst.msk [vmem:[%s1336_s20 + $0x38] sm:$0xff] %vm654_vm2, %v768_v23 }
 0x1d9   : > { %872 = vst.msk [vmem:[%s1336_s20 + $0x28] sm:$0xff] %vm654_vm2, %v760_v26 }
 0x1db   : > { %v1113_v27 = vpop.f32.mrb[8].mxu1 }
 0x1dc   : > { %v781_v28 = vadd.f32 %v1113_v27, %v1331_v10  ;;  %v772_v29 = vpop.f32.mrb[9].mxu1 }
 0x1dd   : > { %v773_v30 = vadd.f32 %v1331_v10, %v772_v29  ;;  %v1114_v31 = vpop.f32.mrb[10].mxu1 }
 0x1de   : > { %877 = vst.msk [vmem:[%s1336_s20 + $0x50] sm:$0xff] %vm654_vm2, %v781_v28  ;;  %v784_v32 = vadd.f32 %v1114_v31, %v1331_v10  ;;  %v775_v33 = vpop.f32.mrb[11].mxu1 }
 0x1df   : > { %875 = vst.msk [vmem:[%s1336_s20 + $0x40] sm:$0xff] %vm654_vm2, %v773_v30  ;;  %v776_v34 = vadd.f32 %v1331_v10, %v775_v33 }
 0x1e0   : > { %878 = vst.msk [vmem:[%s1336_s20 + $0x58] sm:$0xff] %vm654_vm2, %v784_v32 }
 0x1e1   : > { %876 = vst.msk [vmem:[%s1336_s20 + $0x48] sm:$0xff] %vm654_vm2, %v776_v34 }
 0x1e3   : > { %v1117_v35 = vpop.f32.mrb[12].mxu1 }
 0x1e4   : > { %v797_v36 = vadd.f32 %v1117_v35, %v1331_v10  ;;  %v788_v37 = vpop.f32.mrb[13].mxu1 }
 0x1e5   : > { %v789_v38 = vadd.f32 %v1331_v10, %v788_v37  ;;  %v1118_v39 = vpop.f32.mrb[14].mxu1 }
 0x1e6   : > { %881 = vst.msk [vmem:[%s1336_s20 + $0x70] sm:$0xff] %vm654_vm2, %v797_v36  ;;  %v800_v40 = vadd.f32 %v1118_v39, %v1331_v10  ;;  %v791_v41 = vpop.f32.mrb[15].mxu1 }
 0x1e7   : > { %879 = vst.msk [vmem:[%s1336_s20 + $0x60] sm:$0xff] %vm654_vm2, %v789_v38  ;;  %v792_v42 = vadd.f32 %v1331_v10, %v791_v41 }
 0x1e8   : > { %882 = vst.msk [vmem:[%s1336_s20 + $0x78] sm:$0xff] %vm654_vm2, %v800_v40 }
 0x1e9   : > { %880 = vst.msk [vmem:[%s1336_s20 + $0x68] sm:$0xff] %vm654_vm2, %v792_v42 }
 0x1eb   : > { %v1121_v43 = vpop.f32.mrb[16].mxu1 }
 0x1ec   : > { %v813_v44 = vadd.f32 %v1121_v43, %v1331_v10  ;;  %v804_v45 = vpop.f32.mrb[17].mxu1 }
 0x1ed   : > { %v805_v46 = vadd.f32 %v1331_v10, %v804_v45  ;;  %v1122_v47 = vpop.f32.mrb[18].mxu1 }
 0x1ee   : > { %885 = vst.msk [vmem:[%s1336_s20 + $0x90] sm:$0xff] %vm654_vm2, %v813_v44  ;;  %v816_v48 = vadd.f32 %v1122_v47, %v1331_v10  ;;  %v807_v49 = vpop.f32.mrb[19].mxu1 }
 0x1ef   : > { %883 = vst.msk [vmem:[%s1336_s20 + $0x80] sm:$0xff] %vm654_vm2, %v805_v46  ;;  %v808_v50 = vadd.f32 %v1331_v10, %v807_v49 }
 0x1f0   : > { %886 = vst.msk [vmem:[%s1336_s20 + $0x98] sm:$0xff] %vm654_vm2, %v816_v48 }
 0x1f1   : > { %884 = vst.msk [vmem:[%s1336_s20 + $0x88] sm:$0xff] %vm654_vm2, %v808_v50 }
 0x1f3   : > { %v1125_v51 = vpop.f32.mrb[20].mxu1 }
 0x1f4   : > { %v829_v52 = vadd.f32 %v1125_v51, %v1331_v10  ;;  %v820_v53 = vpop.f32.mrb[21].mxu1 }
 0x1f5   : > { %v821_v54 = vadd.f32 %v1331_v10, %v820_v53  ;;  %v1126_v55 = vpop.f32.mrb[22].mxu1 }
 0x1f6   : > { %889 = vst.msk [vmem:[%s1336_s20 + $0xb0] sm:$0xff] %vm654_vm2, %v829_v52  ;;  %v832_v56 = vadd.f32 %v1126_v55, %v1331_v10  ;;  %v823_v57 = vpop.f32.mrb[23].mxu1 }
 0x1f7   : > { %887 = vst.msk [vmem:[%s1336_s20 + $0xa0] sm:$0xff] %vm654_vm2, %v821_v54  ;;  %v824_v58 = vadd.f32 %v1331_v10, %v823_v57 }
 0x1f8   : > { %890 = vst.msk [vmem:[%s1336_s20 + $0xb8] sm:$0xff] %vm654_vm2, %v832_v56 }
 0x1f9   : > { %888 = vst.msk [vmem:[%s1336_s20 + $0xa8] sm:$0xff] %vm654_vm2, %v824_v58 }
 0x1fb   : > { %v1129_v59 = vpop.f32.mrb[24].mxu1 }
 0x1fc   : > { %v845_v60 = vadd.f32 %v1129_v59, %v1331_v10  ;;  %v836_v61 = vpop.f32.mrb[25].mxu1 }
 0x1fd   : > { %v837_v62 = vadd.f32 %v1331_v10, %v836_v61  ;;  %v1130_v63 = vpop.f32.mrb[26].mxu1 }
 0x1fe   : > { %893 = vst.msk [vmem:[%s1336_s20 + $0xd0] sm:$0xff] %vm654_vm2, %v845_v60  ;;  %v848_v0 = vadd.f32 %v1130_v63, %v1331_v10  ;;  %v839_v1 = vpop.f32.mrb[27].mxu1 }
 0x1ff   : > { %891 = vst.msk [vmem:[%s1336_s20 + $0xc0] sm:$0xff] %vm654_vm2, %v837_v62  ;;  %v840_v2 = vadd.f32 %v1331_v10, %v839_v1 }
 0x200   : > { %894 = vst.msk [vmem:[%s1336_s20 + $0xd8] sm:$0xff] %vm654_vm2, %v848_v0 }
 0x201   : > { %892 = vst.msk [vmem:[%s1336_s20 + $0xc8] sm:$0xff] %vm654_vm2, %v840_v2 }
 0x203   : > { %v1133_v3 = vpop.f32.mrb[28].mxu1 }
 0x204   : > { %v861_v4 = vadd.f32 %v1133_v3, %v1331_v10  ;;  %v852_v5 = vpop.f32.mrb[29].mxu1 }
 0x205   : > { %v853_v6 = vadd.f32 %v1331_v10, %v852_v5  ;;  %v1134_v7 = vpop.f32.mrb[30].mxu1 }
 0x206   : > { %897 = vst.msk [vmem:[%s1336_s20 + $0xf0] sm:$0xff] %vm654_vm2, %v861_v4  ;;  %v864_v8 = vadd.f32 %v1134_v7, %v1331_v10  ;;  %v855_v9 = vpop.f32.mrb[31].mxu1 }
 0x207   : > { %895 = vst.msk [vmem:[%s1336_s20 + $0xe0] sm:$0xff] %vm654_vm2, %v853_v6  ;;  %v856_v24 = vadd.f32 %v1331_v10, %v855_v9 }
 0x208   : > { %898 = vst.msk [vmem:[%s1336_s20 + $0xf8] sm:$0xff] %vm654_vm2, %v864_v8 }
 0x209   : > { %896 = vst.msk [vmem:[%s1336_s20 + $0xe8] sm:$0xff] %vm654_vm2, %v856_v24 }
 0x20a PF: > { %s15_s18 = sadd.s32 1, %s1172_s18  }
 0x20b   : > { %p12_p4 = scmp.ge.s32.totalorder %s15_s18, 4  }
 0x20d   :  { %14 = sbr.rel (!%p12_p4) target bundleno = 1 (0x1), region = 70 }

</bundles_post_ra>
